<compile_context>
chip_gen: v6e
topology: v6e:2x2x1
jax: 0.10.0
libtpu: 0.0.40
codegen_flags: <defaults>
</compile_context>

<pallas_src>
import functools

import jax
import jax.numpy as jnp
from jax.experimental import pallas as pl
from jax.experimental.pallas import tpu as pltpu


# ------------------------------- fused kernel --------------------------------

def _mtgode_fused_kernel(x_ref, ws_ref, bs_ref, wincep_ref, bincep_ref,
                         mkron_ref, bkron_ref, w0_ref, b0_ref, w1_ref, b1_ref,
                         w2_ref, b2_ref, o_ref, *, dils, step1, eps):
    """Whole MTGODE forward for a block of `bb` batch elements.

    Carried state x lives in the lane-dense flat layout (bb, t, N*C); only the
    live (shrinking) trailing time window is carried across Euler steps, which
    is exact because only that window is ever read downstream.
    """
    bb, t0, nci = x_ref.shape
    nc = bs_ref.shape[1]                       # N * conv_dim (lane width, 256)
    bf16 = jnp.bfloat16

    # ---- start 1x1 conv fused into the prologue (block-diag, K = N*in_dim) ----
    xin = x_ref[...].reshape(bb * t0, nci).astype(bf16)
    x = (jnp.dot(xin, ws_ref[...], preferred_element_type=jnp.float32)
         + bs_ref[...]).reshape(bb, t0, nc)    # f32 carried state

    bincep = bincep_ref[...]                   # (1, 2*N*C)
    bkron = bkron_ref[...]                     # (1, N*C)

    # ---- outer ODE: statically-unrolled fixed-step Euler (nfe1 steps) ----
    t_cur = t0
    for dil in dils:
        t_out = t_cur - 6 * dil
        rows = bb * t_out
        xb = x.astype(bf16)                    # cast once per step for the MXU

        # Dilated inception (filter & gate branches fused in one weight) as 7
        # accumulated lane-dense (rows, N*C) x (N*C, 2*N*C) matmuls,
        # initialized from the first tap's dot (no zeros + add chain).
        # TODO(synk): a single im2col matmul (lane-concat of the 7 taps to
        # (rows, 7*N*C)) would fuse these 7 MXU ops into one.
        y = jnp.dot(xb[:, 0:t_out, :].reshape(rows, nc), wincep_ref[0],
                    preferred_element_type=jnp.float32)
        for m in range(1, 7):
            tap = xb[:, dil * m: dil * m + t_out, :].reshape(rows, nc)
            y = y + jnp.dot(tap, wincep_ref[m],
                            preferred_element_type=jnp.float32)
        y = y + bincep
        g = jnp.tanh(y[:, :nc]) * jax.nn.sigmoid(y[:, nc:])   # (rows, N*C)

        # CGP (both adjacency directions) + per-direction 1x1 mlp + sum,
        # folded into ONE Kronecker-operator matmul (lane-dense, 256 wide).
        proj = jnp.dot(g.astype(bf16), mkron_ref[...],
                       preferred_element_type=jnp.float32) + bkron

        # Residual Euler update on the live trailing time window.
        x = x[:, t_cur - t_out:, :] + step1 * proj.reshape(bb, t_out, nc)
        t_cur = t_out

    # ---- tail: LayerNorm over (C, N, 1) then end convs (relu, relu, linear).
    # Reference uses F.layer_norm(..., weight=None, bias=None): no affine.
    xl = x[:, t_cur - 1: t_cur, :].reshape(bb, nc)
    mean = jnp.mean(xl, axis=1, keepdims=True)
    var = jnp.mean((xl - mean) ** 2, axis=1, keepdims=True)
    xn = (xl - mean) * jax.lax.rsqrt(var + eps)

    h = jnp.dot(xn.astype(bf16), w0_ref[...],
                preferred_element_type=jnp.float32) + b0_ref[...]
    h = jnp.maximum(h, 0.0)
    h = jnp.dot(h.astype(bf16), w1_ref[...],
                preferred_element_type=jnp.float32) + b1_ref[...]
    h = jnp.maximum(h, 0.0)
    out = jnp.dot(h.astype(bf16), w2_ref[...],
                  preferred_element_type=jnp.float32) + b2_ref[...]
    o_ref[...] = out.reshape(o_ref.shape).astype(o_ref.dtype)


# --------------------------------- wrapper ------------------------------------

def _tensorcores_per_chip():
    try:
        kind = jax.devices()[0].device_kind.lower()
    except Exception:
        return 1
    return 2 if ("v7" in kind or "tpu7" in kind) else 1


def build_propagator(adj, nfe, beta):
    """CGP propagator: ((1-beta) I + beta * D^-1/2 (A+I) D^-1/2)^nfe.

    The inner-ODE Euler recurrence is linear, so it folds into a single N x N
    matrix applied once inside the kernel.
    TODO(synk): CGP's source was not provided with the module; this follows
    the MTGODE reference (dh/dt = 0.5*alpha*(A_norm h - h), fixed-step Euler).
    """
    n = adj.shape[0]
    eye = jnp.eye(n, dtype=jnp.float32)
    adj_hat = adj + eye
    dinv = jax.lax.rsqrt(adj_hat.sum(axis=1))
    a_norm = dinv[:, None] * adj_hat * dinv[None, :]
    step = (1.0 - beta) * eye + beta * a_norm
    p = eye
    for _ in range(nfe):
        p = step @ p
    return p


def mtgode_forward(x, adj, params, cfg, batch_blocks=None):
    """x: (B, in_dim, N, T) NCHW like the PyTorch module -> (B, out_dim, N, 1)."""
    B, in_dim, N, seq_len = x.shape
    rf = cfg["receptive_field"]
    C = params["start"][0].shape[1]
    out_dim = params["end2"][0].shape[1]

    # Static Euler / dilation schedule (guarded for dilation_exponential > 1).
    nfe1 = round(cfg["time_1"] / cfg["step_size_1"])
    dils, t, d = [], rf, 1
    for _ in range(nfe1):
        dils.append(d)
        t -= 6 * d
        if t < 1:
            raise ValueError("receptive_field too small for dilation schedule")
        d *= cfg["dilation_exponential"]
    dils = tuple(dils)

    # Layout: (B, T, N, Ci), pad/slice to the receptive field (only the trailing
    # rf timesteps are ever read), then flatten nodes into the lane axis.
    x = jnp.transpose(x, (0, 3, 2, 1))
    if seq_len < rf:
        x = jnp.pad(x, ((0, 0), (rf - seq_len, 0), (0, 0), (0, 0)))
    else:
        x = x[:, -rf:]
    x = x.reshape(B, rf, N * in_dim)

    # CGP propagators for both directions folded (with the per-direction 1x1
    # mlps) into one Kronecker operator: proj_flat = g_flat @ M + b.
    nfe2 = round(cfg["time_2"] / cfg["step_size_2"])
    beta = cfg["step_size_2"] * 0.5 * cfg["alpha"]
    p1 = build_propagator(adj, nfe2, beta)
    p2 = build_propagator(adj.T, nfe2, beta)
    eye_n = jnp.eye(N, dtype=jnp.float32)
    bf16 = jnp.bfloat16

    (w1g, b1g), (w2g, b2g) = params["gconv1"], params["gconv2"]
    m_kron = (jnp.kron(p1.T, w1g) + jnp.kron(p2.T, w2g)).astype(bf16)  # (N*C, N*C)
    b_kron = jnp.tile(b1g + b2g, N).reshape(1, -1)

    # Per-node 1x1 convs lifted to block-diagonal kron(I_N, W) operators so the
    # whole kernel stays in the lane-dense (time, N*C) layout (small-N
    # specialization: N*C = 256 lanes here).
    ws, bs = params["start"]
    ws_big = jnp.kron(eye_n, ws).astype(bf16)                 # (N*Ci, N*C)
    bs_big = jnp.tile(bs, N).reshape(1, -1)

    (wf, bfb), (wg, bgb) = params["incep_f"], params["incep_g"]
    w_incep = jnp.stack([
        jnp.concatenate([jnp.kron(eye_n, wf[m * C:(m + 1) * C]),
                         jnp.kron(eye_n, wg[m * C:(m + 1) * C])], axis=1)
        for m in range(7)], axis=0).astype(bf16)              # (7, N*C, 2*N*C)
    b_incep = jnp.concatenate([jnp.tile(bfb, N), jnp.tile(bgb, N)]).reshape(1, -1)

    w0, b0 = params["end0"]
    w1e, b1e = params["end1"]
    w2e, b2e = params["end2"]
    w0_big = jnp.kron(eye_n, w0).astype(bf16)
    w1_big = jnp.kron(eye_n, w1e).astype(bf16)
    w2_big = jnp.kron(eye_n, w2e).astype(bf16)
    b0_big = jnp.tile(b0, N).reshape(1, -1)
    b1_big = jnp.tile(b1e, N).reshape(1, -1)
    b2_big = jnp.tile(b2e, N).reshape(1, -1)

    # Grid: fold the batch into the matmul M dim (single program) on single-TC
    # chips (v5e/v6e); split 2-way "parallel" over batch on v7x (2 TCs/chip).
    # Constant-index weight blocks are fetched once by the pipeline.
    if batch_blocks is None:
        tc = _tensorcores_per_chip()
        batch_blocks = tc if (tc > 1 and B % tc == 0) else 1
    gb = batch_blocks
    bb = B // gb

    def _const_spec(a):
        nd = a.ndim
        return pl.BlockSpec(a.shape, lambda i, _nd=nd: (0,) * _nd)

    kernel = functools.partial(
        _mtgode_fused_kernel, dils=dils, step1=float(cfg["step_size_1"]),
        eps=1e-5)

    operands = (x, ws_big, bs_big, w_incep, b_incep, m_kron, b_kron,
                w0_big, b0_big, w1_big, b1_big, w2_big, b2_big)
    in_specs = [pl.BlockSpec((bb, rf, N * in_dim), lambda i: (i, 0, 0))]
    in_specs += [_const_spec(a) for a in operands[1:]]

    out = pl.pallas_call(
        kernel,
        out_shape=jax.ShapeDtypeStruct((B, 1, N * out_dim), jnp.float32),
        grid=(gb,),
        in_specs=in_specs,
        out_specs=pl.BlockSpec((bb, 1, N * out_dim), lambda i: (i, 0, 0)),
        compiler_params=pltpu.CompilerParams(
            dimension_semantics=("parallel",)),
    )(*operands)

    out = out.reshape(B, N, out_dim)
    return jnp.transpose(out, (0, 2, 1))[:, :, :, None]       # (B, out_dim, N, 1)


# ---------------------------- parameter creation -----------------------------

def _init_linear(key, cin, cout, scale=0.1):
    kw, kb = jax.random.split(key)
    w = scale * jax.random.normal(kw, (cin, cout), jnp.float32)
    b = scale * jax.random.normal(kb, (cout,), jnp.float32)
    return w, b


def _init_inception(key, cin, cout, scale=0.1):
    """(7*cin, cout) weight for the [2,3,6,7] dilated inception.

    Branch outputs are right-aligned (truncated to the kernel-7 branch length),
    so the kernel-k branch occupies taps [7-k, 6]; tap m occupies rows
    [m*cin, (m+1)*cin)."""
    kernel_set = [2, 3, 6, 7]
    c4 = cout // len(kernel_set)
    big = jnp.zeros((7, cin, cout), jnp.float32)
    biases = []
    keys = jax.random.split(key, len(kernel_set))
    for bi, (kern, k) in enumerate(zip(kernel_set, keys)):
        kw, kb = jax.random.split(k)
        w = scale * jax.random.normal(kw, (kern, cin, c4), jnp.float32)
        b = scale * jax.random.normal(kb, (c4,), jnp.float32)
        base = 7 - kern
        big = big.at[base:base + kern, :, bi * c4:(bi + 1) * c4].set(w)
        biases.append(b)
    return big.reshape(7 * cin, cout), jnp.concatenate(biases)


def make_params(key, in_dim, out_dim, conv_dim, end_dim):
    keys = jax.random.split(key, 8)
    return {
        "start": _init_linear(keys[0], in_dim, conv_dim),
        "incep_f": _init_inception(keys[1], conv_dim, conv_dim),
        "incep_g": _init_inception(keys[2], conv_dim, conv_dim),
        "gconv1": _init_linear(keys[3], conv_dim, conv_dim),
        "gconv2": _init_linear(keys[4], conv_dim, conv_dim),
        "end0": _init_linear(keys[5], conv_dim, end_dim // 2),
        "end1": _init_linear(keys[6], end_dim // 2, end_dim),
        "end2": _init_linear(keys[7], end_dim, out_dim),
    }


# ----------------------------------- main ------------------------------------

if __name__ == "__main__":
    B, in_dim, out_dim = 2, 2, 4
    num_nodes, seq_len = 8, 8
    conv_dim, end_dim = 32, 32
    time_1, step_size_1 = 1.2, 0.4
    time_2, step_size_2 = 1.0, 0.25
    dilation_exponential = 1

    estimated_nfe = round(time_1 / step_size_1)                   # 3
    max_kernel_size = 7
    if dilation_exponential > 1:
        receptive_field = int(
            1 + (max_kernel_size - 1)
            * (dilation_exponential ** estimated_nfe - 1)
            / (dilation_exponential - 1))
    else:
        receptive_field = estimated_nfe * (max_kernel_size - 1) + 1  # 19

    cfg = {
        "receptive_field": receptive_field,
        "dilation_exponential": dilation_exponential,
        "time_1": time_1, "step_size_1": step_size_1,
        "time_2": time_2, "step_size_2": step_size_2,
        "alpha": 2.0,
    }

    key = jax.random.PRNGKey(0)
    k_x, k_adj, k_par = jax.random.split(key, 3)
    x = jax.random.normal(k_x, (B, in_dim, num_nodes, seq_len), jnp.float32)
    adj = jax.random.uniform(k_adj, (num_nodes, num_nodes), jnp.float32)
    params = make_params(k_par, in_dim, out_dim, conv_dim, end_dim)

    fwd = jax.jit(functools.partial(mtgode_forward, cfg=cfg))
    out = jax.block_until_ready(fwd(x, adj, params))
    assert out.shape == (B, out_dim, num_nodes, 1), out.shape
    assert bool(jnp.all(jnp.isfinite(out)))
    print("KERNEL_OK")
</pallas_src>

<mosaic_0001>
module attributes {stable_mosaic.version = 11 : i64} {
  func.func @_mtgode_fused_kernel(%arg0: i32, %arg1: memref<2x19x16xf32, #tpu.memory_space<vmem>>, %arg2: memref<16x256xbf16, #tpu.memory_space<vmem>>, %arg3: memref<1x256xf32, #tpu.memory_space<vmem>>, %arg4: memref<7x256x512xbf16, #tpu.memory_space<vmem>>, %arg5: memref<1x512xf32, #tpu.memory_space<vmem>>, %arg6: memref<256x256xbf16, #tpu.memory_space<vmem>>, %arg7: memref<1x256xf32, #tpu.memory_space<vmem>>, %arg8: memref<256x128xbf16, #tpu.memory_space<vmem>>, %arg9: memref<1x128xf32, #tpu.memory_space<vmem>>, %arg10: memref<128x256xbf16, #tpu.memory_space<vmem>>, %arg11: memref<1x256xf32, #tpu.memory_space<vmem>>, %arg12: memref<256x32xbf16, #tpu.memory_space<vmem>>, %arg13: memref<1x32xf32, #tpu.memory_space<vmem>>, %arg14: memref<2x1x32xf32, #tpu.memory_space<vmem>>) attributes {dimension_semantics = [#tpu.dimension_semantics<parallel>], iteration_bounds = array<i64: 1>, scalar_prefetch = 0 : i64, scratch_operands = 0 : i64, tpu.core_type = #tpu.core_type<tc>, window_params = [{transform_indices = @transform_0, window_bounds = array<i64: 2, 19, 16>}, {pipeline_mode = #tpu.pipeline_mode<synchronous>, transform_indices = @transform_1, window_bounds = array<i64: 16, 256>}, {pipeline_mode = #tpu.pipeline_mode<synchronous>, transform_indices = @transform_2, window_bounds = array<i64: 1, 256>}, {pipeline_mode = #tpu.pipeline_mode<synchronous>, transform_indices = @transform_3, window_bounds = array<i64: 7, 256, 512>}, {pipeline_mode = #tpu.pipeline_mode<synchronous>, transform_indices = @transform_4, window_bounds = array<i64: 1, 512>}, {pipeline_mode = #tpu.pipeline_mode<synchronous>, transform_indices = @transform_5, window_bounds = array<i64: 256, 256>}, {pipeline_mode = #tpu.pipeline_mode<synchronous>, transform_indices = @transform_6, window_bounds = array<i64: 1, 256>}, {pipeline_mode = #tpu.pipeline_mode<synchronous>, transform_indices = @transform_7, window_bounds = array<i64: 256, 128>}, {pipeline_mode = #tpu.pipeline_mode<synchronous>, transform_indices = @transform_8, window_bounds = array<i64: 1, 128>}, {pipeline_mode = #tpu.pipeline_mode<synchronous>, transform_indices = @transform_9, window_bounds = array<i64: 128, 256>}, {pipeline_mode = #tpu.pipeline_mode<synchronous>, transform_indices = @transform_10, window_bounds = array<i64: 1, 256>}, {pipeline_mode = #tpu.pipeline_mode<synchronous>, transform_indices = @transform_11, window_bounds = array<i64: 256, 32>}, {pipeline_mode = #tpu.pipeline_mode<synchronous>, transform_indices = @transform_12, window_bounds = array<i64: 1, 32>}, {transform_indices = @transform_13, window_bounds = array<i64: 2, 1, 32>}]} {
    %c0 = arith.constant 0 : index
    %c0_0 = arith.constant 0 : index
    %c0_1 = arith.constant 0 : index
    %0 = vector.load %arg1[%c0, %c0_0, %c0_1] : memref<2x19x16xf32, #tpu.memory_space<vmem>>, vector<2x19x16xf32>
    %1 = vector.shape_cast %0 : vector<2x19x16xf32> to vector<38x16xf32>
    %2 = arith.truncf %1 : vector<38x16xf32> to vector<38x16xbf16>
    %c0_2 = arith.constant 0 : index
    %c0_3 = arith.constant 0 : index
    %3 = vector.load %arg2[%c0_2, %c0_3] : memref<16x256xbf16, #tpu.memory_space<vmem>>, vector<16x256xbf16>
    %cst = arith.constant dense<0.000000e+00> : vector<38x256xf32>
    %4 = tpu.matmul %2, %3, %cst {dimension_numbers = #tpu.dot_dimension_numbers<[1], [0], [0], [1], [0, 0, 1, 1], [], []>} : vector<38x16xbf16>, vector<16x256xbf16>, vector<38x256xf32> -> vector<38x256xf32>
    %c0_4 = arith.constant 0 : index
    %c0_5 = arith.constant 0 : index
    %5 = vector.load %arg3[%c0_4, %c0_5] : memref<1x256xf32, #tpu.memory_space<vmem>>, vector<1x256xf32>
    %6 = vector.broadcast %5 : vector<1x256xf32> to vector<38x256xf32>
    %7 = arith.addf %4, %6 : vector<38x256xf32>
    %8 = vector.shape_cast %7 : vector<38x256xf32> to vector<2x19x256xf32>
    %c0_6 = arith.constant 0 : index
    %c0_7 = arith.constant 0 : index
    %9 = vector.load %arg5[%c0_6, %c0_7] : memref<1x512xf32, #tpu.memory_space<vmem>>, vector<1x512xf32>
    %c0_8 = arith.constant 0 : index
    %c0_9 = arith.constant 0 : index
    %10 = vector.load %arg7[%c0_8, %c0_9] : memref<1x256xf32, #tpu.memory_space<vmem>>, vector<1x256xf32>
    %11 = arith.truncf %8 : vector<2x19x256xf32> to vector<2x19x256xbf16>
    %12 = vector.extract_strided_slice %11 {offsets = [0, 0, 0], sizes = [2, 13, 256], strides = [1, 1, 1]} : vector<2x19x256xbf16> to vector<2x13x256xbf16>
    %13 = vector.shape_cast %12 : vector<2x13x256xbf16> to vector<26x256xbf16>
    %c0_10 = arith.constant 0 : index
    %c0_11 = arith.constant 0 : index
    %c0_12 = arith.constant 0 : index
    %14 = vector.load %arg4[%c0_10, %c0_11, %c0_12] : memref<7x256x512xbf16, #tpu.memory_space<vmem>>, vector<1x256x512xbf16>
    %15 = vector.shape_cast %14 : vector<1x256x512xbf16> to vector<256x512xbf16>
    %cst_13 = arith.constant dense<0.000000e+00> : vector<26x512xf32>
    %16 = tpu.matmul %13, %15, %cst_13 {dimension_numbers = #tpu.dot_dimension_numbers<[1], [0], [0], [1], [0, 0, 1, 1], [], []>} : vector<26x256xbf16>, vector<256x512xbf16>, vector<26x512xf32> -> vector<26x512xf32>
    %17 = vector.extract_strided_slice %11 {offsets = [0, 1, 0], sizes = [2, 13, 256], strides = [1, 1, 1]} : vector<2x19x256xbf16> to vector<2x13x256xbf16>
    %18 = vector.shape_cast %17 : vector<2x13x256xbf16> to vector<26x256xbf16>
    %c1 = arith.constant 1 : index
    %c0_14 = arith.constant 0 : index
    %c0_15 = arith.constant 0 : index
    %19 = vector.load %arg4[%c1, %c0_14, %c0_15] : memref<7x256x512xbf16, #tpu.memory_space<vmem>>, vector<1x256x512xbf16>
    %20 = vector.shape_cast %19 : vector<1x256x512xbf16> to vector<256x512xbf16>
    %cst_16 = arith.constant dense<0.000000e+00> : vector<26x512xf32>
    %21 = tpu.matmul %18, %20, %cst_16 {dimension_numbers = #tpu.dot_dimension_numbers<[1], [0], [0], [1], [0, 0, 1, 1], [], []>} : vector<26x256xbf16>, vector<256x512xbf16>, vector<26x512xf32> -> vector<26x512xf32>
    %22 = arith.addf %16, %21 : vector<26x512xf32>
    %23 = vector.extract_strided_slice %11 {offsets = [0, 2, 0], sizes = [2, 13, 256], strides = [1, 1, 1]} : vector<2x19x256xbf16> to vector<2x13x256xbf16>
    %24 = vector.shape_cast %23 : vector<2x13x256xbf16> to vector<26x256xbf16>
    %c2 = arith.constant 2 : index
    %c0_17 = arith.constant 0 : index
    %c0_18 = arith.constant 0 : index
    %25 = vector.load %arg4[%c2, %c0_17, %c0_18] : memref<7x256x512xbf16, #tpu.memory_space<vmem>>, vector<1x256x512xbf16>
    %26 = vector.shape_cast %25 : vector<1x256x512xbf16> to vector<256x512xbf16>
    %cst_19 = arith.constant dense<0.000000e+00> : vector<26x512xf32>
    %27 = tpu.matmul %24, %26, %cst_19 {dimension_numbers = #tpu.dot_dimension_numbers<[1], [0], [0], [1], [0, 0, 1, 1], [], []>} : vector<26x256xbf16>, vector<256x512xbf16>, vector<26x512xf32> -> vector<26x512xf32>
    %28 = arith.addf %22, %27 : vector<26x512xf32>
    %29 = vector.extract_strided_slice %11 {offsets = [0, 3, 0], sizes = [2, 13, 256], strides = [1, 1, 1]} : vector<2x19x256xbf16> to vector<2x13x256xbf16>
    %30 = vector.shape_cast %29 : vector<2x13x256xbf16> to vector<26x256xbf16>
    %c3 = arith.constant 3 : index
    %c0_20 = arith.constant 0 : index
    %c0_21 = arith.constant 0 : index
    %31 = vector.load %arg4[%c3, %c0_20, %c0_21] : memref<7x256x512xbf16, #tpu.memory_space<vmem>>, vector<1x256x512xbf16>
    %32 = vector.shape_cast %31 : vector<1x256x512xbf16> to vector<256x512xbf16>
    %cst_22 = arith.constant dense<0.000000e+00> : vector<26x512xf32>
    %33 = tpu.matmul %30, %32, %cst_22 {dimension_numbers = #tpu.dot_dimension_numbers<[1], [0], [0], [1], [0, 0, 1, 1], [], []>} : vector<26x256xbf16>, vector<256x512xbf16>, vector<26x512xf32> -> vector<26x512xf32>
    %34 = arith.addf %28, %33 : vector<26x512xf32>
    %35 = vector.extract_strided_slice %11 {offsets = [0, 4, 0], sizes = [2, 13, 256], strides = [1, 1, 1]} : vector<2x19x256xbf16> to vector<2x13x256xbf16>
    %36 = vector.shape_cast %35 : vector<2x13x256xbf16> to vector<26x256xbf16>
    %c4 = arith.constant 4 : index
    %c0_23 = arith.constant 0 : index
    %c0_24 = arith.constant 0 : index
    %37 = vector.load %arg4[%c4, %c0_23, %c0_24] : memref<7x256x512xbf16, #tpu.memory_space<vmem>>, vector<1x256x512xbf16>
    %38 = vector.shape_cast %37 : vector<1x256x512xbf16> to vector<256x512xbf16>
    %cst_25 = arith.constant dense<0.000000e+00> : vector<26x512xf32>
    %39 = tpu.matmul %36, %38, %cst_25 {dimension_numbers = #tpu.dot_dimension_numbers<[1], [0], [0], [1], [0, 0, 1, 1], [], []>} : vector<26x256xbf16>, vector<256x512xbf16>, vector<26x512xf32> -> vector<26x512xf32>
    %40 = arith.addf %34, %39 : vector<26x512xf32>
    %41 = vector.extract_strided_slice %11 {offsets = [0, 5, 0], sizes = [2, 13, 256], strides = [1, 1, 1]} : vector<2x19x256xbf16> to vector<2x13x256xbf16>
    %42 = vector.shape_cast %41 : vector<2x13x256xbf16> to vector<26x256xbf16>
    %c5 = arith.constant 5 : index
    %c0_26 = arith.constant 0 : index
    %c0_27 = arith.constant 0 : index
    %43 = vector.load %arg4[%c5, %c0_26, %c0_27] : memref<7x256x512xbf16, #tpu.memory_space<vmem>>, vector<1x256x512xbf16>
    %44 = vector.shape_cast %43 : vector<1x256x512xbf16> to vector<256x512xbf16>
    %cst_28 = arith.constant dense<0.000000e+00> : vector<26x512xf32>
    %45 = tpu.matmul %42, %44, %cst_28 {dimension_numbers = #tpu.dot_dimension_numbers<[1], [0], [0], [1], [0, 0, 1, 1], [], []>} : vector<26x256xbf16>, vector<256x512xbf16>, vector<26x512xf32> -> vector<26x512xf32>
    %46 = arith.addf %40, %45 : vector<26x512xf32>
    %47 = vector.extract_strided_slice %11 {offsets = [0, 6, 0], sizes = [2, 13, 256], strides = [1, 1, 1]} : vector<2x19x256xbf16> to vector<2x13x256xbf16>
    %48 = vector.shape_cast %47 : vector<2x13x256xbf16> to vector<26x256xbf16>
    %c6 = arith.constant 6 : index
    %c0_29 = arith.constant 0 : index
    %c0_30 = arith.constant 0 : index
    %49 = vector.load %arg4[%c6, %c0_29, %c0_30] : memref<7x256x512xbf16, #tpu.memory_space<vmem>>, vector<1x256x512xbf16>
    %50 = vector.shape_cast %49 : vector<1x256x512xbf16> to vector<256x512xbf16>
    %cst_31 = arith.constant dense<0.000000e+00> : vector<26x512xf32>
    %51 = tpu.matmul %48, %50, %cst_31 {dimension_numbers = #tpu.dot_dimension_numbers<[1], [0], [0], [1], [0, 0, 1, 1], [], []>} : vector<26x256xbf16>, vector<256x512xbf16>, vector<26x512xf32> -> vector<26x512xf32>
    %52 = arith.addf %46, %51 : vector<26x512xf32>
    %53 = vector.broadcast %9 : vector<1x512xf32> to vector<26x512xf32>
    %54 = arith.addf %52, %53 : vector<26x512xf32>
    %55 = vector.extract_strided_slice %54 {offsets = [0, 0], sizes = [26, 256], strides = [1, 1]} : vector<26x512xf32> to vector<26x256xf32>
    %56 = math.tanh %55 : vector<26x256xf32>
    %57 = vector.extract_strided_slice %54 {offsets = [0, 256], sizes = [26, 256], strides = [1, 1]} : vector<26x512xf32> to vector<26x256xf32>
    %58 = arith.negf %57 : vector<26x256xf32>
    %59 = math.exp %58 : vector<26x256xf32>
    %cst_32 = arith.constant 1.000000e+00 : f32
    %60 = vector.broadcast %cst_32 : f32 to vector<26x256xf32>
    %61 = arith.addf %60, %59 : vector<26x256xf32>
    %62 = arith.divf %60, %61 : vector<26x256xf32>
    %63 = arith.mulf %56, %62 : vector<26x256xf32>
    %64 = arith.truncf %63 : vector<26x256xf32> to vector<26x256xbf16>
    %c0_33 = arith.constant 0 : index
    %c0_34 = arith.constant 0 : index
    %65 = vector.load %arg6[%c0_33, %c0_34] : memref<256x256xbf16, #tpu.memory_space<vmem>>, vector<256x256xbf16>
    %cst_35 = arith.constant dense<0.000000e+00> : vector<26x256xf32>
    %66 = tpu.matmul %64, %65, %cst_35 {dimension_numbers = #tpu.dot_dimension_numbers<[1], [0], [0], [1], [0, 0, 1, 1], [], []>} : vector<26x256xbf16>, vector<256x256xbf16>, vector<26x256xf32> -> vector<26x256xf32>
    %67 = vector.broadcast %10 : vector<1x256xf32> to vector<26x256xf32>
    %68 = arith.addf %66, %67 : vector<26x256xf32>
    %69 = vector.extract_strided_slice %8 {offsets = [0, 6, 0], sizes = [2, 13, 256], strides = [1, 1, 1]} : vector<2x19x256xf32> to vector<2x13x256xf32>
    %70 = vector.shape_cast %68 : vector<26x256xf32> to vector<2x13x256xf32>
    %cst_36 = arith.constant 4.000000e-01 : f32
    %71 = vector.broadcast %cst_36 : f32 to vector<2x13x256xf32>
    %72 = arith.mulf %71, %70 : vector<2x13x256xf32>
    %73 = arith.addf %69, %72 : vector<2x13x256xf32>
    %74 = arith.truncf %73 : vector<2x13x256xf32> to vector<2x13x256xbf16>
    %75 = vector.extract_strided_slice %74 {offsets = [0, 0, 0], sizes = [2, 7, 256], strides = [1, 1, 1]} : vector<2x13x256xbf16> to vector<2x7x256xbf16>
    %76 = vector.shape_cast %75 : vector<2x7x256xbf16> to vector<14x256xbf16>
    %c0_37 = arith.constant 0 : index
    %c0_38 = arith.constant 0 : index
    %c0_39 = arith.constant 0 : index
    %77 = vector.load %arg4[%c0_37, %c0_38, %c0_39] : memref<7x256x512xbf16, #tpu.memory_space<vmem>>, vector<1x256x512xbf16>
    %78 = vector.shape_cast %77 : vector<1x256x512xbf16> to vector<256x512xbf16>
    %cst_40 = arith.constant dense<0.000000e+00> : vector<14x512xf32>
    %79 = tpu.matmul %76, %78, %cst_40 {dimension_numbers = #tpu.dot_dimension_numbers<[1], [0], [0], [1], [0, 0, 1, 1], [], []>} : vector<14x256xbf16>, vector<256x512xbf16>, vector<14x512xf32> -> vector<14x512xf32>
    %80 = vector.extract_strided_slice %74 {offsets = [0, 1, 0], sizes = [2, 7, 256], strides = [1, 1, 1]} : vector<2x13x256xbf16> to vector<2x7x256xbf16>
    %81 = vector.shape_cast %80 : vector<2x7x256xbf16> to vector<14x256xbf16>
    %c1_41 = arith.constant 1 : index
    %c0_42 = arith.constant 0 : index
    %c0_43 = arith.constant 0 : index
    %82 = vector.load %arg4[%c1_41, %c0_42, %c0_43] : memref<7x256x512xbf16, #tpu.memory_space<vmem>>, vector<1x256x512xbf16>
    %83 = vector.shape_cast %82 : vector<1x256x512xbf16> to vector<256x512xbf16>
    %cst_44 = arith.constant dense<0.000000e+00> : vector<14x512xf32>
    %84 = tpu.matmul %81, %83, %cst_44 {dimension_numbers = #tpu.dot_dimension_numbers<[1], [0], [0], [1], [0, 0, 1, 1], [], []>} : vector<14x256xbf16>, vector<256x512xbf16>, vector<14x512xf32> -> vector<14x512xf32>
    %85 = arith.addf %79, %84 : vector<14x512xf32>
    %86 = vector.extract_strided_slice %74 {offsets = [0, 2, 0], sizes = [2, 7, 256], strides = [1, 1, 1]} : vector<2x13x256xbf16> to vector<2x7x256xbf16>
    %87 = vector.shape_cast %86 : vector<2x7x256xbf16> to vector<14x256xbf16>
    %c2_45 = arith.constant 2 : index
    %c0_46 = arith.constant 0 : index
    %c0_47 = arith.constant 0 : index
    %88 = vector.load %arg4[%c2_45, %c0_46, %c0_47] : memref<7x256x512xbf16, #tpu.memory_space<vmem>>, vector<1x256x512xbf16>
    %89 = vector.shape_cast %88 : vector<1x256x512xbf16> to vector<256x512xbf16>
    %cst_48 = arith.constant dense<0.000000e+00> : vector<14x512xf32>
    %90 = tpu.matmul %87, %89, %cst_48 {dimension_numbers = #tpu.dot_dimension_numbers<[1], [0], [0], [1], [0, 0, 1, 1], [], []>} : vector<14x256xbf16>, vector<256x512xbf16>, vector<14x512xf32> -> vector<14x512xf32>
    %91 = arith.addf %85, %90 : vector<14x512xf32>
    %92 = vector.extract_strided_slice %74 {offsets = [0, 3, 0], sizes = [2, 7, 256], strides = [1, 1, 1]} : vector<2x13x256xbf16> to vector<2x7x256xbf16>
    %93 = vector.shape_cast %92 : vector<2x7x256xbf16> to vector<14x256xbf16>
    %c3_49 = arith.constant 3 : index
    %c0_50 = arith.constant 0 : index
    %c0_51 = arith.constant 0 : index
    %94 = vector.load %arg4[%c3_49, %c0_50, %c0_51] : memref<7x256x512xbf16, #tpu.memory_space<vmem>>, vector<1x256x512xbf16>
    %95 = vector.shape_cast %94 : vector<1x256x512xbf16> to vector<256x512xbf16>
    %cst_52 = arith.constant dense<0.000000e+00> : vector<14x512xf32>
    %96 = tpu.matmul %93, %95, %cst_52 {dimension_numbers = #tpu.dot_dimension_numbers<[1], [0], [0], [1], [0, 0, 1, 1], [], []>} : vector<14x256xbf16>, vector<256x512xbf16>, vector<14x512xf32> -> vector<14x512xf32>
    %97 = arith.addf %91, %96 : vector<14x512xf32>
    %98 = vector.extract_strided_slice %74 {offsets = [0, 4, 0], sizes = [2, 7, 256], strides = [1, 1, 1]} : vector<2x13x256xbf16> to vector<2x7x256xbf16>
    %99 = vector.shape_cast %98 : vector<2x7x256xbf16> to vector<14x256xbf16>
    %c4_53 = arith.constant 4 : index
    %c0_54 = arith.constant 0 : index
    %c0_55 = arith.constant 0 : index
    %100 = vector.load %arg4[%c4_53, %c0_54, %c0_55] : memref<7x256x512xbf16, #tpu.memory_space<vmem>>, vector<1x256x512xbf16>
    %101 = vector.shape_cast %100 : vector<1x256x512xbf16> to vector<256x512xbf16>
    %cst_56 = arith.constant dense<0.000000e+00> : vector<14x512xf32>
    %102 = tpu.matmul %99, %101, %cst_56 {dimension_numbers = #tpu.dot_dimension_numbers<[1], [0], [0], [1], [0, 0, 1, 1], [], []>} : vector<14x256xbf16>, vector<256x512xbf16>, vector<14x512xf32> -> vector<14x512xf32>
    %103 = arith.addf %97, %102 : vector<14x512xf32>
    %104 = vector.extract_strided_slice %74 {offsets = [0, 5, 0], sizes = [2, 7, 256], strides = [1, 1, 1]} : vector<2x13x256xbf16> to vector<2x7x256xbf16>
    %105 = vector.shape_cast %104 : vector<2x7x256xbf16> to vector<14x256xbf16>
    %c5_57 = arith.constant 5 : index
    %c0_58 = arith.constant 0 : index
    %c0_59 = arith.constant 0 : index
    %106 = vector.load %arg4[%c5_57, %c0_58, %c0_59] : memref<7x256x512xbf16, #tpu.memory_space<vmem>>, vector<1x256x512xbf16>
    %107 = vector.shape_cast %106 : vector<1x256x512xbf16> to vector<256x512xbf16>
    %cst_60 = arith.constant dense<0.000000e+00> : vector<14x512xf32>
    %108 = tpu.matmul %105, %107, %cst_60 {dimension_numbers = #tpu.dot_dimension_numbers<[1], [0], [0], [1], [0, 0, 1, 1], [], []>} : vector<14x256xbf16>, vector<256x512xbf16>, vector<14x512xf32> -> vector<14x512xf32>
    %109 = arith.addf %103, %108 : vector<14x512xf32>
    %110 = vector.extract_strided_slice %74 {offsets = [0, 6, 0], sizes = [2, 7, 256], strides = [1, 1, 1]} : vector<2x13x256xbf16> to vector<2x7x256xbf16>
    %111 = vector.shape_cast %110 : vector<2x7x256xbf16> to vector<14x256xbf16>
    %c6_61 = arith.constant 6 : index
    %c0_62 = arith.constant 0 : index
    %c0_63 = arith.constant 0 : index
    %112 = vector.load %arg4[%c6_61, %c0_62, %c0_63] : memref<7x256x512xbf16, #tpu.memory_space<vmem>>, vector<1x256x512xbf16>
    %113 = vector.shape_cast %112 : vector<1x256x512xbf16> to vector<256x512xbf16>
    %cst_64 = arith.constant dense<0.000000e+00> : vector<14x512xf32>
    %114 = tpu.matmul %111, %113, %cst_64 {dimension_numbers = #tpu.dot_dimension_numbers<[1], [0], [0], [1], [0, 0, 1, 1], [], []>} : vector<14x256xbf16>, vector<256x512xbf16>, vector<14x512xf32> -> vector<14x512xf32>
    %115 = arith.addf %109, %114 : vector<14x512xf32>
    %116 = vector.broadcast %9 : vector<1x512xf32> to vector<14x512xf32>
    %117 = arith.addf %115, %116 : vector<14x512xf32>
    %118 = vector.extract_strided_slice %117 {offsets = [0, 0], sizes = [14, 256], strides = [1, 1]} : vector<14x512xf32> to vector<14x256xf32>
    %119 = math.tanh %118 : vector<14x256xf32>
    %120 = vector.extract_strided_slice %117 {offsets = [0, 256], sizes = [14, 256], strides = [1, 1]} : vector<14x512xf32> to vector<14x256xf32>
    %121 = arith.negf %120 : vector<14x256xf32>
    %122 = math.exp %121 : vector<14x256xf32>
    %cst_65 = arith.constant 1.000000e+00 : f32
    %123 = vector.broadcast %cst_65 : f32 to vector<14x256xf32>
    %124 = arith.addf %123, %122 : vector<14x256xf32>
    %125 = arith.divf %123, %124 : vector<14x256xf32>
    %126 = arith.mulf %119, %125 : vector<14x256xf32>
    %127 = arith.truncf %126 : vector<14x256xf32> to vector<14x256xbf16>
    %c0_66 = arith.constant 0 : index
    %c0_67 = arith.constant 0 : index
    %128 = vector.load %arg6[%c0_66, %c0_67] : memref<256x256xbf16, #tpu.memory_space<vmem>>, vector<256x256xbf16>
    %cst_68 = arith.constant dense<0.000000e+00> : vector<14x256xf32>
    %129 = tpu.matmul %127, %128, %cst_68 {dimension_numbers = #tpu.dot_dimension_numbers<[1], [0], [0], [1], [0, 0, 1, 1], [], []>} : vector<14x256xbf16>, vector<256x256xbf16>, vector<14x256xf32> -> vector<14x256xf32>
    %130 = vector.broadcast %10 : vector<1x256xf32> to vector<14x256xf32>
    %131 = arith.addf %129, %130 : vector<14x256xf32>
    %132 = vector.extract_strided_slice %73 {offsets = [0, 6, 0], sizes = [2, 7, 256], strides = [1, 1, 1]} : vector<2x13x256xf32> to vector<2x7x256xf32>
    %133 = vector.shape_cast %131 : vector<14x256xf32> to vector<2x7x256xf32>
    %cst_69 = arith.constant 4.000000e-01 : f32
    %134 = vector.broadcast %cst_69 : f32 to vector<2x7x256xf32>
    %135 = arith.mulf %134, %133 : vector<2x7x256xf32>
    %136 = arith.addf %132, %135 : vector<2x7x256xf32>
    %137 = arith.truncf %136 : vector<2x7x256xf32> to vector<2x7x256xbf16>
    %138 = vector.extract_strided_slice %137 {offsets = [0, 0, 0], sizes = [2, 1, 256], strides = [1, 1, 1]} : vector<2x7x256xbf16> to vector<2x1x256xbf16>
    %139 = vector.shape_cast %138 : vector<2x1x256xbf16> to vector<2x256xbf16>
    %c0_70 = arith.constant 0 : index
    %c0_71 = arith.constant 0 : index
    %c0_72 = arith.constant 0 : index
    %140 = vector.load %arg4[%c0_70, %c0_71, %c0_72] : memref<7x256x512xbf16, #tpu.memory_space<vmem>>, vector<1x256x512xbf16>
    %141 = vector.shape_cast %140 : vector<1x256x512xbf16> to vector<256x512xbf16>
    %cst_73 = arith.constant dense<0.000000e+00> : vector<2x512xf32>
    %142 = tpu.matmul %139, %141, %cst_73 {dimension_numbers = #tpu.dot_dimension_numbers<[1], [0], [0], [1], [0, 0, 1, 1], [], []>} : vector<2x256xbf16>, vector<256x512xbf16>, vector<2x512xf32> -> vector<2x512xf32>
    %143 = vector.extract_strided_slice %137 {offsets = [0, 1, 0], sizes = [2, 1, 256], strides = [1, 1, 1]} : vector<2x7x256xbf16> to vector<2x1x256xbf16>
    %144 = vector.shape_cast %143 : vector<2x1x256xbf16> to vector<2x256xbf16>
    %c1_74 = arith.constant 1 : index
    %c0_75 = arith.constant 0 : index
    %c0_76 = arith.constant 0 : index
    %145 = vector.load %arg4[%c1_74, %c0_75, %c0_76] : memref<7x256x512xbf16, #tpu.memory_space<vmem>>, vector<1x256x512xbf16>
    %146 = vector.shape_cast %145 : vector<1x256x512xbf16> to vector<256x512xbf16>
    %cst_77 = arith.constant dense<0.000000e+00> : vector<2x512xf32>
    %147 = tpu.matmul %144, %146, %cst_77 {dimension_numbers = #tpu.dot_dimension_numbers<[1], [0], [0], [1], [0, 0, 1, 1], [], []>} : vector<2x256xbf16>, vector<256x512xbf16>, vector<2x512xf32> -> vector<2x512xf32>
    %148 = arith.addf %142, %147 : vector<2x512xf32>
    %149 = vector.extract_strided_slice %137 {offsets = [0, 2, 0], sizes = [2, 1, 256], strides = [1, 1, 1]} : vector<2x7x256xbf16> to vector<2x1x256xbf16>
    %150 = vector.shape_cast %149 : vector<2x1x256xbf16> to vector<2x256xbf16>
    %c2_78 = arith.constant 2 : index
    %c0_79 = arith.constant 0 : index
    %c0_80 = arith.constant 0 : index
    %151 = vector.load %arg4[%c2_78, %c0_79, %c0_80] : memref<7x256x512xbf16, #tpu.memory_space<vmem>>, vector<1x256x512xbf16>
    %152 = vector.shape_cast %151 : vector<1x256x512xbf16> to vector<256x512xbf16>
    %cst_81 = arith.constant dense<0.000000e+00> : vector<2x512xf32>
    %153 = tpu.matmul %150, %152, %cst_81 {dimension_numbers = #tpu.dot_dimension_numbers<[1], [0], [0], [1], [0, 0, 1, 1], [], []>} : vector<2x256xbf16>, vector<256x512xbf16>, vector<2x512xf32> -> vector<2x512xf32>
    %154 = arith.addf %148, %153 : vector<2x512xf32>
    %155 = vector.extract_strided_slice %137 {offsets = [0, 3, 0], sizes = [2, 1, 256], strides = [1, 1, 1]} : vector<2x7x256xbf16> to vector<2x1x256xbf16>
    %156 = vector.shape_cast %155 : vector<2x1x256xbf16> to vector<2x256xbf16>
    %c3_82 = arith.constant 3 : index
    %c0_83 = arith.constant 0 : index
    %c0_84 = arith.constant 0 : index
    %157 = vector.load %arg4[%c3_82, %c0_83, %c0_84] : memref<7x256x512xbf16, #tpu.memory_space<vmem>>, vector<1x256x512xbf16>
    %158 = vector.shape_cast %157 : vector<1x256x512xbf16> to vector<256x512xbf16>
    %cst_85 = arith.constant dense<0.000000e+00> : vector<2x512xf32>
    %159 = tpu.matmul %156, %158, %cst_85 {dimension_numbers = #tpu.dot_dimension_numbers<[1], [0], [0], [1], [0, 0, 1, 1], [], []>} : vector<2x256xbf16>, vector<256x512xbf16>, vector<2x512xf32> -> vector<2x512xf32>
    %160 = arith.addf %154, %159 : vector<2x512xf32>
    %161 = vector.extract_strided_slice %137 {offsets = [0, 4, 0], sizes = [2, 1, 256], strides = [1, 1, 1]} : vector<2x7x256xbf16> to vector<2x1x256xbf16>
    %162 = vector.shape_cast %161 : vector<2x1x256xbf16> to vector<2x256xbf16>
    %c4_86 = arith.constant 4 : index
    %c0_87 = arith.constant 0 : index
    %c0_88 = arith.constant 0 : index
    %163 = vector.load %arg4[%c4_86, %c0_87, %c0_88] : memref<7x256x512xbf16, #tpu.memory_space<vmem>>, vector<1x256x512xbf16>
    %164 = vector.shape_cast %163 : vector<1x256x512xbf16> to vector<256x512xbf16>
    %cst_89 = arith.constant dense<0.000000e+00> : vector<2x512xf32>
    %165 = tpu.matmul %162, %164, %cst_89 {dimension_numbers = #tpu.dot_dimension_numbers<[1], [0], [0], [1], [0, 0, 1, 1], [], []>} : vector<2x256xbf16>, vector<256x512xbf16>, vector<2x512xf32> -> vector<2x512xf32>
    %166 = arith.addf %160, %165 : vector<2x512xf32>
    %167 = vector.extract_strided_slice %137 {offsets = [0, 5, 0], sizes = [2, 1, 256], strides = [1, 1, 1]} : vector<2x7x256xbf16> to vector<2x1x256xbf16>
    %168 = vector.shape_cast %167 : vector<2x1x256xbf16> to vector<2x256xbf16>
    %c5_90 = arith.constant 5 : index
    %c0_91 = arith.constant 0 : index
    %c0_92 = arith.constant 0 : index
    %169 = vector.load %arg4[%c5_90, %c0_91, %c0_92] : memref<7x256x512xbf16, #tpu.memory_space<vmem>>, vector<1x256x512xbf16>
    %170 = vector.shape_cast %169 : vector<1x256x512xbf16> to vector<256x512xbf16>
    %cst_93 = arith.constant dense<0.000000e+00> : vector<2x512xf32>
    %171 = tpu.matmul %168, %170, %cst_93 {dimension_numbers = #tpu.dot_dimension_numbers<[1], [0], [0], [1], [0, 0, 1, 1], [], []>} : vector<2x256xbf16>, vector<256x512xbf16>, vector<2x512xf32> -> vector<2x512xf32>
    %172 = arith.addf %166, %171 : vector<2x512xf32>
    %173 = vector.extract_strided_slice %137 {offsets = [0, 6, 0], sizes = [2, 1, 256], strides = [1, 1, 1]} : vector<2x7x256xbf16> to vector<2x1x256xbf16>
    %174 = vector.shape_cast %173 : vector<2x1x256xbf16> to vector<2x256xbf16>
    %c6_94 = arith.constant 6 : index
    %c0_95 = arith.constant 0 : index
    %c0_96 = arith.constant 0 : index
    %175 = vector.load %arg4[%c6_94, %c0_95, %c0_96] : memref<7x256x512xbf16, #tpu.memory_space<vmem>>, vector<1x256x512xbf16>
    %176 = vector.shape_cast %175 : vector<1x256x512xbf16> to vector<256x512xbf16>
    %cst_97 = arith.constant dense<0.000000e+00> : vector<2x512xf32>
    %177 = tpu.matmul %174, %176, %cst_97 {dimension_numbers = #tpu.dot_dimension_numbers<[1], [0], [0], [1], [0, 0, 1, 1], [], []>} : vector<2x256xbf16>, vector<256x512xbf16>, vector<2x512xf32> -> vector<2x512xf32>
    %178 = arith.addf %172, %177 : vector<2x512xf32>
    %179 = vector.broadcast %9 : vector<1x512xf32> to vector<2x512xf32>
    %180 = arith.addf %178, %179 : vector<2x512xf32>
    %181 = vector.extract_strided_slice %180 {offsets = [0, 0], sizes = [2, 256], strides = [1, 1]} : vector<2x512xf32> to vector<2x256xf32>
    %182 = math.tanh %181 : vector<2x256xf32>
    %183 = vector.extract_strided_slice %180 {offsets = [0, 256], sizes = [2, 256], strides = [1, 1]} : vector<2x512xf32> to vector<2x256xf32>
    %184 = arith.negf %183 : vector<2x256xf32>
    %185 = math.exp %184 : vector<2x256xf32>
    %cst_98 = arith.constant 1.000000e+00 : f32
    %186 = vector.broadcast %cst_98 : f32 to vector<2x256xf32>
    %187 = arith.addf %186, %185 : vector<2x256xf32>
    %188 = arith.divf %186, %187 : vector<2x256xf32>
    %189 = arith.mulf %182, %188 : vector<2x256xf32>
    %190 = arith.truncf %189 : vector<2x256xf32> to vector<2x256xbf16>
    %c0_99 = arith.constant 0 : index
    %c0_100 = arith.constant 0 : index
    %191 = vector.load %arg6[%c0_99, %c0_100] : memref<256x256xbf16, #tpu.memory_space<vmem>>, vector<256x256xbf16>
    %cst_101 = arith.constant dense<0.000000e+00> : vector<2x256xf32>
    %192 = tpu.matmul %190, %191, %cst_101 {dimension_numbers = #tpu.dot_dimension_numbers<[1], [0], [0], [1], [0, 0, 1, 1], [], []>} : vector<2x256xbf16>, vector<256x256xbf16>, vector<2x256xf32> -> vector<2x256xf32>
    %193 = vector.broadcast %10 : vector<1x256xf32> to vector<2x256xf32>
    %194 = arith.addf %192, %193 : vector<2x256xf32>
    %195 = vector.extract_strided_slice %136 {offsets = [0, 6, 0], sizes = [2, 1, 256], strides = [1, 1, 1]} : vector<2x7x256xf32> to vector<2x1x256xf32>
    %196 = vector.shape_cast %194 : vector<2x256xf32> to vector<2x1x256xf32>
    %cst_102 = arith.constant 4.000000e-01 : f32
    %197 = vector.broadcast %cst_102 : f32 to vector<2x1x256xf32>
    %198 = arith.mulf %197, %196 : vector<2x1x256xf32>
    %199 = arith.addf %195, %198 : vector<2x1x256xf32>
    %200 = vector.shape_cast %199 : vector<2x1x256xf32> to vector<2x256xf32>
    %cst_103 = arith.constant dense<0.000000e+00> : vector<2xf32>
    %201 = vector.multi_reduction <add>, %200, %cst_103 [1] : vector<2x256xf32> to vector<2xf32>
    %202 = vector.shape_cast %201 : vector<2xf32> to vector<2x1xf32>
    %cst_104 = arith.constant 2.560000e+02 : f32
    %203 = vector.broadcast %cst_104 : f32 to vector<2x1xf32>
    %204 = arith.divf %202, %203 : vector<2x1xf32>
    %205 = vector.broadcast %204 : vector<2x1xf32> to vector<2x256xf32>
    %206 = arith.subf %200, %205 : vector<2x256xf32>
    %207 = arith.mulf %206, %206 : vector<2x256xf32>
    %cst_105 = arith.constant dense<0.000000e+00> : vector<2xf32>
    %208 = vector.multi_reduction <add>, %207, %cst_105 [1] : vector<2x256xf32> to vector<2xf32>
    %209 = vector.shape_cast %208 : vector<2xf32> to vector<2x1xf32>
    %cst_106 = arith.constant 2.560000e+02 : f32
    %210 = vector.broadcast %cst_106 : f32 to vector<2x1xf32>
    %211 = arith.divf %209, %210 : vector<2x1xf32>
    %212 = vector.broadcast %204 : vector<2x1xf32> to vector<2x256xf32>
    %213 = arith.subf %200, %212 : vector<2x256xf32>
    %cst_107 = arith.constant 9.99999974E-6 : f32
    %214 = vector.broadcast %cst_107 : f32 to vector<2x1xf32>
    %215 = arith.addf %211, %214 : vector<2x1xf32>
    %216 = math.rsqrt %215 : vector<2x1xf32>
    %217 = vector.broadcast %216 : vector<2x1xf32> to vector<2x256xf32>
    %218 = arith.mulf %213, %217 : vector<2x256xf32>
    %219 = arith.truncf %218 : vector<2x256xf32> to vector<2x256xbf16>
    %c0_108 = arith.constant 0 : index
    %c0_109 = arith.constant 0 : index
    %220 = vector.load %arg8[%c0_108, %c0_109] : memref<256x128xbf16, #tpu.memory_space<vmem>>, vector<256x128xbf16>
    %cst_110 = arith.constant dense<0.000000e+00> : vector<2x128xf32>
    %221 = tpu.matmul %219, %220, %cst_110 {dimension_numbers = #tpu.dot_dimension_numbers<[1], [0], [0], [1], [0, 0, 1, 1], [], []>} : vector<2x256xbf16>, vector<256x128xbf16>, vector<2x128xf32> -> vector<2x128xf32>
    %c0_111 = arith.constant 0 : index
    %c0_112 = arith.constant 0 : index
    %222 = vector.load %arg9[%c0_111, %c0_112] : memref<1x128xf32, #tpu.memory_space<vmem>>, vector<1x128xf32>
    %223 = vector.broadcast %222 : vector<1x128xf32> to vector<2x128xf32>
    %224 = arith.addf %221, %223 : vector<2x128xf32>
    %cst_113 = arith.constant 0.000000e+00 : f32
    %225 = vector.broadcast %cst_113 : f32 to vector<2x128xf32>
    %226 = arith.maximumf %224, %225 : vector<2x128xf32>
    %227 = arith.truncf %226 : vector<2x128xf32> to vector<2x128xbf16>
    %c0_114 = arith.constant 0 : index
    %c0_115 = arith.constant 0 : index
    %228 = vector.load %arg10[%c0_114, %c0_115] : memref<128x256xbf16, #tpu.memory_space<vmem>>, vector<128x256xbf16>
    %cst_116 = arith.constant dense<0.000000e+00> : vector<2x256xf32>
    %229 = tpu.matmul %227, %228, %cst_116 {dimension_numbers = #tpu.dot_dimension_numbers<[1], [0], [0], [1], [0, 0, 1, 1], [], []>} : vector<2x128xbf16>, vector<128x256xbf16>, vector<2x256xf32> -> vector<2x256xf32>
    %c0_117 = arith.constant 0 : index
    %c0_118 = arith.constant 0 : index
    %230 = vector.load %arg11[%c0_117, %c0_118] : memref<1x256xf32, #tpu.memory_space<vmem>>, vector<1x256xf32>
    %231 = vector.broadcast %230 : vector<1x256xf32> to vector<2x256xf32>
    %232 = arith.addf %229, %231 : vector<2x256xf32>
    %cst_119 = arith.constant 0.000000e+00 : f32
    %233 = vector.broadcast %cst_119 : f32 to vector<2x256xf32>
    %234 = arith.maximumf %232, %233 : vector<2x256xf32>
    %235 = arith.truncf %234 : vector<2x256xf32> to vector<2x256xbf16>
    %c0_120 = arith.constant 0 : index
    %c0_121 = arith.constant 0 : index
    %236 = vector.load %arg12[%c0_120, %c0_121] : memref<256x32xbf16, #tpu.memory_space<vmem>>, vector<256x32xbf16>
    %cst_122 = arith.constant dense<0.000000e+00> : vector<2x32xf32>
    %237 = tpu.matmul %235, %236, %cst_122 {dimension_numbers = #tpu.dot_dimension_numbers<[1], [0], [0], [1], [0, 0, 1, 1], [], []>} : vector<2x256xbf16>, vector<256x32xbf16>, vector<2x32xf32> -> vector<2x32xf32>
    %c0_123 = arith.constant 0 : index
    %c0_124 = arith.constant 0 : index
    %238 = vector.load %arg13[%c0_123, %c0_124] : memref<1x32xf32, #tpu.memory_space<vmem>>, vector<1x32xf32>
    %239 = vector.broadcast %238 : vector<1x32xf32> to vector<2x32xf32>
    %240 = arith.addf %237, %239 : vector<2x32xf32>
    %241 = vector.shape_cast %240 : vector<2x32xf32> to vector<2x1x32xf32>
    %c0_125 = arith.constant 0 : index
    %c0_126 = arith.constant 0 : index
    %c0_127 = arith.constant 0 : index
    %242 = vector.load %arg14[%c0_125, %c0_126, %c0_127] : memref<2x1x32xf32, #tpu.memory_space<vmem>>, vector<2x1x32xf32>
    tpu.vector_store %arg14[%c0_125, %c0_126, %c0_127], %241 {strides = array<i32>} : memref<2x1x32xf32, #tpu.memory_space<vmem>>, vector<2x1x32xf32>,
    return
  }
  func.func @transform_0(%arg0: i32) -> (i32, i32, i32) {
    %c0_i32 = arith.constant 0 : i32
    %c0_i32_0 = arith.constant 0 : i32
    %c0_i32_1 = arith.constant 0 : i32
    return %arg0, %c0_i32, %c0_i32_0 : i32, i32, i32
  }
  func.func @transform_1(%arg0: i32) -> (i32, i32) {
    %c0_i32 = arith.constant 0 : i32
    %c0_i32_0 = arith.constant 0 : i32
    %c0_i32_1 = arith.constant 0 : i32
    return %c0_i32, %c0_i32_0 : i32, i32
  }
  func.func @transform_2(%arg0: i32) -> (i32, i32) {
    %c0_i32 = arith.constant 0 : i32
    %c0_i32_0 = arith.constant 0 : i32
    %c0_i32_1 = arith.constant 0 : i32
    return %c0_i32, %c0_i32_0 : i32, i32
  }
  func.func @transform_3(%arg0: i32) -> (i32, i32, i32) {
    %c0_i32 = arith.constant 0 : i32
    %c0_i32_0 = arith.constant 0 : i32
    %c0_i32_1 = arith.constant 0 : i32
    %c0_i32_2 = arith.constant 0 : i32
    return %c0_i32, %c0_i32_0, %c0_i32_1 : i32, i32, i32
  }
  func.func @transform_4(%arg0: i32) -> (i32, i32) {
    %c0_i32 = arith.constant 0 : i32
    %c0_i32_0 = arith.constant 0 : i32
    %c0_i32_1 = arith.constant 0 : i32
    return %c0_i32, %c0_i32_0 : i32, i32
  }
  func.func @transform_5(%arg0: i32) -> (i32, i32) {
    %c0_i32 = arith.constant 0 : i32
    %c0_i32_0 = arith.constant 0 : i32
    %c0_i32_1 = arith.constant 0 : i32
    return %c0_i32, %c0_i32_0 : i32, i32
  }
  func.func @transform_6(%arg0: i32) -> (i32, i32) {
    %c0_i32 = arith.constant 0 : i32
    %c0_i32_0 = arith.constant 0 : i32
    %c0_i32_1 = arith.constant 0 : i32
    return %c0_i32, %c0_i32_0 : i32, i32
  }
  func.func @transform_7(%arg0: i32) -> (i32, i32) {
    %c0_i32 = arith.constant 0 : i32
    %c0_i32_0 = arith.constant 0 : i32
    %c0_i32_1 = arith.constant 0 : i32
    return %c0_i32, %c0_i32_0 : i32, i32
  }
  func.func @transform_8(%arg0: i32) -> (i32, i32) {
    %c0_i32 = arith.constant 0 : i32
    %c0_i32_0 = arith.constant 0 : i32
    %c0_i32_1 = arith.constant 0 : i32
    return %c0_i32, %c0_i32_0 : i32, i32
  }
  func.func @transform_9(%arg0: i32) -> (i32, i32) {
    %c0_i32 = arith.constant 0 : i32
    %c0_i32_0 = arith.constant 0 : i32
    %c0_i32_1 = arith.constant 0 : i32
    return %c0_i32, %c0_i32_0 : i32, i32
  }
  func.func @transform_10(%arg0: i32) -> (i32, i32) {
    %c0_i32 = arith.constant 0 : i32
    %c0_i32_0 = arith.constant 0 : i32
    %c0_i32_1 = arith.constant 0 : i32
    return %c0_i32, %c0_i32_0 : i32, i32
  }
  func.func @transform_11(%arg0: i32) -> (i32, i32) {
    %c0_i32 = arith.constant 0 : i32
    %c0_i32_0 = arith.constant 0 : i32
    %c0_i32_1 = arith.constant 0 : i32
    return %c0_i32, %c0_i32_0 : i32, i32
  }
  func.func @transform_12(%arg0: i32) -> (i32, i32) {
    %c0_i32 = arith.constant 0 : i32
    %c0_i32_0 = arith.constant 0 : i32
    %c0_i32_1 = arith.constant 0 : i32
    return %c0_i32, %c0_i32_0 : i32, i32
  }
  func.func @transform_13(%arg0: i32) -> (i32, i32, i32) {
    %c0_i32 = arith.constant 0 : i32
    %c0_i32_0 = arith.constant 0 : i32
    %c0_i32_1 = arith.constant 0 : i32
    return %arg0, %c0_i32, %c0_i32_0 : i32, i32, i32
  }
}

</mosaic_0001>

<bundles_post_ra>
// kernel: tile.39
= control target key start
LH: loop header
LB: loop body
LE: loop exit
PB: predicated region body
PF: predicated region fallthrough
CT: control target
= control target key end

     0   :  { %s7_s6 = smov 3  ;;  %s14_s9 = smov 3  ;;  %vm4_vm0 = vcmask 261120   ;;  %vm11_vm1 = vcmask 1048320   ;;  %vm18_vm2 = vcmask 785920   ;;  %vm25_vm3 = vcmask 523520   ;;  %s79_s0 = inlined_call_operand.vmem [shape: f32[8,32], index: 0, kind: input, shape index: {}]   ;;  %s80_s1 = inlined_call_operand.vmem [shape: f32[1,256], index: 1, kind: output, shape index: {}]  }
   0x1   :  { %v41_v0 = vld [vmem:[%s79_s0 + $0x3] ss:$4 sm:%s7_s6]   ;;  %s48_s10 = smov 96   ;;  %s21_s11 = smov 3  ;;  %v42_v1 = vld [vmem:[%s79_s0 + $0x2] ss:$4 sm:%s14_s9]  }
   0x2   :  { %9 = vrot.lane.b32.xlu0 %v41_v0, %s48_s10  ;;  %v43_v2 = vld [vmem:[%s79_s0 + $0x1] ss:$4 sm:%s21_s11]   ;;  %s2_s16 = smov 3  ;;  %s49_s17 = smov 32  }
   0x3   :  { %23 = vrot.lane.b32.xlu1 %v43_v2, %s49_s17  ;;  %v3_v3 = vld [vmem:[%s79_s0] ss:$4 sm:%s2_s16]   ;;  %s50_s0 = smov 64  }
   0x4   :  { %5 = vst.msk [vmem:[#allocation0] ss:$8 sm:$0x3] %vm4_vm0, %v3_v3  }
   0x6   :  { %16 = vrot.lane.b32.xlu0 %v42_v1, %s50_s0 }
  0x74   :  { %v10_v4 = vpop.permute.xlu0 %9  }
  0x75   :  { %12 = vst.msk [vmem:[#allocation0] ss:$8 sm:$0x3] %vm11_vm1, %v10_v4   ;;  %v24_v5 = vpop.permute.xlu1 %23  }
  0x78   :  { %v17_v6 = vpop.permute.xlu0 %16  }
  0x79   :  { %19 = vst.msk [vmem:[#allocation0] ss:$8 sm:$0x3] %vm18_vm2, %v17_v6  }
  0x7a   :  { %26 = vst.msk [vmem:[#allocation0] ss:$8 sm:$0x3] %vm25_vm3, %v24_v5  }
  0x81   :  { %v31_v7 = vld [vmem:[#allocation0] sm:$0x1]  ;;  %v36_v8 = vld [vmem:[#allocation0 + $0x8] sm:$0x1] }
  0x82   :  { %34 = vst [vmem:[%s80_s1] sm:$0x1] %v31_v7  ;;  %44 = vst [vmem:[%s80_s1 + $0x1] sm:$0x1] %v36_v8 }

// kernel: tile.38
= control target key start
LH: loop header
LB: loop body
LE: loop exit
PB: predicated region body
PF: predicated region fallthrough
CT: control target
= control target key end

     0   :  { %s22_s0 = inlined_call_operand.vmem [shape: f32[32], index: 0, kind: input, shape index: {}]   ;;  %s23_s1 = inlined_call_operand.vmem [shape: f32[8,32], index: 1, kind: output, shape index: {}]  }
   0x1   :  { %v4_v0 = vld [vmem:[%s22_s0] ss:$0 sm:$0xff] }
   0x2   :  { %5 = vst [vmem:[%s23_s1] sm:$0xff] %v4_v0 }

// kernel: tile.58
= control target key start
LH: loop header
LB: loop body
LE: loop exit
PB: predicated region body
PF: predicated region fallthrough
CT: control target
= control target key end

     0   :  { %2 = vsyncpa [#allocation1], 0  ;;  %s42_s6 = smov [#allocation0]   ;;  %s59_s0 = inlined_call_operand.hbm [shape: f32[16], index: 0, kind: input, shape index: {}]   ;;  %s60_s1 = inlined_call_operand.vmem [shape: f32[8,16], index: 1, kind: output, shape index: {}]  }
   0x1   :  { %s9_s7 = sshll.u32 %s42_s6, 4  ;;  %s10_s7 = int_to_ptr.vmem [resolvable:$true] %s9_s7 }
   0x2   :  { %s28_s8 = scalar_lea.vmem %s10_s7, 16  ;;  %s32_s9 = scalar_lea.vmem %s10_s7, 32 }
   0x3   :  { %p29_p0 = scmp.ne.s32.totalorder %s10_s7, %s28_s8  ;;  %p33_p1 = scmp.lt.s32.totalorder %s10_s7, %s10_s7 }
   0x4   :  { %p34_p2 = scmp.lt.s32.totalorder %s32_s9, %s28_s8 }
   0x6   :  { %p35_p3 = por %p34_p2, %p33_p1 }
   0x8   :  { %p36_p4 = pnand %p35_p3, %p29_p0 }
   0xa   :  { %39 = shalt.err (!%p36_p4)
}
   0xb   :  { %12 = dma.hbm_to_vmem [thread:$0]  %s59_s0, 16, %s10_s7, [#allocation1]  }
   0xc   :  { %40 = dma.done.wait [#allocation1], 16  }
   0xd   :  { %41 = vsyncadd [#allocation1], 4294967280  ;;  %v16_v0 = vld [vmem:[#allocation0] ss:$0 sm:$0xff] }
   0xe   :  { %17 = vst [vmem:[%s60_s1] sm:$0xff] %v16_v0 }
   0xf   :  { %18 = vsyncpa [#allocation1], 1 }

// kernel: tile.59
= control target key start
LH: loop header
LB: loop body
LE: loop exit
PB: predicated region body
PF: predicated region fallthrough
CT: control target
= control target key end

     0   :  { %s69_s10 = smov 112   ;;  %s70_s11 = smov 80   ;;  %vm3_vm0 = vcmask 130048   ;;  %vm9_vm1 = vcmask 1048448   ;;  %vm15_vm2 = vcmask 917248   ;;  %vm21_vm3 = vcmask 786048   ;;  %s113_s0 = inlined_call_operand.vmem [shape: f32[8,16], index: 0, kind: input, shape index: {}]   ;;  %s114_s1 = inlined_call_operand.vmem [shape: f32[1,128], index: 1, kind: output, shape index: {}]  }
   0x1   :  { %v55_v0 = vld [vmem:[%s113_s0 + $0x7] sm:$0x1]   ;;  %v57_v1 = vld [vmem:[%s113_s0 + $0x5] sm:$0x1]   ;;  %v56_v2 = vld [vmem:[%s113_s0 + $0x6] sm:$0x1]  }
   0x2   :  { %7 = vrot.lane.b32.xlu0 %v55_v0, %s69_s10  ;;  %19 = vrot.lane.b32.xlu1 %v57_v1, %s70_s11  ;;  %v58_v3 = vld [vmem:[%s113_s0 + $0x4] sm:$0x1]   ;;  %v2_v4 = vld [vmem:[%s113_s0] sm:$0x1]   ;;  %s71_s18 = smov 96   ;;  %s72_s19 = smov 64  }
   0x3   :  { %4 = vst.msk [vmem:[#allocation0] sm:$0x1] %vm3_vm0, %v2_v4   ;;  %v59_v5 = vld [vmem:[%s113_s0 + $0x3] sm:$0x1]   ;;  %v60_v6 = vld [vmem:[%s113_s0 + $0x2] sm:$0x1]  }
   0x4   :  { %s73_s24 = smov 48   ;;  %s74_s25 = smov 32   ;;  %v61_v7 = vld [vmem:[%s113_s0 + $0x1] sm:$0x1]   ;;  %vm27_vm4 = vcmask 654848   ;;  %vm33_vm5 = vcmask 523648  }
   0x5   :  { %s75_s0 = smov 16   ;;  %vm39_vm6 = vcmask 392448   ;;  %vm45_vm7 = vcmask 261248  }
   0x6   :  { %13 = vrot.lane.b32.xlu0 %v56_v2, %s71_s18  ;;  %25 = vrot.lane.b32.xlu1 %v58_v3, %s72_s19 }
   0xa   :  { %31 = vrot.lane.b32.xlu0 %v59_v5, %s73_s24  ;;  %37 = vrot.lane.b32.xlu1 %v60_v6, %s74_s25 }
   0xe   :  { %43 = vrot.lane.b32.xlu0 %v61_v7, %s75_s0 }
  0x74   :  { %v8_v8 = vpop.permute.xlu0 %7   ;;  %v20_v9 = vpop.permute.xlu1 %19  }
  0x75   :  { %10 = vst.msk [vmem:[#allocation0] sm:$0x1] %vm9_vm1, %v8_v8  }
  0x78   :  { %v14_v10 = vpop.permute.xlu0 %13   ;;  %v26_v11 = vpop.permute.xlu1 %25  }
  0x79   :  { %16 = vst.msk [vmem:[#allocation0] sm:$0x1] %vm15_vm2, %v14_v10  }
  0x7a   :  { %22 = vst.msk [vmem:[#allocation0] sm:$0x1] %vm21_vm3, %v20_v9  }
  0x7b   :  { %28 = vst.msk [vmem:[#allocation0] sm:$0x1] %vm27_vm4, %v26_v11  }
  0x7c   :  { %v32_v12 = vpop.permute.xlu0 %31   ;;  %v38_v13 = vpop.permute.xlu1 %37  }
  0x7d   :  { %34 = vst.msk [vmem:[#allocation0] sm:$0x1] %vm33_vm5, %v32_v12  }
  0x7e   :  { %40 = vst.msk [vmem:[#allocation0] sm:$0x1] %vm39_vm6, %v38_v13  }
  0x80   :  { %v44_v14 = vpop.permute.xlu0 %43  }
  0x81   :  { %46 = vst.msk [vmem:[#allocation0] sm:$0x1] %vm45_vm7, %v44_v14  }
  0x88   :  { %v51_v15 = vld [vmem:[#allocation0] sm:$0x1] }
  0x89   :  { %54 = vst [vmem:[%s114_s1] sm:$0x1] %v51_v15 }

// kernel: tile.68
= control target key start
LH: loop header
LB: loop body
LE: loop exit
PB: predicated region body
PF: predicated region fallthrough
CT: control target
= control target key end

     0   :  { %2 = vsyncpa [#allocation1], 0  ;;  %s42_s6 = smov [#allocation0]   ;;  %s59_s0 = inlined_call_operand.hbm [shape: f32[4], index: 0, kind: input, shape index: {}]   ;;  %s60_s1 = inlined_call_operand.vmem [shape: f32[8,4], index: 1, kind: output, shape index: {}]  }
   0x1   :  { %s9_s7 = sshll.u32 %s42_s6, 4  ;;  %s10_s7 = int_to_ptr.vmem [resolvable:$true] %s9_s7 }
   0x2   :  { %s28_s8 = scalar_lea.vmem %s10_s7, 16  ;;  %s32_s9 = scalar_lea.vmem %s10_s7, 32 }
   0x3   :  { %p29_p0 = scmp.ne.s32.totalorder %s10_s7, %s28_s8  ;;  %p33_p1 = scmp.lt.s32.totalorder %s10_s7, %s10_s7 }
   0x4   :  { %p34_p2 = scmp.lt.s32.totalorder %s32_s9, %s28_s8 }
   0x6   :  { %p35_p3 = por %p34_p2, %p33_p1 }
   0x8   :  { %p36_p4 = pnand %p35_p3, %p29_p0 }
   0xa   :  { %39 = shalt.err (!%p36_p4)
}
   0xb   :  { %12 = dma.hbm_to_vmem [thread:$0]  %s59_s0, 16, %s10_s7, [#allocation1]  }
   0xc   :  { %40 = dma.done.wait [#allocation1], 16  }
   0xd   :  { %41 = vsyncadd [#allocation1], 4294967280  ;;  %v16_v0 = vld [vmem:[#allocation0] ss:$0 sm:$0xff] }
   0xe   :  { %17 = vst [vmem:[%s60_s1] sm:$0xff] %v16_v0 }
   0xf   :  { %18 = vsyncpa [#allocation1], 1 }

// kernel: tile.69
= control target key start
LH: loop header
LB: loop body
LE: loop exit
PB: predicated region body
PF: predicated region fallthrough
CT: control target
= control target key end

     0   :  { %s69_s10 = smov 28   ;;  %s70_s11 = smov 20   ;;  %vm3_vm0 = vcmask 31744   ;;  %vm9_vm1 = vcmask 261344   ;;  %vm15_vm2 = vcmask 228544   ;;  %vm21_vm3 = vcmask 195744   ;;  %s113_s0 = inlined_call_operand.vmem [shape: f32[8,4], index: 0, kind: input, shape index: {}]   ;;  %s114_s1 = inlined_call_operand.vmem [shape: f32[1,32], index: 1, kind: output, shape index: {}]  }
   0x1   :  { %v55_v0 = vld [vmem:[%s113_s0 + $0x7] sm:$0x1]   ;;  %v57_v1 = vld [vmem:[%s113_s0 + $0x5] sm:$0x1]   ;;  %v56_v2 = vld [vmem:[%s113_s0 + $0x6] sm:$0x1]  }
   0x2   :  { %7 = vrot.lane.b32.xlu0 %v55_v0, %s69_s10  ;;  %19 = vrot.lane.b32.xlu1 %v57_v1, %s70_s11  ;;  %v58_v3 = vld [vmem:[%s113_s0 + $0x4] sm:$0x1]   ;;  %v2_v4 = vld [vmem:[%s113_s0] sm:$0x1]   ;;  %s71_s18 = smov 24   ;;  %s72_s19 = smov 16  }
   0x3   :  { %4 = vst.msk [vmem:[#allocation0] sm:$0x1] %vm3_vm0, %v2_v4   ;;  %v59_v5 = vld [vmem:[%s113_s0 + $0x3] sm:$0x1]   ;;  %v60_v6 = vld [vmem:[%s113_s0 + $0x2] sm:$0x1]  }
   0x4   :  { %s73_s24 = smov 12   ;;  %s74_s25 = smov 8   ;;  %v61_v7 = vld [vmem:[%s113_s0 + $0x1] sm:$0x1]   ;;  %vm27_vm4 = vcmask 162944   ;;  %vm33_vm5 = vcmask 130144  }
   0x5   :  { %s75_s0 = smov 4   ;;  %vm39_vm6 = vcmask 97344   ;;  %vm45_vm7 = vcmask 64544  }
   0x6   :  { %13 = vrot.lane.b32.xlu0 %v56_v2, %s71_s18  ;;  %25 = vrot.lane.b32.xlu1 %v58_v3, %s72_s19 }
   0xa   :  { %31 = vrot.lane.b32.xlu0 %v59_v5, %s73_s24  ;;  %37 = vrot.lane.b32.xlu1 %v60_v6, %s74_s25 }
   0xe   :  { %43 = vrot.lane.b32.xlu0 %v61_v7, %s75_s0 }
  0x74   :  { %v8_v8 = vpop.permute.xlu0 %7   ;;  %v20_v9 = vpop.permute.xlu1 %19  }
  0x75   :  { %10 = vst.msk [vmem:[#allocation0] sm:$0x1] %vm9_vm1, %v8_v8  }
  0x78   :  { %v14_v10 = vpop.permute.xlu0 %13   ;;  %v26_v11 = vpop.permute.xlu1 %25  }
  0x79   :  { %16 = vst.msk [vmem:[#allocation0] sm:$0x1] %vm15_vm2, %v14_v10  }
  0x7a   :  { %22 = vst.msk [vmem:[#allocation0] sm:$0x1] %vm21_vm3, %v20_v9  }
  0x7b   :  { %28 = vst.msk [vmem:[#allocation0] sm:$0x1] %vm27_vm4, %v26_v11  }
  0x7c   :  { %v32_v12 = vpop.permute.xlu0 %31   ;;  %v38_v13 = vpop.permute.xlu1 %37  }
  0x7d   :  { %34 = vst.msk [vmem:[#allocation0] sm:$0x1] %vm33_vm5, %v32_v12  }
  0x7e   :  { %40 = vst.msk [vmem:[#allocation0] sm:$0x1] %vm39_vm6, %v38_v13  }
  0x80   :  { %v44_v14 = vpop.permute.xlu0 %43  }
  0x81   :  { %46 = vst.msk [vmem:[#allocation0] sm:$0x1] %vm45_vm7, %v44_v14  }
  0x88   :  { %v51_v15 = vld [vmem:[#allocation0] sm:$0x1] }
  0x89   :  { %54 = vst [vmem:[%s114_s1] sm:$0x1] %v51_v15 }

// kernel: tile.63
= control target key start
LH: loop header
LB: loop body
LE: loop exit
PB: predicated region body
PF: predicated region fallthrough
CT: control target
= control target key end

     0   :  { %2 = vsyncpa [#allocation1], 0  ;;  %s42_s6 = smov [#allocation0]   ;;  %s59_s0 = inlined_call_operand.hbm [shape: f32[32], index: 0, kind: input, shape index: {}]   ;;  %s60_s1 = inlined_call_operand.vmem [shape: f32[8,32], index: 1, kind: output, shape index: {}]  }
   0x1   :  { %s9_s7 = sshll.u32 %s42_s6, 4  ;;  %s10_s7 = int_to_ptr.vmem [resolvable:$true] %s9_s7 }
   0x2   :  { %s28_s8 = scalar_lea.vmem %s10_s7, 16  ;;  %s32_s9 = scalar_lea.vmem %s10_s7, 32 }
   0x3   :  { %p29_p0 = scmp.ne.s32.totalorder %s10_s7, %s28_s8  ;;  %p33_p1 = scmp.lt.s32.totalorder %s10_s7, %s10_s7 }
   0x4   :  { %p34_p2 = scmp.lt.s32.totalorder %s32_s9, %s28_s8 }
   0x6   :  { %p35_p3 = por %p34_p2, %p33_p1 }
   0x8   :  { %p36_p4 = pnand %p35_p3, %p29_p0 }
   0xa   :  { %39 = shalt.err (!%p36_p4)
}
   0xb   :  { %12 = dma.hbm_to_vmem [thread:$0]  %s59_s0, 16, %s10_s7, [#allocation1]  }
   0xc   :  { %40 = dma.done.wait [#allocation1], 16  }
   0xd   :  { %41 = vsyncadd [#allocation1], 4294967280  ;;  %v16_v0 = vld [vmem:[#allocation0] ss:$0 sm:$0xff] }
   0xe   :  { %17 = vst [vmem:[%s60_s1] sm:$0xff] %v16_v0 }
   0xf   :  { %18 = vsyncpa [#allocation1], 1 }

// kernel: tile.49
= control target key start
LH: loop header
LB: loop body
LE: loop exit
PB: predicated region body
PF: predicated region fallthrough
CT: control target
= control target key end

     0   :  { %s7_s6 = smov 3  ;;  %s14_s9 = smov 3  ;;  %vm4_vm0 = vcmask 261120   ;;  %vm11_vm1 = vcmask 1048320   ;;  %vm18_vm2 = vcmask 785920   ;;  %vm25_vm3 = vcmask 523520   ;;  %s69_s0 = inlined_call_operand.vmem [shape: f32[8,32], index: 0, kind: input, shape index: {}]   ;;  %s70_s1 = inlined_call_operand.vmem [shape: f32[256], index: 1, kind: output, shape index: {}]  }
   0x1   :  { %v35_v0 = vld [vmem:[%s69_s0 + $0x3] ss:$4 sm:%s7_s6]   ;;  %s41_s10 = smov 96   ;;  %s21_s11 = smov 3  ;;  %v36_v1 = vld [vmem:[%s69_s0 + $0x2] ss:$4 sm:%s14_s9]  }
   0x2   :  { %9 = vrot.lane.b32.xlu0 %v35_v0, %s41_s10  ;;  %v37_v2 = vld [vmem:[%s69_s0 + $0x1] ss:$4 sm:%s21_s11]   ;;  %s2_s16 = smov 3  ;;  %s42_s17 = smov 32  }
   0x3   :  { %23 = vrot.lane.b32.xlu1 %v37_v2, %s42_s17  ;;  %v3_v3 = vld [vmem:[%s69_s0] ss:$4 sm:%s2_s16]   ;;  %s43_s0 = smov 64  }
   0x4   :  { %5 = vst.msk [vmem:[#allocation0] sm:$0x3] %vm4_vm0, %v3_v3  }
   0x6   :  { %16 = vrot.lane.b32.xlu0 %v36_v1, %s43_s0 }
  0x74   :  { %v10_v4 = vpop.permute.xlu0 %9  }
  0x75   :  { %12 = vst.msk [vmem:[#allocation0] sm:$0x3] %vm11_vm1, %v10_v4   ;;  %v24_v5 = vpop.permute.xlu1 %23  }
  0x78   :  { %v17_v6 = vpop.permute.xlu0 %16  }
  0x79   :  { %19 = vst.msk [vmem:[#allocation0] sm:$0x3] %vm18_vm2, %v17_v6  }
  0x7a   :  { %26 = vst.msk [vmem:[#allocation0] sm:$0x3] %vm25_vm3, %v24_v5  }
  0x81   :  { %v31_v7 = vld [vmem:[#allocation0] sm:$0x3] }
  0x82   :  { %34 = vst [vmem:[%s70_s1] sm:$0x3] %v31_v7 }

// kernel: mtgode_forward.1
= control target key start
LH: loop header
LB: loop body
LE: loop exit
PB: predicated region body
PF: predicated region fallthrough
CT: control target
= control target key end

     0   :  { %v61_v0 = vlaneseq  ;;  %v19061_v2 = vmov 0   ;;  %v12691_v3 = vmov 1966171168   ;;  %vm567_vm0 = vcmask 130048   ;;  %s19047_s1 = inlined_call_operand.vmem [shape: bf16[16,256], index: 1, kind: input, shape index: {}]   ;;  %s19048_s0 = inlined_call_operand.vmem [shape: f32[2,19,16], index: 0, kind: input, shape index: {}]   ;;  %s19049_s3 = inlined_call_operand.vmem [shape: bf16[7,256,512], index: 3, kind: input, shape index: {}]   ;;  %s19050_s2 = inlined_call_operand.vmem [shape: f32[1,256], index: 2, kind: input, shape index: {}]   ;;  %s19051_s5 = inlined_call_operand.vmem [shape: bf16[256,256], index: 5, kind: input, shape index: {}]   ;;  %s19052_s4 = inlined_call_operand.vmem [shape: f32[1,512], index: 4, kind: input, shape index: {}]   ;;  %s19053_s6 = inlined_call_operand.vmem [shape: f32[1,256], index: 6, kind: input, shape index: {}]   ;;  %s19054_s7 = inlined_call_operand.vmem [shape: bf16[256,128], index: 7, kind: input, shape index: {}]   ;;  %s19055_s9 = inlined_call_operand.vmem [shape: bf16[128,256], index: 9, kind: input, shape index: {}]   ;;  %s19056_s11 = inlined_call_operand.vmem [shape: bf16[256,32], index: 11, kind: input, shape index: {}]   ;;  %s19057_s8 = inlined_call_operand.vmem [shape: f32[1,128], index: 8, kind: input, shape index: {}]   ;;  %s19058_s10 = inlined_call_operand.vmem [shape: f32[1,256], index: 10, kind: input, shape index: {}]   ;;  %s19059_s12 = inlined_call_operand.vmem [shape: f32[1,32], index: 12, kind: input, shape index: {}]   ;;  %s19060_s13 = inlined_call_operand.vmem [shape: f32[2,1,32], index: 13, kind: output, shape index: {}]  }
   0x1   :  { %v10861_v1 = vld [vmem:[%s19047_s1 + $0x4] ss:$8 sps:$4 sm:$0xff]   ;;  %609 = vmatprep.mubr.bf16.mxu0 %v19061_v2  ;;  %v59_v4 = vunpack.c.l.s4 %v12691_v3  ;;  %v10863_v5 = vld [vmem:[%s19047_s1] ss:$8 sps:$4 sm:$0xff]   ;;  %v48_v13 = vld [vmem:[%s19048_s0 + $0x18] sm:$0xff]  ;;  %vm8389_vm1 = vcmask 1041409  }
   0x2   :  { %v45_v6 = vld [vmem:[%s19048_s0] sm:$0xff]  ;;  %v46_v7 = vld [vmem:[%s19048_s0 + $0x8] sm:$0xff]  ;;  %v12775_v8 = vshrl.u32 %v61_v0, 7  ;;  %591 = vmatprep.subr.bf16.mxu0 %v10861_v1  ;;  %v178_v16 = vcombine.high %v48_v13, %v48_v13  ;;  %vm9170_vm2 = vcmask 1041408   ;;  %vm9813_vm3 = vcmask 253952  }
   0x3   :  { %v57_v9 = vcombine.high %v45_v6, %v45_v6  ;;  %v60_v10 = vunpack.c.0.s8 %v59_v4  ;;  %v106_v11 = vcombine.high %v46_v7, %v46_v7  ;;  %v9820_v12 = vld.sshfl [vmem:[%s19048_s0 + $0x10] sm:$0x13 pattern:$0x75316420]  ;;  %v12786_v14 = vld [vmem:[%s19048_s0 + $0x20] sm:$0xff]  ;;  %592 = vmatpush1.bf16.msra.mxu0 %v10863_v5 }
   0x4   :  { %v162_v15 = vcombine.high %v9820_v12, %v9820_v12  ;;  %v12791_v17 = vld.sshfl [vmem:[%s19048_s0 + $0x28] sm:$0x13 pattern:$0x75316420]  ;;  %v10868_v19 = vld [vmem:[%s19049_s3 + $0x2e4] ss:$16 sps:$4 sm:$0xff]   ;;  %v227_v20 = vcombine.high %v12786_v14, %v12786_v14 }
   0x5   :  { %v12794_v18 = vsub.s32 %v60_v10, %v12775_v8  ;;  %v283_v21 = vcombine.high %v12791_v17, %v12791_v17  ;;  %v10872_v22 = vld [vmem:[%s19049_s3 + $0x2ec] ss:$16 sps:$4 sm:$0xff]   ;;  %v10873_v23 = vld [vmem:[%s19049_s3 + $0x2e0] ss:$16 sps:$4 sm:$0xff]   ;;  %1988 = vmatprep.subr.bf16.mxu1 %v10868_v19  ;;  %v10874_v28 = vld [vmem:[%s19049_s3 + $0x2c4] ss:$16 sps:$4 sm:$0xff]  }
   0x6   :  { %2041 = vmatprep.subr.bf16.mxu0 %v10872_v22  ;;  %1989 = vmatpush1.bf16.msra.mxu1 %v10873_v23  ;;  %v10879_v37 = vld [vmem:[%s19049_s3 + $0x2c0] ss:$16 sps:$4 sm:$0xff]   ;;  %v10880_v42 = vld [vmem:[%s19049_s3 + $0x2a4] ss:$16 sps:$4 sm:$0xff]  }
   0x7   :  { %19122 = vst [vmem:[#allocation2_spill] sm:$0xff] %v12794_v18  ;;  %v64_v24 = vrot.slane %v45_v6, %v12794_v18  ;;  %v71_v25 = vrot.slane %v57_v9, %v12794_v18  ;;  %v113_v26 = vrot.slane %v46_v7, %v12794_v18  ;;  %v120_v27 = vrot.slane %v106_v11, %v12794_v18 }
   0x8   :  { %v12817_v29 = vrot.slane %v9820_v12, %v12794_v18  ;;  %v12820_v30 = vrot.slane %v162_v15, %v12794_v18  ;;  %v185_v31 = vrot.slane %v48_v13, %v12794_v18  ;;  %v192_v32 = vrot.slane %v178_v16, %v12794_v18  ;;  %1990 = vmatprep.subr.bf16.mxu1 %v10874_v28 }
   0x9   :  { %v72_v33 = vcombine.high %v64_v24, %v64_v24  ;;  %v73_v34 = vcombine.high %v71_v25, %v71_v25  ;;  %v80_v35 = vrot.slane %v64_v24, %v12794_v18  ;;  %v87_v36 = vrot.slane %v71_v25, %v12794_v18 }
   0xa   :  { %v121_v38 = vcombine.high %v113_v26, %v113_v26  ;;  %v122_v39 = vcombine.high %v120_v27, %v120_v27  ;;  %v129_v40 = vrot.slane %v113_v26, %v12794_v18  ;;  %v136_v41 = vrot.slane %v120_v27, %v12794_v18  ;;  %1991 = vmatpush1.bf16.msra.mxu1 %v10879_v37 }
   0xb   :  { %v94_v43 = vrot.slane %v72_v33, %v12794_v18  ;;  %v101_v44 = vrot.slane %v73_v34, %v12794_v18  ;;  %v177_v45 = vcombine.high %v12817_v29, %v12817_v29  ;;  %v193_v46 = vcombine.high %v185_v31, %v185_v31  ;;  %1992 = vmatprep.subr.bf16.mxu1 %v10880_v42 }
   0xc   :  { %v143_v47 = vrot.slane %v121_v38, %v12794_v18  ;;  %v150_v48 = vrot.slane %v122_v39, %v12794_v18  ;;  %v194_v49 = vcombine.high %v192_v32, %v192_v32  ;;  %v201_v50 = vrot.slane %v185_v31, %v12794_v18 }
   0xd   :  { %v299_v51 = vcombine.low %v80_v35, %v94_v43  ;;  %v9822_v52 = vcombine.high %v80_v35, %v94_v43  ;;  %v301_v53 = vcombine.low %v87_v36, %v101_v44  ;;  %v9823_v54 = vcombine.high %v87_v36, %v101_v44  ;;  %v10870_v36 = vld [vmem:[%s19049_s3 + $0x2e8] ss:$16 sps:$4 sm:$0xff]  }
   0xe   :  { %v348_v55 = vcombine.low %v129_v40, %v143_v47  ;;  %v9824_v56 = vcombine.high %v129_v40, %v143_v47  ;;  %v350_v57 = vcombine.low %v136_v41, %v150_v48  ;;  %v9825_v58 = vcombine.high %v136_v41, %v150_v48 }
   0xf   :  { %v309_v59 = vrot.slane %v299_v51, %v12794_v18  ;;  %v316_v60 = vrot.slane %v9822_v52, %v12794_v18  ;;  %v323_v61 = vrot.slane %v301_v53, %v12794_v18  ;;  %v330_v62 = vrot.slane %v9823_v54, %v12794_v18  ;;  %v10884_v54 = vld [vmem:[%s19049_s3 + $0x2ac] ss:$16 sps:$4 sm:$0xff]  }
  0x10   :  { %v358_v63 = vrot.slane %v348_v55, %v12794_v18  ;;  %v365_v0 = vrot.slane %v9824_v56, %v12794_v18  ;;  %v372_v1 = vrot.slane %v350_v57, %v12794_v18  ;;  %v379_v3 = vrot.slane %v9825_v58, %v12794_v18 }
  0x11   :  { %v331_v4 = vcombine.low %v309_v59, %v316_v60  ;;  %v332_v5 = vcombine.low %v323_v61, %v330_v62  ;;  %v208_v6 = vrot.slane %v192_v32, %v12794_v18  ;;  %v215_v7 = vrot.slane %v193_v46, %v12794_v18 }
  0x12   :  { %v380_v9 = vcombine.low %v358_v63, %v365_v0  ;;  %v381_v10 = vcombine.low %v372_v1, %v379_v3  ;;  %v222_v11 = vrot.slane %v194_v49, %v12794_v18  ;;  %v223_v12 = vcombine.high %v201_v50, %v201_v50 }
  0x13   :  { %v339_v13 = vrot.slane %v331_v4, %v12794_v18  ;;  %v346_v15 = vrot.slane %v332_v5, %v12794_v18  ;;  %v224_v16 = vcombine.high %v208_v6, %v208_v6  ;;  %v225_v19 = vcombine.high %v215_v7, %v215_v7  ;;  %v10882_v4 = vld [vmem:[%s19049_s3 + $0x2a8] ss:$16 sps:$4 sm:$0xff]  }
  0x14   :  { %v388_v22 = vrot.slane %v380_v9, %v12794_v18  ;;  %v395_v23 = vrot.slane %v381_v10, %v12794_v18  ;;  %v226_v24 = vcombine.high %v222_v11, %v222_v11  ;;  %v234_v25 = vrot.slane %v12786_v14, %v12794_v18 }
  0x15   :  { %v347_v26 = vcombine.low %v339_v13, %v346_v15  ;;  %v241_v27 = vrot.slane %v227_v20, %v12794_v18  ;;  %v397_v28 = vcombine.low %v12817_v29, %v12820_v30  ;;  %v398_v31 = vcombine.low %v177_v45, %v201_v50  ;;  %v10878_v20 = vld [vmem:[%s19049_s3 + $0x2cc] ss:$16 sps:$4 sm:$0xff]   ;;  %v10876_v50 = vld [vmem:[%s19049_s3 + $0x2c8] ss:$16 sps:$4 sm:$0xff]  }
  0x16   :  { %v396_v32 = vcombine.low %v388_v22, %v395_v23  ;;  %v242_v33 = vcombine.high %v234_v25, %v234_v25  ;;  %v250_v34 = vrot.slane %v234_v25, %v12794_v18  ;;  %v399_v35 = vcombine.low %v215_v7, %v223_v12  ;;  %v10885_v25 = vld [vmem:[%s19049_s3 + $0x2a0] ss:$16 sps:$4 sm:$0xff]  }
  0x17   :  { %v257_v37 = vrot.slane %v241_v27, %v12794_v18  ;;  %v400_v38 = vcombine.low %v225_v19, %v208_v6  ;;  %v407_v39 = vrot.slane %v397_v28, %v12794_v18  ;;  %v414_v14 = vrot.slane %v398_v31, %v12794_v18  ;;  %1993 = vmatpush1.bf16.msra.mxu1 %v10885_v25  ;;  %v10888_v28 = vld [vmem:[%s19049_s3 + $0x288] ss:$16 sps:$4 sm:$0xff]   ;;  %v10891_v31 = vld [vmem:[%s19049_s3 + $0x280] ss:$16 sps:$4 sm:$0xff]  }
  0x18   :  { %v540_v29 = vpack.c.bf16 %v396_v32, %v347_v26  ;;  %v264_v30 = vrot.slane %v242_v33, %v12794_v18  ;;  %v272_v40 = vcombine.high %v250_v34, %v250_v34  ;;  %v421_v41 = vrot.slane %v399_v35, %v12794_v18  ;;  %v10886_v26 = vld [vmem:[%s19049_s3 + $0x284] ss:$16 sps:$4 sm:$0xff]   ;;  %v10896_v33 = vld [vmem:[%s19049_s3 + $0x26c] ss:$16 sps:$4 sm:$0xff]   ;;  %v10897_v35 = vld [vmem:[%s19049_s3 + $0x260] ss:$16 sps:$4 sm:$0xff]  }
  0x19   :  { %v428_v42 = vrot.slane %v400_v38, %v12794_v18  ;;  %v429_v43 = vcombine.low %v407_v39, %v414_v14  ;;  %v446_v44 = vcombine.low %v222_v11, %v224_v16  ;;  %v447_v45 = vcombine.low %v226_v24, %v250_v34  ;;  %1994 = vmatprep.subr.bf16.mxu1 %v10886_v26  ;;  %v10892_v32 = vld [vmem:[%s19049_s3 + $0x264] ss:$16 sps:$4 sm:$0xff]   ;;  %v10894_v34 = vld [vmem:[%s19049_s3 + $0x268] ss:$16 sps:$4 sm:$0xff]   ;;  %v10903_v39 = vld [vmem:[%s19049_s3 + $0x240] ss:$16 sps:$4 sm:$0xff]  }
  0x1a   :  { %9828 = vmatmul.mubr.msk.bf16.vlgmr.msra.gmra.mxu0 %vm567_vm0, %v540_v29  ;;  %v274_v46 = vcombine.high %v264_v30, %v264_v30  ;;  %v448_v47 = vcombine.low %v264_v30, %v272_v40  ;;  %v243_v48 = vcombine.high %v241_v27, %v241_v27  ;;  %v273_v49 = vcombine.high %v257_v37, %v257_v37  ;;  %v10890_v27 = vld [vmem:[%s19049_s3 + $0x28c] ss:$16 sps:$4 sm:$0xff]   ;;  %v10900_v38 = vld [vmem:[%s19049_s3 + $0x248] ss:$16 sps:$4 sm:$0xff]   ;;  %v10904_v14 = vld [vmem:[%s19049_s3 + $0x224] ss:$16 sps:$4 sm:$0xff]  }
  0x1b   :  { %619 = vmatprep.mubr.bf16.mxu0 %v19061_v2  ;;  %v430_v51 = vcombine.low %v421_v41, %v428_v42  ;;  %v456_v52 = vrot.slane %v446_v44, %v12794_v18  ;;  %v463_v53 = vrot.slane %v447_v45, %v12794_v18  ;;  %v290_v58 = vrot.slane %v12791_v17, %v12794_v18  ;;  %v10906_v29 = vld [vmem:[%s19049_s3 + $0x228] ss:$16 sps:$4 sm:$0xff]   ;;  %v10909_v30 = vld [vmem:[%s19049_s3 + $0x220] ss:$16 sps:$4 sm:$0xff]   ;;  %v10910_v40 = vld [vmem:[%s19049_s3 + $0x204] ss:$16 sps:$4 sm:$0xff]  }
  0x1c   :  { %v449_v55 = vcombine.low %v274_v46, %v257_v37  ;;  %v470_v56 = vrot.slane %v448_v47, %v12794_v18  ;;  %v271_v57 = vrot.slane %v243_v48, %v12794_v18  ;;  %2042 = vmatpush1.bf16.msra.mxu0 %v10870_v36  ;;  %v437_v59 = vrot.slane %v429_v43, %v12794_v18  ;;  %v10898_v36 = vld [vmem:[%s19049_s3 + $0x244] ss:$16 sps:$4 sm:$0xff]   ;;  %v10902_v37 = vld [vmem:[%s19049_s3 + $0x24c] ss:$16 sps:$4 sm:$0xff]   ;;  %v10912_v42 = vld [vmem:[%s19049_s3 + $0x208] ss:$16 sps:$4 sm:$0xff]  }
  0x1d   :  { %v444_v60 = vrot.slane %v430_v51, %v12794_v18  ;;  %v478_v61 = vcombine.low %v456_v52, %v463_v53  ;;  %v297_v62 = vrot.slane %v283_v21, %v12794_v18  ;;  %2043 = vmatprep.subr.bf16.mxu0 %v10878_v20  ;;  %v298_v1 = vcombine.high %v290_v58, %v290_v58  ;;  %v10908_v20 = vld [vmem:[%s19049_s3 + $0x22c] ss:$16 sps:$4 sm:$0xff]   ;;  %v10915_v43 = vld [vmem:[%s19049_s3 + $0x200] ss:$16 sps:$4 sm:$0xff]   ;;  %v10916_v44 = vld [vmem:[%s19049_s3 + $0x3e4] ss:$16 sps:$4 sm:$0xff]  }
  0x1e   :  { %v477_v63 = vrot.slane %v449_v55, %v12794_v18  ;;  %v275_v0 = vcombine.high %v271_v57, %v271_v57  ;;  %v495_v3 = vcombine.low %v271_v57, %v273_v49  ;;  %1995 = vmatpush1.bf16.msra.mxu1 %v10891_v31  ;;  %v10914_v41 = vld [vmem:[%s19049_s3 + $0x20c] ss:$16 sps:$4 sm:$0xff]   ;;  %v10918_v46 = vld [vmem:[%s19049_s3 + $0x3e8] ss:$16 sps:$4 sm:$0xff]   ;;  %v10921_v47 = vld [vmem:[%s19049_s3 + $0x3e0] ss:$16 sps:$4 sm:$0xff]  }
  0x1f   :  { %v486_v5 = vrot.slane %v478_v61, %v12794_v18  ;;  %v497_v9 = vcombine.low %v297_v62, %v298_v1  ;;  %v445_v17 = vcombine.low %v437_v59, %v444_v60  ;;  %1996 = vmatprep.subr.bf16.mxu1 %v10892_v32  ;;  %v10920_v45 = vld [vmem:[%s19049_s3 + $0x3ec] ss:$16 sps:$4 sm:$0xff]   ;;  %v10922_v48 = vld [vmem:[%s19049_s3 + $0x3c4] ss:$16 sps:$4 sm:$0xff]   ;;  %v10927_v51 = vld [vmem:[%s19049_s3 + $0x3c0] ss:$16 sps:$4 sm:$0xff]  }
  0x20   :  { %v479_v6 = vcombine.low %v470_v56, %v477_v63  ;;  %v496_v7 = vcombine.low %v275_v0, %v290_v58  ;;  %v504_v10 = vrot.slane %v495_v3, %v12794_v18  ;;  %2044 = vmatpush1.bf16.msra.mxu0 %v10876_v50  ;;  %v10926_v49 = vld [vmem:[%s19049_s3 + $0x3cc] ss:$16 sps:$4 sm:$0xff]   ;;  %v10924_v50 = vld [vmem:[%s19049_s3 + $0x3c8] ss:$16 sps:$4 sm:$0xff]   ;;  %v10928_v52 = vld [vmem:[%s19049_s3 + $0x3a4] ss:$16 sps:$4 sm:$0xff]  }
  0x21   :  { %2045 = vmatprep.subr.bf16.mxu0 %v10884_v54  ;;  %v518_v12 = vrot.slane %v497_v9, %v12794_v18  ;;  %v10932_v53 = vld [vmem:[%s19049_s3 + $0x3ac] ss:$16 sps:$4 sm:$0xff]   ;;  %v10930_v54 = vld [vmem:[%s19049_s3 + $0x3a8] ss:$16 sps:$4 sm:$0xff]   ;;  %v10933_v55 = vld [vmem:[%s19049_s3 + $0x3a0] ss:$16 sps:$4 sm:$0xff]  }
  0x22   :  { %v493_v21 = vrot.slane %v479_v6, %v12794_v18  ;;  %v511_v11 = vrot.slane %v496_v7, %v12794_v18  ;;  %1997 = vmatpush1.bf16.msra.mxu1 %v10897_v35  ;;  %v10934_v56 = vld [vmem:[%s19049_s3 + $0x384] ss:$16 sps:$4 sm:$0xff]   ;;  %v10938_v57 = vld [vmem:[%s19049_s3 + $0x38c] ss:$16 sps:$4 sm:$0xff]   ;;  %v10936_v58 = vld [vmem:[%s19049_s3 + $0x388] ss:$16 sps:$4 sm:$0xff]  }
  0x23   :  { %v533_v16 = vrot.slane %v518_v12, %v12794_v18  ;;  %1998 = vmatprep.subr.bf16.mxu1 %v10898_v36  ;;  %v10939_v59 = vld [vmem:[%s19049_s3 + $0x380] ss:$16 sps:$4 sm:$0xff]   ;;  %v10940_v60 = vld [vmem:[%s19049_s3 + $0x364] ss:$16 sps:$4 sm:$0xff]   ;;  %v10944_v61 = vld [vmem:[%s19049_s3 + $0x36c] ss:$16 sps:$4 sm:$0xff]  }
  0x24   :  { %v494_v13 = vcombine.low %v486_v5, %v493_v21  ;;  %v519_v15 = vcombine.low %v504_v10, %v511_v11  ;;  %2046 = vmatpush1.bf16.msra.mxu0 %v10882_v4  ;;  %v10942_v62 = vld [vmem:[%s19049_s3 + $0x368] ss:$16 sps:$4 sm:$0xff]   ;;  %v10945_v63 = vld [vmem:[%s19049_s3 + $0x360] ss:$16 sps:$4 sm:$0xff]   ;;  %v10946_v0 = vld [vmem:[%s19049_s3 + $0x344] ss:$16 sps:$4 sm:$0xff]  }
  0x25   :  { %2047 = vmatprep.subr.bf16.mxu0 %v10890_v27  ;;  %v10950_v1 = vld [vmem:[%s19049_s3 + $0x34c] ss:$16 sps:$4 sm:$0xff]   ;;  %v10948_v3 = vld [vmem:[%s19049_s3 + $0x348] ss:$16 sps:$4 sm:$0xff]   ;;  %v10951_v4 = vld [vmem:[%s19049_s3 + $0x340] ss:$16 sps:$4 sm:$0xff]  }
  0x26   :  { %v541_v19 = vpack.c.bf16 %v494_v13, %v445_v17  ;;  %v526_v22 = vrot.slane %v519_v15, %v12794_v18  ;;  %1999 = vmatpush1.bf16.msra.mxu1 %v10903_v39  ;;  %v10952_v5 = vld [vmem:[%s19049_s3 + $0x324] ss:$16 sps:$4 sm:$0xff]   ;;  %v10954_v6 = vld [vmem:[%s19049_s3 + $0x328] ss:$16 sps:$4 sm:$0xff]   ;;  %v10956_v7 = vld [vmem:[%s19049_s3 + $0x32c] ss:$16 sps:$4 sm:$0xff]  }
  0x27   :  { %2000 = vmatprep.subr.bf16.mxu1 %v10904_v14  ;;  %v10957_v9 = vld [vmem:[%s19049_s3 + $0x320] ss:$16 sps:$4 sm:$0xff]   ;;  %v10958_v10 = vld [vmem:[%s19049_s3 + $0x304] ss:$16 sps:$4 sm:$0xff]   ;;  %v10960_v17 = vld [vmem:[%s19049_s3 + $0x308] ss:$16 sps:$4 sm:$0xff]  }
  0x28   :  { %9829 = vmatmul.mubr.msk.bf16.gmra.mxu0 %vm567_vm0, %v541_v19  ;;  %v534_v23 = vcombine.low %v526_v22, %v533_v16  ;;  %v10962_v21 = vld [vmem:[%s19049_s3 + $0x30c] ss:$16 sps:$4 sm:$0xff]   ;;  %v10963_v11 = vld [vmem:[%s19049_s3 + $0x300] ss:$16 sps:$4 sm:$0xff]   ;;  %v10966_v12 = vld [vmem:[%s19049_s3 + $0xe4] ss:$16 sps:$4 sm:$0xff]  }
  0x29   :  { %629 = vmatprep.mubr.bf16.mxu0 %v19061_v2  ;;  %2048 = vmatpush1.bf16.msra.mxu0 %v10888_v28  ;;  %v10969_v13 = vld [vmem:[%s19049_s3 + $0xec] ss:$16 sps:$4 sm:$0xff]   ;;  %v13077_v15 = vsub.s32 0, %v12775_v8  ;;  %v13080_v16 = vsub.s32 1, %v12775_v8  ;;  %v545_v19 = vld [vmem:[%s19050_s2] sm:$0x3] }
  0x2a   :  { %v542_v24 = vpack.c.bf16 %v534_v23, %v534_v23  ;;  %2049 = vmatprep.subr.bf16.mxu0 %v10896_v33  ;;  %2001 = vmatpush1.bf16.msra.mxu1 %v10909_v30 }
  0x2b   :  { %2002 = vmatprep.subr.bf16.mxu1 %v10910_v40  ;;  %19123 = vst [vmem:[#allocation3_spill] sm:$0xff] %v13077_v15  ;;  %19124 = vst [vmem:[#allocation4_spill] sm:$0xff] %v13080_v16  ;;  %v13086_v22 = vrot.slane %v545_v19, %v13077_v15  ;;  %v13089_v23 = vrot.slane %v545_v19, %v13080_v16 }
  0x2d   :  { %2050 = vmatpush1.bf16.msra.mxu0 %v10894_v34 }
  0x2e   :  { %2051 = vmatprep.subr.bf16.mxu0 %v10902_v37  ;;  %2003 = vmatpush1.bf16.msra.mxu1 %v10915_v43 }
  0x2f   :  { %2004 = vmatprep.subr.bf16.mxu1 %v10916_v44 }
  0x30   :  { %9830 = vmatmul.mubr.msk.bf16.gmra.mxu0 %vm567_vm0, %v542_v24 }
  0x31   :  { %2052 = vmatpush1.bf16.msra.mxu0 %v10900_v38 }
  0x32   :  { %2053 = vmatprep.subr.bf16.mxu0 %v10908_v20  ;;  %2005 = vmatpush2.bf16.msra.mxu1 %v10921_v47 }
  0x33   :  { %2006 = vmatprep.subr.bf16.mxu1 %v10922_v48 }
  0x35   :  { %2054 = vmatpush1.bf16.msra.mxu0 %v10906_v29 }
  0x36   :  { %2055 = vmatprep.subr.bf16.mxu0 %v10914_v41  ;;  %2007 = vmatpush2.bf16.msra.mxu1 %v10927_v51 }
  0x37   :  { %2008 = vmatprep.subr.bf16.mxu1 %v10928_v52 }
  0x39   :  { %2056 = vmatpush1.bf16.msra.mxu0 %v10912_v42 }
  0x3a   :  { %2057 = vmatprep.subr.bf16.mxu0 %v10920_v45  ;;  %2009 = vmatpush2.bf16.msra.mxu1 %v10933_v55 }
  0x3b   :  { %2010 = vmatprep.subr.bf16.mxu1 %v10934_v56 }
  0x3d   :  { %2058 = vmatpush2.bf16.msra.mxu0 %v10918_v46 }
  0x3e   :  { %2059 = vmatprep.subr.bf16.mxu0 %v10926_v49  ;;  %2011 = vmatpush2.bf16.msra.mxu1 %v10939_v59 }
  0x3f   :  { %2012 = vmatprep.subr.bf16.mxu1 %v10940_v60 }
  0x41   :  { %2060 = vmatpush2.bf16.msra.mxu0 %v10924_v50 }
  0x42   :  { %2061 = vmatprep.subr.bf16.mxu0 %v10932_v53  ;;  %2013 = vmatpush2.bf16.msra.mxu1 %v10945_v63 }
  0x43   :  { %2014 = vmatprep.subr.bf16.mxu1 %v10946_v0 }
  0x45   :  { %2062 = vmatpush2.bf16.msra.mxu0 %v10930_v54 }
  0x46   :  { %2063 = vmatprep.subr.bf16.mxu0 %v10938_v57  ;;  %2015 = vmatpush2.bf16.msra.mxu1 %v10951_v4 }
  0x47   :  { %2016 = vmatprep.subr.bf16.mxu1 %v10952_v5 }
  0x49   :  { %2064 = vmatpush2.bf16.msra.mxu0 %v10936_v58 }
  0x4a   :  { %2065 = vmatprep.subr.bf16.mxu0 %v10944_v61  ;;  %2017 = vmatpush2.bf16.msra.mxu1 %v10957_v9 }
  0x4b   :  { %2018 = vmatprep.subr.bf16.mxu1 %v10958_v10 }
  0x4d   :  { %2066 = vmatpush2.bf16.msra.mxu0 %v10942_v62 }
  0x4e   :  { %2067 = vmatprep.subr.bf16.mxu0 %v10950_v1  ;;  %2019 = vmatpush2.bf16.msra.mxu1 %v10963_v11 }
  0x4f   :  { %2553 = vmatprep.subr.bf16.mxu1 %v10966_v12 }
  0x51   :  { %2068 = vmatpush2.bf16.msra.mxu0 %v10948_v3 }
  0x52   :  { %2069 = vmatprep.subr.bf16.mxu0 %v10956_v7 }
  0x55   :  { %2070 = vmatpush2.bf16.msra.mxu0 %v10954_v6 }
  0x56   :  { %2071 = vmatprep.subr.bf16.mxu0 %v10962_v21 }
  0x59   :  { %2072 = vmatpush2.bf16.msra.mxu0 %v10960_v17 }
  0x5a   :  { %2606 = vmatprep.subr.bf16.mxu0 %v10969_v13 }
  0xda   :  { %v611_v24 = vpop.f32.mrf.mxu0 }
  0xdb   :  { %v612_v26 = vadd.f32 %v611_v24, %v13086_v22 }
  0xdc   :  { %v613_v25 = vpop.f32.mrf.mxu0 }
  0xdd   :  { %v614_v27 = vadd.f32 %v613_v25, %v13089_v23 }
  0xde   :  { %v615_v28 = vpop.f32.mrf.mxu0 }
  0xdf   :  { %v648_v31 = vcombine.low %v612_v26, %v614_v27  ;;  %v649_v32 = vcombine.high %v612_v26, %v614_v27  ;;  %v616_v37 = vadd.f32 %v615_v28, %v13086_v22 }
  0xe0   :  { %v617_v33 = vpop.f32.mrf.mxu0 }
  0xe1   :  { %v656_v34 = vrot.slane %v648_v31, %v12794_v18  ;;  %v663_v35 = vrot.slane %v649_v32, %v12794_v18  ;;  %v618_v36 = vadd.f32 %v617_v33, %v13089_v23 }
  0xe3   :  { %v664_v38 = vcombine.high %v656_v34, %v656_v34  ;;  %v665_v39 = vcombine.high %v663_v35, %v663_v35  ;;  %v698_v14 = vcombine.low %v616_v37, %v618_v36  ;;  %v699_v20 = vcombine.high %v616_v37, %v618_v36 }
  0xe4   :  { %v672_v29 = vrot.slane %v656_v34, %v12794_v18  ;;  %v13099_v30 = vrot.slane %v663_v35, %v12794_v18 }
  0xe5   :  { %v686_v40 = vrot.slane %v664_v38, %v12794_v18  ;;  %v13103_v41 = vrot.slane %v665_v39, %v12794_v18  ;;  %v706_v42 = vrot.slane %v698_v14, %v12794_v18  ;;  %v713_v43 = vrot.slane %v699_v20, %v12794_v18 }
  0xe6   :  { %19125 = vst [vmem:[#allocation5_spill] sm:$0xff] %v13099_v30 }
  0xe7   :  { %19126 = vst [vmem:[#allocation6_spill] sm:$0xff] %v13103_v41  ;;  %v924_v44 = vcombine.low %v672_v29, %v686_v40  ;;  %v9831_v45 = vcombine.high %v672_v29, %v686_v40  ;;  %v926_v46 = vcombine.low %v13099_v30, %v13103_v41  ;;  %v9832_v47 = vcombine.high %v13099_v30, %v13103_v41 }
  0xe8   :  { %v714_v48 = vcombine.high %v706_v42, %v706_v42  ;;  %v715_v49 = vcombine.high %v713_v43, %v713_v43  ;;  %v621_v50 = vpop.f32.mrf.mxu0  ;;  %v13115_v54 = vrot.slane %v706_v42, %v12794_v18  ;;  %v13119_v56 = vrot.slane %v713_v43, %v12794_v18 }
  0xe9   :  { %v934_v51 = vrot.slane %v924_v44, %v12794_v18  ;;  %v941_v52 = vrot.slane %v9831_v45, %v12794_v18  ;;  %v948_v53 = vrot.slane %v926_v46, %v12794_v18  ;;  %v955_v55 = vrot.slane %v9832_v47, %v12794_v18 }
  0xea   :  { %19127 = vst [vmem:[#allocation7_spill] sm:$0xff] %v13115_v54  ;;  %19128 = vst [vmem:[#allocation8_spill] sm:$0xff] %v13119_v56  ;;  %v13122_v57 = vrot.slane %v714_v48, %v12794_v18  ;;  %v13125_v58 = vrot.slane %v715_v49, %v12794_v18  ;;  %v623_v59 = vpop.f32.mrf.mxu0  ;;  %v622_v62 = vadd.f32 %v621_v50, %v13086_v22 }
  0xeb   :  { %v956_v60 = vcombine.low %v934_v51, %v941_v52  ;;  %v957_v61 = vcombine.high %v934_v51, %v941_v52  ;;  %v624_v63 = vadd.f32 %v623_v59, %v13089_v23  ;;  %v958_v0 = vcombine.low %v948_v53, %v955_v55 }
  0xec   :  { %19129 = vst [vmem:[#allocation9_spill] sm:$0xff] %v13122_v57  ;;  %19130 = vst [vmem:[#allocation10_spill] sm:$0xff] %v13125_v58  ;;  %v959_v1 = vcombine.high %v948_v53, %v955_v55  ;;  %v990_v3 = vcombine.low %v13115_v54, %v13122_v57  ;;  %v9833_v4 = vcombine.high %v13115_v54, %v13122_v57  ;;  %v625_v5 = vpop.f32.mrf.mxu0  ;;  %v11763_v54 = vld [vmem:[%s19049_s3 + $0x2ec] ss:$16 sps:$4 sm:$0xff]  }
  0xed   :  { %v966_v6 = vrot.slane %v956_v60, %v12794_v18  ;;  %v973_v7 = vrot.slane %v957_v61, %v12794_v18  ;;  %v992_v9 = vcombine.low %v13119_v56, %v13125_v58  ;;  %v9834_v10 = vcombine.high %v13119_v56, %v13125_v58 }
  0xee   :  { %v980_v17 = vrot.slane %v958_v0, %v12794_v18  ;;  %v987_v21 = vrot.slane %v959_v1, %v12794_v18  ;;  %v1000_v11 = vrot.slane %v990_v3, %v12794_v18  ;;  %v1007_v12 = vrot.slane %v9833_v4, %v12794_v18  ;;  %v627_v13 = vpop.f32.mrf.mxu0 }
  0xef   :  { %v1014_v19 = vrot.slane %v992_v9, %v12794_v18  ;;  %v1021_v24 = vrot.slane %v9834_v10, %v12794_v18  ;;  %v748_v25 = vcombine.low %v622_v62, %v624_v63  ;;  %v749_v26 = vcombine.high %v622_v62, %v624_v63 }
  0xf0   :  { %v988_v27 = vcombine.low %v966_v6, %v980_v17  ;;  %v989_v28 = vcombine.low %v973_v7, %v987_v21  ;;  %v1022_v31 = vcombine.low %v1000_v11, %v1007_v12  ;;  %v1023_v32 = vcombine.high %v1000_v11, %v1007_v12  ;;  %v631_v33 = vpop.f32.mrf.mxu0 }
  0xf1   :  { %v1024_v34 = vcombine.low %v1014_v19, %v1021_v24  ;;  %v1025_v35 = vcombine.high %v1014_v19, %v1021_v24  ;;  %v756_v36 = vrot.slane %v748_v25, %v12794_v18  ;;  %v763_v37 = vrot.slane %v749_v26, %v12794_v18 }
  0xf2   :  { %v9835_v38 = vpack.c.bf16 %v989_v28, %v988_v27  ;;  %v1032_v39 = vrot.slane %v1022_v31, %v12794_v18  ;;  %v1039_v14 = vrot.slane %v1023_v32, %v12794_v18  ;;  %v633_v20 = vpop.f32.mrf.mxu0  ;;  %v626_v45 = vadd.f32 %v625_v5, %v13086_v22 }
  0xf3   :  { %v1046_v29 = vrot.slane %v1024_v34, %v12794_v18  ;;  %v1053_v40 = vrot.slane %v1025_v35, %v12794_v18  ;;  %v764_v42 = vcombine.high %v756_v36, %v756_v36  ;;  %v765_v43 = vcombine.high %v763_v37, %v763_v37 }
  0xf4   :  { %v779_v44 = vrot.slane %v763_v37, %v12794_v18  ;;  %v628_v46 = vadd.f32 %v627_v13, %v13089_v23  ;;  %v635_v47 = vpop.f32.mrf.mxu0  ;;  %v1282_v59 = vrot.slane %v9835_v38, %v12794_v18  ;;  %v13160_v61 = vrot.slane %v756_v36, %v12794_v18 }
  0xf5   :  { %v1054_v48 = vcombine.low %v1032_v39, %v1046_v29  ;;  %v1055_v49 = vcombine.low %v1039_v14, %v1053_v40  ;;  %v13155_v50 = vrot.slane %v764_v42, %v12794_v18  ;;  %v793_v51 = vrot.slane %v765_v43, %v12794_v18 }
  0xf6   :  { %v795_v52 = vcombine.high %v779_v44, %v779_v44  ;;  %v798_v53 = vcombine.low %v626_v45, %v628_v46  ;;  %v636_v55 = vpop.f32.mrf.mxu0  ;;  %19132 = vst [vmem:[#allocation12_spill] sm:$0xff] %v13160_v61  ;;  %v799_v63 = vcombine.high %v626_v45, %v628_v46  ;;  %v1290_v6 = vcombine.high %v1282_v59, %v1282_v59 }
  0xf7   :  { %19131 = vst [vmem:[#allocation11_spill] sm:$0xff] %v13155_v50  ;;  %v9836_v60 = vpack.c.bf16 %v1055_v49, %v1054_v48  ;;  %v796_v62 = vcombine.high %v13155_v50, %v13155_v50  ;;  %v1056_v0 = vcombine.low %v13160_v61, %v13155_v50  ;;  %v797_v9 = vcombine.high %v793_v51, %v793_v51 }
  0xf8   :  { %v1088_v3 = vcombine.low %v793_v51, %v795_v52  ;;  %v806_v4 = vrot.slane %v798_v53, %v12794_v18  ;;  %v813_v5 = vrot.slane %v799_v63, %v12794_v18  ;;  %v13173_v12 = vcombine.high %v13160_v61, %v13160_v61 }
  0xf9   :  { %v1087_v1 = vcombine.low %v796_v62, %v779_v44  ;;  %v1289_v7 = vrot.slane %v9836_v60, %v12794_v18  ;;  %v13176_v13 = vrot.slane %v1056_v0, %v12794_v18  ;;  %v632_v27 = vadd.f32 %v631_v33, %v13086_v22 }
  0xfa   :  { %v814_v17 = vcombine.high %v806_v4, %v806_v4  ;;  %v815_v21 = vcombine.high %v813_v5, %v813_v5  ;;  %v822_v11 = vrot.slane %v806_v4, %v12794_v18  ;;  %19133 = vst [vmem:[#allocation13_spill] sm:$0xff] %v13173_v12  ;;  %v1104_v19 = vrot.slane %v1088_v3, %v12794_v18 }
  0xfb   :  { %v1097_v10 = vrot.slane %v1087_v1, %v12794_v18  ;;  %v13180_v24 = vrot.slane %v813_v5, %v12794_v18  ;;  %v634_v28 = vadd.f32 %v633_v20, %v13089_v23  ;;  %v1291_v31 = vcombine.high %v1289_v7, %v1289_v7 }
  0xfc   :  { %v13183_v25 = vrot.slane %v814_v17, %v12794_v18  ;;  %v13186_v26 = vrot.slane %v815_v21, %v12794_v18  ;;  %v13190_v32 = vcombine.high %v822_v11, %v822_v11  ;;  %v1089_v35 = vcombine.low %v797_v9, %v822_v11 }
  0xfd   :  { %19134 = vst [vmem:[#allocation14_spill] sm:$0xff] %v13180_v24  ;;  %v13194_v34 = vcombine.high %v13180_v24, %v13180_v24  ;;  %v13197_v36 = vrot.slane %v1290_v6, %v12794_v18  ;;  %v1119_v37 = vcombine.low %v1097_v10, %v1104_v19  ;;  %v1120_v38 = vcombine.high %v1097_v10, %v1104_v19 }
  0xfe   :  { %19135 = vst [vmem:[#allocation15_spill] sm:$0xff] %v13183_v25  ;;  %19136 = vst [vmem:[#allocation16_spill] sm:$0xff] %v13186_v26  ;;  %v13201_v39 = vcombine.high %v13183_v25, %v13183_v25  ;;  %v13204_v22 = vrot.slane %v1289_v7, %v12794_v18  ;;  %v13208_v23 = vrot.slane %v13173_v12, %v12794_v18 }
  0xff   :  { %19137 = vst [vmem:[#allocation17_spill] sm:$0xff] %v13190_v32  ;;  %19138 = vst [vmem:[#allocation18_spill] sm:$0xff] %v13194_v34  ;;  %v1090_v33 = vcombine.low %v13183_v25, %v13190_v32  ;;  %v1154_v14 = vcombine.low %v13186_v26, %v13194_v34  ;;  %v848_v29 = vcombine.low %v632_v27, %v634_v28  ;;  %v1375_v10 = vunpack.i.h.s16 %v13197_v36 }
 0x100   :  { %19139 = vst [vmem:[#allocation19_spill] sm:$0xff] %v13201_v39  ;;  %v1153_v20 = vcombine.low %v13201_v39, %v13180_v24  ;;  %v849_v40 = vcombine.high %v632_v27, %v634_v28  ;;  %v13217_v42 = vrot.slane %v1282_v59, %v12794_v18  ;;  %v13220_v43 = vrot.slane %v1291_v31, %v12794_v18 }
 0x101   :  { %v1071_v44 = vcombine.low %v13176_v13, %v13208_v23  ;;  %v1111_v45 = vrot.slane %v1089_v35, %v12794_v18  ;;  %v1118_v46 = vrot.slane %v1090_v33, %v12794_v18  ;;  %v1129_v47 = vrot.slane %v1119_v37, %v12794_v18 }
 0x102   :  { %v1136_v48 = vrot.slane %v1120_v38, %v12794_v18  ;;  %v1163_v49 = vrot.slane %v1153_v20, %v12794_v18  ;;  %v856_v51 = vrot.slane %v848_v29, %v12794_v18  ;;  %v1170_v55 = vrot.slane %v1154_v14, %v12794_v18 }
 0x103   :  { %v1121_v52 = vcombine.low %v1111_v45, %v1118_v46  ;;  %v1122_v53 = vcombine.high %v1111_v45, %v1118_v46  ;;  %v13233_v59 = vcombine.high %v13186_v26, %v13186_v26  ;;  %v863_v60 = vrot.slane %v849_v40, %v12794_v18 }
 0x104   :  { %v864_v62 = vcombine.high %v856_v51, %v856_v51  ;;  %v13238_v63 = vcombine.high %v13217_v42, %v13217_v42  ;;  %v13242_v0 = vcombine.high %v13197_v36, %v13197_v36  ;;  %v1185_v4 = vcombine.low %v1163_v49, %v1170_v55 }
 0x105   :  { %19140 = vst [vmem:[#allocation20_spill] sm:$0xff] %v13233_v59  ;;  %v1143_v1 = vrot.slane %v1121_v52, %v12794_v18  ;;  %v1150_v3 = vrot.slane %v1122_v53, %v12794_v18  ;;  %v13247_v5 = vrot.slane %v856_v51, %v12794_v18  ;;  %v1186_v6 = vcombine.high %v1163_v49, %v1170_v55 }
 0x106   :  { %v13250_v7 = vrot.slane %v864_v62, %v12794_v18  ;;  %v13254_v9 = vcombine.high %v13204_v22, %v13204_v22  ;;  %v865_v27 = vcombine.high %v863_v60, %v863_v60  ;;  %v1373_v28 = vunpack.i.h.s16 %v13217_v42 }
 0x107   :  { %19141 = vst [vmem:[#allocation21_spill] sm:$0xff] %v13247_v5  ;;  %v1151_v17 = vcombine.low %v1129_v47, %v1143_v1  ;;  %v1152_v21 = vcombine.low %v1136_v48, %v1150_v3  ;;  %v13259_v11 = vcombine.high %v13247_v5, %v13247_v5  ;;  %v1155_v19 = vcombine.low %v13233_v59, %v13247_v5 }
 0x108   :  { %19142 = vst [vmem:[#allocation22_spill] sm:$0xff] %v13250_v7  ;;  %v1377_v31 = vunpack.i.h.s16 %v13238_v63  ;;  %v1379_v35 = vunpack.i.h.s16 %v13242_v0  ;;  %v1195_v37 = vrot.slane %v1185_v4, %v12794_v18  ;;  %v13268_v33 = vrot.slane %v863_v60, %v12794_v18 }
 0x109   :  { %19143 = vst [vmem:[#allocation23_spill] sm:$0xff] %v13259_v11  ;;  %v9837_v38 = vpack.c.bf16 %v1152_v21, %v1151_v17  ;;  %v1156_v14 = vcombine.low %v13250_v7, %v13259_v11  ;;  %v1202_v20 = vrot.slane %v1186_v6, %v12794_v18  ;;  %v13275_v29 = vcombine.high %v13250_v7, %v13250_v7 }
 0x10a   :  { %19144 = vst [vmem:[#allocation24_spill] sm:$0xff] %v13268_v33  ;;  %v1381_v40 = vunpack.i.h.s16 %v13204_v22  ;;  %v1383_v45 = vunpack.i.h.s16 %v13220_v43  ;;  %v1177_v47 = vrot.slane %v1155_v19, %v12794_v18  ;;  %v13283_v49 = vpack.i.b16 %v13238_v63, %v1375_v10 }
 0x10b   :  { %19145 = vst [vmem:[#allocation25_spill] sm:$0xff] %v13275_v29  ;;  %v1331_v46 = vrot.slane %v9837_v38, %v12794_v18  ;;  %v1184_v48 = vrot.slane %v1156_v14, %v12794_v18  ;;  %v9903_v51 = vpack.i.b16 %v13197_v36, %v1373_v28  ;;  %v13287_v52 = vpack.i.b16 %v13242_v0, %v1377_v31 }
 0x10c   :  { %v13290_v53 = vpack.i.b16 %v13204_v22, %v1379_v35  ;;  %v13293_v55 = vpack.i.b16 %v13254_v9, %v1383_v45  ;;  %v13299_v4 = vrot.slane %v865_v27, %v12794_v18  ;;  %v13302_v6 = vpack.i.b16 %v13220_v43, %v1381_v40 }
 0x10d   :  { %v1339_v60 = vcombine.high %v1331_v46, %v1331_v46  ;;  %v1187_v62 = vcombine.low %v1177_v47, %v1184_v48  ;;  %v1188_v1 = vcombine.high %v1177_v47, %v1184_v48  ;;  %v13296_v3 = vrot.slane %v1331_v46, %v12794_v18 }
 0x10e   :  { %19146 = vst [vmem:[#allocation26_spill] sm:$0xff] %v13299_v4  ;;  %v1542_v10 = vcombine.low %v9903_v51, %v13283_v49  ;;  %v1543_v17 = vcombine.low %v13287_v52, %v13290_v53  ;;  %v19062_v31 = vunpack.i.h.s16 %v13254_v9  ;;  %v1219_v27 = vcombine.low %v13275_v29, %v13268_v33 }
 0x10f   :  { %v1209_v21 = vrot.slane %v1187_v62, %v12794_v18  ;;  %v1216_v19 = vrot.slane %v1188_v1, %v12794_v18  ;;  %v1386_v28 = vunpack.i.h.s16 %v13296_v3  ;;  %v13312_v35 = vrot.slane %v1339_v60, %v12794_v18 }
 0x110   :  { %v1544_v38 = vcombine.low %v13302_v6, %v13293_v55  ;;  %v13321_v46 = vrot.slane %v1543_v17, %v12794_v18  ;;  %v1072_v47 = vcombine.high %v13176_v13, %v13208_v23  ;;  %v1552_v48 = vrot.slane %v1542_v10, %v12794_v18 }
 0x111   :  { %v1217_v14 = vcombine.low %v1195_v37, %v1209_v21  ;;  %v1218_v40 = vcombine.low %v1202_v20, %v1216_v19  ;;  %v1535_v45 = vpack.i.b16 %v1386_v28, %v19062_v31  ;;  %v13330_v51 = vrot.slane %v1071_v44, %v12794_v18 }
 0x112   :  { %v13334_v37 = vrot.slane %v13299_v4, %v12794_v18  ;;  %v1575_v62 = vcombine.high %v1552_v48, %v13321_v46  ;;  %v1574_v1 = vcombine.low %v1552_v48, %v13321_v46  ;;  %v9974_v10 = vpack.i.b16 %v13296_v3, %v13254_v9 }
 0x113   :  { %v9838_v20 = vpack.c.bf16 %v1218_v40, %v1217_v14  ;;  %v1545_v60 = vcombine.low %v1535_v45, %v13312_v35  ;;  %v9975_v17 = vpack.i.b16 %v13312_v35, %v1386_v28  ;;  %v13343_v13 = vrot.slane %v1219_v27, %v12794_v18 }
 0x114   :  { %v13347_v44 = vrot.slane %v1544_v38, %v12794_v18  ;;  %v9909_v19 = vcombine.high %v13296_v3, %v13312_v35  ;;  %v2107_v14 = vcombine.low %v13217_v42, %v13197_v36  ;;  %v2109_v40 = vcombine.low %v13204_v22, %v13220_v43 }
 0x115   :  { %v1338_v23 = vrot.slane %v9838_v20, %v12794_v18  ;;  %v1573_v21 = vrot.slane %v1545_v60, %v12794_v18  ;;  %v2110_v28 = vcombine.low %v9974_v10, %v9975_v17  ;;  %v1591_v20 = vrot.slane %v1575_v62, %v12794_v18 }
 0x116   :  { %v1584_v60 = vrot.slane %v1574_v1, %v12794_v18  ;;  %v9981_v2 = vcombine.high %v13217_v42, %v13197_v36  ;;  %v13378_v62 = vrot.slane %v1072_v47, %v12794_v18  ;;  %v1234_v42 = vcombine.low %v13343_v13, %v13334_v37 }
 0x117   :  { %v1340_v45 = vcombine.high %v1338_v23, %v1338_v23  ;;  %v13357_v27 = vrot.slane %v1338_v23, %v12794_v18  ;;  %v1577_v48 = vcombine.high %v13347_v44, %v1573_v21  ;;  %v1576_v38 = vcombine.low %v13347_v44, %v1573_v21 }
 0x118   :  { %v13366_v31 = vrot.slane %v2110_v28, %v12794_v18  ;;  %v13383_v1 = vrot.slane %v2107_v14, %v12794_v18  ;;  %v13386_v28 = vrot.slane %v2109_v40, %v12794_v18  ;;  %v10972_v40 = vld [vmem:[%s19049_s3 + $0xc4] ss:$16 sps:$4 sm:$0xff]   ;;  %v13415_v33 = vcombine.high %v13312_v35, %v13312_v35 }
 0x119   :  { %v13369_v10 = vrot.slane %v1340_v45, %v12794_v18  ;;  %v1605_v17 = vrot.slane %v1577_v48, %v12794_v18  ;;  %v1598_v23 = vrot.slane %v1576_v38, %v12794_v18  ;;  %v13375_v21 = vcombine.high %v13357_v27, %v13357_v27  ;;  %v10964_v48 = vld [vmem:[%s19049_s3 + $0xe0] ss:$16 sps:$4 sm:$0xff]   ;;  %v10967_v38 = vld [vmem:[%s19049_s3 + $0xe8] ss:$16 sps:$4 sm:$0xff]  }
 0x11a   :  { %v1616_v29 = vrot.slane %v9909_v19, %v12794_v18  ;;  %v10305_v7 = vpack.c.bf16 %v13378_v62, %v13330_v51  ;;  %v1235_v5 = vcombine.high %v13343_v13, %v13334_v37  ;;  %v10973_v51 = vld [vmem:[%s19049_s3 + $0xc8] ss:$16 sps:$4 sm:$0xff]   ;;  %v1392_v13 = vunpack.i.h.s16 %v13415_v33 }
 0x11b   :  { %v1607_v45 = vcombine.low %v1591_v20, %v1605_v17  ;;  %v1606_v47 = vcombine.low %v1584_v60, %v1598_v23  ;;  %v1609_v4 = vcombine.low %v13357_v27, %v13369_v10  ;;  %v1630_v14 = vrot.slane %v13375_v21, %v12794_v18  ;;  %v10975_v20 = vld [vmem:[%s19049_s3 + $0xcc] ss:$16 sps:$4 sm:$0xff]  }
 0x11c   :  { %v13405_v17 = vrot.slane %v9981_v2, %v12794_v18  ;;  %v2142_v60 = vcombine.high %v13386_v28, %v13366_v31  ;;  %v13411_v23 = vcombine.high %v13296_v3, %v13296_v3  ;;  %v13426_v3 = vrot.slane %v1234_v42, %v12794_v18  ;;  %v10978_v42 = vld [vmem:[%s19049_s3 + $0xa4] ss:$16 sps:$4 sm:$0xff]  }
 0x11d   :  { %2020 = vmatprep.mubr.bf16.mxu1 %v1607_v45  ;;  %2073 = vmatprep.mubr.bf16.mxu0 %v1607_v45  ;;  %v13419_v11 = vrot.slane %v1609_v4, %v12794_v18  ;;  %v1633_v2 = vcombine.high %v1630_v14, %v1630_v14  ;;  %v10970_v4 = vld [vmem:[%s19049_s3 + $0xc0] ss:$16 sps:$4 sm:$0xff]   ;;  %v1394_v62 = vunpack.i.h.s16 %v13357_v27  ;;  %v10981_v45 = vld [vmem:[%s19049_s3 + $0xac] ss:$16 sps:$4 sm:$0xff]   ;;  %v1396_v34 = vunpack.i.h.s16 %v13369_v10 }
 0x11e   :  { %2021 = vmatmul.mubr.bf16.vlgmr.msra.gmra.mxu1 %v1606_v47  ;;  %2074 = vmatmul.mubr.bf16.vlgmr.msra.gmra.mxu0 %v1606_v47  ;;  %v19147_v26 = vunpack.i.h.s16 %v13312_v35  ;;  %v13474_v47 = vpack.i.b16 %v13357_v27, %v1392_v13  ;;  %v10987_v13 = vld [vmem:[%s19049_s3 + $0x8c] ss:$16 sps:$4 sm:$0xff]   ;;  %v19149_v12 = vunpack.i.h.s16 %v13254_v9  ;;  %v3369_v61 = vcombine.low %v13283_v49, %v13287_v52  ;;  %v11002_v49 = vld [vmem:[%s19049_s3 + $0x24] ss:$16 sps:$4 sm:$0xff]  }
 0x11f   :  { %2554 = vmatpush1.bf16.msra.mxu1 %v10964_v48  ;;  %2607 = vmatpush1.bf16.msra.mxu0 %v10967_v38  ;;  %v1632_v19 = vcombine.high %v1616_v29, %v13419_v11  ;;  %v1631_v37 = vcombine.low %v1616_v29, %v13419_v11  ;;  %v1654_v48 = vrot.slane %v1630_v14, %v12794_v18  ;;  %v11005_v52 = vld [vmem:[%s19049_s3 + $0x2c] ss:$16 sps:$4 sm:$0xff]  }
 0x120   :  { %2555 = vmatprep.subr.bf16.mxu1 %v10972_v40  ;;  %2608 = vmatprep.subr.bf16.mxu0 %v10975_v20  ;;  %v2140_v38 = vcombine.high %v13383_v1, %v13405_v17  ;;  %v2170_v29 = vrot.slane %v2142_v60, %v12794_v18  ;;  %v1661_v20 = vrot.slane %v1633_v2, %v12794_v18 }
 0x121   :  { %v1647_v40 = vrot.slane %v1632_v19, %v12794_v18  ;;  %v1640_v59 = vrot.slane %v1631_v37, %v12794_v18  ;;  %v13457_v24 = vpack.i.b16 %v13411_v23, %v19147_v26  ;;  %v13461_v14 = vcombine.high %v13220_v43, %v13220_v43  ;;  %v10976_v37 = vld [vmem:[%s19049_s3 + $0xa0] ss:$16 sps:$4 sm:$0xff]   ;;  %v10979_v26 = vld [vmem:[%s19049_s3 + $0xa8] ss:$16 sps:$4 sm:$0xff]  }
 0x122   :  { %v2731_v60 = vcombine.low %v13197_v36, %v13238_v63  ;;  %v2732_v19 = vcombine.low %v13242_v0, %v13204_v22  ;;  %v13477_v39 = vpack.i.b16 %v13369_v10, %v1394_v62  ;;  %v2156_v63 = vrot.slane %v2140_v38, %v12794_v18  ;;  %v10982_v38 = vld [vmem:[%s19049_s3 + $0x80] ss:$16 sps:$4 sm:$0xff]  }
 0x123   :  { %v1663_v2 = vcombine.low %v1647_v40, %v1661_v20  ;;  %2556 = vmatpush1.bf16.msra.mxu1 %v10970_v4  ;;  %2609 = vmatpush1.bf16.msra.mxu0 %v10973_v51  ;;  %v1662_v36 = vcombine.low %v1640_v59, %v1654_v48  ;;  %v10110_v0 = vpack.i.b16 %v13312_v35, %v13461_v14  ;;  %v10984_v51 = vld [vmem:[%s19049_s3 + $0x84] ss:$16 sps:$4 sm:$0xff]   ;;  %v19148_v59 = vunpack.i.h.s16 %v13411_v23  ;;  %v10985_v40 = vld [vmem:[%s19049_s3 + $0x88] ss:$16 sps:$4 sm:$0xff]  }
 0x124   :  { %2557 = vmatprep.subr.bf16.mxu1 %v10978_v42  ;;  %2610 = vmatprep.subr.bf16.mxu0 %v10981_v45  ;;  %v13483_v4 = vrot.slane %v1235_v5, %v12794_v18  ;;  %v2733_v42 = vcombine.low %v13220_v43, %v13254_v9  ;;  %v2172_v5 = vcombine.low %v2156_v63, %v2170_v29  ;;  %v19079_v25 = vunpack.i.h.s16 %v13461_v14 }
 0x125   :  { %2030 = vmatprep.mubr.bf16.mxu1 %v1663_v2  ;;  %2083 = vmatprep.mubr.bf16.mxu0 %v1663_v2  ;;  %v13494_v62 = vpack.i.b16 %v13415_v33, %v19148_v59  ;;  %v13499_v45 = vpack.i.b16 %v13375_v21, %v1396_v34  ;;  %v2734_v48 = vcombine.low %v10110_v0, %v13457_v24  ;;  %v1463_v0 = vunpack.i.h.s16 %v13375_v21 }
 0x126   :  { %2031 = vmatmul.mubr.bf16.gmra.mxu1 %v1662_v36  ;;  %2084 = vmatmul.mubr.bf16.gmra.mxu0 %v1662_v36  ;;  %v2174_v20 = vcombine.low %v13474_v47, %v13477_v39  ;;  %v2741_v29 = vrot.slane %v2731_v60, %v12794_v18  ;;  %v13512_v34 = vrot.slane %v2732_v19, %v12794_v18  ;;  %v19152_v56 = vunpack.i.h.s16 %v13461_v14 }
 0x127   :  { %2558 = vmatpush1.bf16.msra.mxu1 %v10976_v37  ;;  %2611 = vmatpush1.bf16.msra.mxu0 %v10979_v26  ;;  %v13515_v2 = vrot.slane %v10305_v7, %v12794_v18  ;;  %v10990_v37 = vld [vmem:[%s19049_s3 + $0x64] ss:$16 sps:$4 sm:$0xff]   ;;  %v10993_v26 = vld [vmem:[%s19049_s3 + $0x6c] ss:$16 sps:$4 sm:$0xff]   ;;  %v13524_v36 = vrot.slane %v2733_v42, %v12794_v18  ;;  %v2762_v60 = vrot.slane %v2734_v48, %v12794_v18 }
 0x128   :  { %2585 = vmatprep.mubr.bf16.mxu1 %v2172_v5  ;;  %2638 = vmatprep.mubr.bf16.mxu0 %v2172_v5  ;;  %v2763_v63 = vcombine.low %v2741_v29, %v13512_v34  ;;  %v2764_v59 = vcombine.high %v2741_v29, %v13512_v34  ;;  %v13538_v48 = vcombine.high %v13369_v10, %v13369_v10 }
 0x129   :  { %2559 = vmatprep.subr.bf16.mxu1 %v10984_v51  ;;  %2612 = vmatprep.subr.bf16.mxu0 %v10987_v13  ;;  %v2765_v5 = vcombine.low %v13524_v36, %v2762_v60  ;;  %v2766_v42 = vcombine.high %v13524_v36, %v2762_v60  ;;  %v10988_v51 = vld [vmem:[%s19049_s3 + $0x60] ss:$16 sps:$4 sm:$0xff]   ;;  %v10991_v13 = vld [vmem:[%s19049_s3 + $0x68] ss:$16 sps:$4 sm:$0xff]   ;;  %v13547_v29 = vrot.slane %v2174_v20, %v12794_v18 }
 0x12a   :  { %v13551_v60 = vrot.slane %v13499_v45, %v12794_v18  ;;  %v2773_v7 = vrot.slane %v2763_v63, %v12794_v18  ;;  %v2780_v19 = vrot.slane %v2764_v59, %v12794_v18  ;;  %v13565_v63 = vpack.i.b16 %v13538_v48, %v1463_v0 }
 0x12b   :  { %2560 = vmatpush1.bf16.msra.mxu1 %v10982_v38  ;;  %2613 = vmatpush1.bf16.msra.mxu0 %v10985_v40  ;;  %v10996_v38 = vld [vmem:[%s19049_s3 + $0x44] ss:$16 sps:$4 sm:$0xff]   ;;  %v10999_v40 = vld [vmem:[%s19049_s3 + $0x4c] ss:$16 sps:$4 sm:$0xff]   ;;  %v2794_v20 = vrot.slane %v2766_v42, %v12794_v18  ;;  %v2787_v32 = vrot.slane %v2765_v5, %v12794_v18  ;;  %v13574_v50 = vpack.i.b16 %v13461_v14, %v19149_v12  ;;  %v19150_v0 = vunpack.i.h.s16 %v13312_v35  ;;  %v10997_v12 = vld [vmem:[%s19049_s3 + $0x48] ss:$16 sps:$4 sm:$0xff]  }
 0x12c   :  { %2561 = vmatprep.subr.bf16.mxu1 %v10990_v37  ;;  %2614 = vmatprep.subr.bf16.mxu0 %v10993_v26  ;;  %v2797_v37 = vcombine.low %v13494_v62, %v13474_v47  ;;  %v2798_v26 = vcombine.low %v13477_v39, %v13499_v45  ;;  %v10994_v39 = vld [vmem:[%s19049_s3 + $0x40] ss:$16 sps:$4 sm:$0xff]   ;;  %v2819_v35 = vrot.slane %v13565_v63, %v12794_v18 }
 0x12d   :  { %v13576_v59 = vcombine.low %v2780_v19, %v2794_v20  ;;  %v13578_v42 = vcombine.low %v2773_v7, %v2787_v32  ;;  %v3367_v5 = vpack.i.b16 %v19150_v0, %v19079_v25  ;;  %v3370_v19 = vcombine.low %v13290_v53, %v13302_v6  ;;  %v11003_v6 = vld [vmem:[%s19049_s3 + $0x28] ss:$16 sps:$4 sm:$0xff]  }
 0x12e   :  { %v2805_v32 = vrot.slane %v2797_v37, %v12794_v18  ;;  %v13594_v9 = vrot.slane %v2798_v26, %v12794_v18  ;;  %v3371_v7 = vcombine.low %v13293_v55, %v13574_v50  ;;  %v2843_v20 = vrot.slane %v2819_v35, %v12794_v18  ;;  %v11000_v55 = vld [vmem:[%s19049_s3 + $0x20] ss:$16 sps:$4 sm:$0xff]  }
 0x12f   :  { %2562 = vmatpush1.bf16.msra.mxu1 %v10988_v51  ;;  %2615 = vmatpush1.bf16.msra.mxu0 %v10991_v13  ;;  %v3372_v51 = vcombine.low %v3367_v5, %v13411_v23  ;;  %v3379_v37 = vrot.slane %v3369_v61, %v12794_v18  ;;  %v3386_v26 = vrot.slane %v3370_v19, %v12794_v18 }
 0x130   :  { %2563 = vmatprep.subr.bf16.mxu1 %v10996_v38  ;;  %2616 = vmatprep.subr.bf16.mxu0 %v10999_v40  ;;  %v2821_v13 = vcombine.high %v2805_v32, %v13594_v9  ;;  %v2822_v38 = vcombine.high %v2819_v35, %v2819_v35  ;;  %v2820_v40 = vcombine.low %v2805_v32, %v13594_v9 }
 0x131   :  { %v3393_v0 = vrot.slane %v3371_v7, %v12794_v18  ;;  %v3400_v53 = vrot.slane %v3372_v51, %v12794_v18  ;;  %v3401_v35 = vcombine.low %v3379_v37, %v3386_v26  ;;  %v3402_v19 = vcombine.high %v3379_v37, %v3386_v26  ;;  %v11009_v37 = vld [vmem:[%s19049_s3 + $0x8] ss:$16 sps:$4 sm:$0xff]  }
 0x132   :  { %v2836_v5 = vrot.slane %v2821_v13, %v12794_v18  ;;  %v2850_v61 = vrot.slane %v2822_v38, %v12794_v18  ;;  %v2829_v32 = vrot.slane %v2820_v40, %v12794_v18  ;;  %v3436_v58 = vcombine.low %v13369_v10, %v13375_v21  ;;  %v11014_v21 = vld [vmem:[%s19049_s3 + $0x1e4] ss:$16 sps:$4 sm:$0xff]  }
 0x133   :  { %2564 = vmatpush1.bf16.msra.mxu1 %v10994_v39  ;;  %2617 = vmatpush1.bf16.msra.mxu0 %v10997_v12  ;;  %v11008_v39 = vld [vmem:[%s19049_s3 + $0x4] ss:$16 sps:$4 sm:$0xff]   ;;  %v11011_v12 = vld [vmem:[%s19049_s3 + $0xc] ss:$16 sps:$4 sm:$0xff]   ;;  %v3403_v7 = vcombine.low %v3393_v0, %v3400_v53  ;;  %v3404_v38 = vcombine.high %v3393_v0, %v3400_v53  ;;  %v3411_v40 = vrot.slane %v3401_v35, %v12794_v18 }
 0x134   :  { %2565 = vmatprep.subr.bf16.mxu1 %v11002_v49  ;;  %2618 = vmatprep.subr.bf16.mxu0 %v11005_v52  ;;  %v13631_v51 = vcombine.low %v2836_v5, %v2850_v61  ;;  %v13633_v13 = vcombine.low %v2829_v32, %v2843_v20  ;;  %v3435_v49 = vcombine.low %v13415_v33, %v13357_v27  ;;  %v11006_v20 = vld [vmem:[%s19049_s3] ss:$16 sps:$4 sm:$0xff]  }
 0x135   :  { %v3418_v52 = vrot.slane %v3402_v19, %v12794_v18  ;;  %v3425_v25 = vrot.slane %v3403_v7, %v12794_v18  ;;  %v3432_v26 = vrot.slane %v3404_v38, %v12794_v18  ;;  %v3457_v53 = vrot.slane %v13538_v48, %v12794_v18  ;;  %v11012_v38 = vld [vmem:[%s19049_s3 + $0x1e0] ss:$16 sps:$4 sm:$0xff]  }
 0x136   :  { %v3443_v0 = vrot.slane %v3435_v49, %v12794_v18  ;;  %v3450_v5 = vrot.slane %v3436_v58, %v12794_v18  ;;  %v13663_v61 = vrot.slane %v13515_v2, %v12794_v18  ;;  %v10373_v35 = vcombine.high %v13204_v22, %v13220_v43  ;;  %v11015_v49 = vld [vmem:[%s19049_s3 + $0x1e8] ss:$16 sps:$4 sm:$0xff]  }
 0x137   :  { %2566 = vmatpush1.bf16.msra.mxu1 %v11000_v55  ;;  %2619 = vmatpush1.bf16.msra.mxu0 %v11003_v6  ;;  %v11017_v55 = vld [vmem:[%s19049_s3 + $0x1ec] ss:$16 sps:$4 sm:$0xff]   ;;  %v13658_v6 = vcombine.low %v3411_v40, %v3425_v25  ;;  %v13665_v32 = vcombine.low %v3418_v52, %v3432_v26  ;;  %v4058_v58 = vcombine.high %v13405_v17, %v13386_v28  ;;  %v3300_v40 = vunpack.i.h.s16 %v13538_v48 }
 0x138   :  { %2567 = vmatprep.subr.bf16.mxu1 %v11008_v39  ;;  %2620 = vmatprep.subr.bf16.mxu0 %v11011_v12  ;;  %v3460_v39 = vcombine.high %v3457_v53, %v3457_v53  ;;  %v3481_v12 = vrot.slane %v3457_v53, %v12794_v18  ;;  %v3459_v19 = vcombine.high %v3443_v0, %v3450_v5 }
 0x139   :  { %v3458_v7 = vcombine.low %v3443_v0, %v3450_v5  ;;  %v10371_v25 = vpack.i.b16 %v13411_v23, %v13663_v61  ;;  %v4049_v43 = vrot.slane %v10373_v35, %v12794_v18  ;;  %v4057_v52 = vcombine.low %v13405_v17, %v13386_v28 }
 0x13a   :  { %v3488_v22 = vrot.slane %v3460_v39, %v12794_v18  ;;  %v3474_v26 = vrot.slane %v3459_v19, %v12794_v18  ;;  %v4585_v5 = vunpack.i.h.s16 %v13663_v61  ;;  %v4074_v48 = vrot.slane %v4058_v58, %v12794_v18 }
 0x13b   :  { %2568 = vmatpush1.bf16.msra.mxu1 %v11006_v20  ;;  %2621 = vmatpush1.bf16.msra.mxu0 %v11009_v37  ;;  %v11020_v20 = vld [vmem:[%s19049_s3 + $0x1c4] ss:$16 sps:$4 sm:$0xff]   ;;  %v11023_v37 = vld [vmem:[%s19049_s3 + $0x1cc] ss:$16 sps:$4 sm:$0xff]   ;;  %v3467_v0 = vrot.slane %v3458_v7, %v12794_v18  ;;  %v4042_v53 = vcombine.low %v10371_v25, %v13494_v62  ;;  %v4091_v35 = vcombine.low %v13499_v45, %v13565_v63 }
 0x13c   :  { %2569 = vmatprep.subr.bf16.mxu1 %v11014_v21  ;;  %2622 = vmatprep.subr.bf16.mxu0 %v11017_v55  ;;  %v4067_v21 = vrot.slane %v4057_v52, %v12794_v18  ;;  %v19151_v55 = vpack.c.bf16 %v13483_v4, %v13426_v3  ;;  %v13705_v19 = vcombine.low %v3474_v26, %v3488_v22  ;;  %v11018_v3 = vld [vmem:[%s19049_s3 + $0x1c0] ss:$16 sps:$4 sm:$0xff]   ;;  %v11021_v4 = vld [vmem:[%s19049_s3 + $0x1c8] ss:$16 sps:$4 sm:$0xff]   ;;  %v19153_v22 = vunpack.i.h.s16 %v13411_v23 }
 0x13d   :  { %v13707_v7 = vcombine.low %v3467_v0, %v3481_v12  ;;  %v4056_v25 = vrot.slane %v4042_v53, %v12794_v18  ;;  %v10502_v58 = vpack.i.b16 %v13663_v61, %v19152_v56  ;;  %v4098_v12 = vrot.slane %v4091_v35, %v12794_v18  ;;  %v11026_v56 = vld [vmem:[%s19049_s3 + $0x1a4] ss:$16 sps:$4 sm:$0xff]  }
 0x13e   :  { %v13701_v39 = vrot.slane %v19151_v55, %v12794_v18  ;;  %v4653_v52 = vpack.i.b16 %v19153_v22, %v4585_v5  ;;  %v10503_v57 = vcombine.high %v13357_v27, %v13369_v10  ;;  %v11038_v27 = vld [vmem:[%s19049_s3 + $0x164] ss:$16 sps:$4 sm:$0xff]   ;;  %v11041_v10 = vld [vmem:[%s19049_s3 + $0x16c] ss:$16 sps:$4 sm:$0xff]  }
 0x13f   :  { %2570 = vmatpush2.bf16.msra.mxu1 %v11012_v38  ;;  %2623 = vmatpush2.bf16.msra.mxu0 %v11015_v49  ;;  %v11029_v38 = vld [vmem:[%s19049_s3 + $0x1ac] ss:$16 sps:$4 sm:$0xff]   ;;  %v4059_v49 = vcombine.low %v4049_v43, %v4056_v25  ;;  %v4060_v26 = vcombine.high %v4049_v43, %v4056_v25  ;;  %v4655_v0 = vcombine.low %v13574_v50, %v10502_v58  ;;  %v11024_v50 = vld [vmem:[%s19049_s3 + $0x1a0] ss:$16 sps:$4 sm:$0xff]  }
 0x140   :  { %v13721_v45 = vrot.slane %v13701_v39, %v12794_v18  ;;  %2571 = vmatprep.subr.bf16.mxu1 %v11020_v20  ;;  %2624 = vmatprep.subr.bf16.mxu0 %v11023_v37  ;;  %v4107_v23 = vcombine.high %v13547_v29, %v4098_v12  ;;  %v4106_v20 = vcombine.low %v13547_v29, %v4098_v12 }
 0x141   :  { %v4656_v37 = vcombine.low %v4653_v52, %v13415_v33  ;;  %v4088_v5 = vrot.slane %v4060_v26, %v12794_v18  ;;  %v4081_v55 = vrot.slane %v4059_v49, %v12794_v18  ;;  %v4663_v35 = vrot.slane %v4655_v0, %v12794_v18 }
 0x142   :  { %v13734_v53 = vpack.i.b16 %v13721_v45, %v3300_v40  ;;  %v4672_v43 = vcombine.high %v13321_v46, %v13347_v44  ;;  %v11027_v40 = vld [vmem:[%s19049_s3 + $0x1a8] ss:$16 sps:$4 sm:$0xff]   ;;  %v4122_v58 = vrot.slane %v4107_v23, %v12794_v18  ;;  %v4115_v12 = vrot.slane %v4106_v20, %v12794_v18 }
 0x143   :  { %2572 = vmatpush2.bf16.msra.mxu1 %v11018_v3  ;;  %2625 = vmatpush2.bf16.msra.mxu0 %v11021_v4  ;;  %v11032_v3 = vld [vmem:[%s19049_s3 + $0x184] ss:$16 sps:$4 sm:$0xff]   ;;  %v11035_v4 = vld [vmem:[%s19049_s3 + $0x18c] ss:$16 sps:$4 sm:$0xff]   ;;  %v13760_v22 = vcombine.low %v4074_v48, %v4088_v5  ;;  %v13762_v52 = vcombine.low %v4067_v21, %v4081_v55  ;;  %v4670_v49 = vrot.slane %v4656_v37, %v12794_v18  ;;  %v11030_v21 = vld [vmem:[%s19049_s3 + $0x180] ss:$16 sps:$4 sm:$0xff]  }
 0x144   :  { %v4105_v25 = vrot.slane %v13734_v53, %v12794_v18  ;;  %2573 = vmatprep.subr.bf16.mxu1 %v11026_v56  ;;  %2626 = vmatprep.subr.bf16.mxu0 %v11029_v38  ;;  %v4688_v56 = vrot.slane %v4672_v43, %v12794_v18  ;;  %v4671_v38 = vcombine.low %v13321_v46, %v13347_v44  ;;  %v11033_v37 = vld [vmem:[%s19049_s3 + $0x188] ss:$16 sps:$4 sm:$0xff]  }
 0x145   :  { %v4673_v23 = vcombine.low %v4663_v35, %v4670_v49  ;;  %v4674_v20 = vcombine.high %v4663_v35, %v4670_v49  ;;  %v4719_v48 = vrot.slane %v13721_v45, %v12794_v18  ;;  %v4712_v43 = vrot.slane %v10503_v57, %v12794_v18  ;;  %v11036_v57 = vld [vmem:[%s19049_s3 + $0x160] ss:$16 sps:$4 sm:$0xff]  }
 0x146   :  { %v4108_v26 = vcombine.high %v4105_v25, %v4105_v25  ;;  %v4129_v0 = vrot.slane %v4105_v25, %v12794_v18  ;;  %v4681_v5 = vrot.slane %v4671_v38, %v12794_v18  ;;  %v11047_v38 = vld [vmem:[%s19049_s3 + $0x14c] ss:$16 sps:$4 sm:$0xff]  }
 0x147   :  { %2574 = vmatpush2.bf16.msra.mxu1 %v11024_v50  ;;  %2627 = vmatpush2.bf16.msra.mxu0 %v11027_v40  ;;  %v4702_v55 = vrot.slane %v4674_v20, %v12794_v18  ;;  %v4695_v35 = vrot.slane %v4673_v23, %v12794_v18  ;;  %v4722_v40 = vcombine.high %v4719_v48, %v4719_v48 }
 0x148   :  { %v4136_v46 = vrot.slane %v4108_v26, %v12794_v18  ;;  %v13780_v44 = vcombine.low %v4115_v12, %v4129_v0  ;;  %2575 = vmatprep.subr.bf16.mxu1 %v11032_v3  ;;  %2628 = vmatprep.subr.bf16.mxu0 %v11035_v4  ;;  %v4743_v25 = vrot.slane %v4719_v48, %v12794_v18 }
 0x149   :  { %v5199_v12 = vcombine.high %v13515_v2, %v13515_v2  ;;  %v13797_v3 = vcombine.low %v4688_v56, %v4702_v55  ;;  %v13799_v4 = vcombine.low %v4681_v5, %v4695_v35  ;;  %v4721_v49 = vcombine.high %v13419_v11, %v4712_v43 }
 0x14a   :  { %v13792_v50 = vcombine.low %v4122_v58, %v4136_v46  ;;  %v4720_v26 = vcombine.low %v13419_v11, %v4712_v43  ;;  %v11039_v58 = vld [vmem:[%s19049_s3 + $0x168] ss:$16 sps:$4 sm:$0xff]   ;;  %v4750_v2 = vrot.slane %v4722_v40, %v12794_v18  ;;  %v5285_v56 = vcombine.low %v13461_v14, %v13663_v61  ;;  %v11044_v11 = vld [vmem:[%s19049_s3 + $0x144] ss:$16 sps:$4 sm:$0xff]  }
 0x14b   :  { %2576 = vmatpush2.bf16.msra.mxu1 %v11030_v21  ;;  %2629 = vmatpush2.bf16.msra.mxu0 %v11033_v37  ;;  %v5206_v0 = vrot.slane %v5199_v12, %v12794_v18  ;;  %v4736_v23 = vrot.slane %v4721_v49, %v12794_v18  ;;  %v5302_v48 = vcombine.high %v13512_v34, %v13524_v36  ;;  %v4586_v61 = vunpack.i.h.s16 %v13721_v45  ;;  %v11051_v49 = vld [vmem:[%s19049_s3 + $0x128] ss:$16 sps:$4 sm:$0xff]  }
 0x14c   :  { %2577 = vmatprep.subr.bf16.mxu1 %v11038_v27  ;;  %2630 = vmatprep.subr.bf16.mxu0 %v11041_v10  ;;  %v4729_v20 = vrot.slane %v4720_v26, %v12794_v18  ;;  %v5301_v14 = vcombine.low %v13512_v34, %v13524_v36  ;;  %v5207_v37 = vcombine.high %v13701_v39, %v13701_v39  ;;  %v11045_v34 = vld [vmem:[%s19049_s3 + $0x148] ss:$16 sps:$4 sm:$0xff]  }
 0x14d   :  { %v10632_v21 = vpack.i.b16 %v13415_v33, %v5206_v0  ;;  %v13829_v46 = vcombine.low %v4736_v23, %v4750_v2  ;;  %v5335_v27 = vcombine.low %v13565_v63, %v13734_v53  ;;  %v11042_v33 = vld [vmem:[%s19049_s3 + $0x140] ss:$16 sps:$4 sm:$0xff]   ;;  %v2141_v45 = vcombine.low %v13386_v28, %v13366_v31  ;;  %v11050_v63 = vld [vmem:[%s19049_s3 + $0x124] ss:$16 sps:$4 sm:$0xff]   ;;  %v11053_v53 = vld [vmem:[%s19049_s3 + $0x12c] ss:$16 sps:$4 sm:$0xff]  }
 0x14e   :  { %v13831_v5 = vcombine.low %v4729_v20, %v4743_v25  ;;  %v5214_v39 = vrot.slane %v5207_v37, %v12794_v18  ;;  %v19154_v10 = vcombine.low %v13457_v24, %v13494_v62  ;;  %v2198_v31 = vcombine.high %v13551_v60, %v13551_v60  ;;  %v11048_v62 = vld [vmem:[%s19049_s3 + $0x120] ss:$16 sps:$4 sm:$0xff]   ;;  %v11059_v2 = vld [vmem:[%s19049_s3 + $0x10c] ss:$16 sps:$4 sm:$0xff]  }
 0x14f   :  { %2578 = vmatpush2.bf16.msra.mxu1 %v11036_v57  ;;  %2631 = vmatpush2.bf16.msra.mxu0 %v11039_v58  ;;  %v5286_v36 = vcombine.low %v10632_v21, %v13474_v47  ;;  %v5342_v55 = vrot.slane %v5335_v27, %v12794_v18  ;;  %v5293_v28 = vrot.slane %v5285_v56, %v12794_v18 }
 0x150   :  { %2579 = vmatprep.subr.bf16.mxu1 %v11044_v11  ;;  %2632 = vmatprep.subr.bf16.mxu0 %v11047_v38  ;;  %v13855_v47 = vrot.slane %v19154_v10, %v12794_v18  ;;  %v10633_v43 = vpack.i.b16 %v5214_v39, %v4586_v61  ;;  %v5318_v25 = vrot.slane %v5302_v48, %v12794_v18  ;;  %v11057_v61 = vld [vmem:[%s19049_s3 + $0x108] ss:$16 sps:$4 sm:$0xff]  }
 0x151   :  { %v5300_v35 = vrot.slane %v5286_v36, %v12794_v18  ;;  %v5351_v12 = vcombine.high %v13594_v9, %v5342_v55  ;;  %v5350_v24 = vcombine.low %v13594_v9, %v5342_v55  ;;  %v11056_v9 = vld [vmem:[%s19049_s3 + $0x104] ss:$16 sps:$4 sm:$0xff]   ;;  %v5311_v0 = vrot.slane %v5301_v14, %v12794_v18  ;;  %v11054_v14 = vld [vmem:[%s19049_s3 + $0x100] ss:$16 sps:$4 sm:$0xff]  }
 0x152   :  { %v2197_v40 = vcombine.high %v13855_v47, %v13547_v29  ;;  %v5349_v58 = vrot.slane %v10633_v43, %v12794_v18  ;;  %v2139_v21 = vcombine.low %v13383_v1, %v13405_v17  ;;  %v2163_v1 = vrot.slane %v2141_v45, %v12794_v18  ;;  %v11062_v17 = vld [vmem:[%s19049_s3 + $0x4e4] ss:$16 sps:$4 sm:$0xff]   ;;  %v11060_v55 = vld [vmem:[%s19049_s3 + $0x4e0] ss:$16 sps:$4 sm:$0xff]  }
 0x153   :  { %2580 = vmatpush2.bf16.msra.mxu1 %v11042_v33  ;;  %2633 = vmatpush2.bf16.msra.mxu0 %v11045_v34  ;;  %v5303_v26 = vcombine.low %v5293_v28, %v5300_v35  ;;  %v5304_v57 = vcombine.high %v5293_v28, %v5300_v35  ;;  %v5366_v56 = vrot.slane %v5351_v12, %v12794_v18  ;;  %v11065_v34 = vld [vmem:[%s19049_s3 + $0x4ec] ss:$16 sps:$4 sm:$0xff]   ;;  %v11063_v28 = vld [vmem:[%s19049_s3 + $0x4e8] ss:$16 sps:$4 sm:$0xff]   ;;  %v11068_v43 = vld [vmem:[%s19049_s3 + $0x4c4] ss:$16 sps:$4 sm:$0xff]  }
 0x154   :  { %2581 = vmatprep.subr.bf16.mxu1 %v11050_v63  ;;  %2634 = vmatprep.subr.bf16.mxu0 %v11053_v53  ;;  %v5359_v11 = vrot.slane %v5350_v24, %v12794_v18  ;;  %v5352_v20 = vcombine.high %v5349_v58, %v5349_v58  ;;  %v5373_v48 = vrot.slane %v5349_v58, %v12794_v18  ;;  %v11074_v12 = vld [vmem:[%s19049_s3 + $0x4a4] ss:$16 sps:$4 sm:$0xff]   ;;  %v11077_v24 = vld [vmem:[%s19049_s3 + $0x4ac] ss:$16 sps:$4 sm:$0xff]  }
 0x155   :  { %v5332_v38 = vrot.slane %v5304_v57, %v12794_v18  ;;  %v5325_v23 = vrot.slane %v5303_v26, %v12794_v18  ;;  %v2212_v39 = vrot.slane %v2197_v40, %v12794_v18  ;;  %v2226_v63 = vrot.slane %v2198_v31, %v12794_v18  ;;  %v11071_v40 = vld [vmem:[%s19049_s3 + $0x4cc] ss:$16 sps:$4 sm:$0xff]   ;;  %v11072_v26 = vld [vmem:[%s19049_s3 + $0x4a0] ss:$16 sps:$4 sm:$0xff]   ;;  %v11075_v57 = vld [vmem:[%s19049_s3 + $0x4a8] ss:$16 sps:$4 sm:$0xff]  }
 0x156   :  { %v5380_v33 = vrot.slane %v5352_v20, %v12794_v18  ;;  %v13906_v36 = vcombine.low %v5359_v11, %v5373_v48  ;;  %v2149_v10 = vrot.slane %v2139_v21, %v12794_v18  ;;  %v2196_v31 = vcombine.low %v13855_v47, %v13547_v29  ;;  %v11069_v29 = vld [vmem:[%s19049_s3 + $0x4c8] ss:$16 sps:$4 sm:$0xff]   ;;  %v11080_v58 = vld [vmem:[%s19049_s3 + $0x484] ss:$16 sps:$4 sm:$0xff]   ;;  %v11090_v20 = vld [vmem:[%s19049_s3 + $0x440] ss:$16 sps:$4 sm:$0xff]  }
 0x157   :  { %2582 = vmatpush2.bf16.msra.mxu1 %v11048_v62  ;;  %2635 = vmatpush2.bf16.msra.mxu0 %v11051_v49  ;;  %v13894_v37 = vcombine.low %v5318_v25, %v5332_v38  ;;  %v13896_v27 = vcombine.low %v5311_v0, %v5325_v23  ;;  %v2228_v35 = vcombine.low %v2212_v39, %v2226_v63  ;;  %v11066_v25 = vld [vmem:[%s19049_s3 + $0x4c0] ss:$16 sps:$4 sm:$0xff]   ;;  %v11086_v0 = vld [vmem:[%s19049_s3 + $0x464] ss:$16 sps:$4 sm:$0xff]   ;;  %v11087_v11 = vld [vmem:[%s19049_s3 + $0x468] ss:$16 sps:$4 sm:$0xff]  }
 0x158   :  { %2583 = vmatprep.subr.bf16.mxu1 %v11056_v9  ;;  %2636 = vmatprep.subr.bf16.mxu0 %v11059_v2  ;;  %v13910_v53 = vcombine.low %v5366_v56, %v5380_v33  ;;  %v2171_v45 = vcombine.low %v2149_v10, %v2163_v1  ;;  %v2205_v47 = vrot.slane %v2196_v31, %v12794_v18  ;;  %v11078_v9 = vld [vmem:[%s19049_s3 + $0x480] ss:$16 sps:$4 sm:$0xff]   ;;  %v11081_v2 = vld [vmem:[%s19049_s3 + $0x488] ss:$16 sps:$4 sm:$0xff]   ;;  %v11092_v38 = vld [vmem:[%s19049_s3 + $0x444] ss:$16 sps:$4 sm:$0xff]  }
 0x159   :  { %v2219_v62 = vrot.slane %v13551_v60, %v12794_v18  ;;  %v11083_v60 = vld [vmem:[%s19049_s3 + $0x48c] ss:$16 sps:$4 sm:$0xff]   ;;  %v11084_v56 = vld [vmem:[%s19049_s3 + $0x460] ss:$16 sps:$4 sm:$0xff]   ;;  %v11093_v48 = vld [vmem:[%s19049_s3 + $0x448] ss:$16 sps:$4 sm:$0xff]  }
 0x15a   :  { %v11095_v23 = vld [vmem:[%s19049_s3 + $0x44c] ss:$16 sps:$4 sm:$0xff]   ;;  %v11098_v21 = vld [vmem:[%s19049_s3 + $0x424] ss:$16 sps:$4 sm:$0xff]   ;;  %v11099_v33 = vld [vmem:[%s19049_s3 + $0x428] ss:$16 sps:$4 sm:$0xff]  }
 0x15b   :  { %2584 = vmatpush2.bf16.msra.mxu1 %v11054_v14  ;;  %2637 = vmatpush2.bf16.msra.mxu0 %v11057_v61  ;;  %v2227_v49 = vcombine.low %v2205_v47, %v2219_v62  ;;  %v11101_v14 = vld [vmem:[%s19049_s3 + $0x42c] ss:$16 sps:$4 sm:$0xff]   ;;  %v11096_v61 = vld [vmem:[%s19049_s3 + $0x420] ss:$16 sps:$4 sm:$0xff]   ;;  %v11104_v1 = vld [vmem:[%s19049_s3 + $0x404] ss:$16 sps:$4 sm:$0xff]  }
 0x15c   :  { %3177 = vmatprep.subr.bf16.mxu1 %v11062_v17  ;;  %3230 = vmatprep.subr.bf16.mxu0 %v11065_v34  ;;  %v11107_v17 = vld [vmem:[%s19049_s3 + $0x40c] ss:$16 sps:$4 sm:$0xff]   ;;  %v11102_v34 = vld [vmem:[%s19049_s3 + $0x400] ss:$16 sps:$4 sm:$0xff]   ;;  %v11105_v39 = vld [vmem:[%s19049_s3 + $0x408] ss:$16 sps:$4 sm:$0xff]  }
 0x15d   :  { %v11110_v63 = vld [vmem:[%s19049_s3 + $0x5e4] ss:$16 sps:$4 sm:$0xff]   ;;  %v11113_v10 = vld [vmem:[%s19049_s3 + $0x5ec] ss:$16 sps:$4 sm:$0xff]   ;;  %v11123_v47 = vld [vmem:[%s19049_s3 + $0x5a8] ss:$16 sps:$4 sm:$0xff]  }
 0x15e   :  { %2586 = vmatmul.mubr.bf16.vlgmr.msra.gmra.mxu1 %v2171_v45  ;;  %2639 = vmatmul.mubr.bf16.vlgmr.msra.gmra.mxu0 %v2171_v45  ;;  %v11108_v45 = vld [vmem:[%s19049_s3 + $0x5e0] ss:$16 sps:$4 sm:$0xff]   ;;  %v11119_v31 = vld [vmem:[%s19049_s3 + $0x5cc] ss:$16 sps:$4 sm:$0xff]  }
 0x15f   :  { %2595 = vmatprep.mubr.bf16.mxu1 %v2228_v35  ;;  %2648 = vmatprep.mubr.bf16.mxu0 %v2228_v35  ;;  %v11114_v35 = vld [vmem:[%s19049_s3 + $0x5c0] ss:$16 sps:$4 sm:$0xff]  }
 0x160   :  { %3178 = vmatpush1.bf16.msra.mxu1 %v11060_v55  ;;  %3231 = vmatpush1.bf16.msra.mxu0 %v11063_v28  ;;  %v11111_v55 = vld [vmem:[%s19049_s3 + $0x5e8] ss:$16 sps:$4 sm:$0xff]   ;;  %v11116_v28 = vld [vmem:[%s19049_s3 + $0x5c4] ss:$16 sps:$4 sm:$0xff]   ;;  %v11126_v62 = vld [vmem:[%s19049_s3 + $0x580] ss:$16 sps:$4 sm:$0xff]  }
 0x161   :  { %3179 = vmatprep.subr.bf16.mxu1 %v11068_v43  ;;  %3232 = vmatprep.subr.bf16.mxu0 %v11071_v40  ;;  %v11117_v43 = vld [vmem:[%s19049_s3 + $0x5c8] ss:$16 sps:$4 sm:$0xff]   ;;  %v11122_v40 = vld [vmem:[%s19049_s3 + $0x5a4] ss:$16 sps:$4 sm:$0xff]  }
 0x164   :  { %3180 = vmatpush1.bf16.msra.mxu1 %v11066_v25  ;;  %3233 = vmatpush1.bf16.msra.mxu0 %v11069_v29  ;;  %v11125_v25 = vld [vmem:[%s19049_s3 + $0x5ac] ss:$16 sps:$4 sm:$0xff]   ;;  %v11120_v29 = vld [vmem:[%s19049_s3 + $0x5a0] ss:$16 sps:$4 sm:$0xff]  }
 0x165   :  { %3181 = vmatprep.subr.bf16.mxu1 %v11074_v12  ;;  %3234 = vmatprep.subr.bf16.mxu0 %v11077_v24  ;;  %v11128_v12 = vld [vmem:[%s19049_s3 + $0x584] ss:$16 sps:$4 sm:$0xff]   ;;  %v11131_v24 = vld [vmem:[%s19049_s3 + $0x58c] ss:$16 sps:$4 sm:$0xff]  }
 0x166   :  { %2596 = vmatmul.mubr.bf16.gmra.mxu1 %v2227_v49  ;;  %2649 = vmatmul.mubr.bf16.gmra.mxu0 %v2227_v49  ;;  %v11129_v49 = vld [vmem:[%s19049_s3 + $0x588] ss:$16 sps:$4 sm:$0xff]  }
 0x167   :  { %3209 = vmatprep.mubr.bf16.mxu1 %v13576_v59  ;;  %3262 = vmatprep.mubr.bf16.mxu0 %v13576_v59  ;;  %v11089_v59 = vld [vmem:[%s19049_s3 + $0x46c] ss:$16 sps:$4 sm:$0xff]  }
 0x168   :  { %3182 = vmatpush1.bf16.msra.mxu1 %v11072_v26  ;;  %3235 = vmatpush1.bf16.msra.mxu0 %v11075_v57  ;;  %v11134_v26 = vld [vmem:[%s19049_s3 + $0x564] ss:$16 sps:$4 sm:$0xff]   ;;  %v11137_v57 = vld [vmem:[%s19049_s3 + $0x56c] ss:$16 sps:$4 sm:$0xff]  }
 0x169   :  { %3183 = vmatprep.subr.bf16.mxu1 %v11080_v58  ;;  %3236 = vmatprep.subr.bf16.mxu0 %v11083_v60  ;;  %v11132_v58 = vld [vmem:[%s19049_s3 + $0x560] ss:$16 sps:$4 sm:$0xff]   ;;  %v11135_v60 = vld [vmem:[%s19049_s3 + $0x568] ss:$16 sps:$4 sm:$0xff]  }
 0x16c   :  { %3184 = vmatpush1.bf16.msra.mxu1 %v11078_v9  ;;  %3237 = vmatpush1.bf16.msra.mxu0 %v11081_v2  ;;  %v11140_v9 = vld [vmem:[%s19049_s3 + $0x544] ss:$16 sps:$4 sm:$0xff]   ;;  %v11143_v2 = vld [vmem:[%s19049_s3 + $0x54c] ss:$16 sps:$4 sm:$0xff]  }
 0x16d   :  { %3185 = vmatprep.subr.bf16.mxu1 %v11086_v0  ;;  %3238 = vmatprep.subr.bf16.mxu0 %v11089_v59  ;;  %v11138_v0 = vld [vmem:[%s19049_s3 + $0x540] ss:$16 sps:$4 sm:$0xff]   ;;  %v11141_v59 = vld [vmem:[%s19049_s3 + $0x548] ss:$16 sps:$4 sm:$0xff]  }
 0x170   :  { %3186 = vmatpush1.bf16.msra.mxu1 %v11084_v56  ;;  %3239 = vmatpush1.bf16.msra.mxu0 %v11087_v11  ;;  %v11146_v56 = vld [vmem:[%s19049_s3 + $0x524] ss:$16 sps:$4 sm:$0xff]   ;;  %v11149_v11 = vld [vmem:[%s19049_s3 + $0x52c] ss:$16 sps:$4 sm:$0xff]  }
 0x171   :  { %3187 = vmatprep.subr.bf16.mxu1 %v11092_v38  ;;  %3240 = vmatprep.subr.bf16.mxu0 %v11095_v23  ;;  %v11144_v38 = vld [vmem:[%s19049_s3 + $0x520] ss:$16 sps:$4 sm:$0xff]   ;;  %v11147_v23 = vld [vmem:[%s19049_s3 + $0x528] ss:$16 sps:$4 sm:$0xff]  }
 0x174   :  { %3188 = vmatpush1.bf16.msra.mxu1 %v11090_v20  ;;  %3241 = vmatpush1.bf16.msra.mxu0 %v11093_v48  ;;  %v11152_v20 = vld [vmem:[%s19049_s3 + $0x504] ss:$16 sps:$4 sm:$0xff]   ;;  %v11155_v48 = vld [vmem:[%s19049_s3 + $0x50c] ss:$16 sps:$4 sm:$0xff]  }
 0x175   :  { %3189 = vmatprep.subr.bf16.mxu1 %v11098_v21  ;;  %3242 = vmatprep.subr.bf16.mxu0 %v11101_v14  ;;  %v11150_v21 = vld [vmem:[%s19049_s3 + $0x500] ss:$16 sps:$4 sm:$0xff]   ;;  %v11153_v14 = vld [vmem:[%s19049_s3 + $0x508] ss:$16 sps:$4 sm:$0xff]  }
 0x178   :  { %3190 = vmatpush1.bf16.msra.mxu1 %v11096_v61  ;;  %3243 = vmatpush1.bf16.msra.mxu0 %v11099_v33  ;;  %v11158_v61 = vld [vmem:[%s19049_s3 + $0x6e4] ss:$16 sps:$4 sm:$0xff]   ;;  %v11161_v33 = vld [vmem:[%s19049_s3 + $0x6ec] ss:$16 sps:$4 sm:$0xff]  }
 0x179   :  { %3191 = vmatprep.subr.bf16.mxu1 %v11104_v1  ;;  %3244 = vmatprep.subr.bf16.mxu0 %v11107_v17  ;;  %v11156_v1 = vld [vmem:[%s19049_s3 + $0x6e0] ss:$16 sps:$4 sm:$0xff]   ;;  %v11159_v17 = vld [vmem:[%s19049_s3 + $0x6e8] ss:$16 sps:$4 sm:$0xff]  }
 0x17c   :  { %3192 = vmatpush1.bf16.msra.mxu1 %v11102_v34  ;;  %3245 = vmatpush1.bf16.msra.mxu0 %v11105_v39  ;;  %v11164_v34 = vld [vmem:[%s19049_s3 + $0x6c4] ss:$16 sps:$4 sm:$0xff]   ;;  %v11167_v39 = vld [vmem:[%s19049_s3 + $0x6cc] ss:$16 sps:$4 sm:$0xff]  }
 0x17d   :  { %3193 = vmatprep.subr.bf16.mxu1 %v11110_v63  ;;  %3246 = vmatprep.subr.bf16.mxu0 %v11113_v10  ;;  %v11162_v63 = vld [vmem:[%s19049_s3 + $0x6c0] ss:$16 sps:$4 sm:$0xff]   ;;  %v11165_v10 = vld [vmem:[%s19049_s3 + $0x6c8] ss:$16 sps:$4 sm:$0xff]  }
 0x180   :  { %3194 = vmatpush2.bf16.msra.mxu1 %v11108_v45  ;;  %3247 = vmatpush2.bf16.msra.mxu0 %v11111_v55  ;;  %v11168_v45 = vld [vmem:[%s19049_s3 + $0x6a0] ss:$16 sps:$4 sm:$0xff]   ;;  %v11171_v55 = vld [vmem:[%s19049_s3 + $0x6a8] ss:$16 sps:$4 sm:$0xff]  }
 0x181   :  { %3195 = vmatprep.subr.bf16.mxu1 %v11116_v28  ;;  %3248 = vmatprep.subr.bf16.mxu0 %v11119_v31  ;;  %v11176_v28 = vld [vmem:[%s19049_s3 + $0x684] ss:$16 sps:$4 sm:$0xff]   ;;  %v11179_v31 = vld [vmem:[%s19049_s3 + $0x68c] ss:$16 sps:$4 sm:$0xff]  }
 0x184   :  { %3196 = vmatpush2.bf16.msra.mxu1 %v11114_v35  ;;  %3249 = vmatpush2.bf16.msra.mxu0 %v11117_v43  ;;  %v11174_v35 = vld [vmem:[%s19049_s3 + $0x680] ss:$16 sps:$4 sm:$0xff]   ;;  %v11177_v43 = vld [vmem:[%s19049_s3 + $0x688] ss:$16 sps:$4 sm:$0xff]  }
 0x185   :  { %3197 = vmatprep.subr.bf16.mxu1 %v11122_v40  ;;  %3250 = vmatprep.subr.bf16.mxu0 %v11125_v25  ;;  %v11180_v40 = vld [vmem:[%s19049_s3 + $0x660] ss:$16 sps:$4 sm:$0xff]   ;;  %v11183_v25 = vld [vmem:[%s19049_s3 + $0x668] ss:$16 sps:$4 sm:$0xff]  }
 0x188   :  { %3198 = vmatpush2.bf16.msra.mxu1 %v11120_v29  ;;  %3251 = vmatpush2.bf16.msra.mxu0 %v11123_v47  ;;  %v11188_v29 = vld [vmem:[%s19049_s3 + $0x644] ss:$16 sps:$4 sm:$0xff]   ;;  %v11191_v47 = vld [vmem:[%s19049_s3 + $0x64c] ss:$16 sps:$4 sm:$0xff]  }
 0x189   :  { %3199 = vmatprep.subr.bf16.mxu1 %v11128_v12  ;;  %3252 = vmatprep.subr.bf16.mxu0 %v11131_v24  ;;  %v11186_v12 = vld [vmem:[%s19049_s3 + $0x640] ss:$16 sps:$4 sm:$0xff]   ;;  %v11189_v24 = vld [vmem:[%s19049_s3 + $0x648] ss:$16 sps:$4 sm:$0xff]  }
 0x18c   :  { %3200 = vmatpush2.bf16.msra.mxu1 %v11126_v62  ;;  %3253 = vmatpush2.bf16.msra.mxu0 %v11129_v49  ;;  %v11194_v62 = vld [vmem:[%s19049_s3 + $0x624] ss:$16 sps:$4 sm:$0xff]   ;;  %v11197_v49 = vld [vmem:[%s19049_s3 + $0x62c] ss:$16 sps:$4 sm:$0xff]  }
 0x18d   :  { %3201 = vmatprep.subr.bf16.mxu1 %v11134_v26  ;;  %3254 = vmatprep.subr.bf16.mxu0 %v11137_v57  ;;  %v11192_v26 = vld [vmem:[%s19049_s3 + $0x620] ss:$16 sps:$4 sm:$0xff]   ;;  %v11195_v57 = vld [vmem:[%s19049_s3 + $0x628] ss:$16 sps:$4 sm:$0xff]  }
 0x190   :  { %3202 = vmatpush2.bf16.msra.mxu1 %v11132_v58  ;;  %3255 = vmatpush2.bf16.msra.mxu0 %v11135_v60  ;;  %v11200_v58 = vld [vmem:[%s19049_s3 + $0x604] ss:$16 sps:$4 sm:$0xff]   ;;  %v11203_v60 = vld [vmem:[%s19049_s3 + $0x60c] ss:$16 sps:$4 sm:$0xff]  }
 0x191   :  { %3203 = vmatprep.subr.bf16.mxu1 %v11140_v9  ;;  %3256 = vmatprep.subr.bf16.mxu0 %v11143_v2  ;;  %v11198_v9 = vld [vmem:[%s19049_s3 + $0x600] ss:$16 sps:$4 sm:$0xff]   ;;  %v11201_v2 = vld [vmem:[%s19049_s3 + $0x608] ss:$16 sps:$4 sm:$0xff]  }
 0x194   :  { %3204 = vmatpush2.bf16.msra.mxu1 %v11138_v0  ;;  %3257 = vmatpush2.bf16.msra.mxu0 %v11141_v59  ;;  %v11206_v0 = vld [vmem:[%s19049_s3 + $0x7e4] ss:$16 sps:$4 sm:$0xff]   ;;  %v11209_v59 = vld [vmem:[%s19049_s3 + $0x7ec] ss:$16 sps:$4 sm:$0xff]  }
 0x195   :  { %3205 = vmatprep.subr.bf16.mxu1 %v11146_v56  ;;  %3258 = vmatprep.subr.bf16.mxu0 %v11149_v11  ;;  %v11204_v56 = vld [vmem:[%s19049_s3 + $0x7e0] ss:$16 sps:$4 sm:$0xff]   ;;  %v11207_v11 = vld [vmem:[%s19049_s3 + $0x7e8] ss:$16 sps:$4 sm:$0xff]  }
 0x198   :  { %3206 = vmatpush2.bf16.msra.mxu1 %v11144_v38  ;;  %3259 = vmatpush2.bf16.msra.mxu0 %v11147_v23  ;;  %v11212_v38 = vld [vmem:[%s19049_s3 + $0x7c4] ss:$16 sps:$4 sm:$0xff]   ;;  %v11215_v23 = vld [vmem:[%s19049_s3 + $0x7cc] ss:$16 sps:$4 sm:$0xff]  }
 0x199   :  { %3207 = vmatprep.subr.bf16.mxu1 %v11152_v20  ;;  %3260 = vmatprep.subr.bf16.mxu0 %v11155_v48  ;;  %v11210_v20 = vld [vmem:[%s19049_s3 + $0x7c0] ss:$16 sps:$4 sm:$0xff]   ;;  %v11213_v48 = vld [vmem:[%s19049_s3 + $0x7c8] ss:$16 sps:$4 sm:$0xff]  }
 0x19c   :  { %3208 = vmatpush2.bf16.msra.mxu1 %v11150_v21  ;;  %3261 = vmatpush2.bf16.msra.mxu0 %v11153_v14  ;;  %v11218_v21 = vld [vmem:[%s19049_s3 + $0x7a4] ss:$16 sps:$4 sm:$0xff]   ;;  %v11221_v14 = vld [vmem:[%s19049_s3 + $0x7ac] ss:$16 sps:$4 sm:$0xff]  }
 0x19d   :  { %3815 = vmatprep.subr.bf16.mxu1 %v11158_v61  ;;  %3868 = vmatprep.subr.bf16.mxu0 %v11161_v33  ;;  %v11216_v61 = vld [vmem:[%s19049_s3 + $0x7a0] ss:$16 sps:$4 sm:$0xff]   ;;  %v11219_v33 = vld [vmem:[%s19049_s3 + $0x7a8] ss:$16 sps:$4 sm:$0xff]  }
 0x19f   :  { %3210 = vmatmul.mubr.bf16.vlgmr.msra.gmra.mxu1 %v13578_v42  ;;  %3263 = vmatmul.mubr.bf16.vlgmr.msra.gmra.mxu0 %v13578_v42  ;;  %v11170_v42 = vld [vmem:[%s19049_s3 + $0x6a4] ss:$16 sps:$4 sm:$0xff]  }
 0x1a0   :  { %3219 = vmatprep.mubr.bf16.mxu1 %v13631_v51  ;;  %3272 = vmatprep.mubr.bf16.mxu0 %v13631_v51  ;;  %v11173_v51 = vld [vmem:[%s19049_s3 + $0x6ac] ss:$16 sps:$4 sm:$0xff]  }
 0x1a1   :  { %3816 = vmatpush1.bf16.msra.mxu1 %v11156_v1  ;;  %3869 = vmatpush1.bf16.msra.mxu0 %v11159_v17  ;;  %v11224_v1 = vld [vmem:[%s19049_s3 + $0x784] ss:$16 sps:$4 sm:$0xff]   ;;  %v11227_v17 = vld [vmem:[%s19049_s3 + $0x78c] ss:$16 sps:$4 sm:$0xff]  }
 0x1a2   :  { %3817 = vmatprep.subr.bf16.mxu1 %v11164_v34  ;;  %3870 = vmatprep.subr.bf16.mxu0 %v11167_v39  ;;  %v11222_v34 = vld [vmem:[%s19049_s3 + $0x780] ss:$16 sps:$4 sm:$0xff]   ;;  %v11225_v39 = vld [vmem:[%s19049_s3 + $0x788] ss:$16 sps:$4 sm:$0xff]  }
 0x1a5   :  { %3818 = vmatpush1.bf16.msra.mxu1 %v11162_v63  ;;  %3871 = vmatpush1.bf16.msra.mxu0 %v11165_v10  ;;  %v11230_v63 = vld [vmem:[%s19049_s3 + $0x764] ss:$16 sps:$4 sm:$0xff]   ;;  %v11233_v10 = vld [vmem:[%s19049_s3 + $0x76c] ss:$16 sps:$4 sm:$0xff]  }
 0x1a6   :  { %3819 = vmatprep.subr.bf16.mxu1 %v11170_v42  ;;  %3872 = vmatprep.subr.bf16.mxu0 %v11173_v51  ;;  %v11228_v42 = vld [vmem:[%s19049_s3 + $0x760] ss:$16 sps:$4 sm:$0xff]   ;;  %v11231_v51 = vld [vmem:[%s19049_s3 + $0x768] ss:$16 sps:$4 sm:$0xff]  }
 0x1a7   :  { %3220 = vmatmul.mubr.bf16.gmra.mxu1 %v13633_v13  ;;  %3273 = vmatmul.mubr.bf16.gmra.mxu0 %v13633_v13  ;;  %v11182_v13 = vld [vmem:[%s19049_s3 + $0x664] ss:$16 sps:$4 sm:$0xff]  }
 0x1a8   :  { %3847 = vmatprep.mubr.bf16.mxu1 %v13665_v32  ;;  %3900 = vmatprep.mubr.bf16.mxu0 %v13665_v32  ;;  %v11185_v32 = vld [vmem:[%s19049_s3 + $0x66c] ss:$16 sps:$4 sm:$0xff]  }
 0x1a9   :  { %3820 = vmatpush1.bf16.msra.mxu1 %v11168_v45  ;;  %3873 = vmatpush1.bf16.msra.mxu0 %v11171_v55  ;;  %v11236_v45 = vld [vmem:[%s19049_s3 + $0x744] ss:$16 sps:$4 sm:$0xff]   ;;  %v11239_v55 = vld [vmem:[%s19049_s3 + $0x74c] ss:$16 sps:$4 sm:$0xff]  }
 0x1aa   :  { %3821 = vmatprep.subr.bf16.mxu1 %v11176_v28  ;;  %3874 = vmatprep.subr.bf16.mxu0 %v11179_v31  ;;  %v11234_v28 = vld [vmem:[%s19049_s3 + $0x740] ss:$16 sps:$4 sm:$0xff]   ;;  %v11237_v31 = vld [vmem:[%s19049_s3 + $0x748] ss:$16 sps:$4 sm:$0xff]  }
 0x1ad   :  { %3822 = vmatpush1.bf16.msra.mxu1 %v11174_v35  ;;  %3875 = vmatpush1.bf16.msra.mxu0 %v11177_v43  ;;  %v11242_v35 = vld [vmem:[%s19049_s3 + $0x724] ss:$16 sps:$4 sm:$0xff]   ;;  %v11245_v43 = vld [vmem:[%s19049_s3 + $0x72c] ss:$16 sps:$4 sm:$0xff]  }
 0x1ae   :  { %3823 = vmatprep.subr.bf16.mxu1 %v11182_v13  ;;  %3876 = vmatprep.subr.bf16.mxu0 %v11185_v32  ;;  %v11240_v13 = vld [vmem:[%s19049_s3 + $0x720] ss:$16 sps:$4 sm:$0xff]   ;;  %v11243_v32 = vld [vmem:[%s19049_s3 + $0x728] ss:$16 sps:$4 sm:$0xff]  }
 0x1b1   :  { %3824 = vmatpush1.bf16.msra.mxu1 %v11180_v40  ;;  %3877 = vmatpush1.bf16.msra.mxu0 %v11183_v25  ;;  %v11248_v40 = vld [vmem:[%s19049_s3 + $0x704] ss:$16 sps:$4 sm:$0xff]   ;;  %v11251_v25 = vld [vmem:[%s19049_s3 + $0x70c] ss:$16 sps:$4 sm:$0xff]  }
 0x1b2   :  { %3825 = vmatprep.subr.bf16.mxu1 %v11188_v29  ;;  %3878 = vmatprep.subr.bf16.mxu0 %v11191_v47  ;;  %v11246_v29 = vld [vmem:[%s19049_s3 + $0x700] ss:$16 sps:$4 sm:$0xff]   ;;  %v11249_v47 = vld [vmem:[%s19049_s3 + $0x708] ss:$16 sps:$4 sm:$0xff]  }
 0x1b5   :  { %3826 = vmatpush1.bf16.msra.mxu1 %v11186_v12  ;;  %3879 = vmatpush1.bf16.msra.mxu0 %v11189_v24  ;;  %v11254_v12 = vld [vmem:[%s19049_s3 + $0x8e4] ss:$16 sps:$4 sm:$0xff]   ;;  %v11257_v24 = vld [vmem:[%s19049_s3 + $0x8ec] ss:$16 sps:$4 sm:$0xff]  }
 0x1b6   :  { %3827 = vmatprep.subr.bf16.mxu1 %v11194_v62  ;;  %3880 = vmatprep.subr.bf16.mxu0 %v11197_v49  ;;  %v11252_v62 = vld [vmem:[%s19049_s3 + $0x8e0] ss:$16 sps:$4 sm:$0xff]   ;;  %v11255_v49 = vld [vmem:[%s19049_s3 + $0x8e8] ss:$16 sps:$4 sm:$0xff]  }
 0x1b9   :  { %3828 = vmatpush1.bf16.msra.mxu1 %v11192_v26  ;;  %3881 = vmatpush1.bf16.msra.mxu0 %v11195_v57  ;;  %v11260_v26 = vld [vmem:[%s19049_s3 + $0x8c4] ss:$16 sps:$4 sm:$0xff]   ;;  %v11263_v57 = vld [vmem:[%s19049_s3 + $0x8cc] ss:$16 sps:$4 sm:$0xff]  }
 0x1ba   :  { %3829 = vmatprep.subr.bf16.mxu1 %v11200_v58  ;;  %3882 = vmatprep.subr.bf16.mxu0 %v11203_v60  ;;  %v11258_v58 = vld [vmem:[%s19049_s3 + $0x8c0] ss:$16 sps:$4 sm:$0xff]   ;;  %v11261_v60 = vld [vmem:[%s19049_s3 + $0x8c8] ss:$16 sps:$4 sm:$0xff]  }
 0x1bd   :  { %3830 = vmatpush1.bf16.msra.mxu1 %v11198_v9  ;;  %3883 = vmatpush1.bf16.msra.mxu0 %v11201_v2  ;;  %v11264_v9 = vld [vmem:[%s19049_s3 + $0x8a0] ss:$16 sps:$4 sm:$0xff]   ;;  %v11267_v2 = vld [vmem:[%s19049_s3 + $0x8a8] ss:$16 sps:$4 sm:$0xff]  }
 0x1be   :  { %3831 = vmatprep.subr.bf16.mxu1 %v11206_v0  ;;  %3884 = vmatprep.subr.bf16.mxu0 %v11209_v59  ;;  %v11272_v0 = vld [vmem:[%s19049_s3 + $0x884] ss:$16 sps:$4 sm:$0xff]   ;;  %v11275_v59 = vld [vmem:[%s19049_s3 + $0x88c] ss:$16 sps:$4 sm:$0xff]  }
 0x1c1   :  { %3832 = vmatpush2.bf16.msra.mxu1 %v11204_v56  ;;  %3885 = vmatpush2.bf16.msra.mxu0 %v11207_v11  ;;  %v11270_v56 = vld [vmem:[%s19049_s3 + $0x880] ss:$16 sps:$4 sm:$0xff]   ;;  %v11273_v11 = vld [vmem:[%s19049_s3 + $0x888] ss:$16 sps:$4 sm:$0xff]  }
 0x1c2   :  { %3833 = vmatprep.subr.bf16.mxu1 %v11212_v38  ;;  %3886 = vmatprep.subr.bf16.mxu0 %v11215_v23  ;;  %v11276_v38 = vld [vmem:[%s19049_s3 + $0x860] ss:$16 sps:$4 sm:$0xff]   ;;  %v11279_v23 = vld [vmem:[%s19049_s3 + $0x868] ss:$16 sps:$4 sm:$0xff]  }
 0x1c5   :  { %3834 = vmatpush2.bf16.msra.mxu1 %v11210_v20  ;;  %3887 = vmatpush2.bf16.msra.mxu0 %v11213_v48  ;;  %v11284_v20 = vld [vmem:[%s19049_s3 + $0x844] ss:$16 sps:$4 sm:$0xff]   ;;  %v11287_v48 = vld [vmem:[%s19049_s3 + $0x84c] ss:$16 sps:$4 sm:$0xff]  }
 0x1c6   :  { %3835 = vmatprep.subr.bf16.mxu1 %v11218_v21  ;;  %3888 = vmatprep.subr.bf16.mxu0 %v11221_v14  ;;  %v11282_v21 = vld [vmem:[%s19049_s3 + $0x840] ss:$16 sps:$4 sm:$0xff]   ;;  %v11285_v14 = vld [vmem:[%s19049_s3 + $0x848] ss:$16 sps:$4 sm:$0xff]  }
 0x1c9   :  { %3836 = vmatpush2.bf16.msra.mxu1 %v11216_v61  ;;  %3889 = vmatpush2.bf16.msra.mxu0 %v11219_v33  ;;  %v11290_v61 = vld [vmem:[%s19049_s3 + $0x824] ss:$16 sps:$4 sm:$0xff]   ;;  %v11293_v33 = vld [vmem:[%s19049_s3 + $0x82c] ss:$16 sps:$4 sm:$0xff]  }
 0x1ca   :  { %3837 = vmatprep.subr.bf16.mxu1 %v11224_v1  ;;  %3890 = vmatprep.subr.bf16.mxu0 %v11227_v17  ;;  %v11288_v1 = vld [vmem:[%s19049_s3 + $0x820] ss:$16 sps:$4 sm:$0xff]   ;;  %v11291_v17 = vld [vmem:[%s19049_s3 + $0x828] ss:$16 sps:$4 sm:$0xff]  }
 0x1cd   :  { %3838 = vmatpush2.bf16.msra.mxu1 %v11222_v34  ;;  %3891 = vmatpush2.bf16.msra.mxu0 %v11225_v39  ;;  %v11296_v34 = vld [vmem:[%s19049_s3 + $0x804] ss:$16 sps:$4 sm:$0xff]   ;;  %v11299_v39 = vld [vmem:[%s19049_s3 + $0x80c] ss:$16 sps:$4 sm:$0xff]  }
 0x1ce   :  { %3839 = vmatprep.subr.bf16.mxu1 %v11230_v63  ;;  %3892 = vmatprep.subr.bf16.mxu0 %v11233_v10  ;;  %v11294_v63 = vld [vmem:[%s19049_s3 + $0x800] ss:$16 sps:$4 sm:$0xff]   ;;  %v11297_v10 = vld [vmem:[%s19049_s3 + $0x808] ss:$16 sps:$4 sm:$0xff]  }
 0x1d1   :  { %3840 = vmatpush2.bf16.msra.mxu1 %v11228_v42  ;;  %3893 = vmatpush2.bf16.msra.mxu0 %v11231_v51  ;;  %v11302_v42 = vld [vmem:[%s19049_s3 + $0x9e4] ss:$16 sps:$4 sm:$0xff]   ;;  %v11305_v51 = vld [vmem:[%s19049_s3 + $0x9ec] ss:$16 sps:$4 sm:$0xff]  }
 0x1d2   :  { %3841 = vmatprep.subr.bf16.mxu1 %v11236_v45  ;;  %3894 = vmatprep.subr.bf16.mxu0 %v11239_v55  ;;  %v11300_v45 = vld [vmem:[%s19049_s3 + $0x9e0] ss:$16 sps:$4 sm:$0xff]   ;;  %v11303_v55 = vld [vmem:[%s19049_s3 + $0x9e8] ss:$16 sps:$4 sm:$0xff]  }
 0x1d5   :  { %3842 = vmatpush2.bf16.msra.mxu1 %v11234_v28  ;;  %3895 = vmatpush2.bf16.msra.mxu0 %v11237_v31  ;;  %v11308_v28 = vld [vmem:[%s19049_s3 + $0x9c4] ss:$16 sps:$4 sm:$0xff]   ;;  %v11311_v31 = vld [vmem:[%s19049_s3 + $0x9cc] ss:$16 sps:$4 sm:$0xff]  }
 0x1d6   :  { %3843 = vmatprep.subr.bf16.mxu1 %v11242_v35  ;;  %3896 = vmatprep.subr.bf16.mxu0 %v11245_v43 }
 0x1d9   :  { %3844 = vmatpush2.bf16.msra.mxu1 %v11240_v13  ;;  %3897 = vmatpush2.bf16.msra.mxu0 %v11243_v32  ;;  %v11306_v13 = vld [vmem:[%s19049_s3 + $0x9c0] ss:$16 sps:$4 sm:$0xff]   ;;  %v11309_v32 = vld [vmem:[%s19049_s3 + $0x9c8] ss:$16 sps:$4 sm:$0xff]  }
 0x1da   :  { %3845 = vmatprep.subr.bf16.mxu1 %v11248_v40  ;;  %3898 = vmatprep.subr.bf16.mxu0 %v11251_v25  ;;  %v11314_v40 = vld [vmem:[%s19049_s3 + $0x9a4] ss:$16 sps:$4 sm:$0xff]   ;;  %v11317_v25 = vld [vmem:[%s19049_s3 + $0x9ac] ss:$16 sps:$4 sm:$0xff]  }
 0x1dd   :  { %3846 = vmatpush2.bf16.msra.mxu1 %v11246_v29  ;;  %3899 = vmatpush2.bf16.msra.mxu0 %v11249_v47 }
 0x1de   :  { %4463 = vmatprep.subr.bf16.mxu1 %v11254_v12  ;;  %4516 = vmatprep.subr.bf16.mxu0 %v11257_v24  ;;  %v14428_v35 = vpop.f32.mrf.mxu1  ;;  %v14430_v43 = vpop.f32.mrf.mxu0  ;;  %v11312_v12 = vld [vmem:[%s19049_s3 + $0x9a0] ss:$16 sps:$4 sm:$0xff]   ;;  %v11315_v24 = vld [vmem:[%s19049_s3 + $0x9a8] ss:$16 sps:$4 sm:$0xff]  }
 0x1e0   :  { %3848 = vmatmul.mubr.bf16.vlgmr.msra.gmra.mxu1 %v13658_v6  ;;  %3901 = vmatmul.mubr.bf16.vlgmr.msra.gmra.mxu0 %v13658_v6  ;;  %v11266_v6 = vld [vmem:[%s19049_s3 + $0x8a4] ss:$16 sps:$4 sm:$0xff]   ;;  %v14444_v29 = vpop.f32.mrf.mxu1  ;;  %v14446_v47 = vpop.f32.mrf.mxu0 }
 0x1e1   :  { %3857 = vmatprep.mubr.bf16.mxu1 %v13705_v19  ;;  %3910 = vmatprep.mubr.bf16.mxu0 %v13705_v19  ;;  %v11269_v19 = vld [vmem:[%s19049_s3 + $0x8ac] ss:$16 sps:$4 sm:$0xff]  }
 0x1e2   :  { %4464 = vmatpush1.bf16.msra.mxu1 %v11252_v62  ;;  %4517 = vmatpush1.bf16.msra.mxu0 %v11255_v49  ;;  %v11320_v62 = vld [vmem:[%s19049_s3 + $0x984] ss:$16 sps:$4 sm:$0xff]   ;;  %v11323_v49 = vld [vmem:[%s19049_s3 + $0x98c] ss:$16 sps:$4 sm:$0xff]  }
 0x1e3   :  { %4465 = vmatprep.subr.bf16.mxu1 %v11260_v26  ;;  %4518 = vmatprep.subr.bf16.mxu0 %v11263_v57  ;;  %v14460_v26 = vpop.f32.mrf.mxu1  ;;  %v14462_v57 = vpop.f32.mrf.mxu0 }
 0x1e6   :  { %4466 = vmatpush1.bf16.msra.mxu1 %v11258_v58  ;;  %4519 = vmatpush1.bf16.msra.mxu0 %v11261_v60  ;;  %v11318_v58 = vld [vmem:[%s19049_s3 + $0x980] ss:$16 sps:$4 sm:$0xff]   ;;  %v11321_v60 = vld [vmem:[%s19049_s3 + $0x988] ss:$16 sps:$4 sm:$0xff]  }
 0x1e7   :  { %4467 = vmatprep.subr.bf16.mxu1 %v11266_v6  ;;  %4520 = vmatprep.subr.bf16.mxu0 %v11269_v19  ;;  %v11326_v6 = vld [vmem:[%s19049_s3 + $0x964] ss:$16 sps:$4 sm:$0xff]   ;;  %v11329_v19 = vld [vmem:[%s19049_s3 + $0x96c] ss:$16 sps:$4 sm:$0xff]  }
 0x1e8   :  { %3858 = vmatmul.mubr.bf16.gmra.mxu1 %v13707_v7  ;;  %3911 = vmatmul.mubr.bf16.gmra.mxu0 %v13707_v7  ;;  %v11278_v7 = vld [vmem:[%s19049_s3 + $0x864] ss:$16 sps:$4 sm:$0xff]  }
 0x1e9   :  { %4495 = vmatprep.mubr.bf16.mxu1 %v13760_v22  ;;  %4548 = vmatprep.mubr.bf16.mxu0 %v13760_v22  ;;  %v11281_v22 = vld [vmem:[%s19049_s3 + $0x86c] ss:$16 sps:$4 sm:$0xff]  }
 0x1ea   :  { %4468 = vmatpush1.bf16.msra.mxu1 %v11264_v9  ;;  %4521 = vmatpush1.bf16.msra.mxu0 %v11267_v2  ;;  %v14476_v9 = vpop.f32.mrf.mxu1  ;;  %v14478_v2 = vpop.f32.mrf.mxu0 }
 0x1eb   :  { %4469 = vmatprep.subr.bf16.mxu1 %v11272_v0  ;;  %4522 = vmatprep.subr.bf16.mxu0 %v11275_v59  ;;  %v11324_v0 = vld [vmem:[%s19049_s3 + $0x960] ss:$16 sps:$4 sm:$0xff]   ;;  %v11327_v59 = vld [vmem:[%s19049_s3 + $0x968] ss:$16 sps:$4 sm:$0xff]  }
 0x1ee   :  { %4470 = vmatpush1.bf16.msra.mxu1 %v11270_v56  ;;  %4523 = vmatpush1.bf16.msra.mxu0 %v11273_v11  ;;  %v11332_v56 = vld [vmem:[%s19049_s3 + $0x944] ss:$16 sps:$4 sm:$0xff]   ;;  %v11335_v11 = vld [vmem:[%s19049_s3 + $0x94c] ss:$16 sps:$4 sm:$0xff]  }
 0x1ef   :  { %4471 = vmatprep.subr.bf16.mxu1 %v11278_v7  ;;  %4524 = vmatprep.subr.bf16.mxu0 %v11281_v22  ;;  %v14492_v7 = vpop.f32.mrf.mxu1  ;;  %v14494_v22 = vpop.f32.mrf.mxu0 }
 0x1f2   :  { %4472 = vmatpush1.bf16.msra.mxu1 %v11276_v38  ;;  %4525 = vmatpush1.bf16.msra.mxu0 %v11279_v23  ;;  %v11330_v38 = vld [vmem:[%s19049_s3 + $0x940] ss:$16 sps:$4 sm:$0xff]   ;;  %v11333_v23 = vld [vmem:[%s19049_s3 + $0x948] ss:$16 sps:$4 sm:$0xff]  }
 0x1f3   :  { %4473 = vmatprep.subr.bf16.mxu1 %v11284_v20  ;;  %4526 = vmatprep.subr.bf16.mxu0 %v11287_v48  ;;  %v11338_v20 = vld [vmem:[%s19049_s3 + $0x924] ss:$16 sps:$4 sm:$0xff]   ;;  %v11341_v48 = vld [vmem:[%s19049_s3 + $0x92c] ss:$16 sps:$4 sm:$0xff]  }
 0x1f6   :  { %4474 = vmatpush1.bf16.msra.mxu1 %v11282_v21  ;;  %4527 = vmatpush1.bf16.msra.mxu0 %v11285_v14  ;;  %v14508_v21 = vpop.f32.mrf.mxu1  ;;  %v14510_v14 = vpop.f32.mrf.mxu0 }
 0x1f7   :  { %4475 = vmatprep.subr.bf16.mxu1 %v11290_v61  ;;  %4528 = vmatprep.subr.bf16.mxu0 %v11293_v33  ;;  %v11336_v61 = vld [vmem:[%s19049_s3 + $0x920] ss:$16 sps:$4 sm:$0xff]   ;;  %v11339_v33 = vld [vmem:[%s19049_s3 + $0x928] ss:$16 sps:$4 sm:$0xff]  }
 0x1fa   :  { %4476 = vmatpush1.bf16.msra.mxu1 %v11288_v1  ;;  %4529 = vmatpush1.bf16.msra.mxu0 %v11291_v17  ;;  %v11344_v1 = vld [vmem:[%s19049_s3 + $0x904] ss:$16 sps:$4 sm:$0xff]   ;;  %v11347_v17 = vld [vmem:[%s19049_s3 + $0x90c] ss:$16 sps:$4 sm:$0xff]  }
 0x1fb   :  { %4477 = vmatprep.subr.bf16.mxu1 %v11296_v34  ;;  %4530 = vmatprep.subr.bf16.mxu0 %v11299_v39  ;;  %v14524_v34 = vpop.f32.mrf.mxu1  ;;  %v14526_v39 = vpop.f32.mrf.mxu0 }
 0x1fe   :  { %4478 = vmatpush1.bf16.msra.mxu1 %v11294_v63  ;;  %4531 = vmatpush1.bf16.msra.mxu0 %v11297_v10  ;;  %v11342_v63 = vld [vmem:[%s19049_s3 + $0x900] ss:$16 sps:$4 sm:$0xff]   ;;  %v11345_v10 = vld [vmem:[%s19049_s3 + $0x908] ss:$16 sps:$4 sm:$0xff]  }
 0x1ff   :  { %4479 = vmatprep.subr.bf16.mxu1 %v11302_v42  ;;  %4532 = vmatprep.subr.bf16.mxu0 %v11305_v51  ;;  %v11350_v42 = vld [vmem:[%s19049_s3 + $0xae4] ss:$16 sps:$4 sm:$0xff]   ;;  %v11353_v51 = vld [vmem:[%s19049_s3 + $0xaec] ss:$16 sps:$4 sm:$0xff]  }
 0x202   :  { %4480 = vmatpush2.bf16.msra.mxu1 %v11300_v45  ;;  %4533 = vmatpush2.bf16.msra.mxu0 %v11303_v55  ;;  %v14540_v45 = vpop.f32.mrf.mxu1  ;;  %v14542_v55 = vpop.f32.mrf.mxu0 }
 0x203   :  { %4481 = vmatprep.subr.bf16.mxu1 %v11308_v28  ;;  %4534 = vmatprep.subr.bf16.mxu0 %v11311_v31 }
 0x206   :  { %4482 = vmatpush2.bf16.msra.mxu1 %v11306_v13  ;;  %4535 = vmatpush2.bf16.msra.mxu0 %v11309_v32 }
 0x207   :  { %4483 = vmatprep.subr.bf16.mxu1 %v11314_v40  ;;  %4536 = vmatprep.subr.bf16.mxu0 %v11317_v25  ;;  %v11348_v40 = vld [vmem:[%s19049_s3 + $0xae0] ss:$16 sps:$4 sm:$0xff]   ;;  %v11351_v25 = vld [vmem:[%s19049_s3 + $0xae8] ss:$16 sps:$4 sm:$0xff]  }
 0x20a   :  { %4484 = vmatpush2.bf16.msra.mxu1 %v11312_v12  ;;  %4537 = vmatpush2.bf16.msra.mxu0 %v11315_v24 }
 0x20b   :  { %4485 = vmatprep.subr.bf16.mxu1 %v11320_v62  ;;  %4538 = vmatprep.subr.bf16.mxu0 %v11323_v49 }
 0x20e   :  { %4486 = vmatpush2.bf16.msra.mxu1 %v11318_v58  ;;  %4539 = vmatpush2.bf16.msra.mxu0 %v11321_v60 }
 0x20f   :  { %4487 = vmatprep.subr.bf16.mxu1 %v11326_v6  ;;  %4540 = vmatprep.subr.bf16.mxu0 %v11329_v19 }
 0x212   :  { %4488 = vmatpush2.bf16.msra.mxu1 %v11324_v0  ;;  %4541 = vmatpush2.bf16.msra.mxu0 %v11327_v59 }
 0x213   :  { %4489 = vmatprep.subr.bf16.mxu1 %v11332_v56  ;;  %4542 = vmatprep.subr.bf16.mxu0 %v11335_v11 }
 0x216   :  { %4490 = vmatpush2.bf16.msra.mxu1 %v11330_v38  ;;  %4543 = vmatpush2.bf16.msra.mxu0 %v11333_v23  ;;  %v11360_v38 = vld [vmem:[%s19049_s3 + $0xaa0] ss:$16 sps:$4 sm:$0xff]   ;;  %v11363_v23 = vld [vmem:[%s19049_s3 + $0xaa8] ss:$16 sps:$4 sm:$0xff]  }
 0x217   :  { %4491 = vmatprep.subr.bf16.mxu1 %v11338_v20  ;;  %4544 = vmatprep.subr.bf16.mxu0 %v11341_v48 }
 0x21a   :  { %4492 = vmatpush2.bf16.msra.mxu1 %v11336_v61  ;;  %4545 = vmatpush2.bf16.msra.mxu0 %v11339_v33 }
 0x21b   :  { %4493 = vmatprep.subr.bf16.mxu1 %v11344_v1  ;;  %4546 = vmatprep.subr.bf16.mxu0 %v11347_v17 }
 0x21e   :  { %4494 = vmatpush2.bf16.msra.mxu1 %v11342_v63  ;;  %4547 = vmatpush2.bf16.msra.mxu0 %v11345_v10  ;;  %v2587_v28 = vpop.f32.mrf.mxu1  ;;  %v2640_v31 = vpop.f32.mrf.mxu0 }
 0x21f   :  { %v14545_v13 = vadd.f32 %v2587_v28, %v14428_v35  ;;  %v14548_v32 = vadd.f32 %v2640_v31, %v14430_v43  ;;  %5077 = vmatprep.subr.bf16.mxu1 %v11350_v42  ;;  %5130 = vmatprep.subr.bf16.mxu0 %v11353_v51  ;;  %v11356_v35 = vld [vmem:[%s19049_s3 + $0xac4] ss:$16 sps:$4 sm:$0xff]   ;;  %v11359_v43 = vld [vmem:[%s19049_s3 + $0xacc] ss:$16 sps:$4 sm:$0xff]   ;;  %v11378_v28 = vld [vmem:[%s19049_s3 + $0xa40] ss:$16 sps:$4 sm:$0xff]  }
 0x220   :  { %v2589_v12 = vpop.f32.mrf.mxu1  ;;  %v2642_v24 = vpop.f32.mrf.mxu0  ;;  %v11380_v42 = vld [vmem:[%s19049_s3 + $0xa44] ss:$16 sps:$4 sm:$0xff]   ;;  %v11383_v51 = vld [vmem:[%s19049_s3 + $0xa4c] ss:$16 sps:$4 sm:$0xff]   ;;  %v11381_v31 = vld [vmem:[%s19049_s3 + $0xa48] ss:$16 sps:$4 sm:$0xff]  }
 0x221   :  { %4496 = vmatmul.mubr.bf16.vlgmr.msra.gmra.mxu1 %v13762_v52  ;;  %4549 = vmatmul.mubr.bf16.vlgmr.msra.gmra.mxu0 %v13762_v52  ;;  %v14565_v62 = vadd.f32 %v2589_v12, %v14444_v29  ;;  %v14568_v49 = vadd.f32 %v2642_v24, %v14446_v47  ;;  %v11354_v52 = vld [vmem:[%s19049_s3 + $0xac0] ss:$16 sps:$4 sm:$0xff]   ;;  %v11357_v29 = vld [vmem:[%s19049_s3 + $0xac8] ss:$16 sps:$4 sm:$0xff]  }
 0x222   :  { %4505 = vmatprep.mubr.bf16.mxu1 %v13792_v50  ;;  %4558 = vmatprep.mubr.bf16.mxu0 %v13792_v50  ;;  %v2591_v58 = vpop.f32.mrf.mxu1  ;;  %v2644_v60 = vpop.f32.mrf.mxu0  ;;  %v11384_v12 = vld [vmem:[%s19049_s3 + $0xa20] ss:$16 sps:$4 sm:$0xff]   ;;  %v11387_v24 = vld [vmem:[%s19049_s3 + $0xa28] ss:$16 sps:$4 sm:$0xff]  }
 0x223   :  { %5078 = vmatpush1.bf16.msra.mxu1 %v11348_v40  ;;  %5131 = vmatpush1.bf16.msra.mxu0 %v11351_v25  ;;  %v14573_v6 = vadd.f32 %v2591_v58, %v14460_v26  ;;  %v14576_v19 = vadd.f32 %v2644_v60, %v14462_v57  ;;  %v11362_v26 = vld [vmem:[%s19049_s3 + $0xaa4] ss:$16 sps:$4 sm:$0xff]   ;;  %v11365_v57 = vld [vmem:[%s19049_s3 + $0xaac] ss:$16 sps:$4 sm:$0xff]   ;;  %v11390_v58 = vld [vmem:[%s19049_s3 + $0xa00] ss:$16 sps:$4 sm:$0xff]  }
 0x224   :  { %5079 = vmatprep.subr.bf16.mxu1 %v11356_v35  ;;  %5132 = vmatprep.subr.bf16.mxu0 %v11359_v43  ;;  %v14584_v50 = vpop.f32.mrf.mxu1  ;;  %v14586_v47 = vpop.f32.mrf.mxu0  ;;  %v11386_v40 = vld [vmem:[%s19049_s3 + $0xa24] ss:$16 sps:$4 sm:$0xff]   ;;  %v11389_v25 = vld [vmem:[%s19049_s3 + $0xa2c] ss:$16 sps:$4 sm:$0xff]   ;;  %v11393_v60 = vld [vmem:[%s19049_s3 + $0xa08] ss:$16 sps:$4 sm:$0xff]  }
 0x225   :  { %v11392_v35 = vld [vmem:[%s19049_s3 + $0xa04] ss:$16 sps:$4 sm:$0xff]   ;;  %v11395_v43 = vld [vmem:[%s19049_s3 + $0xa0c] ss:$16 sps:$4 sm:$0xff]  }
 0x226   :  { %v2597_v0 = vpop.f32.mrf.mxu1  ;;  %v2650_v59 = vpop.f32.mrf.mxu0 }
 0x227   :  { %5080 = vmatpush1.bf16.msra.mxu1 %v11354_v52  ;;  %5133 = vmatpush1.bf16.msra.mxu0 %v11357_v29  ;;  %v14595_v56 = vadd.f32 %v2597_v0, %v14492_v7  ;;  %v14598_v11 = vadd.f32 %v2650_v59, %v14494_v22  ;;  %v11368_v7 = vld [vmem:[%s19049_s3 + $0xa84] ss:$16 sps:$4 sm:$0xff]   ;;  %v11371_v22 = vld [vmem:[%s19049_s3 + $0xa8c] ss:$16 sps:$4 sm:$0xff]  }
 0x228   :  { %5081 = vmatprep.subr.bf16.mxu1 %v11362_v26  ;;  %5134 = vmatprep.subr.bf16.mxu0 %v11365_v57  ;;  %v2599_v20 = vpop.f32.mrf.mxu1  ;;  %v2652_v48 = vpop.f32.mrf.mxu0  ;;  %v11398_v52 = vld [vmem:[%s19049_s3 + $0xbe4] ss:$16 sps:$4 sm:$0xff]   ;;  %v11401_v29 = vld [vmem:[%s19049_s3 + $0xbec] ss:$16 sps:$4 sm:$0xff]   ;;  %v11396_v26 = vld [vmem:[%s19049_s3 + $0xbe0] ss:$16 sps:$4 sm:$0xff]  }
 0x229   :  { %4506 = vmatmul.mubr.bf16.gmra.mxu1 %v13780_v44  ;;  %4559 = vmatmul.mubr.bf16.gmra.mxu0 %v13780_v44  ;;  %v14615_v61 = vadd.f32 %v2599_v20, %v14508_v21  ;;  %v14618_v33 = vadd.f32 %v2652_v48, %v14510_v14  ;;  %v11366_v44 = vld [vmem:[%s19049_s3 + $0xa80] ss:$16 sps:$4 sm:$0xff]   ;;  %v11369_v21 = vld [vmem:[%s19049_s3 + $0xa88] ss:$16 sps:$4 sm:$0xff]   ;;  %v11377_v14 = vld [vmem:[%s19049_s3 + $0xa6c] ss:$16 sps:$4 sm:$0xff]  }
 0x22a   :  { %5109 = vmatprep.mubr.bf16.mxu1 %v13797_v3  ;;  %5162 = vmatprep.mubr.bf16.mxu0 %v13797_v3  ;;  %v2601_v1 = vpop.f32.mrf.mxu1  ;;  %v2654_v17 = vpop.f32.mrf.mxu0  ;;  %v11374_v3 = vld [vmem:[%s19049_s3 + $0xa64] ss:$16 sps:$4 sm:$0xff]   ;;  %v11399_v57 = vld [vmem:[%s19049_s3 + $0xbe8] ss:$16 sps:$4 sm:$0xff]   ;;  %v11407_v59 = vld [vmem:[%s19049_s3 + $0xbcc] ss:$16 sps:$4 sm:$0xff]  }
 0x22b   :  { %5082 = vmatpush1.bf16.msra.mxu1 %v11360_v38  ;;  %5135 = vmatpush1.bf16.msra.mxu0 %v11363_v23  ;;  %v14623_v63 = vadd.f32 %v2601_v1, %v14524_v34  ;;  %v14626_v10 = vadd.f32 %v2654_v17, %v14526_v39  ;;  %v11372_v34 = vld [vmem:[%s19049_s3 + $0xa60] ss:$16 sps:$4 sm:$0xff]   ;;  %v11375_v39 = vld [vmem:[%s19049_s3 + $0xa68] ss:$16 sps:$4 sm:$0xff]   ;;  %v11404_v0 = vld [vmem:[%s19049_s3 + $0xbc4] ss:$16 sps:$4 sm:$0xff]  }
 0x22c   :  { %5083 = vmatprep.subr.bf16.mxu1 %v11368_v7  ;;  %5136 = vmatprep.subr.bf16.mxu0 %v11371_v22  ;;  %v11402_v38 = vld [vmem:[%s19049_s3 + $0xbc0] ss:$16 sps:$4 sm:$0xff]   ;;  %v11405_v23 = vld [vmem:[%s19049_s3 + $0xbc8] ss:$16 sps:$4 sm:$0xff]   ;;  %v11410_v20 = vld [vmem:[%s19049_s3 + $0xba4] ss:$16 sps:$4 sm:$0xff]  }
 0x22d   :  { %v11413_v48 = vld [vmem:[%s19049_s3 + $0xbac] ss:$16 sps:$4 sm:$0xff]   ;;  %v11408_v7 = vld [vmem:[%s19049_s3 + $0xba0] ss:$16 sps:$4 sm:$0xff]   ;;  %v11411_v22 = vld [vmem:[%s19049_s3 + $0xba8] ss:$16 sps:$4 sm:$0xff]  }
 0x22e   :  { %v11416_v1 = vld [vmem:[%s19049_s3 + $0xb84] ss:$16 sps:$4 sm:$0xff]   ;;  %v11419_v17 = vld [vmem:[%s19049_s3 + $0xb8c] ss:$16 sps:$4 sm:$0xff]  }
 0x22f   :  { %5084 = vmatpush1.bf16.msra.mxu1 %v11366_v44  ;;  %5137 = vmatpush1.bf16.msra.mxu0 %v11369_v21  ;;  %v11414_v44 = vld [vmem:[%s19049_s3 + $0xb80] ss:$16 sps:$4 sm:$0xff]   ;;  %v11417_v21 = vld [vmem:[%s19049_s3 + $0xb88] ss:$16 sps:$4 sm:$0xff]  }
 0x230   :  { %5085 = vmatprep.subr.bf16.mxu1 %v11374_v3  ;;  %5138 = vmatprep.subr.bf16.mxu0 %v11377_v14  ;;  %v11422_v3 = vld [vmem:[%s19049_s3 + $0xb64] ss:$16 sps:$4 sm:$0xff]   ;;  %v11425_v14 = vld [vmem:[%s19049_s3 + $0xb6c] ss:$16 sps:$4 sm:$0xff]  }
 0x233   :  { %5086 = vmatpush1.bf16.msra.mxu1 %v11372_v34  ;;  %5139 = vmatpush1.bf16.msra.mxu0 %v11375_v39  ;;  %v11420_v34 = vld [vmem:[%s19049_s3 + $0xb60] ss:$16 sps:$4 sm:$0xff]   ;;  %v11423_v39 = vld [vmem:[%s19049_s3 + $0xb68] ss:$16 sps:$4 sm:$0xff]  }
 0x234   :  { %5087 = vmatprep.subr.bf16.mxu1 %v11380_v42  ;;  %5140 = vmatprep.subr.bf16.mxu0 %v11383_v51  ;;  %v11428_v42 = vld [vmem:[%s19049_s3 + $0xb44] ss:$16 sps:$4 sm:$0xff]   ;;  %v11431_v51 = vld [vmem:[%s19049_s3 + $0xb4c] ss:$16 sps:$4 sm:$0xff]  }
 0x237   :  { %5088 = vmatpush1.bf16.msra.mxu1 %v11378_v28  ;;  %5141 = vmatpush1.bf16.msra.mxu0 %v11381_v31  ;;  %v11426_v28 = vld [vmem:[%s19049_s3 + $0xb40] ss:$16 sps:$4 sm:$0xff]   ;;  %v11429_v31 = vld [vmem:[%s19049_s3 + $0xb48] ss:$16 sps:$4 sm:$0xff]  }
 0x238   :  { %5089 = vmatprep.subr.bf16.mxu1 %v11386_v40  ;;  %5142 = vmatprep.subr.bf16.mxu0 %v11389_v25  ;;  %v11434_v40 = vld [vmem:[%s19049_s3 + $0xb24] ss:$16 sps:$4 sm:$0xff]   ;;  %v11437_v25 = vld [vmem:[%s19049_s3 + $0xb2c] ss:$16 sps:$4 sm:$0xff]  }
 0x23b   :  { %5090 = vmatpush1.bf16.msra.mxu1 %v11384_v12  ;;  %5143 = vmatpush1.bf16.msra.mxu0 %v11387_v24  ;;  %v11432_v12 = vld [vmem:[%s19049_s3 + $0xb20] ss:$16 sps:$4 sm:$0xff]   ;;  %v11435_v24 = vld [vmem:[%s19049_s3 + $0xb28] ss:$16 sps:$4 sm:$0xff]  }
 0x23c   :  { %5091 = vmatprep.subr.bf16.mxu1 %v11392_v35  ;;  %5144 = vmatprep.subr.bf16.mxu0 %v11395_v43  ;;  %v11440_v35 = vld [vmem:[%s19049_s3 + $0xb04] ss:$16 sps:$4 sm:$0xff]   ;;  %v11443_v43 = vld [vmem:[%s19049_s3 + $0xb0c] ss:$16 sps:$4 sm:$0xff]  }
 0x23f   :  { %5092 = vmatpush1.bf16.msra.mxu1 %v11390_v58  ;;  %5145 = vmatpush1.bf16.msra.mxu0 %v11393_v60  ;;  %v11438_v58 = vld [vmem:[%s19049_s3 + $0xb00] ss:$16 sps:$4 sm:$0xff]   ;;  %v11441_v60 = vld [vmem:[%s19049_s3 + $0xb08] ss:$16 sps:$4 sm:$0xff]  }
 0x240   :  { %5093 = vmatprep.subr.bf16.mxu1 %v11398_v52  ;;  %5146 = vmatprep.subr.bf16.mxu0 %v11401_v29  ;;  %v11446_v52 = vld [vmem:[%s19049_s3 + $0xce4] ss:$16 sps:$4 sm:$0xff]   ;;  %v11449_v29 = vld [vmem:[%s19049_s3 + $0xcec] ss:$16 sps:$4 sm:$0xff]  }
 0x243   :  { %5094 = vmatpush2.bf16.msra.mxu1 %v11396_v26  ;;  %5147 = vmatpush2.bf16.msra.mxu0 %v11399_v57  ;;  %v14784_v26 = vpop.f32.mrf.mxu1  ;;  %v14786_v57 = vpop.f32.mrf.mxu0 }
 0x244   :  { %5095 = vmatprep.subr.bf16.mxu1 %v11404_v0  ;;  %5148 = vmatprep.subr.bf16.mxu0 %v11407_v59 }
 0x247   :  { %5096 = vmatpush2.bf16.msra.mxu1 %v11402_v38  ;;  %5149 = vmatpush2.bf16.msra.mxu0 %v11405_v23  ;;  %v11444_v38 = vld [vmem:[%s19049_s3 + $0xce0] ss:$16 sps:$4 sm:$0xff]   ;;  %v11447_v23 = vld [vmem:[%s19049_s3 + $0xce8] ss:$16 sps:$4 sm:$0xff]  }
 0x248   :  { %5097 = vmatprep.subr.bf16.mxu1 %v11410_v20  ;;  %5150 = vmatprep.subr.bf16.mxu0 %v11413_v48 }
 0x24b   :  { %5098 = vmatpush2.bf16.msra.mxu1 %v11408_v7  ;;  %5151 = vmatpush2.bf16.msra.mxu0 %v11411_v22  ;;  %v11452_v7 = vld [vmem:[%s19049_s3 + $0xcc4] ss:$16 sps:$4 sm:$0xff]   ;;  %v11455_v22 = vld [vmem:[%s19049_s3 + $0xccc] ss:$16 sps:$4 sm:$0xff]  }
 0x24c   :  { %5099 = vmatprep.subr.bf16.mxu1 %v11416_v1  ;;  %5152 = vmatprep.subr.bf16.mxu0 %v11419_v17 }
 0x24f   :  { %5100 = vmatpush2.bf16.msra.mxu1 %v11414_v44  ;;  %5153 = vmatpush2.bf16.msra.mxu0 %v11417_v21  ;;  %v11450_v44 = vld [vmem:[%s19049_s3 + $0xcc0] ss:$16 sps:$4 sm:$0xff]   ;;  %v11453_v21 = vld [vmem:[%s19049_s3 + $0xcc8] ss:$16 sps:$4 sm:$0xff]  }
 0x250   :  { %5101 = vmatprep.subr.bf16.mxu1 %v11422_v3  ;;  %5154 = vmatprep.subr.bf16.mxu0 %v11425_v14  ;;  %v11461_v14 = vld [vmem:[%s19049_s3 + $0xcac] ss:$16 sps:$4 sm:$0xff]  }
 0x253   :  { %5102 = vmatpush2.bf16.msra.mxu1 %v11420_v34  ;;  %5155 = vmatpush2.bf16.msra.mxu0 %v11423_v39 }
 0x254   :  { %5103 = vmatprep.subr.bf16.mxu1 %v11428_v42  ;;  %5156 = vmatprep.subr.bf16.mxu0 %v11431_v51 }
 0x257   :  { %5104 = vmatpush2.bf16.msra.mxu1 %v11426_v28  ;;  %5157 = vmatpush2.bf16.msra.mxu0 %v11429_v31  ;;  %v11456_v28 = vld [vmem:[%s19049_s3 + $0xca0] ss:$16 sps:$4 sm:$0xff]   ;;  %v11459_v31 = vld [vmem:[%s19049_s3 + $0xca8] ss:$16 sps:$4 sm:$0xff]  }
 0x258   :  { %5105 = vmatprep.subr.bf16.mxu1 %v11434_v40  ;;  %5158 = vmatprep.subr.bf16.mxu0 %v11437_v25  ;;  %v11464_v40 = vld [vmem:[%s19049_s3 + $0xc84] ss:$16 sps:$4 sm:$0xff]   ;;  %v11465_v25 = vld [vmem:[%s19049_s3 + $0xc88] ss:$16 sps:$4 sm:$0xff]  }
 0x25b   :  { %5106 = vmatpush2.bf16.msra.mxu1 %v11432_v12  ;;  %5159 = vmatpush2.bf16.msra.mxu0 %v11435_v24  ;;  %v11468_v12 = vld [vmem:[%s19049_s3 + $0xc60] ss:$16 sps:$4 sm:$0xff]   ;;  %v11471_v24 = vld [vmem:[%s19049_s3 + $0xc68] ss:$16 sps:$4 sm:$0xff]  }
 0x25c   :  { %5107 = vmatprep.subr.bf16.mxu1 %v11440_v35  ;;  %5160 = vmatprep.subr.bf16.mxu0 %v11443_v43  ;;  %v11476_v35 = vld [vmem:[%s19049_s3 + $0xc44] ss:$16 sps:$4 sm:$0xff]   ;;  %v11479_v43 = vld [vmem:[%s19049_s3 + $0xc4c] ss:$16 sps:$4 sm:$0xff]  }
 0x25f   :  { %5108 = vmatpush2.bf16.msra.mxu1 %v11438_v58  ;;  %5161 = vmatpush2.bf16.msra.mxu0 %v11441_v60  ;;  %v14788_v0 = vpop.f32.mrf.mxu1  ;;  %v14790_v59 = vpop.f32.mrf.mxu0  ;;  %v11474_v58 = vld [vmem:[%s19049_s3 + $0xc40] ss:$16 sps:$4 sm:$0xff]   ;;  %v11477_v60 = vld [vmem:[%s19049_s3 + $0xc48] ss:$16 sps:$4 sm:$0xff]  }
 0x260   :  { %5707 = vmatprep.subr.bf16.mxu1 %v11446_v52  ;;  %5760 = vmatprep.subr.bf16.mxu0 %v11449_v29  ;;  %v11482_v52 = vld [vmem:[%s19049_s3 + $0xc24] ss:$16 sps:$4 sm:$0xff]   ;;  %v11485_v29 = vld [vmem:[%s19049_s3 + $0xc2c] ss:$16 sps:$4 sm:$0xff]  }
 0x261   :  { %v14798_v20 = vpop.f32.mrf.mxu1  ;;  %v14800_v48 = vpop.f32.mrf.mxu0 }
 0x262   :  { %5110 = vmatmul.mubr.bf16.vlgmr.msra.gmra.mxu1 %v13799_v4  ;;  %5163 = vmatmul.mubr.bf16.vlgmr.msra.gmra.mxu0 %v13799_v4 }
 0x263   :  { %5119 = vmatprep.mubr.bf16.mxu1 %v13829_v46  ;;  %5172 = vmatprep.mubr.bf16.mxu0 %v13829_v46  ;;  %v14812_v1 = vpop.f32.mrf.mxu1  ;;  %v14814_v17 = vpop.f32.mrf.mxu0  ;;  %v11458_v46 = vld [vmem:[%s19049_s3 + $0xca4] ss:$16 sps:$4 sm:$0xff]  }
 0x264   :  { %5708 = vmatpush1.bf16.msra.mxu1 %v11444_v38  ;;  %5761 = vmatpush1.bf16.msra.mxu0 %v11447_v23  ;;  %v11480_v38 = vld [vmem:[%s19049_s3 + $0xc20] ss:$16 sps:$4 sm:$0xff]   ;;  %v11483_v23 = vld [vmem:[%s19049_s3 + $0xc28] ss:$16 sps:$4 sm:$0xff]  }
 0x265   :  { %5709 = vmatprep.subr.bf16.mxu1 %v11452_v7  ;;  %5762 = vmatprep.subr.bf16.mxu0 %v11455_v22  ;;  %v14822_v4 = vpop.f32.mrf.mxu1  ;;  %v14824_v3 = vpop.f32.mrf.mxu0  ;;  %v11488_v7 = vld [vmem:[%s19049_s3 + $0xc04] ss:$16 sps:$4 sm:$0xff]   ;;  %v11491_v22 = vld [vmem:[%s19049_s3 + $0xc0c] ss:$16 sps:$4 sm:$0xff]  }
 0x267   :  { %v3221_v34 = vpop.f32.mrf.mxu1  ;;  %v3274_v39 = vpop.f32.mrf.mxu0 }
 0x268   :  { %5710 = vmatpush1.bf16.msra.mxu1 %v11450_v44  ;;  %5763 = vmatpush1.bf16.msra.mxu0 %v11453_v21  ;;  %v14833_v42 = vadd.f32 %v3221_v34, %v14595_v56  ;;  %v14836_v51 = vadd.f32 %v3274_v39, %v14598_v11  ;;  %v11467_v56 = vld [vmem:[%s19049_s3 + $0xc8c] ss:$16 sps:$4 sm:$0xff]   ;;  %v11462_v11 = vld [vmem:[%s19049_s3 + $0xc80] ss:$16 sps:$4 sm:$0xff]   ;;  %v11489_v21 = vld [vmem:[%s19049_s3 + $0xc08] ss:$16 sps:$4 sm:$0xff]  }
 0x269   :  { %5711 = vmatprep.subr.bf16.mxu1 %v11458_v46  ;;  %5764 = vmatprep.subr.bf16.mxu0 %v11461_v14  ;;  %v11486_v44 = vld [vmem:[%s19049_s3 + $0xc00] ss:$16 sps:$4 sm:$0xff]   ;;  %v11494_v46 = vld [vmem:[%s19049_s3 + $0xde4] ss:$16 sps:$4 sm:$0xff]   ;;  %v11497_v14 = vld [vmem:[%s19049_s3 + $0xdec] ss:$16 sps:$4 sm:$0xff]  }
 0x26a   :  { %5120 = vmatmul.mubr.bf16.gmra.mxu1 %v13831_v5  ;;  %5173 = vmatmul.mubr.bf16.gmra.mxu0 %v13831_v5  ;;  %v11470_v5 = vld [vmem:[%s19049_s3 + $0xc64] ss:$16 sps:$4 sm:$0xff]   ;;  %v11492_v34 = vld [vmem:[%s19049_s3 + $0xde0] ss:$16 sps:$4 sm:$0xff]   ;;  %v11495_v39 = vld [vmem:[%s19049_s3 + $0xde8] ss:$16 sps:$4 sm:$0xff]  }
 0x26b   :  { %5739 = vmatprep.mubr.bf16.mxu1 %v13894_v37  ;;  %5792 = vmatprep.mubr.bf16.mxu0 %v13894_v37  ;;  %v11473_v37 = vld [vmem:[%s19049_s3 + $0xc6c] ss:$16 sps:$4 sm:$0xff]  }
 0x26c   :  { %5712 = vmatpush1.bf16.msra.mxu1 %v11456_v28  ;;  %5765 = vmatpush1.bf16.msra.mxu0 %v11459_v31  ;;  %v11500_v28 = vld [vmem:[%s19049_s3 + $0xdc4] ss:$16 sps:$4 sm:$0xff]   ;;  %v11503_v31 = vld [vmem:[%s19049_s3 + $0xdcc] ss:$16 sps:$4 sm:$0xff]  }
 0x26d   :  { %5713 = vmatprep.subr.bf16.mxu1 %v11464_v40  ;;  %5766 = vmatprep.subr.bf16.mxu0 %v11467_v56  ;;  %v11498_v40 = vld [vmem:[%s19049_s3 + $0xdc0] ss:$16 sps:$4 sm:$0xff]   ;;  %v11501_v56 = vld [vmem:[%s19049_s3 + $0xdc8] ss:$16 sps:$4 sm:$0xff]  }
 0x270   :  { %5714 = vmatpush1.bf16.msra.mxu1 %v11462_v11  ;;  %5767 = vmatpush1.bf16.msra.mxu0 %v11465_v25  ;;  %v11506_v11 = vld [vmem:[%s19049_s3 + $0xda4] ss:$16 sps:$4 sm:$0xff]   ;;  %v11509_v25 = vld [vmem:[%s19049_s3 + $0xdac] ss:$16 sps:$4 sm:$0xff]  }
 0x271   :  { %5715 = vmatprep.subr.bf16.mxu1 %v11470_v5  ;;  %5768 = vmatprep.subr.bf16.mxu0 %v11473_v37  ;;  %v11504_v5 = vld [vmem:[%s19049_s3 + $0xda0] ss:$16 sps:$4 sm:$0xff]   ;;  %v11507_v37 = vld [vmem:[%s19049_s3 + $0xda8] ss:$16 sps:$4 sm:$0xff]  }
 0x274   :  { %5716 = vmatpush1.bf16.msra.mxu1 %v11468_v12  ;;  %5769 = vmatpush1.bf16.msra.mxu0 %v11471_v24  ;;  %v11512_v12 = vld [vmem:[%s19049_s3 + $0xd84] ss:$16 sps:$4 sm:$0xff]   ;;  %v11515_v24 = vld [vmem:[%s19049_s3 + $0xd8c] ss:$16 sps:$4 sm:$0xff]  }
 0x275   :  { %5717 = vmatprep.subr.bf16.mxu1 %v11476_v35  ;;  %5770 = vmatprep.subr.bf16.mxu0 %v11479_v43  ;;  %v11510_v35 = vld [vmem:[%s19049_s3 + $0xd80] ss:$16 sps:$4 sm:$0xff]   ;;  %v11513_v43 = vld [vmem:[%s19049_s3 + $0xd88] ss:$16 sps:$4 sm:$0xff]  }
 0x278   :  { %5718 = vmatpush1.bf16.msra.mxu1 %v11474_v58  ;;  %5771 = vmatpush1.bf16.msra.mxu0 %v11477_v60  ;;  %v11518_v58 = vld [vmem:[%s19049_s3 + $0xd64] ss:$16 sps:$4 sm:$0xff]   ;;  %v11521_v60 = vld [vmem:[%s19049_s3 + $0xd6c] ss:$16 sps:$4 sm:$0xff]  }
 0x279   :  { %5719 = vmatprep.subr.bf16.mxu1 %v11482_v52  ;;  %5772 = vmatprep.subr.bf16.mxu0 %v11485_v29  ;;  %v11516_v52 = vld [vmem:[%s19049_s3 + $0xd60] ss:$16 sps:$4 sm:$0xff]   ;;  %v11519_v29 = vld [vmem:[%s19049_s3 + $0xd68] ss:$16 sps:$4 sm:$0xff]  }
 0x27c   :  { %5720 = vmatpush1.bf16.msra.mxu1 %v11480_v38  ;;  %5773 = vmatpush1.bf16.msra.mxu0 %v11483_v23  ;;  %v11524_v38 = vld [vmem:[%s19049_s3 + $0xd44] ss:$16 sps:$4 sm:$0xff]   ;;  %v11527_v23 = vld [vmem:[%s19049_s3 + $0xd4c] ss:$16 sps:$4 sm:$0xff]  }
 0x27d   :  { %5721 = vmatprep.subr.bf16.mxu1 %v11488_v7  ;;  %5774 = vmatprep.subr.bf16.mxu0 %v11491_v22  ;;  %v11522_v7 = vld [vmem:[%s19049_s3 + $0xd40] ss:$16 sps:$4 sm:$0xff]   ;;  %v11525_v22 = vld [vmem:[%s19049_s3 + $0xd48] ss:$16 sps:$4 sm:$0xff]  }
 0x280   :  { %5722 = vmatpush1.bf16.msra.mxu1 %v11486_v44  ;;  %5775 = vmatpush1.bf16.msra.mxu0 %v11489_v21  ;;  %v11530_v44 = vld [vmem:[%s19049_s3 + $0xd24] ss:$16 sps:$4 sm:$0xff]   ;;  %v11533_v21 = vld [vmem:[%s19049_s3 + $0xd2c] ss:$16 sps:$4 sm:$0xff]  }
 0x281   :  { %5723 = vmatprep.subr.bf16.mxu1 %v11494_v46  ;;  %5776 = vmatprep.subr.bf16.mxu0 %v11497_v14  ;;  %v11528_v46 = vld [vmem:[%s19049_s3 + $0xd20] ss:$16 sps:$4 sm:$0xff]   ;;  %v11531_v14 = vld [vmem:[%s19049_s3 + $0xd28] ss:$16 sps:$4 sm:$0xff]  }
 0x284   :  { %5724 = vmatpush2.bf16.msra.mxu1 %v11492_v34  ;;  %5777 = vmatpush2.bf16.msra.mxu0 %v11495_v39  ;;  %v11536_v34 = vld [vmem:[%s19049_s3 + $0xd04] ss:$16 sps:$4 sm:$0xff]   ;;  %v11539_v39 = vld [vmem:[%s19049_s3 + $0xd0c] ss:$16 sps:$4 sm:$0xff]  }
 0x285   :  { %5725 = vmatprep.subr.bf16.mxu1 %v11500_v28  ;;  %5778 = vmatprep.subr.bf16.mxu0 %v11503_v31  ;;  %v11534_v28 = vld [vmem:[%s19049_s3 + $0xd00] ss:$16 sps:$4 sm:$0xff]   ;;  %v11537_v31 = vld [vmem:[%s19049_s3 + $0xd08] ss:$16 sps:$4 sm:$0xff]  }
 0x288   :  { %5726 = vmatpush2.bf16.msra.mxu1 %v11498_v40  ;;  %5779 = vmatpush2.bf16.msra.mxu0 %v11501_v56  ;;  %v11730_v40 = vld [vmem:[%s19049_s3 + $0x2e4] ss:$16 sps:$4 sm:$0xff]   ;;  %v11731_v56 = vld [vmem:[%s19049_s3 + $0x2e0] ss:$16 sps:$4 sm:$0xff]  }
 0x289   :  { %5727 = vmatprep.subr.bf16.mxu1 %v11506_v11  ;;  %5780 = vmatprep.subr.bf16.mxu0 %v11509_v25  ;;  %v11732_v11 = vld [vmem:[%s19049_s3 + $0x2c4] ss:$16 sps:$4 sm:$0xff]   ;;  %v11733_v25 = vld [vmem:[%s19049_s3 + $0x2c0] ss:$16 sps:$4 sm:$0xff]  }
 0x28c   :  { %5728 = vmatpush2.bf16.msra.mxu1 %v11504_v5  ;;  %5781 = vmatpush2.bf16.msra.mxu0 %v11507_v37  ;;  %v11736_v5 = vld [vmem:[%s19049_s3 + $0x284] ss:$16 sps:$4 sm:$0xff]   ;;  %v11737_v37 = vld [vmem:[%s19049_s3 + $0x280] ss:$16 sps:$4 sm:$0xff]  }
 0x28d   :  { %5729 = vmatprep.subr.bf16.mxu1 %v11512_v12  ;;  %5782 = vmatprep.subr.bf16.mxu0 %v11515_v24  ;;  %v11540_v12 = vld [vmem:[%s19051_s5 + $0x70] ss:$8 sps:$4 sm:$0xff]   ;;  %v11542_v24 = vld [vmem:[%s19051_s5 + $0x74] ss:$8 sps:$4 sm:$0xff]  }
 0x290   :  { %5730 = vmatpush2.bf16.msra.mxu1 %v11510_v35  ;;  %5783 = vmatpush2.bf16.msra.mxu0 %v11513_v43  ;;  %v11545_v35 = vld [vmem:[%s19051_s5 + $0x64] ss:$8 sps:$4 sm:$0xff]   ;;  %v11739_v43 = vld [vmem:[%s19049_s3 + $0x260] ss:$16 sps:$4 sm:$0xff]  }
 0x291   :  { %5731 = vmatprep.subr.bf16.mxu1 %v11518_v58  ;;  %5784 = vmatprep.subr.bf16.mxu0 %v11521_v60  ;;  %v11543_v58 = vld [vmem:[%s19051_s5 + $0x60] ss:$8 sps:$4 sm:$0xff]   ;;  %v11740_v60 = vld [vmem:[%s19049_s3 + $0x244] ss:$16 sps:$4 sm:$0xff]  }
 0x294   :  { %5732 = vmatpush2.bf16.msra.mxu1 %v11516_v52  ;;  %5785 = vmatpush2.bf16.msra.mxu0 %v11519_v29  ;;  %v11548_v52 = vld [vmem:[%s19051_s5 + $0x54] ss:$8 sps:$4 sm:$0xff]   ;;  %v11546_v29 = vld [vmem:[%s19051_s5 + $0x50] ss:$8 sps:$4 sm:$0xff]  }
 0x295   :  { %5733 = vmatprep.subr.bf16.mxu1 %v11524_v38  ;;  %5786 = vmatprep.subr.bf16.mxu0 %v11527_v23  ;;  %v11551_v38 = vld [vmem:[%s19051_s5 + $0x44] ss:$8 sps:$4 sm:$0xff]   ;;  %v11741_v23 = vld [vmem:[%s19049_s3 + $0x240] ss:$16 sps:$4 sm:$0xff]  }
 0x298   :  { %5734 = vmatpush2.bf16.msra.mxu1 %v11522_v7  ;;  %5787 = vmatpush2.bf16.msra.mxu0 %v11525_v22  ;;  %v11742_v7 = vld [vmem:[%s19049_s3 + $0x224] ss:$16 sps:$4 sm:$0xff]   ;;  %v11549_v22 = vld [vmem:[%s19051_s5 + $0x40] ss:$8 sps:$4 sm:$0xff]  }
 0x299   :  { %5735 = vmatprep.subr.bf16.mxu1 %v11530_v44  ;;  %5788 = vmatprep.subr.bf16.mxu0 %v11533_v21  ;;  %v11743_v44 = vld [vmem:[%s19049_s3 + $0x220] ss:$16 sps:$4 sm:$0xff]   ;;  %v11744_v21 = vld [vmem:[%s19049_s3 + $0x204] ss:$16 sps:$4 sm:$0xff]  }
 0x29c   :  { %5736 = vmatpush2.bf16.msra.mxu1 %v11528_v46  ;;  %5789 = vmatpush2.bf16.msra.mxu0 %v11531_v14  ;;  %v11745_v46 = vld [vmem:[%s19049_s3 + $0x200] ss:$16 sps:$4 sm:$0xff]   ;;  %v11746_v14 = vld [vmem:[%s19049_s3 + $0x3e4] ss:$16 sps:$4 sm:$0xff]  }
 0x29d   :  { %5737 = vmatprep.subr.bf16.mxu1 %v11536_v34  ;;  %5790 = vmatprep.subr.bf16.mxu0 %v11539_v39  ;;  %v11747_v34 = vld [vmem:[%s19049_s3 + $0x3e0] ss:$16 sps:$4 sm:$0xff]   ;;  %v11748_v39 = vld [vmem:[%s19049_s3 + $0x3c4] ss:$16 sps:$4 sm:$0xff]  }
 0x2a0   :  { %5738 = vmatpush2.bf16.msra.mxu1 %v11534_v28  ;;  %5791 = vmatpush2.bf16.msra.mxu0 %v11537_v31  ;;  %v11749_v28 = vld [vmem:[%s19049_s3 + $0x3c0] ss:$16 sps:$4 sm:$0xff]   ;;  %v11750_v31 = vld [vmem:[%s19049_s3 + $0x3a4] ss:$16 sps:$4 sm:$0xff]  }
 0x2a1   :  { %6875 = vmatprep.subr.bf16.mxu0 %v11730_v40  ;;  %6137 = vmatprep.subr.bf16.mxu1 %v11542_v24  ;;  %v11751_v40 = vld [vmem:[%s19049_s3 + $0x3a0] ss:$16 sps:$4 sm:$0xff]  }
 0x2a2   :  { %v11761_v24 = vld [vmem:[%s19049_s3 + $0x300] ss:$16 sps:$4 sm:$0xff]  }
 0x2a3   :  { %5740 = vmatmul.mubr.bf16.vlgmr.msra.gmra.mxu1 %v13896_v27  ;;  %5793 = vmatmul.mubr.bf16.vlgmr.msra.gmra.mxu0 %v13896_v27  ;;  %v11734_v27 = vld [vmem:[%s19049_s3 + $0x2a4] ss:$16 sps:$4 sm:$0xff]  }
 0x2a4   :  { %5749 = vmatprep.mubr.bf16.mxu1 %v13910_v53  ;;  %5802 = vmatprep.mubr.bf16.mxu0 %v13910_v53  ;;  %v11735_v53 = vld [vmem:[%s19049_s3 + $0x2a0] ss:$16 sps:$4 sm:$0xff]  }
 0x2a5   :  { %6876 = vmatpush1.bf16.msra.mxu0 %v11731_v56  ;;  %6138 = vmatpush1.bf16.msra.mxu1 %v11540_v12  ;;  %v11752_v56 = vld [vmem:[%s19049_s3 + $0x384] ss:$16 sps:$4 sm:$0xff]   ;;  %v11759_v12 = vld [vmem:[%s19049_s3 + $0x320] ss:$16 sps:$4 sm:$0xff]  }
 0x2a6   :  { %6877 = vmatprep.subr.bf16.mxu0 %v11732_v11  ;;  %6139 = vmatprep.subr.bf16.mxu1 %v11545_v35  ;;  %v11753_v11 = vld [vmem:[%s19049_s3 + $0x380] ss:$16 sps:$4 sm:$0xff]   ;;  %v11762_v35 = vld [vmem:[%s19049_s3 + $0xe4] ss:$16 sps:$4 sm:$0xff]  }
 0x2a9   :  { %6878 = vmatpush1.bf16.msra.mxu0 %v11733_v25  ;;  %6140 = vmatpush1.bf16.msra.mxu1 %v11543_v58  ;;  %v11754_v25 = vld [vmem:[%s19049_s3 + $0x364] ss:$16 sps:$4 sm:$0xff]  }
 0x2aa   :  { %6879 = vmatprep.subr.bf16.mxu0 %v11734_v27  ;;  %6141 = vmatprep.subr.bf16.mxu1 %v11548_v52  ;;  %v11755_v27 = vld [vmem:[%s19049_s3 + $0x360] ss:$16 sps:$4 sm:$0xff]   ;;  %v11554_v58 = vld [vmem:[%s19051_s5 + $0x34] ss:$8 sps:$4 sm:$0xff]   ;;  %v15141_v52 = vpop.f32.mrf.mxu0 }
 0x2ab   :  { %5750 = vmatmul.mubr.bf16.gmra.mxu1 %v13906_v36  ;;  %5803 = vmatmul.mubr.bf16.gmra.mxu0 %v13906_v36  ;;  %v11738_v36 = vld [vmem:[%s19049_s3 + $0x264] ss:$16 sps:$4 sm:$0xff]  }
 0x2ad   :  { %6880 = vmatpush1.bf16.msra.mxu0 %v11735_v53  ;;  %6142 = vmatpush1.bf16.msra.mxu1 %v11546_v29  ;;  %v11756_v53 = vld [vmem:[%s19049_s3 + $0x344] ss:$16 sps:$4 sm:$0xff]   ;;  %v11555_v29 = vld [vmem:[%s19051_s5 + $0x20] ss:$8 sps:$4 sm:$0xff]  }
 0x2ae   :  { %6881 = vmatprep.subr.bf16.mxu0 %v11736_v5  ;;  %6143 = vmatprep.subr.bf16.mxu1 %v11551_v38  ;;  %v11757_v5 = vld [vmem:[%s19049_s3 + $0x340] ss:$16 sps:$4 sm:$0xff]   ;;  %v11557_v38 = vld [vmem:[%s19051_s5 + $0x24] ss:$8 sps:$4 sm:$0xff]  }
 0x2b1   :  { %6882 = vmatpush1.bf16.msra.mxu0 %v11737_v37  ;;  %6144 = vmatpush1.bf16.msra.mxu1 %v11549_v22  ;;  %v11758_v37 = vld [vmem:[%s19049_s3 + $0x324] ss:$16 sps:$4 sm:$0xff]   ;;  %v11558_v22 = vld [vmem:[%s19051_s5 + $0x10] ss:$8 sps:$4 sm:$0xff]  }
 0x2b2   :  { %6883 = vmatprep.subr.bf16.mxu0 %v11738_v36  ;;  %v11760_v36 = vld [vmem:[%s19049_s3 + $0x304] ss:$16 sps:$4 sm:$0xff]   ;;  %6145 = vmatprep.subr.bf16.mxu1 %v11554_v58 }
 0x2b3   :  { %v11578_v58 = vld [vmem:[%s19051_s5 + $0xb4] ss:$8 sps:$4 sm:$0xff]  }
 0x2b5   :  { %6884 = vmatpush1.bf16.msra.mxu0 %v11739_v43  ;;  %v11552_v43 = vld [vmem:[%s19051_s5 + $0x30] ss:$8 sps:$4 sm:$0xff]  }
 0x2b6   :  { %6885 = vmatprep.subr.bf16.mxu0 %v11740_v60  ;;  %6146 = vmatpush1.bf16.msra.mxu1 %v11552_v43  ;;  %v15139_v60 = vpop.f32.mrf.mxu1  ;;  %v11573_v43 = vld [vmem:[%s19051_s5 + $0xc0] ss:$8 sps:$4 sm:$0xff]  }
 0x2b7   :  { %6147 = vmatprep.subr.bf16.mxu1 %v11557_v38 }
 0x2b9   :  { %6886 = vmatpush1.bf16.msra.mxu0 %v11741_v23  ;;  %v15149_v23 = vpop.f32.mrf.mxu1 }
 0x2ba   :  { %6887 = vmatprep.subr.bf16.mxu0 %v11742_v7  ;;  %6148 = vmatpush1.bf16.msra.mxu1 %v11555_v29  ;;  %v15151_v7 = vpop.f32.mrf.mxu0 }
 0x2bd   :  { %6888 = vmatpush1.bf16.msra.mxu0 %v11743_v44  ;;  %v11560_v44 = vld [vmem:[%s19051_s5 + $0x14] ss:$8 sps:$4 sm:$0xff]  }
 0x2be   :  { %6889 = vmatprep.subr.bf16.mxu0 %v11744_v21  ;;  %6149 = vmatprep.subr.bf16.mxu1 %v11560_v44  ;;  %v11561_v21 = vld [vmem:[%s19051_s5] ss:$8 sps:$4 sm:$0xff]   ;;  %v11581_v44 = vld [vmem:[%s19051_s5 + $0xa4] ss:$8 sps:$4 sm:$0xff]  }
 0x2bf   :  { %6150 = vmatpush1.bf16.msra.mxu1 %v11558_v22  ;;  %v11576_v22 = vld [vmem:[%s19051_s5 + $0xb0] ss:$8 sps:$4 sm:$0xff]  }
 0x2c1   :  { %6890 = vmatpush1.bf16.msra.mxu0 %v11745_v46  ;;  %v11563_v46 = vld [vmem:[%s19051_s5 + $0x4] ss:$8 sps:$4 sm:$0xff]  }
 0x2c2   :  { %6891 = vmatprep.subr.bf16.mxu0 %v11746_v14  ;;  %v15165_v14 = vpop.f32.mrf.mxu1  ;;  %6151 = vmatprep.subr.bf16.mxu1 %v11563_v46 }
 0x2c3   :  { %19155 = vst [vmem:[#allocation27_spill] sm:$0xff] %v15165_v14  ;;  %6152 = vmatpush1.bf16.msra.mxu1 %v11561_v21 }
 0x2c5   :  { %6892 = vmatpush2.bf16.msra.mxu0 %v11747_v34  ;;  %v15167_v34 = vpop.f32.mrf.mxu0 }
 0x2c6   :  { %6893 = vmatprep.subr.bf16.mxu0 %v11748_v39  ;;  %v15169_v39 = vpop.f32.mrf.mxu1 }
 0x2c9   :  { %6894 = vmatpush2.bf16.msra.mxu0 %v11749_v28  ;;  %v15171_v28 = vpop.f32.mrf.mxu0 }
 0x2ca   :  { %6895 = vmatprep.subr.bf16.mxu0 %v11750_v31  ;;  %v11566_v31 = vld [vmem:[%s19051_s5 + $0xf4] ss:$8 sps:$4 sm:$0xff]  }
 0x2cb   :  { %6153 = vmatprep.subr.bf16.mxu1 %v11566_v31  ;;  %v11579_v31 = vld [vmem:[%s19051_s5 + $0xa0] ss:$8 sps:$4 sm:$0xff]  }
 0x2cd   :  { %6896 = vmatpush2.bf16.msra.mxu0 %v11751_v40  ;;  %v11564_v40 = vld [vmem:[%s19051_s5 + $0xf0] ss:$8 sps:$4 sm:$0xff]  }
 0x2ce   :  { %6897 = vmatprep.subr.bf16.mxu0 %v11752_v56  ;;  %v11569_v56 = vld [vmem:[%s19051_s5 + $0xe4] ss:$8 sps:$4 sm:$0xff]   ;;  %6154 = vmatpush2.bf16.msra.mxu1 %v11564_v40  ;;  %v11584_v40 = vld [vmem:[%s19051_s5 + $0x94] ss:$8 sps:$4 sm:$0xff]  }
 0x2cf   :  { %6155 = vmatprep.subr.bf16.mxu1 %v11569_v56 }
 0x2d1   :  { %6898 = vmatpush2.bf16.msra.mxu0 %v11753_v11  ;;  %v15182_v11 = vpop.f32.mrf.mxu1 }
 0x2d2   :  { %6899 = vmatprep.subr.bf16.mxu0 %v11754_v25  ;;  %v15184_v25 = vpop.f32.mrf.mxu0 }
 0x2d5   :  { %6900 = vmatpush2.bf16.msra.mxu0 %v11755_v27  ;;  %v11567_v27 = vld [vmem:[%s19051_s5 + $0xe0] ss:$8 sps:$4 sm:$0xff]  }
 0x2d6   :  { %6901 = vmatprep.subr.bf16.mxu0 %v11756_v53  ;;  %v11572_v53 = vld [vmem:[%s19051_s5 + $0xd4] ss:$8 sps:$4 sm:$0xff]   ;;  %6156 = vmatpush2.bf16.msra.mxu1 %v11567_v27 }
 0x2d7   :  { %6157 = vmatprep.subr.bf16.mxu1 %v11572_v53  ;;  %v11582_v53 = vld [vmem:[%s19051_s5 + $0x90] ss:$8 sps:$4 sm:$0xff]  }
 0x2d9   :  { %6902 = vmatpush2.bf16.msra.mxu0 %v11757_v5  ;;  %v15192_v5 = vpop.f32.mrf.mxu1 }
 0x2da   :  { %6903 = vmatprep.subr.bf16.mxu0 %v11758_v37  ;;  %v15194_v37 = vpop.f32.mrf.mxu0 }
 0x2dd   :  { %6904 = vmatpush2.bf16.msra.mxu0 %v11759_v12  ;;  %v11570_v12 = vld [vmem:[%s19051_s5 + $0xd0] ss:$8 sps:$4 sm:$0xff]  }
 0x2de   :  { %6905 = vmatprep.subr.bf16.mxu0 %v11760_v36  ;;  %v11575_v36 = vld [vmem:[%s19051_s5 + $0xc4] ss:$8 sps:$4 sm:$0xff]   ;;  %6158 = vmatpush2.bf16.msra.mxu1 %v11570_v12 }
 0x2df   :  { %6159 = vmatprep.subr.bf16.mxu1 %v11575_v36  ;;  %v11587_v12 = vld [vmem:[%s19051_s5 + $0x84] ss:$8 sps:$4 sm:$0xff]  }
 0x2e1   :  { %6906 = vmatpush2.bf16.msra.mxu0 %v11761_v24  ;;  %v15202_v24 = vpop.f32.mrf.mxu1 }
 0x2e2   :  { %7035 = vmatprep.subr.bf16.mxu0 %v11762_v35  ;;  %v15204_v35 = vpop.f32.mrf.mxu0  ;;  %6160 = vmatpush2.bf16.msra.mxu1 %v11573_v43 }
 0x2e3   :  { %v15212_v29 = vpop.f32.mrf.mxu1  ;;  %6161 = vmatprep.subr.bf16.mxu1 %v11578_v58  ;;  %v11585_v58 = vld [vmem:[%s19051_s5 + $0x80] ss:$8 sps:$4 sm:$0xff]  }
 0x2e4   :  { %v15214_v38 = vpop.f32.mrf.mxu0 }
 0x2e5   :  { %v15222_v21 = vpop.f32.mrf.mxu1 }
 0x2e6   :  { %v15224_v46 = vpop.f32.mrf.mxu0  ;;  %6162 = vmatpush2.bf16.msra.mxu1 %v11576_v22 }
 0x2e7   :  { %6163 = vmatprep.subr.bf16.mxu1 %v11581_v44  ;;  %v15232_v56 = vpop.f32.mrf.mxu1 }
 0x2e8   :  { %19156 = vst [vmem:[#allocation28_spill] sm:$0xff] %v15232_v56  ;;  %v15234_v27 = vpop.f32.mrf.mxu0 }
 0x2e9   :  { %19157 = vst [vmem:[#allocation29_spill] sm:$0xff] %v15234_v27  ;;  %v15242_v36 = vpop.f32.mrf.mxu1 }
 0x2ea   :  { %6164 = vmatpush2.bf16.msra.mxu1 %v11579_v31  ;;  %19158 = vst [vmem:[#allocation30_spill] sm:$0xff] %v15242_v36  ;;  %v15244_v43 = vpop.f32.mrf.mxu0 }
 0x2eb   :  { %6165 = vmatprep.subr.bf16.mxu1 %v11584_v40  ;;  %19159 = vst [vmem:[#allocation31_spill] sm:$0xff] %v15244_v43  ;;  %v15249_v22 = vpop.f32.mrf.mxu1 }
 0x2ec   :  { %19160 = vst [vmem:[#allocation32_spill] sm:$0xff] %v15249_v22  ;;  %v4550_v44 = vpop.f32.mrf.mxu0 }
 0x2ed   :  { %v15251_v31 = vpop.f32.mrf.mxu1 }
 0x2ee   :  { %6166 = vmatpush2.bf16.msra.mxu1 %v11582_v53  ;;  %19161 = vst [vmem:[#allocation33_spill] sm:$0xff] %v15251_v31  ;;  %v4552_v40 = vpop.f32.mrf.mxu0 }
 0x2ef   :  { %6167 = vmatprep.subr.bf16.mxu1 %v11587_v12  ;;  %v15256_v41 = vpop.f32.mrf.mxu1 }
 0x2f0   :  { %19162 = vst [vmem:[#allocation34_spill] sm:$0xff] %v15256_v41  ;;  %v4554_v53 = vpop.f32.mrf.mxu0 }
 0x2f1   :  { %v15258_v30 = vpop.f32.mrf.mxu1 }
 0x2f2   :  { %6168 = vmatpush2.bf16.msra.mxu1 %v11585_v58  ;;  %19163 = vst [vmem:[#allocation35_spill] sm:$0xff] %v15258_v30  ;;  %v15260_v18 = vpop.f32.mrf.mxu0 }
 0x2f3   :  { %6918 = vmatprep.subr.bf16.mxu1 %v11763_v54  ;;  %v15262_v36 = vpop.f32.mrf.mxu1 }
 0x2f4   :  { %19164 = vst [vmem:[#allocation36_spill] sm:$0xff] %v15262_v36  ;;  %v15264_v14 = vpop.f32.mrf.mxu0 }
 0x2f5   :  { %v15266_v12 = vpop.f32.mrf.mxu1 }
 0x2f6   :  { %19165 = vst [vmem:[#allocation37_spill] sm:$0xff] %v15266_v12  ;;  %v15268_v58 = vpop.f32.mrf.mxu0 }
 0x2f7   :  { %19166 = vst [vmem:[#allocation38_spill] sm:$0xff] %v15268_v58  ;;  %v15270_v56 = vpop.f32.mrf.mxu1 }
 0x2f8   :  { %19167 = vst [vmem:[#allocation39_spill] sm:$0xff] %v15270_v56  ;;  %v15272_v16 = vpop.f32.mrf.mxu0 }
 0x2f9   :  { %19168 = vst [vmem:[#allocation40_spill] sm:$0xff] %v15272_v16  ;;  %v15274_v54 = vpop.f32.mrf.mxu1 }
 0x2fa   :  { %19169 = vst [vmem:[#allocation41_spill] sm:$0xff] %v15274_v54  ;;  %v15276_v41 = vpop.f32.mrf.mxu0 }
 0x2fb   :  { %19170 = vst [vmem:[#allocation42_spill] sm:$0xff] %v15276_v41  ;;  %v3285_v41 = vadd.f32 %v14790_v59, %v14548_v32  ;;  %v15310_v32 = vadd.f32 %v14784_v26, %v14540_v45  ;;  %v2657_v59 = vadd.f32 %v14786_v57, %v14542_v55  ;;  %v3284_v45 = vadd.f32 %v14798_v20, %v14565_v62 }
 0x2fc   :  { %v3289_v55 = vadd.f32 %v14814_v17, %v14576_v19  ;;  %v3292_v62 = vadd.f32 %v15139_v60, %v14615_v61  ;;  %v15344_v19 = vadd.f32 %v15149_v23, %v14623_v63  ;;  %v3297_v61 = vadd.f32 %v15151_v7, %v14626_v10 }
 0x2fd   :  { %v3931_v10 = vadd.f32 %v15214_v38, %v14836_v51 }
 0x2fe   :  { %v3927_v20 = vadd.f32 %v15194_v37, %v3289_v55 }
 0x300   :  { %v4575_v63 = vadd.f32 %v4554_v53, %v3927_v20 }
 0x322   :  { %v15278_v15 = vpop.f32.mrf.mxu1  ;;  %v5164_v30 = vpop.f32.mrf.mxu0 }
 0x323   :  { %19171 = vst [vmem:[#allocation43_spill] sm:$0xff] %v15278_v15 }
 0x324   :  { %v15280_v31 = vpop.f32.mrf.mxu1  ;;  %v5166_v36 = vpop.f32.mrf.mxu0 }
 0x325   :  { %19172 = vst [vmem:[#allocation44_spill] sm:$0xff] %v15280_v31 }
 0x326   :  { %v15282_v22 = vpop.f32.mrf.mxu1  ;;  %v5168_v43 = vpop.f32.mrf.mxu0 }
 0x327   :  { %19173 = vst [vmem:[#allocation45_spill] sm:$0xff] %v15282_v22  ;;  %v3286_v22 = vadd.f32 %v14800_v48, %v14568_v49  ;;  %v15317_v49 = vld [vmem:[%s19052_s4] sm:$0xf]  ;;  %v5189_v7 = vadd.f32 %v5168_v43, %v4575_v63 }
 0x328   :  { %v15284_v12 = vpop.f32.mrf.mxu1  ;;  %v5170_v58 = vpop.f32.mrf.mxu0 }
 0x329   :  { %19174 = vst [vmem:[#allocation46_spill] sm:$0xff] %v15284_v12  ;;  %v3923_v12 = vadd.f32 %v15171_v28, %v3285_v41  ;;  %v3283_v41 = vadd.f32 %v14788_v0, %v14545_v13 }
 0x32a   :  { %v15286_v27 = vpop.f32.mrf.mxu1  ;;  %v15288_v56 = vpop.f32.mrf.mxu0 }
 0x32b   :  { %19175 = vst [vmem:[#allocation47_spill] sm:$0xff] %v15286_v27  ;;  %19176 = vst [vmem:[#allocation48_spill] sm:$0xff] %v15288_v56  ;;  %v5840_v27 = vsub.s32 2, %v12775_v8  ;;  %v2594_v56 = vadd.f32 %v14584_v50, %v14476_v9  ;;  %v3924_v9 = vadd.f32 %v15184_v25, %v3286_v22  ;;  %v4571_v50 = vadd.f32 %v4550_v44, %v3923_v12 }
 0x32c   :  { %v15290_v16 = vpop.f32.mrf.mxu1  ;;  %v15292_v54 = vpop.f32.mrf.mxu0  ;;  %v3921_v60 = vadd.f32 %v15169_v39, %v3283_v41  ;;  %v3922_v25 = vadd.f32 %v15182_v11, %v3284_v45  ;;  %v3929_v39 = vadd.f32 %v15212_v29, %v14833_v42  ;;  %v19179_v41 = vld [vmem:[#allocation31_spill] sm:$0xff]  ;;  %v19180_v29 = vld [vmem:[#allocation38_spill] sm:$0xff] }
 0x32d   :  { %19177 = vst [vmem:[#allocation49_spill] sm:$0xff] %v15290_v16  ;;  %v2647_v16 = vadd.f32 %v14586_v47, %v14478_v2  ;;  %v5844_v2 = vsub.s32 3, %v12775_v8  ;;  %v3287_v47 = vadd.f32 %v14812_v1, %v14573_v6  ;;  %v3288_v26 = vadd.f32 %v14822_v4, %v2594_v56 }
 0x32e   :  { %v15296_v15 = vpop.f32.mrf.mxu1  ;;  %v15298_v31 = vpop.f32.mrf.mxu0  ;;  %v4572_v0 = vadd.f32 %v4552_v40, %v3924_v9  ;;  %v5185_v28 = vadd.f32 %v5164_v30, %v4571_v50  ;;  %v15336_v8 = vrot.slane %v15317_v49, %v5840_v27  ;;  %v3294_v6 = vadd.f32 %v15141_v52, %v14618_v33 }
 0x32f   :  { %v3290_v13 = vadd.f32 %v14824_v3, %v2647_v16  ;;  %v15349_v3 = vrot.slane %v15317_v49, %v5844_v2  ;;  %v3298_v33 = vadd.f32 %v15167_v34, %v2657_v59  ;;  %v3925_v27 = vadd.f32 %v15192_v5, %v3287_v47  ;;  %v19178_v59 = vld [vmem:[#allocation29_spill] sm:$0xff] }
 0x330   :  { %v15330_v57 = vpop.f32.mrf.mxu1  ;;  %v15332_v48 = vpop.f32.mrf.mxu0  ;;  %v5186_v30 = vadd.f32 %v5166_v36, %v4572_v0  ;;  %v3926_v36 = vadd.f32 %v15202_v24, %v3288_v26  ;;  %v3932_v40 = vadd.f32 %v15224_v46, %v3294_v6  ;;  %v4579_v5 = vadd.f32 %v15264_v14, %v3931_v10  ;;  %v19182_v46 = vld [vmem:[#allocation32_spill] sm:$0xff]  ;;  %v19184_v26 = vld [vmem:[#allocation33_spill] sm:$0xff] }
 0x331   :  { %v3928_v16 = vadd.f32 %v15204_v35, %v3290_v13  ;;  %v3935_v51 = vadd.f32 %v19178_v59, %v3297_v61  ;;  %v3936_v42 = vadd.f32 %v19179_v41, %v3298_v33  ;;  %v4569_v45 = vadd.f32 %v19182_v46, %v3921_v60  ;;  %v19183_v14 = vld [vmem:[#allocation40_spill] sm:$0xff]  ;;  %v19188_v60 = vld [vmem:[#allocation42_spill] sm:$0xff] }
 0x332   :  { %v19181_v9 = vld [vmem:[#allocation48_spill] sm:$0xff]  ;;  %v4570_v13 = vadd.f32 %v19184_v26, %v3922_v25  ;;  %v19200_v26 = vld [vmem:[#allocation39_spill] sm:$0xff] }
 0x333   :  { %v4576_v37 = vadd.f32 %v15260_v18, %v3928_v16  ;;  %v3930_v18 = vadd.f32 %v15222_v21, %v3292_v62  ;;  %v5193_v50 = vadd.f32 %v19181_v9, %v4579_v5  ;;  %v4583_v47 = vadd.f32 %v19183_v14, %v3935_v51  ;;  %v19191_v5 = vld [vmem:[#allocation35_spill] sm:$0xff]  ;;  %v19193_v51 = vld [vmem:[#allocation4_spill] sm:$0xff]  ;;  %v19199_v14 = vld [vmem:[#allocation37_spill] sm:$0xff] }
 0x334   :  { %v4584_v63 = vadd.f32 %v19188_v60, %v3936_v42  ;;  %v19195_v41 = vld [vmem:[#allocation28_spill] sm:$0xff] }
 0x335   :  { %v5190_v22 = vadd.f32 %v5170_v58, %v4576_v37  ;;  %v4580_v58 = vadd.f32 %v19180_v29, %v3932_v40  ;;  %v19189_v37 = vld [vmem:[#allocation34_spill] sm:$0xff]  ;;  %v3933_v42 = vadd.f32 %v19195_v41, %v15344_v19 }
 0x336   :  { %v19196_v29 = vld [vmem:[#allocation46_spill] sm:$0xff] }
 0x337   :  { %v5194_v0 = vadd.f32 %v15292_v54, %v4580_v58 }
 0x363   :  { %v5741_v1 = vpop.f32.mrf.mxu1  ;;  %v5794_v17 = vpop.f32.mrf.mxu0 }
 0x364   :  { %v5815_v4 = vadd.f32 %v5794_v17, %v5185_v28  ;;  %v19185_v17 = vld [vmem:[#allocation43_spill] sm:$0xff] }
 0x365   :  { %v15355_v52 = vpop.f32.mrf.mxu1  ;;  %v5796_v23 = vpop.f32.mrf.mxu0  ;;  %v5183_v16 = vadd.f32 %v19185_v17, %v4569_v45  ;;  %v19203_v17 = vld [vmem:[#allocation49_spill] sm:$0xff] }
 0x366   :  { %v5852_v35 = vadd.f32 %v15336_v8, %v5815_v4  ;;  %v5816_v56 = vadd.f32 %v5796_v23, %v5186_v30  ;;  %v5197_v30 = vadd.f32 %v15298_v31, %v4583_v47  ;;  %v19186_v4 = vld [vmem:[#allocation3_spill] sm:$0xff]  ;;  %v5198_v31 = vadd.f32 %v15332_v48, %v4584_v63 }
 0x367   :  { %v5798_v34 = vpop.f32.mrf.mxu0  ;;  %v5745_v53 = vpop.f32.mrf.mxu1  ;;  %v15384_v61 = vrot.slane %v15317_v49, %v19186_v4  ;;  %v4578_v47 = vadd.f32 %v19199_v14, %v3930_v18 }
 0x368   :  { %v10698_v44 = vmul.f32 -1.442695, %v5852_v35  ;;  %v5853_v11 = vadd.f32 %v15349_v3, %v5816_v56  ;;  %v5819_v24 = vadd.f32 %v5798_v34, %v5189_v7  ;;  %v4573_v35 = vadd.f32 %v19189_v37, %v3925_v27  ;;  %v19190_v7 = vld [vmem:[#allocation44_spill] sm:$0xff]  ;;  %v19204_v37 = vld [vmem:[#allocation41_spill] sm:$0xff] }
 0x369   :  { %v5800_v12 = vpop.f32.mrf.mxu0  ;;  %v5747_v62 = vpop.f32.mrf.mxu1  ;;  %19187 = vst [vmem:[#allocation29_spill] sm:$0xff] %v15384_v61  ;;  %v5813_v56 = vadd.f32 %v5741_v1, %v5183_v16  ;;  %v5184_v34 = vadd.f32 %v19190_v7, %v4570_v13  ;;  %v4581_v13 = vadd.f32 %v19200_v26, %v3933_v42  ;;  %v5192_v16 = vadd.f32 %v19203_v17, %v4578_v47  ;;  %v11765_v17 = vld [vmem:[%s19049_s3 + $0x2cc] ss:$16 sps:$4 sm:$0xff]  }
 0x36a   :  { %11644 = vpow2.f32 %v10698_v44  ;;  %v10699_v38 = vmul.f32 -1.442695, %v5853_v11  ;;  %v5820_v43 = vadd.f32 %v5800_v12, %v5190_v22  ;;  %v5856_v21 = vadd.f32 %v15336_v8, %v5819_v24  ;;  %v19192_v12 = vld [vmem:[#allocation45_spill] sm:$0xff] }
 0x36b   :  { %v5804_v2 = vpop.f32.mrf.mxu0  ;;  %v5751_v22 = vpop.f32.mrf.mxu1  ;;  %v4574_v24 = vadd.f32 %v19191_v5, %v3926_v36  ;;  %v5187_v59 = vadd.f32 %v19192_v12, %v4573_v35  ;;  %v5814_v27 = vadd.f32 %v15355_v52, %v5184_v34  ;;  %v5850_v36 = vadd.f32 %v15384_v61, %v5813_v56  ;;  %v19198_v52 = vld [vmem:[#allocation27_spill] sm:$0xff] }
 0x36c   :  { %11646 = vpow2.f32 %v10699_v38  ;;  %v5857_v55 = vadd.f32 %v15349_v3, %v5820_v43  ;;  %v10700_v28 = vmul.f32 -1.442695, %v5856_v21  ;;  %v5823_v6 = vadd.f32 %v5804_v2, %v5193_v50  ;;  %v19197_v50 = vld [vmem:[#allocation36_spill] sm:$0xff] }
 0x36d   :  { %v5806_v20 = vpop.f32.mrf.mxu0  ;;  %v15396_v38 = vrot.slane %v15317_v49, %v19193_v51  ;;  %v5188_v58 = vadd.f32 %v19196_v29, %v4574_v24  ;;  %v4577_v21 = vadd.f32 %v19197_v50, %v3929_v39  ;;  %v5817_v2 = vadd.f32 %v5745_v53, %v5187_v59  ;;  %v5753_v49 = vpop.f32.mrf.mxu1  ;;  %v19202_v53 = vld [vmem:[#allocation30_spill] sm:$0xff] }
 0x36e   :  { %v10701_v33 = vmul.f32 -1.442695, %v5857_v55  ;;  %11648 = vpow2.f32 %v10700_v28  ;;  %v5860_v23 = vadd.f32 %v15336_v8, %v5823_v6  ;;  %v5824_v25 = vadd.f32 %v5806_v20, %v5194_v0  ;;  %v19201_v0 = vld [vmem:[#allocation47_spill] sm:$0xff] }
 0x36f   :  { %v5808_v54 = vpop.f32.mrf.mxu0  ;;  %19194 = vst [vmem:[#allocation31_spill] sm:$0xff] %v15396_v38  ;;  %v3296_v45 = vadd.f32 %v19198_v52, %v15310_v32  ;;  %v5818_v55 = vadd.f32 %v5747_v62, %v5188_v58  ;;  %v5191_v28 = vadd.f32 %v19201_v0, %v4577_v21  ;;  %v5851_v6 = vadd.f32 %v15396_v38, %v5814_v27  ;;  %v5755_v60 = vpop.f32.mrf.mxu1 }
 0x370   :  { %11650 = vpow2.f32 %v10701_v33  ;;  %v5827_v10 = vadd.f32 %v5808_v54, %v5197_v30  ;;  %v10702_v44 = vmul.f32 -1.442695, %v5860_v23  ;;  %v5861_v11 = vadd.f32 %v15349_v3, %v5824_v25 }
 0x371   :  { %v5810_v40 = vpop.f32.mrf.mxu0  ;;  %v3934_v20 = vadd.f32 %v19202_v53, %v3296_v45  ;;  %v5195_v32 = vadd.f32 %v15296_v15, %v4581_v13  ;;  %v5854_v18 = vadd.f32 %v15384_v61, %v5817_v2  ;;  %v5821_v62 = vadd.f32 %v5751_v22, %v5191_v28  ;;  %v5757_v34 = vpop.f32.mrf.mxu1  ;;  %v11764_v53 = vld [vmem:[%s19049_s3 + $0x2e8] ss:$16 sps:$4 sm:$0xff]  }
 0x372   :  { %v5864_v1 = vadd.f32 %v15336_v8, %v5827_v10  ;;  %11652 = vpow2.f32 %v10702_v44  ;;  %v10703_v43 = vmul.f32 -1.442695, %v5861_v11  ;;  %v5828_v48 = vadd.f32 %v5810_v40, %v5198_v31 }
 0x373   :  { %v5855_v23 = vadd.f32 %v15396_v38, %v5818_v55  ;;  %v5822_v25 = vadd.f32 %v5753_v49, %v5192_v16  ;;  %v4582_v35 = vadd.f32 %v19204_v37, %v3934_v20  ;;  %v5825_v56 = vadd.f32 %v5755_v60, %v5195_v32  ;;  %v11766_v32 = vld [vmem:[%s19049_s3 + $0x2c8] ss:$16 sps:$4 sm:$0xff]   ;;  %v11773_v37 = vld [vmem:[%s19049_s3 + $0x24c] ss:$16 sps:$4 sm:$0xff]  }
 0x374   :  { %v10704_v9 = vmul.f32 -1.442695, %v5864_v1  ;;  %11654 = vpow2.f32 %v10703_v43  ;;  %v5865_v46 = vadd.f32 %v15349_v3, %v5828_v48  ;;  %v5858_v15 = vadd.f32 %v15384_v61, %v5821_v62  ;;  %v11767_v62 = vld [vmem:[%s19049_s3 + $0x2ac] ss:$16 sps:$4 sm:$0xff]   ;;  %v11768_v60 = vld [vmem:[%s19049_s3 + $0x2a8] ss:$16 sps:$4 sm:$0xff]  }
 0x375   :  { %v5196_v31 = vadd.f32 %v15330_v57, %v4582_v35  ;;  %v5859_v44 = vadd.f32 %v15396_v38, %v5822_v25  ;;  %v5862_v40 = vadd.f32 %v15384_v61, %v5825_v56  ;;  %v11771_v25 = vld [vmem:[%s19049_s3 + $0x26c] ss:$16 sps:$4 sm:$0xff]   ;;  %v11774_v35 = vld [vmem:[%s19049_s3 + $0x248] ss:$16 sps:$4 sm:$0xff]  }
 0x376   :  { %11656 = vpow2.f32 %v10704_v9  ;;  %v10705_v39 = vmul.f32 -1.442695, %v5865_v46  ;;  %v11775_v56 = vld [vmem:[%s19049_s3 + $0x22c] ss:$16 sps:$4 sm:$0xff]  }
 0x377   :  { %v11645_v19 = vpop.eup %11644  ;;  %11658 = vtanh.f32 %v5850_v36  ;;  %v5826_v5 = vadd.f32 %v5757_v34, %v5196_v31  ;;  %v11779_v34 = vld [vmem:[%s19049_s3 + $0x3ec] ss:$16 sps:$4 sm:$0xff]   ;;  %v11780_v31 = vld [vmem:[%s19049_s3 + $0x3e8] ss:$16 sps:$4 sm:$0xff]  }
 0x378   :  { %v5898_v30 = vadd.f32 1.0, %v11645_v19  ;;  %11660 = vpow2.f32 %v10705_v39 }
 0x379   :  { %v11647_v33 = vpop.eup %11646  ;;  %v5863_v57 = vadd.f32 %v15396_v38, %v5826_v5  ;;  %v11785_v5 = vld [vmem:[%s19049_s3 + $0x38c] ss:$16 sps:$4 sm:$0xff]  }
 0x37a   :  { %11662 = vrcp.f32 %v5898_v30  ;;  %v5899_v63 = vadd.f32 1.0, %v11647_v33 }
 0x37b   :  { %11664 = vtanh.f32 %v5851_v6  ;;  %v11649_v54 = vpop.eup %11648 }
 0x37c   :  { %11666 = vrcp.f32 %v5899_v63  ;;  %v5900_v7 = vadd.f32 1.0, %v11649_v54  ;;  %v11769_v63 = vld [vmem:[%s19049_s3 + $0x28c] ss:$16 sps:$4 sm:$0xff]   ;;  %v11772_v54 = vld [vmem:[%s19049_s3 + $0x268] ss:$16 sps:$4 sm:$0xff]  }
 0x37d   :  { %v11651_v10 = vpop.eup %11650  ;;  %11668 = vtanh.f32 %v5854_v18 }
 0x37e   :  { %11670 = vtanh.f32 %v5855_v23  ;;  %v5901_v22 = vadd.f32 1.0, %v11651_v10  ;;  %v11770_v23 = vld [vmem:[%s19049_s3 + $0x288] ss:$16 sps:$4 sm:$0xff]  }
 0x37f   :  { %11672 = vrcp.f32 %v5900_v7  ;;  %v11653_v11 = vpop.eup %11652  ;;  %v11776_v10 = vld [vmem:[%s19049_s3 + $0x228] ss:$16 sps:$4 sm:$0xff]   ;;  %v11777_v7 = vld [vmem:[%s19049_s3 + $0x20c] ss:$16 sps:$4 sm:$0xff]  }
 0x380   :  { %11674 = vrcp.f32 %v5901_v22  ;;  %v5902_v24 = vadd.f32 1.0, %v11653_v11  ;;  %v11781_v22 = vld [vmem:[%s19049_s3 + $0x3cc] ss:$16 sps:$4 sm:$0xff]  }
 0x381   :  { %11676 = vtanh.f32 %v5858_v15  ;;  %v11655_v12 = vpop.eup %11654  ;;  %v11778_v15 = vld [vmem:[%s19049_s3 + $0x208] ss:$16 sps:$4 sm:$0xff]   ;;  %v11783_v11 = vld [vmem:[%s19049_s3 + $0x3ac] ss:$16 sps:$4 sm:$0xff]  }
 0x382   :  { %11678 = vtanh.f32 %v5859_v44  ;;  %v5903_v1 = vadd.f32 1.0, %v11655_v12  ;;  %v11782_v44 = vld [vmem:[%s19049_s3 + $0x3c8] ss:$16 sps:$4 sm:$0xff]   ;;  %v11787_v12 = vld [vmem:[%s19049_s3 + $0x36c] ss:$16 sps:$4 sm:$0xff]  }
 0x383   :  { %v11657_v59 = vpop.eup %11656  ;;  %11680 = vrcp.f32 %v5902_v24  ;;  %v11786_v24 = vld [vmem:[%s19049_s3 + $0x388] ss:$16 sps:$4 sm:$0xff]  }
 0x384   :  { %11682 = vtanh.f32 %v5862_v40  ;;  %v5904_v27 = vadd.f32 1.0, %v11657_v59  ;;  %v11659_v43 = vpop.eup %11658  ;;  %v11784_v40 = vld [vmem:[%s19049_s3 + $0x3a8] ss:$16 sps:$4 sm:$0xff]  }
 0x385   :  { %11684 = vrcp.f32 %v5903_v1  ;;  %v11661_v48 = vpop.eup %11660  ;;  %v11788_v59 = vld [vmem:[%s19049_s3 + $0x368] ss:$16 sps:$4 sm:$0xff]   ;;  %v11789_v1 = vld [vmem:[%s19049_s3 + $0x34c] ss:$16 sps:$4 sm:$0xff]  }
 0x386   :  { %11686 = vrcp.f32 %v5904_v27  ;;  %v5905_v42 = vadd.f32 1.0, %v11661_v48  ;;  %v11790_v27 = vld [vmem:[%s19049_s3 + $0x348] ss:$16 sps:$4 sm:$0xff]   ;;  %v11793_v48 = vld [vmem:[%s19049_s3 + $0x30c] ss:$16 sps:$4 sm:$0xff]  }
 0x387   :  { %v11663_v41 = vpop.eup %11662  ;;  %11688 = vtanh.f32 %v5863_v57  ;;  %v11791_v57 = vld [vmem:[%s19049_s3 + $0x32c] ss:$16 sps:$4 sm:$0xff]  }
 0x388   :  { %v11665_v29 = vpop.eup %11664  ;;  %v5922_v58 = vmul.f32 %v11663_v41, %v11659_v43  ;;  %11690 = vrcp.f32 %v5905_v42  ;;  %v11792_v43 = vld [vmem:[%s19049_s3 + $0x328] ss:$16 sps:$4 sm:$0xff]   ;;  %v11795_v42 = vld [vmem:[%s19049_s3 + $0xec] ss:$16 sps:$4 sm:$0xff]  }
 0x389   :  { %v11667_v36 = vpop.eup %11666  ;;  %v11794_v41 = vld [vmem:[%s19049_s3 + $0x308] ss:$16 sps:$4 sm:$0xff]  }
 0x38a   :  { %v11669_v9 = vpop.eup %11668  ;;  %v5923_v50 = vmul.f32 %v11667_v36, %v11665_v29  ;;  %v923_v29 = vld [vmem:[%s19053_s6] sm:$0x3] }
 0x38b   :  { %v11671_v21 = vpop.eup %11670  ;;  %v15526_v36 = vrot.slane %v923_v29, %v19193_v51 }
 0x38c   :  { %v11673_v2 = vpop.eup %11672 }
 0x38d   :  { %v11675_v49 = vpop.eup %11674  ;;  %v5924_v46 = vmul.f32 %v11673_v2, %v11669_v9  ;;  %19206 = vst [vmem:[#allocation48_spill] sm:$0xff] %v15526_v36 }
 0x38e   :  { %v11677_v52 = vpop.eup %11676  ;;  %v5925_v45 = vmul.f32 %v11675_v49, %v11671_v21 }
 0x38f   :  { %v11679_v14 = vpop.eup %11678  ;;  %v5930_v47 = vpack.c.bf16 %v5924_v46, %v5922_v58  ;;  %v15523_v58 = vrot.slane %v923_v29, %v19186_v4 }
 0x390   :  { %v11681_v55 = vpop.eup %11680  ;;  %v5931_v19 = vpack.c.bf16 %v5925_v45, %v5923_v50 }
 0x391   :  { %v11683_v26 = vpop.eup %11682  ;;  %v5926_v13 = vmul.f32 %v11681_v55, %v11677_v52  ;;  %19205 = vst [vmem:[#allocation38_spill] sm:$0xff] %v15523_v58 }
 0x392   :  { %v11685_v0 = vpop.eup %11684  ;;  %6169 = vmatprep.mubr.bf16.mxu1 %v5931_v19 }
 0x393   :  { %v11687_v28 = vpop.eup %11686  ;;  %6170 = vmatmul.mubr.bf16.vlgmr.msra.gmra.mxu1 %v5930_v47  ;;  %v5927_v6 = vmul.f32 %v11685_v0, %v11679_v14  ;;  %v19207_v14 = vld [vmem:[#allocation2_spill] sm:$0xff] }
 0x394   :  { %v5928_v39 = vmul.f32 %v11687_v28, %v11683_v26  ;;  %6919 = vmatpush1.bf16.msra.mxu1 %v11764_v53  ;;  %v11689_v20 = vpop.eup %11688  ;;  %v19208_v26 = vld [vmem:[#allocation5_spill] sm:$0xff]  ;;  %v19209_v0 = vld [vmem:[#allocation6_spill] sm:$0xff] }
 0x395   :  { %6920 = vmatprep.subr.bf16.mxu1 %v11765_v17  ;;  %v11691_v16 = vpop.eup %11690  ;;  %v697_v28 = vcombine.high %v19209_v0, %v19209_v0 }
 0x396   :  { %v5932_v30 = vpack.c.bf16 %v5928_v39, %v5926_v13  ;;  %v5929_v33 = vmul.f32 %v11691_v16, %v11689_v20  ;;  %v695_v13 = vcombine.high %v19208_v26, %v19208_v26  ;;  %v19210_v16 = vld [vmem:[#allocation7_spill] sm:$0xff] }
 0x398   :  { %6921 = vmatpush1.bf16.msra.mxu1 %v11766_v32  ;;  %v5933_v18 = vpack.c.bf16 %v5929_v33, %v5927_v6  ;;  %v19211_v33 = vld [vmem:[#allocation9_spill] sm:$0xff] }
 0x399   :  { %6922 = vmatprep.subr.bf16.mxu1 %v11767_v62  ;;  %v746_v32 = vcombine.high %v19211_v33, %v19211_v33 }
 0x39a   :  { %6179 = vmatprep.mubr.bf16.mxu1 %v5933_v18 }
 0x39b   :  { %6180 = vmatmul.mubr.bf16.gmra.mxu1 %v5932_v30  ;;  %v744_v30 = vcombine.high %v19210_v16, %v19210_v16 }
 0x39c   :  { %6923 = vmatpush1.bf16.msra.mxu1 %v11768_v60 }
 0x39d   :  { %6924 = vmatprep.subr.bf16.mxu1 %v11769_v63 }
 0x3a0   :  { %6925 = vmatpush1.bf16.msra.mxu1 %v11770_v23 }
 0x3a1   :  { %6926 = vmatprep.subr.bf16.mxu1 %v11771_v25 }
 0x3a4   :  { %6927 = vmatpush1.bf16.msra.mxu1 %v11772_v54 }
 0x3a5   :  { %6928 = vmatprep.subr.bf16.mxu1 %v11773_v37 }
 0x3a8   :  { %6929 = vmatpush1.bf16.msra.mxu1 %v11774_v35 }
 0x3a9   :  { %6930 = vmatprep.subr.bf16.mxu1 %v11775_v56 }
 0x3ac   :  { %6931 = vmatpush1.bf16.msra.mxu1 %v11776_v10 }
 0x3ad   :  { %6932 = vmatprep.subr.bf16.mxu1 %v11777_v7 }
 0x3b0   :  { %6933 = vmatpush1.bf16.msra.mxu1 %v11778_v15 }
 0x3b1   :  { %6934 = vmatprep.subr.bf16.mxu1 %v11779_v34 }
 0x3b4   :  { %6935 = vmatpush2.bf16.msra.mxu1 %v11780_v31 }
 0x3b5   :  { %6936 = vmatprep.subr.bf16.mxu1 %v11781_v22 }
 0x3b8   :  { %6937 = vmatpush2.bf16.msra.mxu1 %v11782_v44 }
 0x3b9   :  { %6938 = vmatprep.subr.bf16.mxu1 %v11783_v11 }
 0x3bc   :  { %6939 = vmatpush2.bf16.msra.mxu1 %v11784_v40 }
 0x3bd   :  { %6940 = vmatprep.subr.bf16.mxu1 %v11785_v5 }
 0x3c0   :  { %6941 = vmatpush2.bf16.msra.mxu1 %v11786_v24 }
 0x3c1   :  { %6942 = vmatprep.subr.bf16.mxu1 %v11787_v12 }
 0x3c4   :  { %6943 = vmatpush2.bf16.msra.mxu1 %v11788_v59 }
 0x3c5   :  { %6944 = vmatprep.subr.bf16.mxu1 %v11789_v1  ;;  %v19212_v1 = vld [vmem:[#allocation8_spill] sm:$0xff] }
 0x3c8   :  { %6945 = vmatpush2.bf16.msra.mxu1 %v11790_v27 }
 0x3c9   :  { %6946 = vmatprep.subr.bf16.mxu1 %v11791_v57 }
 0x3cc   :  { %6947 = vmatpush2.bf16.msra.mxu1 %v11792_v43 }
 0x3cd   :  { %6948 = vmatprep.subr.bf16.mxu1 %v11793_v48 }
 0x3d0   :  { %6949 = vmatpush2.bf16.msra.mxu1 %v11794_v41  ;;  %v19214_v41 = vld [vmem:[#allocation10_spill] sm:$0xff] }
 0x3d1   :  { %7078 = vmatprep.subr.bf16.mxu1 %v11795_v42 }
 0x453   :  { %v6171_v9 = vpop.f32.mrf.mxu1 }
 0x454   :  { %v6172_v21 = vadd.f32 %v6171_v9, %v15523_v58 }
 0x455   :  { %v6173_v50 = vpop.f32.mrf.mxu1 }
 0x456   :  { %v6174_v2 = vadd.f32 %v6173_v50, %v15526_v36 }
 0x457   :  { %v6175_v49 = vpop.f32.mrf.mxu1 }
 0x458   :  { %v6198_v46 = vcombine.low %v6172_v21, %v6174_v2  ;;  %v6199_v52 = vcombine.high %v6172_v21, %v6174_v2  ;;  %v6176_v6 = vadd.f32 %v6175_v49, %v15523_v58  ;;  %v745_v2 = vcombine.high %v19212_v1, %v19212_v1 }
 0x459   :  { %v6177_v45 = vpop.f32.mrf.mxu1 }
 0x45a   :  { %v6206_v47 = vrot.slane %v6198_v46, %v19207_v14  ;;  %v6213_v55 = vrot.slane %v6199_v52, %v19207_v14  ;;  %v6178_v19 = vadd.f32 %v6177_v45, %v15526_v36 }
 0x45b   :  { %v6181_v50 = vpop.f32.mrf.mxu1 }
 0x45c   :  { %v6214_v39 = vcombine.high %v6206_v47, %v6206_v47  ;;  %v6215_v53 = vcombine.high %v6213_v55, %v6213_v55  ;;  %v6222_v20 = vrot.slane %v6206_v47, %v19207_v14  ;;  %v6229_v17 = vrot.slane %v6213_v55, %v19207_v14 }
 0x45d   :  { %v6248_v18 = vcombine.low %v6176_v6, %v6178_v19  ;;  %v6249_v62 = vcombine.high %v6176_v6, %v6178_v19  ;;  %v747_v47 = vcombine.high %v19214_v41, %v19214_v41 }
 0x45e   :  { %v6236_v60 = vrot.slane %v6214_v39, %v19207_v14  ;;  %v6243_v63 = vrot.slane %v6215_v53, %v19207_v14  ;;  %v6244_v23 = vcombine.high %v6222_v20, %v6222_v20  ;;  %v6245_v25 = vcombine.high %v6229_v17, %v6229_v17 }
 0x45f   :  { %v6397_v54 = vmul.f32 0.4, %v6222_v20  ;;  %v6401_v37 = vmul.f32 0.4, %v6229_v17  ;;  %v6256_v35 = vrot.slane %v6248_v18, %v19207_v14  ;;  %v6263_v56 = vrot.slane %v6249_v62, %v19207_v14  ;;  %v6183_v20 = vpop.f32.mrf.mxu1 }
 0x460   :  { %v6246_v10 = vcombine.high %v6236_v60, %v6236_v60  ;;  %v6247_v7 = vcombine.high %v6243_v63, %v6243_v63  ;;  %v6398_v15 = vmul.f32 0.4, %v6236_v60  ;;  %v6399_v34 = vmul.f32 0.4, %v6244_v23 }
 0x461   :  { %v6402_v31 = vmul.f32 0.4, %v6243_v63  ;;  %v6403_v22 = vmul.f32 0.4, %v6245_v25  ;;  %v6423_v44 = vadd.f32 %v6397_v54, %v695_v13  ;;  %v6427_v11 = vadd.f32 %v6401_v37, %v744_v30 }
 0x462   :  { %v6400_v40 = vmul.f32 0.4, %v6246_v10  ;;  %v6404_v5 = vmul.f32 0.4, %v6247_v7  ;;  %v6424_v24 = vadd.f32 %v6398_v15, %v697_v28  ;;  %v6425_v12 = vadd.f32 %v6399_v34, %v19210_v16  ;;  %v19218_v15 = vld [vmem:[#allocation12_spill] sm:$0xff] }
 0x463   :  { %v6428_v59 = vadd.f32 %v6402_v31, %v746_v32  ;;  %v15550_v27 = vadd.f32 %v6403_v22, %v19212_v1  ;;  %v6264_v57 = vcombine.high %v6256_v35, %v6256_v35  ;;  %v6265_v43 = vcombine.high %v6263_v56, %v6263_v56  ;;  %v19220_v31 = vld [vmem:[#allocation11_spill] sm:$0xff] }
 0x464   :  { %v6426_v48 = vadd.f32 %v6400_v40, %v19211_v33  ;;  %v15554_v42 = vadd.f32 %v6404_v5, %v19214_v41  ;;  %v6475_v29 = vcombine.low %v6423_v44, %v6424_v24  ;;  %v6272_v9 = vrot.slane %v6256_v35, %v19207_v14  ;;  %v19222_v44 = vld [vmem:[#allocation13_spill] sm:$0xff] }
 0x465   :  { %19213 = vst [vmem:[#allocation32_spill] sm:$0xff] %v15550_v27  ;;  %v6477_v21 = vcombine.low %v6427_v11, %v6428_v59  ;;  %v6279_v49 = vrot.slane %v6263_v56, %v19207_v14  ;;  %v6286_v46 = vrot.slane %v6264_v57, %v19207_v14  ;;  %v6293_v13 = vrot.slane %v6265_v43, %v19207_v14 }
 0x466   :  { %19215 = vst [vmem:[#allocation40_spill] sm:$0xff] %v15554_v42  ;;  %v6476_v52 = vcombine.low %v6425_v12, %v6426_v48  ;;  %v6478_v45 = vcombine.low %v15550_v27, %v15554_v42  ;;  %v6294_v55 = vcombine.high %v6272_v9, %v6272_v9  ;;  %v6485_v19 = vrot.slane %v6475_v29, %v19207_v14  ;;  %v6185_v48 = vpop.f32.mrf.mxu1 }
 0x467   :  { %v6499_v26 = vrot.slane %v6477_v21, %v19207_v14  ;;  %v6296_v0 = vcombine.high %v6286_v46, %v6286_v46  ;;  %v6405_v39 = vmul.f32 0.4, %v6272_v9  ;;  %v6406_v53 = vmul.f32 0.4, %v6286_v46  ;;  %v19224_v21 = vld [vmem:[#allocation15_spill] sm:$0xff] }
 0x468   :  { %v6492_v28 = vrot.slane %v6476_v52, %v19207_v14  ;;  %v6506_v6 = vrot.slane %v6478_v45, %v19207_v14  ;;  %v6295_v17 = vcombine.high %v6279_v49, %v6279_v49  ;;  %v6407_v16 = vmul.f32 0.4, %v6294_v55  ;;  %v19225_v45 = vld [vmem:[#allocation17_spill] sm:$0xff] }
 0x469   :  { %v6408_v30 = vmul.f32 0.4, %v6296_v0  ;;  %v6409_v33 = vmul.f32 0.4, %v6279_v49  ;;  %v6297_v63 = vcombine.high %v6293_v13, %v6293_v13  ;;  %v6410_v23 = vmul.f32 0.4, %v6293_v13 }
 0x46a   :  { %v6507_v32 = vcombine.low %v6485_v19, %v6492_v28  ;;  %v6508_v18 = vcombine.high %v6485_v19, %v6492_v28  ;;  %v6509_v62 = vcombine.low %v6499_v26, %v6506_v6  ;;  %v6510_v60 = vcombine.high %v6499_v26, %v6506_v6  ;;  %v19226_v26 = vld [vmem:[#allocation19_spill] sm:$0xff] }
 0x46b   :  { %v15570_v25 = vadd.f32 %v6405_v39, %v745_v2  ;;  %v6184_v54 = vadd.f32 %v6183_v20, %v15526_v36  ;;  %v15577_v7 = vadd.f32 %v6406_v53, %v747_v47  ;;  %v15580_v34 = vadd.f32 %v6407_v16, %v19218_v15  ;;  %v6187_v39 = vpop.f32.mrf.mxu1 }
 0x46c   :  { %v6517_v37 = vrot.slane %v6507_v32, %v19207_v14  ;;  %v6524_v35 = vrot.slane %v6508_v18, %v19207_v14  ;;  %v6531_v56 = vrot.slane %v6509_v62, %v19207_v14  ;;  %v6538_v10 = vrot.slane %v6510_v60, %v19207_v14 }
 0x46d   :  { %19216 = vst [vmem:[#allocation33_spill] sm:$0xff] %v15570_v25  ;;  %19217 = vst [vmem:[#allocation43_spill] sm:$0xff] %v15577_v7  ;;  %v15583_v22 = vadd.f32 %v6408_v30, %v19220_v31  ;;  %v15586_v11 = vadd.f32 %v6409_v33, %v19222_v44  ;;  %v6411_v24 = vmul.f32 0.4, %v6295_v17  ;;  %v6182_v12 = vadd.f32 %v6181_v50, %v15523_v58 }
 0x46e   :  { %19219 = vst [vmem:[#allocation42_spill] sm:$0xff] %v15580_v34  ;;  %v6539_v40 = vcombine.low %v6517_v37, %v6531_v56  ;;  %v6540_v5 = vcombine.low %v6524_v35, %v6538_v10  ;;  %v6412_v59 = vmul.f32 0.4, %v6297_v63  ;;  %v6541_v1 = vcombine.low %v15570_v25, %v15577_v7 }
 0x46f   :  { %19221 = vst [vmem:[#allocation34_spill] sm:$0xff] %v15583_v22  ;;  %19223 = vst [vmem:[#allocation44_spill] sm:$0xff] %v15586_v11  ;;  %v6542_v57 = vcombine.low %v15580_v34, %v15583_v22  ;;  %v6563_v43 = vrot.slane %v15586_v11, %v19207_v14  ;;  %v6298_v29 = vcombine.low %v6182_v12, %v6184_v54 }
 0x470   :  { %v10738_v41 = vpack.c.bf16 %v6540_v5, %v6539_v40  ;;  %v6299_v9 = vcombine.high %v6182_v12, %v6184_v54  ;;  %v6436_v2 = vadd.f32 %v6410_v23, %v19224_v21  ;;  %v6549_v49 = vrot.slane %v6541_v1, %v19207_v14 }
 0x471   :  { %v6556_v50 = vrot.slane %v6542_v57, %v19207_v14  ;;  %v6566_v46 = vcombine.high %v6563_v43, %v6563_v43  ;;  %v6437_v47 = vadd.f32 %v6411_v24, %v19225_v45  ;;  %v6306_v55 = vrot.slane %v6298_v29, %v19207_v14  ;;  %v19227_v57 = vld [vmem:[#allocation14_spill] sm:$0xff]  ;;  %v19230_v45 = vld [vmem:[#allocation20_spill] sm:$0xff] }
 0x472   :  { %v6742_v52 = vrot.slane %v10738_v41, %v19207_v14  ;;  %v6313_v19 = vrot.slane %v6299_v9, %v19207_v14  ;;  %v6438_v13 = vadd.f32 %v6412_v59, %v19226_v26  ;;  %v6587_v6 = vrot.slane %v6563_v43, %v19207_v14  ;;  %v19228_v41 = vld [vmem:[#allocation16_spill] sm:$0xff] }
 0x473   :  { %v6564_v0 = vcombine.low %v6549_v49, %v6556_v50  ;;  %v6565_v28 = vcombine.high %v6549_v49, %v6556_v50  ;;  %v6594_v53 = vrot.slane %v6566_v46, %v19207_v14  ;;  %v6314_v20 = vcombine.high %v6306_v55, %v6306_v55  ;;  %v19229_v50 = vld [vmem:[#allocation18_spill] sm:$0xff] }
 0x474   :  { %v6315_v17 = vcombine.high %v6313_v19, %v6313_v19  ;;  %v6322_v16 = vrot.slane %v6306_v55, %v19207_v14  ;;  %v6743_v30 = vcombine.high %v6742_v52, %v6742_v52  ;;  %v6329_v18 = vrot.slane %v6313_v19, %v19207_v14 }
 0x475   :  { %v6573_v33 = vrot.slane %v6564_v0, %v19207_v14  ;;  %v6580_v32 = vrot.slane %v6565_v28, %v19207_v14  ;;  %v6336_v62 = vrot.slane %v6314_v20, %v19207_v14  ;;  %v6188_v23 = vadd.f32 %v6187_v39, %v15526_v36  ;;  %v19234_v0 = vld [vmem:[#allocation22_spill] sm:$0xff]  ;;  %v19236_v39 = vld [vmem:[#allocation23_spill] sm:$0xff] }
 0x476   :  { %v6343_v60 = vrot.slane %v6315_v17, %v19207_v14  ;;  %v6344_v63 = vcombine.high %v6322_v16, %v6322_v16  ;;  %v6345_v35 = vcombine.high %v6329_v18, %v6329_v18  ;;  %v6413_v56 = vmul.f32 0.4, %v6322_v16 }
 0x477   :  { %v6595_v54 = vcombine.low %v6573_v33, %v6587_v6  ;;  %v6596_v37 = vcombine.low %v6580_v32, %v6594_v53  ;;  %v6346_v10 = vcombine.high %v6336_v62, %v6336_v62  ;;  %v6414_v31 = vmul.f32 0.4, %v6336_v62  ;;  %v19238_v33 = vld [vmem:[#allocation25_spill] sm:$0xff] }
 0x478   :  { %v6347_v15 = vcombine.high %v6343_v60, %v6343_v60  ;;  %v6415_v44 = vmul.f32 0.4, %v6344_v63  ;;  %v6597_v40 = vcombine.low %v6436_v2, %v6437_v47  ;;  %v6417_v5 = vmul.f32 0.4, %v6329_v18  ;;  %v19232_v2 = vld [vmem:[#allocation21_spill] sm:$0xff] }
 0x479   :  { %v6418_v24 = vmul.f32 0.4, %v6343_v60  ;;  %v6186_v12 = vadd.f32 %v6185_v48, %v15523_v58  ;;  %v6416_v59 = vmul.f32 0.4, %v6346_v10  ;;  %v6419_v1 = vmul.f32 0.4, %v6345_v35 }
 0x47a   :  { %v6439_v43 = vadd.f32 %v6413_v56, %v19227_v57  ;;  %v6440_v29 = vadd.f32 %v6414_v31, %v19228_v41  ;;  %v15616_v9 = vrot.slane %v6743_v30, %v19207_v14  ;;  %v10747_v21 = vpack.c.bf16 %v6596_v37, %v6595_v54  ;;  %v19240_v41 = vld [vmem:[#allocation24_spill] sm:$0xff] }
 0x47b   :  { %v6420_v49 = vmul.f32 0.4, %v6347_v15  ;;  %v6441_v46 = vadd.f32 %v6415_v44, %v19229_v50  ;;  %v15620_v55 = vadd.f32 %v6416_v59, %v19230_v45  ;;  %v15623_v47 = vadd.f32 %v6417_v5, %v19232_v2 }
 0x47c   :  { %v6598_v48 = vcombine.low %v6438_v13, %v6439_v43  ;;  %v6348_v19 = vcombine.low %v6186_v12, %v6188_v23  ;;  %v6607_v26 = vrot.slane %v6597_v40, %v19207_v14  ;;  %v15627_v28 = vadd.f32 %v6418_v24, %v19234_v0 }
 0x47d   :  { %19231 = vst [vmem:[#allocation35_spill] sm:$0xff] %v15620_v55  ;;  %19233 = vst [vmem:[#allocation45_spill] sm:$0xff] %v15623_v47  ;;  %v6599_v6 = vcombine.low %v6440_v29, %v6441_v46  ;;  %v15630_v53 = vadd.f32 %v6419_v1, %v19236_v39  ;;  %v6600_v20 = vcombine.low %v15620_v55, %v15623_v47  ;;  %v6788_v56 = vunpack.i.h.s16 %v15616_v9 }
 0x47e   :  { %19235 = vst [vmem:[#allocation28_spill] sm:$0xff] %v15627_v28  ;;  %v6614_v17 = vrot.slane %v6598_v48, %v19207_v14  ;;  %v6355_v16 = vrot.slane %v6348_v19, %v19207_v14  ;;  %v7128_v30 = vrot.slane %v10747_v21, %v19207_v14  ;;  %v15639_v32 = vadd.f32 %v6420_v49, %v19238_v33  ;;  %v19242_v19 = vld [vmem:[#allocation26_spill] sm:$0xff] }
 0x47f   :  { %19237 = vst [vmem:[#allocation46_spill] sm:$0xff] %v15630_v53  ;;  %v6621_v13 = vrot.slane %v6599_v6, %v19207_v14  ;;  %v15642_v18 = vrot.slane %v6742_v52, %v19207_v14  ;;  %v6628_v62 = vrot.slane %v6600_v20, %v19207_v14  ;;  %v15647_v23 = vcombine.high %v15616_v9, %v15616_v9 }
 0x480   :  { %19239 = vst [vmem:[#allocation36_spill] sm:$0xff] %v15639_v32  ;;  %v6629_v60 = vcombine.low %v6607_v26, %v6614_v17  ;;  %v6630_v63 = vcombine.high %v6607_v26, %v6614_v17  ;;  %v6356_v54 = vcombine.high %v6355_v16, %v6355_v16  ;;  %v6363_v37 = vrot.slane %v6355_v16, %v19207_v14 }
 0x481   :  { %v15652_v35 = vcombine.high %v15642_v18, %v15642_v18  ;;  %v6631_v10 = vcombine.low %v6621_v13, %v6628_v62  ;;  %v6632_v52 = vcombine.high %v6621_v13, %v6628_v62  ;;  %v6663_v15 = vcombine.low %v15627_v28, %v15630_v53 }
 0x482   :  { %v6786_v31 = vunpack.i.h.s16 %v15642_v18  ;;  %v6639_v44 = vrot.slane %v6629_v60, %v19207_v14  ;;  %v6370_v40 = vrot.slane %v6356_v54, %v19207_v14  ;;  %v6421_v5 = vmul.f32 0.4, %v6363_v37 }
 0x483   :  { %v6790_v24 = vunpack.i.h.s16 %v15652_v35  ;;  %v6646_v12 = vrot.slane %v6630_v63, %v19207_v14  ;;  %v6653_v59 = vrot.slane %v6631_v10, %v19207_v14  ;;  %v6660_v1 = vrot.slane %v6632_v52, %v19207_v14 }
 0x484   :  { %v6799_v57 = vunpack.i.h.s16 %v15647_v23  ;;  %v6422_v43 = vmul.f32 0.4, %v6370_v40  ;;  %v15666_v29 = vadd.f32 %v6421_v5, %v19240_v41  ;;  %v15669_v21 = vpack.i.b16 %v15652_v35, %v6788_v56 }
 0x485   :  { %v15672_v49 = vpack.i.b16 %v15647_v23, %v6790_v24  ;;  %v15675_v50 = vrot.slane %v7128_v30, %v19207_v14  ;;  %v6661_v46 = vcombine.low %v6639_v44, %v6653_v59  ;;  %v6662_v45 = vcombine.low %v6646_v12, %v6660_v1 }
 0x486   :  { %19241 = vst [vmem:[#allocation27_spill] sm:$0xff] %v15666_v29  ;;  %v7156_v2 = vcombine.low %v15616_v9, %v15652_v35  ;;  %v7483_v48 = vcombine.high %v7128_v30, %v7128_v30  ;;  %v15680_v26 = vadd.f32 %v6422_v43, %v19242_v19  ;;  %v6664_v0 = vcombine.low %v15639_v32, %v15666_v29 }
 0x487   :  { %v10740_v6 = vpack.i.b16 %v15616_v9, %v6786_v31  ;;  %v6671_v39 = vrot.slane %v6663_v15, %v19207_v14  ;;  %v10739_v20 = vpack.c.bf16 %v6662_v45, %v6661_v46  ;;  %v6968_v17 = vcombine.low %v15642_v18, %v15616_v9 }
 0x488   :  { %19243 = vst [vmem:[#allocation37_spill] sm:$0xff] %v15680_v26  ;;  %v15689_v16 = vpack.i.b16 %v15675_v50, %v6799_v57  ;;  %v6678_v13 = vrot.slane %v6664_v0, %v19207_v14  ;;  %v6685_v30 = vrot.slane %v15680_v26, %v19207_v14  ;;  %v7322_v62 = vcombine.low %v15669_v21, %v15672_v49 }
 0x489   :  { %v6808_v33 = vcombine.low %v10740_v6, %v15669_v21  ;;  %v6767_v60 = vrot.slane %v10739_v20, %v19207_v14  ;;  %v7317_v63 = vunpack.i.h.s16 %v15675_v50  ;;  %v10755_v54 = vcombine.high %v15642_v18, %v15616_v9 }
 0x48a   :  { %v6686_v56 = vcombine.low %v6671_v39, %v6678_v13  ;;  %v6687_v10 = vcombine.high %v6671_v39, %v6678_v13  ;;  %v6688_v52 = vcombine.high %v6685_v30, %v6685_v30  ;;  %v15704_v15 = vrot.slane %v7483_v48, %v19207_v14 }
 0x48b   :  { %v6768_v31 = vcombine.high %v6767_v60, %v6767_v60  ;;  %v15707_v44 = vrot.slane %v6767_v60, %v19207_v14  ;;  %v15710_v40 = vrot.slane %v6968_v17, %v19207_v14  ;;  %v6709_v18 = vrot.slane %v6685_v30, %v19207_v14 }
 0x48c   :  { %v6695_v5 = vrot.slane %v6686_v56, %v19207_v14  ;;  %v6702_v9 = vrot.slane %v6687_v10, %v19207_v14  ;;  %v6716_v24 = vrot.slane %v6688_v52, %v19207_v14  ;;  %v6817_v46 = vrot.slane %v6808_v33, %v19207_v14 }
 0x48d   :  { %v15717_v12 = vrot.slane %v6768_v31, %v19207_v14  ;;  %v15721_v59 = vcombine.high %v15707_v44, %v15707_v44  ;;  %v6793_v1 = vunpack.i.h.s16 %v15707_v44  ;;  %v10743_v43 = vpack.i.b16 %v15707_v44, %v15647_v23 }
 0x48e   :  { %v6717_v41 = vcombine.low %v6695_v5, %v6709_v18  ;;  %v6718_v21 = vcombine.low %v6702_v9, %v6716_v24  ;;  %v15728_v45 = vpack.i.b16 %v15704_v15, %v7317_v63 }
 0x48f   :  { %v15732_v48 = vcombine.high %v15717_v12, %v15717_v12  ;;  %v6804_v19 = vpack.i.b16 %v6793_v1, %v6799_v57  ;;  %v6810_v0 = vcombine.low %v15717_v12, %v15721_v59  ;;  %v6795_v6 = vunpack.i.h.s16 %v15717_v12 }
 0x490   :  { %v10748_v39 = vpack.c.bf16 %v6718_v21, %v6717_v41  ;;  %v19096_v20 = vunpack.i.h.s16 %v15721_v59  ;;  %v10744_v17 = vpack.i.b16 %v15717_v12, %v6793_v1  ;;  %v6969_v13 = vcombine.low %v15652_v35, %v10743_v43 }
 0x491   :  { %v6809_v30 = vcombine.low %v15672_v49, %v6804_v19  ;;  %v6831_v33 = vrot.slane %v6810_v0, %v19207_v14  ;;  %v6838_v60 = vrot.slane %v15732_v48, %v19207_v14  ;;  %v10745_v57 = vpack.i.b16 %v15721_v59, %v6795_v6 }
 0x492   :  { %v15746_v56 = vrot.slane %v10748_v39, %v19207_v14  ;;  %v15751_v10 = vpack.i.b16 %v15732_v48, %v19096_v20  ;;  %v15754_v52 = vrot.slane %v6969_v13, %v19207_v14  ;;  %v6800_v35 = vunpack.i.h.s16 %v15732_v48 }
 0x493   :  { %v6824_v31 = vrot.slane %v6809_v30, %v19207_v14  ;;  %v6841_v5 = vcombine.low %v6831_v33, %v6838_v60  ;;  %v6842_v9 = vcombine.high %v6831_v33, %v6838_v60  ;;  %v6970_v18 = vcombine.low %v10744_v17, %v10745_v57 }
 0x494   :  { %v15760_v24 = vrot.slane %v15746_v56, %v19207_v14  ;;  %v7165_v1 = vrot.slane %v7156_v2, %v19207_v14  ;;  %v15764_v43 = vrot.slane %v7322_v62, %v19207_v14  ;;  %v15770_v0 = vrot.slane %v15751_v10, %v19207_v14 }
 0x495   :  { %v6839_v21 = vcombine.low %v6817_v46, %v6824_v31  ;;  %v6840_v19 = vcombine.high %v6817_v46, %v6824_v31  ;;  %v7000_v39 = vcombine.high %v15710_v40, %v15754_v52  ;;  %v6870_v17 = vrot.slane %v6842_v9, %v19207_v14 }
 0x496   :  { %v6863_v13 = vrot.slane %v6841_v5, %v19207_v14  ;;  %v15777_v2 = vrot.slane %v6970_v18, %v19207_v14  ;;  %v10749_v62 = vpack.i.b16 %v15717_v12, %v15675_v50  ;;  %v15784_v33 = vpack.i.b16 %v15760_v24, %v6800_v35 }
 0x497   :  { %v6856_v30 = vrot.slane %v6840_v19, %v19207_v14  ;;  %v6849_v46 = vrot.slane %v6839_v21, %v19207_v14  ;;  %v7158_v60 = vcombine.low %v10745_v57, %v15751_v10  ;;  %v7320_v9 = vpack.i.b16 %v6795_v6, %v7317_v63 }
 0x498   :  { %v7002_v31 = vcombine.high %v15777_v2, %v15770_v0  ;;  %v7157_v5 = vcombine.low %v15647_v23, %v10749_v62  ;;  %v15791_v18 = vrot.slane %v10755_v54, %v19207_v14  ;;  %v7186_v21 = vrot.slane %v15784_v33, %v19207_v14 }
 0x499   :  { %v6872_v41 = vcombine.low %v6856_v30, %v6870_v17  ;;  %v6871_v20 = vcombine.low %v6849_v46, %v6863_v13  ;;  %v7179_v19 = vrot.slane %v7158_v60, %v19207_v14  ;;  %v7016_v35 = vrot.slane %v7000_v39, %v19207_v14  ;;  %v11796_v30 = vld [vmem:[%s19049_s3 + $0xe0] ss:$16 sps:$4 sm:$0xff]   ;;  %v11798_v60 = vld [vmem:[%s19049_s3 + $0xc4] ss:$16 sps:$4 sm:$0xff]  }
 0x49a   :  { %v7030_v57 = vrot.slane %v7002_v31, %v19207_v14  ;;  %v7172_v37 = vrot.slane %v7157_v5, %v19207_v14  ;;  %v7323_v51 = vcombine.low %v15689_v16, %v7320_v9  ;;  %v10752_v6 = vcombine.high %v15707_v44, %v15717_v12  ;;  %v11799_v31 = vld [vmem:[%s19049_s3 + $0xcc] ss:$16 sps:$4 sm:$0xff]  }
 0x49b   :  { %6907 = vmatprep.mubr.bf16.mxu0 %v6872_v41  ;;  %6950 = vmatprep.mubr.bf16.mxu1 %v6872_v41  ;;  %v7190_v63 = vcombine.high %v7179_v19, %v7186_v21  ;;  %v7189_v54 = vcombine.low %v7179_v19, %v7186_v21  ;;  %v19244_v39 = vcombine.low %v15672_v49, %v15689_v16  ;;  %v11797_v41 = vld [vmem:[%s19049_s3 + $0xe8] ss:$16 sps:$4 sm:$0xff]   ;;  %v7318_v5 = vunpack.i.h.s16 %v15760_v24 }
 0x49c   :  { %6908 = vmatmul.mubr.bf16.vlgmr.msra.gmra.mxu0 %v6871_v20  ;;  %6951 = vmatmul.mubr.bf16.vlgmr.msra.gmra.mxu1 %v6871_v20  ;;  %v7032_v17 = vcombine.low %v7016_v35, %v7030_v57  ;;  %v7188_v13 = vcombine.high %v7165_v1, %v7172_v37  ;;  %v7187_v12 = vcombine.low %v7165_v1, %v7172_v37  ;;  %v11800_v57 = vld [vmem:[%s19049_s3 + $0xc0] ss:$16 sps:$4 sm:$0xff]  }
 0x49d   :  { %v15806_v62 = vrot.slane %v19244_v39, %v19207_v14  ;;  %7036 = vmatpush1.bf16.msra.mxu0 %v11796_v30  ;;  %7079 = vmatpush1.bf16.msra.mxu1 %v11797_v41  ;;  %v7218_v44 = vrot.slane %v7190_v63, %v19207_v14  ;;  %v7211_v20 = vrot.slane %v7189_v54, %v19207_v14  ;;  %v11801_v63 = vld [vmem:[%s19049_s3 + $0xc8] ss:$16 sps:$4 sm:$0xff]   ;;  %v7665_v41 = vunpack.i.h.s16 %v15704_v15 }
 0x49e   :  { %7067 = vmatprep.mubr.bf16.mxu0 %v7032_v17  ;;  %7110 = vmatprep.mubr.bf16.mxu1 %v7032_v17  ;;  %v7204_v49 = vrot.slane %v7188_v13, %v19207_v14  ;;  %v7338_v16 = vrot.slane %v7323_v51, %v19207_v14  ;;  %v7345_v46 = vrot.slane %v10752_v6, %v19207_v14  ;;  %v11803_v17 = vld [vmem:[%s19049_s3 + $0xac] ss:$16 sps:$4 sm:$0xff]  }
 0x49f   :  { %7037 = vmatprep.subr.bf16.mxu0 %v11798_v60  ;;  %7080 = vmatprep.subr.bf16.mxu1 %v11799_v31  ;;  %v7197_v37 = vrot.slane %v7187_v12, %v19207_v14  ;;  %v7352_v1 = vrot.slane %v15760_v24, %v19207_v14  ;;  %v7491_v51 = vcombine.high %v15746_v56, %v15746_v56 }
 0x4a0   :  { %v15831_v9 = vcombine.low %v7204_v49, %v7218_v44  ;;  %v7354_v19 = vcombine.high %v15764_v43, %v7338_v16  ;;  %v7353_v21 = vcombine.low %v15764_v43, %v7338_v16  ;;  %v10753_v35 = vpack.i.b16 %v15721_v59, %v15704_v15  ;;  %v11802_v43 = vld [vmem:[%s19049_s3 + $0xa4] ss:$16 sps:$4 sm:$0xff]  }
 0x4a1   :  { %7038 = vmatpush1.bf16.msra.mxu0 %v11800_v57  ;;  %7081 = vmatpush1.bf16.msra.mxu1 %v11801_v63  ;;  %v15843_v56 = vcombine.low %v7197_v37, %v7211_v20  ;;  %v7356_v54 = vcombine.high %v7345_v46, %v7352_v1  ;;  %v7355_v6 = vcombine.low %v7345_v46, %v7352_v1  ;;  %v19245_v46 = vunpack.i.h.s16 %v15721_v59  ;;  %v11804_v1 = vld [vmem:[%s19049_s3 + $0xa0] ss:$16 sps:$4 sm:$0xff]  }
 0x4a2   :  { %7039 = vmatprep.subr.bf16.mxu0 %v11802_v43  ;;  %7082 = vmatprep.subr.bf16.mxu1 %v11803_v17  ;;  %v7370_v13 = vrot.slane %v7354_v19, %v19207_v14  ;;  %v7363_v39 = vrot.slane %v7353_v21, %v19207_v14  ;;  %v7498_v30 = vrot.slane %v7491_v51, %v19207_v14  ;;  %v11805_v51 = vld [vmem:[%s19049_s3 + $0xa8] ss:$16 sps:$4 sm:$0xff]   ;;  %v11806_v19 = vld [vmem:[%s19049_s3 + $0x84] ss:$16 sps:$4 sm:$0xff]   ;;  %v11807_v21 = vld [vmem:[%s19049_s3 + $0x8c] ss:$16 sps:$4 sm:$0xff]  }
 0x4a3   :  { %v7384_v44 = vrot.slane %v7356_v54, %v19207_v14  ;;  %v7377_v12 = vrot.slane %v7355_v6, %v19207_v14  ;;  %v7505_v20 = vcombine.low %v15675_v50, %v10753_v35  ;;  %v7506_v49 = vcombine.low %v15751_v10, %v15784_v33 }
 0x4a4   :  { %v15860_v16 = vpack.i.b16 %v7498_v30, %v7318_v5  ;;  %v7668_v60 = vpack.i.b16 %v19245_v46, %v7665_v41  ;;  %v7672_v31 = vcombine.low %v15732_v48, %v15760_v24  ;;  %v7700_v37 = vrot.slane %v7498_v30, %v19207_v14  ;;  %v11810_v46 = vld [vmem:[%s19049_s3 + $0x64] ss:$16 sps:$4 sm:$0xff]  }
 0x4a5   :  { %7040 = vmatpush1.bf16.msra.mxu0 %v11804_v1  ;;  %7083 = vmatpush1.bf16.msra.mxu1 %v11805_v51  ;;  %v15873_v10 = vcombine.low %v7370_v13, %v7384_v44  ;;  %v15875_v5 = vcombine.low %v7363_v39, %v7377_v12  ;;  %v7520_v59 = vrot.slane %v7505_v20, %v19207_v14  ;;  %v7666_v54 = vunpack.i.h.s16 %v7498_v30 }
 0x4a6   :  { %7041 = vmatprep.subr.bf16.mxu0 %v11806_v19  ;;  %7084 = vmatprep.subr.bf16.mxu1 %v11807_v21  ;;  %v7527_v35 = vrot.slane %v7506_v49, %v19207_v14  ;;  %v7534_v57 = vrot.slane %v15860_v16, %v19207_v14  ;;  %v7671_v63 = vcombine.low %v15728_v45, %v7668_v60  ;;  %v11808_v45 = vld [vmem:[%s19049_s3 + $0x80] ss:$16 sps:$4 sm:$0xff]  }
 0x4a7   :  { %v7536_v6 = vcombine.high %v15791_v18, %v7520_v59  ;;  %v7535_v43 = vcombine.low %v15791_v18, %v7520_v59  ;;  %v7693_v17 = vrot.slane %v7672_v31, %v19207_v14  ;;  %v7832_v13 = vcombine.high %v15760_v24, %v15760_v24  ;;  %v11809_v18 = vld [vmem:[%s19049_s3 + $0x88] ss:$16 sps:$4 sm:$0xff]  }
 0x4a8   :  { %v7538_v39 = vcombine.high %v7527_v35, %v7534_v57  ;;  %v7537_v41 = vcombine.low %v7527_v35, %v7534_v57  ;;  %v7686_v44 = vrot.slane %v7671_v63, %v19207_v14  ;;  %v19246_v12 = vcombine.high %v15675_v50, %v15675_v50 }
 0x4a9   :  { %7042 = vmatpush1.bf16.msra.mxu0 %v11808_v45  ;;  %7085 = vmatpush1.bf16.msra.mxu1 %v11809_v18  ;;  %v7552_v24 = vrot.slane %v7536_v6, %v19207_v14  ;;  %v7545_v30 = vrot.slane %v7535_v43, %v19207_v14  ;;  %v7704_v49 = vcombine.high %v7693_v17, %v7700_v37  ;;  %v11812_v43 = vld [vmem:[%s19049_s3 + $0x60] ss:$16 sps:$4 sm:$0xff]   ;;  %v11817_v18 = vld [vmem:[%s19049_s3 + $0x48] ss:$16 sps:$4 sm:$0xff]  }
 0x4aa   :  { %v10757_v20 = vpack.i.b16 %v15732_v48, %v19246_v12  ;;  %7043 = vmatprep.subr.bf16.mxu0 %v11810_v46  ;;  %v11811_v48 = vld [vmem:[%s19049_s3 + $0x6c] ss:$16 sps:$4 sm:$0xff]   ;;  %v7566_v60 = vrot.slane %v7538_v39, %v19207_v14  ;;  %v7559_v31 = vrot.slane %v7537_v41, %v19207_v14  ;;  %v7702_v1 = vcombine.high %v15806_v62, %v7686_v44  ;;  %v11816_v45 = vld [vmem:[%s19049_s3 + $0x40] ss:$16 sps:$4 sm:$0xff]  }
 0x4ab   :  { %7086 = vmatprep.subr.bf16.mxu1 %v11811_v48  ;;  %v7732_v51 = vrot.slane %v7704_v49, %v19207_v14  ;;  %v7701_v59 = vcombine.low %v15806_v62, %v7686_v44  ;;  %v7703_v19 = vcombine.low %v7693_v17, %v7700_v37  ;;  %v10758_v21 = vpack.i.b16 %v7832_v13, %v7666_v54  ;;  %v11813_v62 = vld [vmem:[%s19049_s3 + $0x68] ss:$16 sps:$4 sm:$0xff]  }
 0x4ac   :  { %v15917_v35 = vcombine.low %v7552_v24, %v7566_v60  ;;  %v15919_v57 = vcombine.low %v7545_v30, %v7559_v31  ;;  %v7718_v63 = vrot.slane %v7702_v1, %v19207_v14  ;;  %v7838_v6 = vcombine.low %v15647_v23, %v15675_v50  ;;  %v11814_v23 = vld [vmem:[%s19049_s3 + $0x44] ss:$16 sps:$4 sm:$0xff]   ;;  %v11815_v50 = vld [vmem:[%s19049_s3 + $0x4c] ss:$16 sps:$4 sm:$0xff]  }
 0x4ad   :  { %7044 = vmatpush1.bf16.msra.mxu0 %v11812_v43  ;;  %7087 = vmatpush1.bf16.msra.mxu1 %v11813_v62  ;;  %v7711_v37 = vrot.slane %v7701_v59, %v19207_v14  ;;  %v7725_v54 = vrot.slane %v7703_v19, %v19207_v14  ;;  %v7839_v17 = vcombine.low %v15704_v15, %v10757_v20  ;;  %v11818_v24 = vld [vmem:[%s19049_s3 + $0x24] ss:$16 sps:$4 sm:$0xff]   ;;  %v11819_v30 = vld [vmem:[%s19049_s3 + $0x2c] ss:$16 sps:$4 sm:$0xff]   ;;  %v11821_v59 = vld [vmem:[%s19049_s3 + $0x28] ss:$16 sps:$4 sm:$0xff]  }
 0x4ae   :  { %7045 = vmatprep.subr.bf16.mxu0 %v11814_v23  ;;  %7088 = vmatprep.subr.bf16.mxu1 %v11815_v50  ;;  %v15939_v13 = vcombine.low %v7718_v63, %v7732_v51  ;;  %v7840_v39 = vcombine.low %v15784_v33, %v15860_v16  ;;  %v7847_v44 = vrot.slane %v7838_v6, %v19207_v14  ;;  %v11820_v51 = vld [vmem:[%s19049_s3 + $0x20] ss:$16 sps:$4 sm:$0xff]   ;;  %v11822_v19 = vld [vmem:[%s19049_s3 + $0x4] ss:$16 sps:$4 sm:$0xff]   ;;  %v11825_v62 = vld [vmem:[%s19049_s3 + $0x8] ss:$16 sps:$4 sm:$0xff]  }
 0x4af   :  { %v15943_v41 = vcombine.low %v7711_v37, %v7725_v54  ;;  %v7854_v15 = vrot.slane %v7839_v17, %v19207_v14  ;;  %v7868_v20 = vrot.slane %v10758_v21, %v19207_v14  ;;  %v11823_v21 = vld [vmem:[%s19049_s3 + $0xc] ss:$16 sps:$4 sm:$0xff]   ;;  %v11824_v43 = vld [vmem:[%s19049_s3] ss:$16 sps:$4 sm:$0xff]   ;;  %v11826_v37 = vld [vmem:[%s19049_s3 + $0x1e4] ss:$16 sps:$4 sm:$0xff]  }
 0x4b0   :  { %v7861_v12 = vrot.slane %v7840_v39, %v19207_v14  ;;  %v11827_v54 = vld [vmem:[%s19049_s3 + $0x1ec] ss:$16 sps:$4 sm:$0xff]   ;;  %v11828_v17 = vld [vmem:[%s19049_s3 + $0x1e0] ss:$16 sps:$4 sm:$0xff]   ;;  %v11829_v23 = vld [vmem:[%s19049_s3 + $0x1e8] ss:$16 sps:$4 sm:$0xff]  }
 0x4b1   :  { %7046 = vmatpush1.bf16.msra.mxu0 %v11816_v45  ;;  %7089 = vmatpush1.bf16.msra.mxu1 %v11817_v18  ;;  %v7870_v33 = vcombine.high %v7847_v44, %v7854_v15  ;;  %v7869_v16 = vcombine.low %v7847_v44, %v7854_v15  ;;  %v11830_v50 = vld [vmem:[%s19049_s3 + $0x1c4] ss:$16 sps:$4 sm:$0xff]   ;;  %v11831_v39 = vld [vmem:[%s19049_s3 + $0x1cc] ss:$16 sps:$4 sm:$0xff]   ;;  %v11832_v44 = vld [vmem:[%s19049_s3 + $0x1c0] ss:$16 sps:$4 sm:$0xff]  }
 0x4b2   :  { %7047 = vmatprep.subr.bf16.mxu0 %v11818_v24  ;;  %7090 = vmatprep.subr.bf16.mxu1 %v11819_v30  ;;  %v7872_v49 = vcombine.high %v7861_v12, %v7868_v20  ;;  %v7871_v46 = vcombine.low %v7861_v12, %v7868_v20  ;;  %v11833_v15 = vld [vmem:[%s19049_s3 + $0x1c8] ss:$16 sps:$4 sm:$0xff]   ;;  %v11834_v12 = vld [vmem:[%s19049_s3 + $0x1a4] ss:$16 sps:$4 sm:$0xff]   ;;  %v11835_v20 = vld [vmem:[%s19049_s3 + $0x1ac] ss:$16 sps:$4 sm:$0xff]  }
 0x4b3   :  { %v7886_v48 = vrot.slane %v7870_v33, %v19207_v14  ;;  %v7879_v31 = vrot.slane %v7869_v16, %v19207_v14  ;;  %v11836_v45 = vld [vmem:[%s19049_s3 + $0x1a0] ss:$16 sps:$4 sm:$0xff]   ;;  %v11837_v18 = vld [vmem:[%s19049_s3 + $0x1a8] ss:$16 sps:$4 sm:$0xff]   ;;  %v11838_v33 = vld [vmem:[%s19049_s3 + $0x184] ss:$16 sps:$4 sm:$0xff]  }
 0x4b4   :  { %v7900_v60 = vrot.slane %v7872_v49, %v19207_v14  ;;  %v7893_v1 = vrot.slane %v7871_v46, %v19207_v14  ;;  %v11839_v16 = vld [vmem:[%s19049_s3 + $0x18c] ss:$16 sps:$4 sm:$0xff]   ;;  %v11840_v24 = vld [vmem:[%s19049_s3 + $0x180] ss:$16 sps:$4 sm:$0xff]   ;;  %v11841_v30 = vld [vmem:[%s19049_s3 + $0x188] ss:$16 sps:$4 sm:$0xff]  }
 0x4b5   :  { %7048 = vmatpush1.bf16.msra.mxu0 %v11820_v51  ;;  %7091 = vmatpush1.bf16.msra.mxu1 %v11821_v59  ;;  %v11842_v49 = vld [vmem:[%s19049_s3 + $0x164] ss:$16 sps:$4 sm:$0xff]   ;;  %v11843_v46 = vld [vmem:[%s19049_s3 + $0x16c] ss:$16 sps:$4 sm:$0xff]   ;;  %v11848_v51 = vld [vmem:[%s19049_s3 + $0x140] ss:$16 sps:$4 sm:$0xff]  }
 0x4b6   :  { %7049 = vmatprep.subr.bf16.mxu0 %v11822_v19  ;;  %7092 = vmatprep.subr.bf16.mxu1 %v11823_v21  ;;  %v15977_v63 = vcombine.low %v7886_v48, %v7900_v60  ;;  %v15979_v6 = vcombine.low %v7879_v31, %v7893_v1  ;;  %v11844_v48 = vld [vmem:[%s19049_s3 + $0x160] ss:$16 sps:$4 sm:$0xff]   ;;  %v11845_v60 = vld [vmem:[%s19049_s3 + $0x168] ss:$16 sps:$4 sm:$0xff]   ;;  %v11846_v31 = vld [vmem:[%s19049_s3 + $0x144] ss:$16 sps:$4 sm:$0xff]  }
 0x4b7   :  { %v11847_v1 = vld [vmem:[%s19049_s3 + $0x14c] ss:$16 sps:$4 sm:$0xff]   ;;  %v11849_v59 = vld [vmem:[%s19049_s3 + $0x148] ss:$16 sps:$4 sm:$0xff]   ;;  %v11850_v19 = vld [vmem:[%s19049_s3 + $0x124] ss:$16 sps:$4 sm:$0xff]  }
 0x4b8   :  { %v11851_v21 = vld [vmem:[%s19049_s3 + $0x12c] ss:$16 sps:$4 sm:$0xff]  }
 0x4b9   :  { %7050 = vmatpush1.bf16.msra.mxu0 %v11824_v43  ;;  %7093 = vmatpush1.bf16.msra.mxu1 %v11825_v62  ;;  %v7001_v43 = vcombine.low %v15777_v2, %v15770_v0  ;;  %v6999_v62 = vcombine.low %v15710_v40, %v15754_v52  ;;  %v11855_v0 = vld [vmem:[%s19049_s3 + $0x10c] ss:$16 sps:$4 sm:$0xff]   ;;  %v11856_v2 = vld [vmem:[%s19049_s3 + $0x100] ss:$16 sps:$4 sm:$0xff]  }
 0x4ba   :  { %7051 = vmatprep.subr.bf16.mxu0 %v11826_v37  ;;  %7094 = vmatprep.subr.bf16.mxu1 %v11827_v54  ;;  %v11852_v37 = vld [vmem:[%s19049_s3 + $0x120] ss:$16 sps:$4 sm:$0xff]   ;;  %v11853_v54 = vld [vmem:[%s19049_s3 + $0x128] ss:$16 sps:$4 sm:$0xff]  }
 0x4bb   :  { %v7023_v40 = vrot.slane %v7001_v43, %v19207_v14  ;;  %v7009_v52 = vrot.slane %v6999_v62, %v19207_v14  ;;  %v11880_v43 = vld [vmem:[%s19049_s3 + $0x440] ss:$16 sps:$4 sm:$0xff]   ;;  %v11881_v62 = vld [vmem:[%s19049_s3 + $0x448] ss:$16 sps:$4 sm:$0xff]  }
 0x4bd   :  { %7052 = vmatpush2.bf16.msra.mxu0 %v11828_v17  ;;  %7095 = vmatpush2.bf16.msra.mxu1 %v11829_v23  ;;  %v11854_v17 = vld [vmem:[%s19049_s3 + $0x104] ss:$16 sps:$4 sm:$0xff]   ;;  %v11857_v23 = vld [vmem:[%s19049_s3 + $0x108] ss:$16 sps:$4 sm:$0xff]  }
 0x4be   :  { %7053 = vmatprep.subr.bf16.mxu0 %v11830_v50  ;;  %7096 = vmatprep.subr.bf16.mxu1 %v11831_v39  ;;  %v7031_v50 = vcombine.low %v7009_v52, %v7023_v40  ;;  %v11858_v39 = vld [vmem:[%s19049_s3 + $0x4e4] ss:$16 sps:$4 sm:$0xff]   ;;  %v11887_v52 = vld [vmem:[%s19049_s3 + $0x40c] ss:$16 sps:$4 sm:$0xff]  }
 0x4bf   :  { %v11886_v40 = vld [vmem:[%s19049_s3 + $0x404] ss:$16 sps:$4 sm:$0xff]  }
 0x4c1   :  { %7054 = vmatpush2.bf16.msra.mxu0 %v11832_v44  ;;  %7097 = vmatpush2.bf16.msra.mxu1 %v11833_v15  ;;  %v11859_v44 = vld [vmem:[%s19049_s3 + $0x4ec] ss:$16 sps:$4 sm:$0xff]   ;;  %v11860_v15 = vld [vmem:[%s19049_s3 + $0x4e0] ss:$16 sps:$4 sm:$0xff]  }
 0x4c2   :  { %7055 = vmatprep.subr.bf16.mxu0 %v11834_v12  ;;  %7098 = vmatprep.subr.bf16.mxu1 %v11835_v20  ;;  %v11861_v12 = vld [vmem:[%s19049_s3 + $0x4e8] ss:$16 sps:$4 sm:$0xff]   ;;  %v11862_v20 = vld [vmem:[%s19049_s3 + $0x4c4] ss:$16 sps:$4 sm:$0xff]  }
 0x4c5   :  { %7056 = vmatpush2.bf16.msra.mxu0 %v11836_v45  ;;  %7099 = vmatpush2.bf16.msra.mxu1 %v11837_v18  ;;  %v11863_v45 = vld [vmem:[%s19049_s3 + $0x4cc] ss:$16 sps:$4 sm:$0xff]   ;;  %v11864_v18 = vld [vmem:[%s19049_s3 + $0x4c0] ss:$16 sps:$4 sm:$0xff]  }
 0x4c6   :  { %7057 = vmatprep.subr.bf16.mxu0 %v11838_v33  ;;  %7100 = vmatprep.subr.bf16.mxu1 %v11839_v16  ;;  %v11865_v33 = vld [vmem:[%s19049_s3 + $0x4c8] ss:$16 sps:$4 sm:$0xff]   ;;  %v11867_v16 = vld [vmem:[%s19049_s3 + $0x4ac] ss:$16 sps:$4 sm:$0xff]  }
 0x4c9   :  { %7058 = vmatpush2.bf16.msra.mxu0 %v11840_v24  ;;  %7101 = vmatpush2.bf16.msra.mxu1 %v11841_v30  ;;  %v11868_v24 = vld [vmem:[%s19049_s3 + $0x4a0] ss:$16 sps:$4 sm:$0xff]   ;;  %v11869_v30 = vld [vmem:[%s19049_s3 + $0x4a8] ss:$16 sps:$4 sm:$0xff]  }
 0x4ca   :  { %7059 = vmatprep.subr.bf16.mxu0 %v11842_v49  ;;  %7102 = vmatprep.subr.bf16.mxu1 %v11843_v46  ;;  %v11870_v49 = vld [vmem:[%s19049_s3 + $0x484] ss:$16 sps:$4 sm:$0xff]   ;;  %v11871_v46 = vld [vmem:[%s19049_s3 + $0x48c] ss:$16 sps:$4 sm:$0xff]  }
 0x4cd   :  { %7060 = vmatpush2.bf16.msra.mxu0 %v11844_v48  ;;  %7103 = vmatpush2.bf16.msra.mxu1 %v11845_v60  ;;  %v11872_v48 = vld [vmem:[%s19049_s3 + $0x480] ss:$16 sps:$4 sm:$0xff]   ;;  %v11873_v60 = vld [vmem:[%s19049_s3 + $0x488] ss:$16 sps:$4 sm:$0xff]  }
 0x4ce   :  { %7061 = vmatprep.subr.bf16.mxu0 %v11846_v31  ;;  %7104 = vmatprep.subr.bf16.mxu1 %v11847_v1  ;;  %v11874_v31 = vld [vmem:[%s19049_s3 + $0x464] ss:$16 sps:$4 sm:$0xff]   ;;  %v11875_v1 = vld [vmem:[%s19049_s3 + $0x46c] ss:$16 sps:$4 sm:$0xff]  }
 0x4d1   :  { %7062 = vmatpush2.bf16.msra.mxu0 %v11848_v51  ;;  %7105 = vmatpush2.bf16.msra.mxu1 %v11849_v59  ;;  %v11876_v51 = vld [vmem:[%s19049_s3 + $0x460] ss:$16 sps:$4 sm:$0xff]   ;;  %v11877_v59 = vld [vmem:[%s19049_s3 + $0x468] ss:$16 sps:$4 sm:$0xff]  }
 0x4d2   :  { %7063 = vmatprep.subr.bf16.mxu0 %v11850_v19  ;;  %7106 = vmatprep.subr.bf16.mxu1 %v11851_v21  ;;  %v11878_v19 = vld [vmem:[%s19049_s3 + $0x444] ss:$16 sps:$4 sm:$0xff]   ;;  %v11879_v21 = vld [vmem:[%s19049_s3 + $0x44c] ss:$16 sps:$4 sm:$0xff]  }
 0x4d5   :  { %7064 = vmatpush2.bf16.msra.mxu0 %v11852_v37  ;;  %7107 = vmatpush2.bf16.msra.mxu1 %v11853_v54  ;;  %v11882_v37 = vld [vmem:[%s19049_s3 + $0x424] ss:$16 sps:$4 sm:$0xff]   ;;  %v11883_v54 = vld [vmem:[%s19049_s3 + $0x42c] ss:$16 sps:$4 sm:$0xff]  }
 0x4d6   :  { %7065 = vmatprep.subr.bf16.mxu0 %v11854_v17  ;;  %7108 = vmatprep.subr.bf16.mxu1 %v11855_v0  ;;  %v11884_v17 = vld [vmem:[%s19049_s3 + $0x420] ss:$16 sps:$4 sm:$0xff]   ;;  %v11885_v0 = vld [vmem:[%s19049_s3 + $0x428] ss:$16 sps:$4 sm:$0xff]  }
 0x4d9   :  { %7066 = vmatpush2.bf16.msra.mxu0 %v11856_v2  ;;  %7109 = vmatpush2.bf16.msra.mxu1 %v11857_v23  ;;  %v11888_v2 = vld [vmem:[%s19049_s3 + $0x400] ss:$16 sps:$4 sm:$0xff]   ;;  %v11889_v23 = vld [vmem:[%s19049_s3 + $0x408] ss:$16 sps:$4 sm:$0xff]  }
 0x4da   :  { %7223 = vmatprep.subr.bf16.mxu0 %v11858_v39  ;;  %7266 = vmatprep.subr.bf16.mxu1 %v11859_v44  ;;  %v11891_v39 = vld [vmem:[%s19049_s3 + $0x5ec] ss:$16 sps:$4 sm:$0xff]   ;;  %v11892_v44 = vld [vmem:[%s19049_s3 + $0x5e0] ss:$16 sps:$4 sm:$0xff]  }
 0x4dc   :  { %7068 = vmatmul.mubr.bf16.vlgmr.msra.gmra.mxu0 %v7031_v50  ;;  %7111 = vmatmul.mubr.bf16.vlgmr.msra.gmra.mxu1 %v7031_v50  ;;  %v11890_v50 = vld [vmem:[%s19049_s3 + $0x5e4] ss:$16 sps:$4 sm:$0xff]  }
 0x4dd   :  { %7224 = vmatpush1.bf16.msra.mxu0 %v11860_v15  ;;  %7255 = vmatprep.mubr.bf16.mxu0 %v15831_v9  ;;  %v11893_v15 = vld [vmem:[%s19049_s3 + $0x5e8] ss:$16 sps:$4 sm:$0xff]  }
 0x4de   :  { %7267 = vmatpush1.bf16.msra.mxu1 %v11861_v12  ;;  %7298 = vmatprep.mubr.bf16.mxu1 %v15831_v9  ;;  %v11866_v9 = vld [vmem:[%s19049_s3 + $0x4a4] ss:$16 sps:$4 sm:$0xff]  }
 0x4df   :  { %7225 = vmatprep.subr.bf16.mxu0 %v11862_v20  ;;  %7268 = vmatprep.subr.bf16.mxu1 %v11863_v45  ;;  %v11894_v12 = vld [vmem:[%s19049_s3 + $0x5c4] ss:$16 sps:$4 sm:$0xff]   ;;  %v11895_v20 = vld [vmem:[%s19049_s3 + $0x5cc] ss:$16 sps:$4 sm:$0xff]   ;;  %v11896_v45 = vld [vmem:[%s19049_s3 + $0x5c0] ss:$16 sps:$4 sm:$0xff]  }
 0x4e1   :  { %7226 = vmatpush1.bf16.msra.mxu0 %v11864_v18  ;;  %v11897_v18 = vld [vmem:[%s19049_s3 + $0x5c8] ss:$16 sps:$4 sm:$0xff]  }
 0x4e2   :  { %7269 = vmatpush1.bf16.msra.mxu1 %v11865_v33  ;;  %7227 = vmatprep.subr.bf16.mxu0 %v11866_v9  ;;  %v11898_v33 = vld [vmem:[%s19049_s3 + $0x5a4] ss:$16 sps:$4 sm:$0xff]   ;;  %v11899_v9 = vld [vmem:[%s19049_s3 + $0x5ac] ss:$16 sps:$4 sm:$0xff]  }
 0x4e3   :  { %7270 = vmatprep.subr.bf16.mxu1 %v11867_v16  ;;  %v11900_v16 = vld [vmem:[%s19049_s3 + $0x5a0] ss:$16 sps:$4 sm:$0xff]  }
 0x4e5   :  { %7228 = vmatpush1.bf16.msra.mxu0 %v11868_v24  ;;  %v11901_v24 = vld [vmem:[%s19049_s3 + $0x5a8] ss:$16 sps:$4 sm:$0xff]  }
 0x4e6   :  { %7271 = vmatpush1.bf16.msra.mxu1 %v11869_v30  ;;  %7229 = vmatprep.subr.bf16.mxu0 %v11870_v49  ;;  %v11902_v30 = vld [vmem:[%s19049_s3 + $0x584] ss:$16 sps:$4 sm:$0xff]   ;;  %v11903_v49 = vld [vmem:[%s19049_s3 + $0x58c] ss:$16 sps:$4 sm:$0xff]  }
 0x4e7   :  { %7272 = vmatprep.subr.bf16.mxu1 %v11871_v46  ;;  %v11904_v46 = vld [vmem:[%s19049_s3 + $0x580] ss:$16 sps:$4 sm:$0xff]  }
 0x4e9   :  { %7230 = vmatpush1.bf16.msra.mxu0 %v11872_v48  ;;  %v11905_v48 = vld [vmem:[%s19049_s3 + $0x588] ss:$16 sps:$4 sm:$0xff]  }
 0x4ea   :  { %7273 = vmatpush1.bf16.msra.mxu1 %v11873_v60  ;;  %7231 = vmatprep.subr.bf16.mxu0 %v11874_v31  ;;  %v11906_v60 = vld [vmem:[%s19049_s3 + $0x564] ss:$16 sps:$4 sm:$0xff]   ;;  %v11907_v31 = vld [vmem:[%s19049_s3 + $0x56c] ss:$16 sps:$4 sm:$0xff]  }
 0x4eb   :  { %7274 = vmatprep.subr.bf16.mxu1 %v11875_v1  ;;  %v11908_v1 = vld [vmem:[%s19049_s3 + $0x560] ss:$16 sps:$4 sm:$0xff]  }
 0x4ed   :  { %7232 = vmatpush1.bf16.msra.mxu0 %v11876_v51  ;;  %v11909_v51 = vld [vmem:[%s19049_s3 + $0x568] ss:$16 sps:$4 sm:$0xff]  }
 0x4ee   :  { %7275 = vmatpush1.bf16.msra.mxu1 %v11877_v59  ;;  %7233 = vmatprep.subr.bf16.mxu0 %v11878_v19  ;;  %v11910_v59 = vld [vmem:[%s19049_s3 + $0x544] ss:$16 sps:$4 sm:$0xff]   ;;  %v11911_v19 = vld [vmem:[%s19049_s3 + $0x54c] ss:$16 sps:$4 sm:$0xff]  }
 0x4ef   :  { %7276 = vmatprep.subr.bf16.mxu1 %v11879_v21  ;;  %v11912_v21 = vld [vmem:[%s19049_s3 + $0x540] ss:$16 sps:$4 sm:$0xff]  }
 0x4f1   :  { %7234 = vmatpush1.bf16.msra.mxu0 %v11880_v43  ;;  %v11913_v43 = vld [vmem:[%s19049_s3 + $0x548] ss:$16 sps:$4 sm:$0xff]  }
 0x4f2   :  { %7277 = vmatpush1.bf16.msra.mxu1 %v11881_v62  ;;  %7235 = vmatprep.subr.bf16.mxu0 %v11882_v37  ;;  %v11914_v62 = vld [vmem:[%s19049_s3 + $0x524] ss:$16 sps:$4 sm:$0xff]   ;;  %v11915_v37 = vld [vmem:[%s19049_s3 + $0x52c] ss:$16 sps:$4 sm:$0xff]  }
 0x4f3   :  { %7278 = vmatprep.subr.bf16.mxu1 %v11883_v54  ;;  %v11916_v54 = vld [vmem:[%s19049_s3 + $0x520] ss:$16 sps:$4 sm:$0xff]  }
 0x4f5   :  { %7236 = vmatpush1.bf16.msra.mxu0 %v11884_v17  ;;  %v11917_v17 = vld [vmem:[%s19049_s3 + $0x528] ss:$16 sps:$4 sm:$0xff]  }
 0x4f6   :  { %7279 = vmatpush1.bf16.msra.mxu1 %v11885_v0  ;;  %7237 = vmatprep.subr.bf16.mxu0 %v11886_v40  ;;  %v11918_v0 = vld [vmem:[%s19049_s3 + $0x504] ss:$16 sps:$4 sm:$0xff]   ;;  %v11919_v40 = vld [vmem:[%s19049_s3 + $0x50c] ss:$16 sps:$4 sm:$0xff]  }
 0x4f7   :  { %7280 = vmatprep.subr.bf16.mxu1 %v11887_v52  ;;  %v11920_v52 = vld [vmem:[%s19049_s3 + $0x500] ss:$16 sps:$4 sm:$0xff]  }
 0x4f9   :  { %7238 = vmatpush1.bf16.msra.mxu0 %v11888_v2  ;;  %v11921_v2 = vld [vmem:[%s19049_s3 + $0x508] ss:$16 sps:$4 sm:$0xff]  }
 0x4fa   :  { %7281 = vmatpush1.bf16.msra.mxu1 %v11889_v23  ;;  %7239 = vmatprep.subr.bf16.mxu0 %v11890_v50  ;;  %v11922_v23 = vld [vmem:[%s19049_s3 + $0x6e4] ss:$16 sps:$4 sm:$0xff]   ;;  %v11923_v50 = vld [vmem:[%s19049_s3 + $0x6ec] ss:$16 sps:$4 sm:$0xff]  }
 0x4fb   :  { %7282 = vmatprep.subr.bf16.mxu1 %v11891_v39  ;;  %v11924_v39 = vld [vmem:[%s19049_s3 + $0x6e0] ss:$16 sps:$4 sm:$0xff]  }
 0x4fd   :  { %7240 = vmatpush2.bf16.msra.mxu0 %v11892_v44  ;;  %v11925_v44 = vld [vmem:[%s19049_s3 + $0x6e8] ss:$16 sps:$4 sm:$0xff]  }
 0x4fe   :  { %7283 = vmatpush2.bf16.msra.mxu1 %v11893_v15  ;;  %7241 = vmatprep.subr.bf16.mxu0 %v11894_v12  ;;  %v11926_v15 = vld [vmem:[%s19049_s3 + $0x6c4] ss:$16 sps:$4 sm:$0xff]   ;;  %v11928_v12 = vld [vmem:[%s19049_s3 + $0x6c0] ss:$16 sps:$4 sm:$0xff]  }
 0x4ff   :  { %7284 = vmatprep.subr.bf16.mxu1 %v11895_v20  ;;  %v11929_v20 = vld [vmem:[%s19049_s3 + $0x6c8] ss:$16 sps:$4 sm:$0xff]  }
 0x501   :  { %7242 = vmatpush2.bf16.msra.mxu0 %v11896_v45  ;;  %v11931_v45 = vld [vmem:[%s19049_s3 + $0x6ac] ss:$16 sps:$4 sm:$0xff]  }
 0x502   :  { %7285 = vmatpush2.bf16.msra.mxu1 %v11897_v18  ;;  %7243 = vmatprep.subr.bf16.mxu0 %v11898_v33  ;;  %v11932_v18 = vld [vmem:[%s19049_s3 + $0x6a0] ss:$16 sps:$4 sm:$0xff]   ;;  %v11933_v33 = vld [vmem:[%s19049_s3 + $0x6a8] ss:$16 sps:$4 sm:$0xff]  }
 0x503   :  { %7286 = vmatprep.subr.bf16.mxu1 %v11899_v9  ;;  %v11934_v9 = vld [vmem:[%s19049_s3 + $0x684] ss:$16 sps:$4 sm:$0xff]  }
 0x505   :  { %7244 = vmatpush2.bf16.msra.mxu0 %v11900_v16  ;;  %v11935_v16 = vld [vmem:[%s19049_s3 + $0x68c] ss:$16 sps:$4 sm:$0xff]  }
 0x506   :  { %7287 = vmatpush2.bf16.msra.mxu1 %v11901_v24  ;;  %7245 = vmatprep.subr.bf16.mxu0 %v11902_v30  ;;  %v11936_v24 = vld [vmem:[%s19049_s3 + $0x680] ss:$16 sps:$4 sm:$0xff]   ;;  %v11937_v30 = vld [vmem:[%s19049_s3 + $0x688] ss:$16 sps:$4 sm:$0xff]  }
 0x507   :  { %7288 = vmatprep.subr.bf16.mxu1 %v11903_v49  ;;  %v11938_v49 = vld [vmem:[%s19049_s3 + $0x664] ss:$16 sps:$4 sm:$0xff]  }
 0x509   :  { %7246 = vmatpush2.bf16.msra.mxu0 %v11904_v46  ;;  %v11939_v46 = vld [vmem:[%s19049_s3 + $0x66c] ss:$16 sps:$4 sm:$0xff]  }
 0x50a   :  { %7289 = vmatpush2.bf16.msra.mxu1 %v11905_v48  ;;  %7247 = vmatprep.subr.bf16.mxu0 %v11906_v60  ;;  %v11940_v48 = vld [vmem:[%s19049_s3 + $0x660] ss:$16 sps:$4 sm:$0xff]   ;;  %v11941_v60 = vld [vmem:[%s19049_s3 + $0x668] ss:$16 sps:$4 sm:$0xff]  }
 0x50b   :  { %7290 = vmatprep.subr.bf16.mxu1 %v11907_v31  ;;  %v11942_v31 = vld [vmem:[%s19049_s3 + $0x644] ss:$16 sps:$4 sm:$0xff]  }
 0x50d   :  { %7248 = vmatpush2.bf16.msra.mxu0 %v11908_v1  ;;  %v11943_v1 = vld [vmem:[%s19049_s3 + $0x64c] ss:$16 sps:$4 sm:$0xff]  }
 0x50e   :  { %7291 = vmatpush2.bf16.msra.mxu1 %v11909_v51  ;;  %7249 = vmatprep.subr.bf16.mxu0 %v11910_v59  ;;  %v11944_v51 = vld [vmem:[%s19049_s3 + $0x640] ss:$16 sps:$4 sm:$0xff]   ;;  %v11945_v59 = vld [vmem:[%s19049_s3 + $0x648] ss:$16 sps:$4 sm:$0xff]  }
 0x50f   :  { %7292 = vmatprep.subr.bf16.mxu1 %v11911_v19  ;;  %v11946_v19 = vld [vmem:[%s19049_s3 + $0x624] ss:$16 sps:$4 sm:$0xff]  }
 0x511   :  { %7250 = vmatpush2.bf16.msra.mxu0 %v11912_v21  ;;  %v11947_v21 = vld [vmem:[%s19049_s3 + $0x62c] ss:$16 sps:$4 sm:$0xff]  }
 0x512   :  { %7293 = vmatpush2.bf16.msra.mxu1 %v11913_v43  ;;  %7251 = vmatprep.subr.bf16.mxu0 %v11914_v62  ;;  %v11948_v43 = vld [vmem:[%s19049_s3 + $0x620] ss:$16 sps:$4 sm:$0xff]   ;;  %v11949_v62 = vld [vmem:[%s19049_s3 + $0x628] ss:$16 sps:$4 sm:$0xff]  }
 0x513   :  { %7294 = vmatprep.subr.bf16.mxu1 %v11915_v37  ;;  %v11950_v37 = vld [vmem:[%s19049_s3 + $0x604] ss:$16 sps:$4 sm:$0xff]  }
 0x515   :  { %7252 = vmatpush2.bf16.msra.mxu0 %v11916_v54  ;;  %v11951_v54 = vld [vmem:[%s19049_s3 + $0x60c] ss:$16 sps:$4 sm:$0xff]  }
 0x516   :  { %7295 = vmatpush2.bf16.msra.mxu1 %v11917_v17  ;;  %7253 = vmatprep.subr.bf16.mxu0 %v11918_v0  ;;  %v11952_v17 = vld [vmem:[%s19049_s3 + $0x600] ss:$16 sps:$4 sm:$0xff]   ;;  %v11953_v0 = vld [vmem:[%s19049_s3 + $0x608] ss:$16 sps:$4 sm:$0xff]  }
 0x517   :  { %7296 = vmatprep.subr.bf16.mxu1 %v11919_v40  ;;  %v11954_v40 = vld [vmem:[%s19049_s3 + $0x7e4] ss:$16 sps:$4 sm:$0xff]  }
 0x519   :  { %7254 = vmatpush2.bf16.msra.mxu0 %v11920_v52  ;;  %v11955_v52 = vld [vmem:[%s19049_s3 + $0x7ec] ss:$16 sps:$4 sm:$0xff]  }
 0x51a   :  { %7297 = vmatpush2.bf16.msra.mxu1 %v11921_v2  ;;  %7389 = vmatprep.subr.bf16.mxu0 %v11922_v23  ;;  %v11956_v2 = vld [vmem:[%s19049_s3 + $0x7e0] ss:$16 sps:$4 sm:$0xff]   ;;  %v11957_v23 = vld [vmem:[%s19049_s3 + $0x7e8] ss:$16 sps:$4 sm:$0xff]  }
 0x51b   :  { %7432 = vmatprep.subr.bf16.mxu1 %v11923_v50  ;;  %v11958_v50 = vld [vmem:[%s19049_s3 + $0x7c4] ss:$16 sps:$4 sm:$0xff]  }
 0x51c   :  { %7256 = vmatmul.mubr.bf16.vlgmr.msra.gmra.mxu0 %v15843_v56 }
 0x51d   :  { %7299 = vmatmul.mubr.bf16.vlgmr.msra.gmra.mxu1 %v15843_v56  ;;  %7390 = vmatpush1.bf16.msra.mxu0 %v11924_v39  ;;  %v11927_v56 = vld [vmem:[%s19049_s3 + $0x6cc] ss:$16 sps:$4 sm:$0xff]  }
 0x51e   :  { %7421 = vmatprep.mubr.bf16.mxu0 %v15873_v10  ;;  %7433 = vmatpush1.bf16.msra.mxu1 %v11925_v44  ;;  %v11959_v39 = vld [vmem:[%s19049_s3 + $0x7cc] ss:$16 sps:$4 sm:$0xff]   ;;  %v11960_v44 = vld [vmem:[%s19049_s3 + $0x7c0] ss:$16 sps:$4 sm:$0xff]  }
 0x51f   :  { %7464 = vmatprep.mubr.bf16.mxu1 %v15873_v10  ;;  %7391 = vmatprep.subr.bf16.mxu0 %v11926_v15  ;;  %v11930_v10 = vld [vmem:[%s19049_s3 + $0x6a4] ss:$16 sps:$4 sm:$0xff]   ;;  %v11961_v15 = vld [vmem:[%s19049_s3 + $0x7c8] ss:$16 sps:$4 sm:$0xff]  }
 0x520   :  { %7434 = vmatprep.subr.bf16.mxu1 %v11927_v56  ;;  %v11962_v56 = vld [vmem:[%s19049_s3 + $0x7a4] ss:$16 sps:$4 sm:$0xff]  }
 0x521   :  { %7392 = vmatpush1.bf16.msra.mxu0 %v11928_v12  ;;  %v11963_v12 = vld [vmem:[%s19049_s3 + $0x7ac] ss:$16 sps:$4 sm:$0xff]  }
 0x522   :  { %7435 = vmatpush1.bf16.msra.mxu1 %v11929_v20  ;;  %7393 = vmatprep.subr.bf16.mxu0 %v11930_v10  ;;  %v11964_v20 = vld [vmem:[%s19049_s3 + $0x7a0] ss:$16 sps:$4 sm:$0xff]   ;;  %v11965_v10 = vld [vmem:[%s19049_s3 + $0x7a8] ss:$16 sps:$4 sm:$0xff]  }
 0x523   :  { %7436 = vmatprep.subr.bf16.mxu1 %v11931_v45  ;;  %v11966_v45 = vld [vmem:[%s19049_s3 + $0x784] ss:$16 sps:$4 sm:$0xff]  }
 0x525   :  { %7394 = vmatpush1.bf16.msra.mxu0 %v11932_v18  ;;  %v11967_v18 = vld [vmem:[%s19049_s3 + $0x78c] ss:$16 sps:$4 sm:$0xff]  }
 0x526   :  { %7437 = vmatpush1.bf16.msra.mxu1 %v11933_v33  ;;  %7395 = vmatprep.subr.bf16.mxu0 %v11934_v9  ;;  %v11968_v33 = vld [vmem:[%s19049_s3 + $0x780] ss:$16 sps:$4 sm:$0xff]   ;;  %v11969_v9 = vld [vmem:[%s19049_s3 + $0x788] ss:$16 sps:$4 sm:$0xff]  }
 0x527   :  { %7438 = vmatprep.subr.bf16.mxu1 %v11935_v16  ;;  %v11970_v16 = vld [vmem:[%s19049_s3 + $0x764] ss:$16 sps:$4 sm:$0xff]  }
 0x529   :  { %7396 = vmatpush1.bf16.msra.mxu0 %v11936_v24  ;;  %v11971_v24 = vld [vmem:[%s19049_s3 + $0x76c] ss:$16 sps:$4 sm:$0xff]  }
 0x52a   :  { %7439 = vmatpush1.bf16.msra.mxu1 %v11937_v30  ;;  %7397 = vmatprep.subr.bf16.mxu0 %v11938_v49  ;;  %v11972_v30 = vld [vmem:[%s19049_s3 + $0x760] ss:$16 sps:$4 sm:$0xff]   ;;  %v11973_v49 = vld [vmem:[%s19049_s3 + $0x768] ss:$16 sps:$4 sm:$0xff]  }
 0x52b   :  { %7440 = vmatprep.subr.bf16.mxu1 %v11939_v46  ;;  %v11974_v46 = vld [vmem:[%s19049_s3 + $0x744] ss:$16 sps:$4 sm:$0xff]  }
 0x52d   :  { %7398 = vmatpush1.bf16.msra.mxu0 %v11940_v48  ;;  %v11975_v48 = vld [vmem:[%s19049_s3 + $0x74c] ss:$16 sps:$4 sm:$0xff]  }
 0x52e   :  { %7441 = vmatpush1.bf16.msra.mxu1 %v11941_v60  ;;  %7399 = vmatprep.subr.bf16.mxu0 %v11942_v31  ;;  %v11976_v60 = vld [vmem:[%s19049_s3 + $0x740] ss:$16 sps:$4 sm:$0xff]   ;;  %v11977_v31 = vld [vmem:[%s19049_s3 + $0x748] ss:$16 sps:$4 sm:$0xff]  }
 0x52f   :  { %7442 = vmatprep.subr.bf16.mxu1 %v11943_v1  ;;  %v11978_v1 = vld [vmem:[%s19049_s3 + $0x724] ss:$16 sps:$4 sm:$0xff]  }
 0x531   :  { %7400 = vmatpush1.bf16.msra.mxu0 %v11944_v51  ;;  %v11979_v51 = vld [vmem:[%s19049_s3 + $0x72c] ss:$16 sps:$4 sm:$0xff]  }
 0x532   :  { %7443 = vmatpush1.bf16.msra.mxu1 %v11945_v59  ;;  %7401 = vmatprep.subr.bf16.mxu0 %v11946_v19  ;;  %v11980_v59 = vld [vmem:[%s19049_s3 + $0x720] ss:$16 sps:$4 sm:$0xff]   ;;  %v11981_v19 = vld [vmem:[%s19049_s3 + $0x728] ss:$16 sps:$4 sm:$0xff]  }
 0x533   :  { %7444 = vmatprep.subr.bf16.mxu1 %v11947_v21  ;;  %v11982_v21 = vld [vmem:[%s19049_s3 + $0x704] ss:$16 sps:$4 sm:$0xff]  }
 0x535   :  { %7402 = vmatpush1.bf16.msra.mxu0 %v11948_v43  ;;  %v11983_v43 = vld [vmem:[%s19049_s3 + $0x70c] ss:$16 sps:$4 sm:$0xff]  }
 0x536   :  { %7445 = vmatpush1.bf16.msra.mxu1 %v11949_v62  ;;  %7403 = vmatprep.subr.bf16.mxu0 %v11950_v37  ;;  %v11984_v62 = vld [vmem:[%s19049_s3 + $0x700] ss:$16 sps:$4 sm:$0xff]   ;;  %v11985_v37 = vld [vmem:[%s19049_s3 + $0x708] ss:$16 sps:$4 sm:$0xff]  }
 0x537   :  { %7446 = vmatprep.subr.bf16.mxu1 %v11951_v54  ;;  %v11986_v54 = vld [vmem:[%s19049_s3 + $0x8e4] ss:$16 sps:$4 sm:$0xff]  }
 0x539   :  { %7404 = vmatpush1.bf16.msra.mxu0 %v11952_v17  ;;  %v11987_v17 = vld [vmem:[%s19049_s3 + $0x8ec] ss:$16 sps:$4 sm:$0xff]  }
 0x53a   :  { %7447 = vmatpush1.bf16.msra.mxu1 %v11953_v0  ;;  %7405 = vmatprep.subr.bf16.mxu0 %v11954_v40  ;;  %v11988_v0 = vld [vmem:[%s19049_s3 + $0x8e0] ss:$16 sps:$4 sm:$0xff]   ;;  %v11989_v40 = vld [vmem:[%s19049_s3 + $0x8e8] ss:$16 sps:$4 sm:$0xff]  }
 0x53b   :  { %7448 = vmatprep.subr.bf16.mxu1 %v11955_v52  ;;  %v11990_v52 = vld [vmem:[%s19049_s3 + $0x8c4] ss:$16 sps:$4 sm:$0xff]  }
 0x53d   :  { %7406 = vmatpush2.bf16.msra.mxu0 %v11956_v2  ;;  %v11992_v2 = vld [vmem:[%s19049_s3 + $0x8c0] ss:$16 sps:$4 sm:$0xff]  }
 0x53e   :  { %7449 = vmatpush2.bf16.msra.mxu1 %v11957_v23  ;;  %7407 = vmatprep.subr.bf16.mxu0 %v11958_v50  ;;  %v11993_v23 = vld [vmem:[%s19049_s3 + $0x8c8] ss:$16 sps:$4 sm:$0xff]   ;;  %v11995_v50 = vld [vmem:[%s19049_s3 + $0x8ac] ss:$16 sps:$4 sm:$0xff]  }
 0x53f   :  { %7450 = vmatprep.subr.bf16.mxu1 %v11959_v39  ;;  %v11996_v39 = vld [vmem:[%s19049_s3 + $0x8a0] ss:$16 sps:$4 sm:$0xff]  }
 0x541   :  { %7408 = vmatpush2.bf16.msra.mxu0 %v11960_v44  ;;  %v11997_v44 = vld [vmem:[%s19049_s3 + $0x8a8] ss:$16 sps:$4 sm:$0xff]  }
 0x542   :  { %7451 = vmatpush2.bf16.msra.mxu1 %v11961_v15  ;;  %7409 = vmatprep.subr.bf16.mxu0 %v11962_v56  ;;  %v11998_v15 = vld [vmem:[%s19049_s3 + $0x884] ss:$16 sps:$4 sm:$0xff]   ;;  %v11999_v56 = vld [vmem:[%s19049_s3 + $0x88c] ss:$16 sps:$4 sm:$0xff]  }
 0x543   :  { %7452 = vmatprep.subr.bf16.mxu1 %v11963_v12  ;;  %v12000_v12 = vld [vmem:[%s19049_s3 + $0x880] ss:$16 sps:$4 sm:$0xff]  }
 0x545   :  { %7410 = vmatpush2.bf16.msra.mxu0 %v11964_v20  ;;  %v12001_v20 = vld [vmem:[%s19049_s3 + $0x888] ss:$16 sps:$4 sm:$0xff]  }
 0x546   :  { %7453 = vmatpush2.bf16.msra.mxu1 %v11965_v10  ;;  %7411 = vmatprep.subr.bf16.mxu0 %v11966_v45  ;;  %v12002_v10 = vld [vmem:[%s19049_s3 + $0x864] ss:$16 sps:$4 sm:$0xff]   ;;  %v12003_v45 = vld [vmem:[%s19049_s3 + $0x86c] ss:$16 sps:$4 sm:$0xff]  }
 0x547   :  { %7454 = vmatprep.subr.bf16.mxu1 %v11967_v18  ;;  %v12004_v18 = vld [vmem:[%s19049_s3 + $0x860] ss:$16 sps:$4 sm:$0xff]  }
 0x549   :  { %7412 = vmatpush2.bf16.msra.mxu0 %v11968_v33  ;;  %v12005_v33 = vld [vmem:[%s19049_s3 + $0x868] ss:$16 sps:$4 sm:$0xff]  }
 0x54a   :  { %7455 = vmatpush2.bf16.msra.mxu1 %v11969_v9  ;;  %7413 = vmatprep.subr.bf16.mxu0 %v11970_v16  ;;  %v12006_v9 = vld [vmem:[%s19049_s3 + $0x844] ss:$16 sps:$4 sm:$0xff]   ;;  %v12007_v16 = vld [vmem:[%s19049_s3 + $0x84c] ss:$16 sps:$4 sm:$0xff]  }
 0x54b   :  { %7456 = vmatprep.subr.bf16.mxu1 %v11971_v24  ;;  %v12008_v24 = vld [vmem:[%s19049_s3 + $0x840] ss:$16 sps:$4 sm:$0xff]  }
 0x54d   :  { %7414 = vmatpush2.bf16.msra.mxu0 %v11972_v30  ;;  %v12009_v30 = vld [vmem:[%s19049_s3 + $0x848] ss:$16 sps:$4 sm:$0xff]  }
 0x54e   :  { %7457 = vmatpush2.bf16.msra.mxu1 %v11973_v49  ;;  %7415 = vmatprep.subr.bf16.mxu0 %v11974_v46  ;;  %v12010_v49 = vld [vmem:[%s19049_s3 + $0x824] ss:$16 sps:$4 sm:$0xff]   ;;  %v12011_v46 = vld [vmem:[%s19049_s3 + $0x82c] ss:$16 sps:$4 sm:$0xff]  }
 0x54f   :  { %7458 = vmatprep.subr.bf16.mxu1 %v11975_v48  ;;  %v12012_v48 = vld [vmem:[%s19049_s3 + $0x820] ss:$16 sps:$4 sm:$0xff]  }
 0x551   :  { %7416 = vmatpush2.bf16.msra.mxu0 %v11976_v60  ;;  %v12013_v60 = vld [vmem:[%s19049_s3 + $0x828] ss:$16 sps:$4 sm:$0xff]  }
 0x552   :  { %7459 = vmatpush2.bf16.msra.mxu1 %v11977_v31  ;;  %7417 = vmatprep.subr.bf16.mxu0 %v11978_v1  ;;  %v12014_v31 = vld [vmem:[%s19049_s3 + $0x804] ss:$16 sps:$4 sm:$0xff]   ;;  %v12015_v1 = vld [vmem:[%s19049_s3 + $0x80c] ss:$16 sps:$4 sm:$0xff]  }
 0x553   :  { %7460 = vmatprep.subr.bf16.mxu1 %v11979_v51  ;;  %v12016_v51 = vld [vmem:[%s19049_s3 + $0x800] ss:$16 sps:$4 sm:$0xff]  }
 0x555   :  { %7418 = vmatpush2.bf16.msra.mxu0 %v11980_v59  ;;  %v12017_v59 = vld [vmem:[%s19049_s3 + $0x808] ss:$16 sps:$4 sm:$0xff]  }
 0x556   :  { %7461 = vmatpush2.bf16.msra.mxu1 %v11981_v19  ;;  %7419 = vmatprep.subr.bf16.mxu0 %v11982_v21  ;;  %v12018_v19 = vld [vmem:[%s19049_s3 + $0x9e4] ss:$16 sps:$4 sm:$0xff]   ;;  %v12019_v21 = vld [vmem:[%s19049_s3 + $0x9ec] ss:$16 sps:$4 sm:$0xff]  }
 0x557   :  { %7462 = vmatprep.subr.bf16.mxu1 %v11983_v43  ;;  %v12020_v43 = vld [vmem:[%s19049_s3 + $0x9e0] ss:$16 sps:$4 sm:$0xff]  }
 0x559   :  { %7420 = vmatpush2.bf16.msra.mxu0 %v11984_v62  ;;  %v12021_v62 = vld [vmem:[%s19049_s3 + $0x9e8] ss:$16 sps:$4 sm:$0xff]  }
 0x55a   :  { %7463 = vmatpush2.bf16.msra.mxu1 %v11985_v37  ;;  %7571 = vmatprep.subr.bf16.mxu0 %v11986_v54  ;;  %v12022_v37 = vld [vmem:[%s19049_s3 + $0x9c4] ss:$16 sps:$4 sm:$0xff]   ;;  %v12023_v54 = vld [vmem:[%s19049_s3 + $0x9cc] ss:$16 sps:$4 sm:$0xff]  }
 0x55b   :  { %7614 = vmatprep.subr.bf16.mxu1 %v11987_v17  ;;  %v12024_v17 = vld [vmem:[%s19049_s3 + $0x9c0] ss:$16 sps:$4 sm:$0xff]  }
 0x55c   :  { %7422 = vmatmul.mubr.bf16.vlgmr.msra.gmra.mxu0 %v15875_v5 }
 0x55d   :  { %7465 = vmatmul.mubr.bf16.vlgmr.msra.gmra.mxu1 %v15875_v5  ;;  %7572 = vmatpush1.bf16.msra.mxu0 %v11988_v0  ;;  %v11991_v5 = vld [vmem:[%s19049_s3 + $0x8cc] ss:$16 sps:$4 sm:$0xff]   ;;  %v12025_v0 = vld [vmem:[%s19049_s3 + $0x9c8] ss:$16 sps:$4 sm:$0xff]  }
 0x55e   :  { %7603 = vmatprep.mubr.bf16.mxu0 %v15917_v35  ;;  %7615 = vmatpush1.bf16.msra.mxu1 %v11989_v40  ;;  %v12026_v40 = vld [vmem:[%s19049_s3 + $0x9a4] ss:$16 sps:$4 sm:$0xff]  }
 0x55f   :  { %7646 = vmatprep.mubr.bf16.mxu1 %v15917_v35  ;;  %7573 = vmatprep.subr.bf16.mxu0 %v11990_v52  ;;  %v11994_v35 = vld [vmem:[%s19049_s3 + $0x8a4] ss:$16 sps:$4 sm:$0xff]   ;;  %v12027_v52 = vld [vmem:[%s19049_s3 + $0x9ac] ss:$16 sps:$4 sm:$0xff]  }
 0x560   :  { %7616 = vmatprep.subr.bf16.mxu1 %v11991_v5  ;;  %v12028_v5 = vld [vmem:[%s19049_s3 + $0x9a0] ss:$16 sps:$4 sm:$0xff]  }
 0x561   :  { %7574 = vmatpush1.bf16.msra.mxu0 %v11992_v2  ;;  %v12029_v2 = vld [vmem:[%s19049_s3 + $0x9a8] ss:$16 sps:$4 sm:$0xff]  }
 0x562   :  { %7617 = vmatpush1.bf16.msra.mxu1 %v11993_v23  ;;  %7575 = vmatprep.subr.bf16.mxu0 %v11994_v35  ;;  %v12030_v23 = vld [vmem:[%s19049_s3 + $0x984] ss:$16 sps:$4 sm:$0xff]   ;;  %v12031_v35 = vld [vmem:[%s19049_s3 + $0x98c] ss:$16 sps:$4 sm:$0xff]  }
 0x563   :  { %7618 = vmatprep.subr.bf16.mxu1 %v11995_v50  ;;  %v12032_v50 = vld [vmem:[%s19049_s3 + $0x980] ss:$16 sps:$4 sm:$0xff]  }
 0x565   :  { %7576 = vmatpush1.bf16.msra.mxu0 %v11996_v39  ;;  %v12033_v39 = vld [vmem:[%s19049_s3 + $0x988] ss:$16 sps:$4 sm:$0xff]  }
 0x566   :  { %7619 = vmatpush1.bf16.msra.mxu1 %v11997_v44  ;;  %7577 = vmatprep.subr.bf16.mxu0 %v11998_v15  ;;  %v12034_v44 = vld [vmem:[%s19049_s3 + $0x964] ss:$16 sps:$4 sm:$0xff]   ;;  %v12035_v15 = vld [vmem:[%s19049_s3 + $0x96c] ss:$16 sps:$4 sm:$0xff]  }
 0x567   :  { %7620 = vmatprep.subr.bf16.mxu1 %v11999_v56  ;;  %v12036_v56 = vld [vmem:[%s19049_s3 + $0x960] ss:$16 sps:$4 sm:$0xff]  }
 0x569   :  { %7578 = vmatpush1.bf16.msra.mxu0 %v12000_v12  ;;  %v12037_v12 = vld [vmem:[%s19049_s3 + $0x968] ss:$16 sps:$4 sm:$0xff]  }
 0x56a   :  { %7621 = vmatpush1.bf16.msra.mxu1 %v12001_v20  ;;  %7579 = vmatprep.subr.bf16.mxu0 %v12002_v10  ;;  %v12038_v20 = vld [vmem:[%s19049_s3 + $0x944] ss:$16 sps:$4 sm:$0xff]   ;;  %v12039_v10 = vld [vmem:[%s19049_s3 + $0x94c] ss:$16 sps:$4 sm:$0xff]  }
 0x56b   :  { %7622 = vmatprep.subr.bf16.mxu1 %v12003_v45  ;;  %v12040_v45 = vld [vmem:[%s19049_s3 + $0x940] ss:$16 sps:$4 sm:$0xff]  }
 0x56d   :  { %7580 = vmatpush1.bf16.msra.mxu0 %v12004_v18  ;;  %v12041_v18 = vld [vmem:[%s19049_s3 + $0x948] ss:$16 sps:$4 sm:$0xff]  }
 0x56e   :  { %7623 = vmatpush1.bf16.msra.mxu1 %v12005_v33  ;;  %7581 = vmatprep.subr.bf16.mxu0 %v12006_v9  ;;  %v12042_v33 = vld [vmem:[%s19049_s3 + $0x924] ss:$16 sps:$4 sm:$0xff]   ;;  %v12043_v9 = vld [vmem:[%s19049_s3 + $0x92c] ss:$16 sps:$4 sm:$0xff]  }
 0x56f   :  { %7624 = vmatprep.subr.bf16.mxu1 %v12007_v16  ;;  %v12044_v16 = vld [vmem:[%s19049_s3 + $0x920] ss:$16 sps:$4 sm:$0xff]  }
 0x571   :  { %7582 = vmatpush1.bf16.msra.mxu0 %v12008_v24  ;;  %v12045_v24 = vld [vmem:[%s19049_s3 + $0x928] ss:$16 sps:$4 sm:$0xff]  }
 0x572   :  { %7625 = vmatpush1.bf16.msra.mxu1 %v12009_v30  ;;  %7583 = vmatprep.subr.bf16.mxu0 %v12010_v49  ;;  %v12046_v30 = vld [vmem:[%s19049_s3 + $0x904] ss:$16 sps:$4 sm:$0xff]   ;;  %v12047_v49 = vld [vmem:[%s19049_s3 + $0x90c] ss:$16 sps:$4 sm:$0xff]  }
 0x573   :  { %7626 = vmatprep.subr.bf16.mxu1 %v12011_v46  ;;  %v12048_v46 = vld [vmem:[%s19049_s3 + $0x900] ss:$16 sps:$4 sm:$0xff]  }
 0x575   :  { %7584 = vmatpush1.bf16.msra.mxu0 %v12012_v48  ;;  %v12049_v48 = vld [vmem:[%s19049_s3 + $0x908] ss:$16 sps:$4 sm:$0xff]  }
 0x576   :  { %7627 = vmatpush1.bf16.msra.mxu1 %v12013_v60  ;;  %7585 = vmatprep.subr.bf16.mxu0 %v12014_v31  ;;  %v12050_v60 = vld [vmem:[%s19049_s3 + $0xae4] ss:$16 sps:$4 sm:$0xff]   ;;  %v12051_v31 = vld [vmem:[%s19049_s3 + $0xaec] ss:$16 sps:$4 sm:$0xff]  }
 0x577   :  { %7628 = vmatprep.subr.bf16.mxu1 %v12015_v1  ;;  %v12052_v1 = vld [vmem:[%s19049_s3 + $0xae0] ss:$16 sps:$4 sm:$0xff]  }
 0x579   :  { %7586 = vmatpush1.bf16.msra.mxu0 %v12016_v51  ;;  %v12053_v51 = vld [vmem:[%s19049_s3 + $0xae8] ss:$16 sps:$4 sm:$0xff]  }
 0x57a   :  { %7629 = vmatpush1.bf16.msra.mxu1 %v12017_v59  ;;  %7587 = vmatprep.subr.bf16.mxu0 %v12018_v19  ;;  %v12054_v59 = vld [vmem:[%s19049_s3 + $0xac4] ss:$16 sps:$4 sm:$0xff]   ;;  %v12056_v19 = vld [vmem:[%s19049_s3 + $0xac0] ss:$16 sps:$4 sm:$0xff]  }
 0x57b   :  { %7630 = vmatprep.subr.bf16.mxu1 %v12019_v21  ;;  %v12057_v21 = vld [vmem:[%s19049_s3 + $0xac8] ss:$16 sps:$4 sm:$0xff]  }
 0x57d   :  { %7588 = vmatpush2.bf16.msra.mxu0 %v12020_v43  ;;  %v12059_v43 = vld [vmem:[%s19049_s3 + $0xaac] ss:$16 sps:$4 sm:$0xff]  }
 0x57e   :  { %7631 = vmatpush2.bf16.msra.mxu1 %v12021_v62  ;;  %7589 = vmatprep.subr.bf16.mxu0 %v12022_v37  ;;  %v12060_v62 = vld [vmem:[%s19049_s3 + $0xaa0] ss:$16 sps:$4 sm:$0xff]   ;;  %v12061_v37 = vld [vmem:[%s19049_s3 + $0xaa8] ss:$16 sps:$4 sm:$0xff]  }
 0x57f   :  { %7632 = vmatprep.subr.bf16.mxu1 %v12023_v54  ;;  %v12062_v54 = vld [vmem:[%s19049_s3 + $0xa84] ss:$16 sps:$4 sm:$0xff]  }
 0x581   :  { %7590 = vmatpush2.bf16.msra.mxu0 %v12024_v17  ;;  %v12063_v17 = vld [vmem:[%s19049_s3 + $0xa8c] ss:$16 sps:$4 sm:$0xff]  }
 0x582   :  { %7633 = vmatpush2.bf16.msra.mxu1 %v12025_v0  ;;  %7591 = vmatprep.subr.bf16.mxu0 %v12026_v40  ;;  %v12064_v0 = vld [vmem:[%s19049_s3 + $0xa80] ss:$16 sps:$4 sm:$0xff]   ;;  %v12065_v40 = vld [vmem:[%s19049_s3 + $0xa88] ss:$16 sps:$4 sm:$0xff]  }
 0x583   :  { %7634 = vmatprep.subr.bf16.mxu1 %v12027_v52  ;;  %v12066_v52 = vld [vmem:[%s19049_s3 + $0xa64] ss:$16 sps:$4 sm:$0xff]  }
 0x585   :  { %7592 = vmatpush2.bf16.msra.mxu0 %v12028_v5  ;;  %v12067_v5 = vld [vmem:[%s19049_s3 + $0xa6c] ss:$16 sps:$4 sm:$0xff]  }
 0x586   :  { %7635 = vmatpush2.bf16.msra.mxu1 %v12029_v2  ;;  %7593 = vmatprep.subr.bf16.mxu0 %v12030_v23  ;;  %v12068_v2 = vld [vmem:[%s19049_s3 + $0xa60] ss:$16 sps:$4 sm:$0xff]   ;;  %v12069_v23 = vld [vmem:[%s19049_s3 + $0xa68] ss:$16 sps:$4 sm:$0xff]  }
 0x587   :  { %7636 = vmatprep.subr.bf16.mxu1 %v12031_v35  ;;  %v12070_v35 = vld [vmem:[%s19049_s3 + $0xa44] ss:$16 sps:$4 sm:$0xff]  }
 0x589   :  { %7594 = vmatpush2.bf16.msra.mxu0 %v12032_v50  ;;  %v12071_v50 = vld [vmem:[%s19049_s3 + $0xa4c] ss:$16 sps:$4 sm:$0xff]  }
 0x58a   :  { %7637 = vmatpush2.bf16.msra.mxu1 %v12033_v39  ;;  %7595 = vmatprep.subr.bf16.mxu0 %v12034_v44  ;;  %v12072_v39 = vld [vmem:[%s19049_s3 + $0xa40] ss:$16 sps:$4 sm:$0xff]   ;;  %v12073_v44 = vld [vmem:[%s19049_s3 + $0xa48] ss:$16 sps:$4 sm:$0xff]  }
 0x58b   :  { %7638 = vmatprep.subr.bf16.mxu1 %v12035_v15  ;;  %v12074_v15 = vld [vmem:[%s19049_s3 + $0xa24] ss:$16 sps:$4 sm:$0xff]  }
 0x58d   :  { %7596 = vmatpush2.bf16.msra.mxu0 %v12036_v56  ;;  %v12075_v56 = vld [vmem:[%s19049_s3 + $0xa2c] ss:$16 sps:$4 sm:$0xff]  }
 0x58e   :  { %7639 = vmatpush2.bf16.msra.mxu1 %v12037_v12  ;;  %7597 = vmatprep.subr.bf16.mxu0 %v12038_v20  ;;  %v12076_v12 = vld [vmem:[%s19049_s3 + $0xa20] ss:$16 sps:$4 sm:$0xff]   ;;  %v12077_v20 = vld [vmem:[%s19049_s3 + $0xa28] ss:$16 sps:$4 sm:$0xff]  }
 0x58f   :  { %7640 = vmatprep.subr.bf16.mxu1 %v12039_v10  ;;  %v12078_v10 = vld [vmem:[%s19049_s3 + $0xa04] ss:$16 sps:$4 sm:$0xff]  }
 0x591   :  { %7598 = vmatpush2.bf16.msra.mxu0 %v12040_v45  ;;  %v12079_v45 = vld [vmem:[%s19049_s3 + $0xa0c] ss:$16 sps:$4 sm:$0xff]  }
 0x592   :  { %7641 = vmatpush2.bf16.msra.mxu1 %v12041_v18  ;;  %7599 = vmatprep.subr.bf16.mxu0 %v12042_v33  ;;  %v12080_v18 = vld [vmem:[%s19049_s3 + $0xa00] ss:$16 sps:$4 sm:$0xff]   ;;  %v12081_v33 = vld [vmem:[%s19049_s3 + $0xa08] ss:$16 sps:$4 sm:$0xff]  }
 0x593   :  { %7642 = vmatprep.subr.bf16.mxu1 %v12043_v9  ;;  %v12082_v9 = vld [vmem:[%s19049_s3 + $0xbe4] ss:$16 sps:$4 sm:$0xff]  }
 0x595   :  { %7600 = vmatpush2.bf16.msra.mxu0 %v12044_v16  ;;  %v12083_v16 = vld [vmem:[%s19049_s3 + $0xbec] ss:$16 sps:$4 sm:$0xff]  }
 0x596   :  { %7643 = vmatpush2.bf16.msra.mxu1 %v12045_v24  ;;  %7601 = vmatprep.subr.bf16.mxu0 %v12046_v30  ;;  %v12084_v24 = vld [vmem:[%s19049_s3 + $0xbe0] ss:$16 sps:$4 sm:$0xff]   ;;  %v12085_v30 = vld [vmem:[%s19049_s3 + $0xbe8] ss:$16 sps:$4 sm:$0xff]  }
 0x597   :  { %7644 = vmatprep.subr.bf16.mxu1 %v12047_v49  ;;  %v12086_v49 = vld [vmem:[%s19049_s3 + $0xbc4] ss:$16 sps:$4 sm:$0xff]  }
 0x599   :  { %7602 = vmatpush2.bf16.msra.mxu0 %v12048_v46  ;;  %v12087_v46 = vld [vmem:[%s19049_s3 + $0xbcc] ss:$16 sps:$4 sm:$0xff]  }
 0x59a   :  { %7645 = vmatpush2.bf16.msra.mxu1 %v12049_v48  ;;  %7737 = vmatprep.subr.bf16.mxu0 %v12050_v60  ;;  %v12088_v48 = vld [vmem:[%s19049_s3 + $0xbc0] ss:$16 sps:$4 sm:$0xff]   ;;  %v12089_v60 = vld [vmem:[%s19049_s3 + $0xbc8] ss:$16 sps:$4 sm:$0xff]  }
 0x59b   :  { %7780 = vmatprep.subr.bf16.mxu1 %v12051_v31  ;;  %v12090_v31 = vld [vmem:[%s19049_s3 + $0xba4] ss:$16 sps:$4 sm:$0xff]  }
 0x59c   :  { %7604 = vmatmul.mubr.bf16.vlgmr.msra.gmra.mxu0 %v15919_v57 }
 0x59d   :  { %7647 = vmatmul.mubr.bf16.vlgmr.msra.gmra.mxu1 %v15919_v57  ;;  %7738 = vmatpush1.bf16.msra.mxu0 %v12052_v1  ;;  %v12055_v57 = vld [vmem:[%s19049_s3 + $0xacc] ss:$16 sps:$4 sm:$0xff]  }
 0x59e   :  { %7769 = vmatprep.mubr.bf16.mxu0 %v15939_v13  ;;  %7781 = vmatpush1.bf16.msra.mxu1 %v12053_v51  ;;  %v12091_v1 = vld [vmem:[%s19049_s3 + $0xbac] ss:$16 sps:$4 sm:$0xff]   ;;  %v12092_v51 = vld [vmem:[%s19049_s3 + $0xba0] ss:$16 sps:$4 sm:$0xff]  }
 0x59f   :  { %7812 = vmatprep.mubr.bf16.mxu1 %v15939_v13  ;;  %7739 = vmatprep.subr.bf16.mxu0 %v12054_v59  ;;  %v12058_v13 = vld [vmem:[%s19049_s3 + $0xaa4] ss:$16 sps:$4 sm:$0xff]   ;;  %v12093_v59 = vld [vmem:[%s19049_s3 + $0xba8] ss:$16 sps:$4 sm:$0xff]  }
 0x5a0   :  { %7782 = vmatprep.subr.bf16.mxu1 %v12055_v57  ;;  %v12094_v57 = vld [vmem:[%s19049_s3 + $0xb84] ss:$16 sps:$4 sm:$0xff]  }
 0x5a1   :  { %7740 = vmatpush1.bf16.msra.mxu0 %v12056_v19  ;;  %v12095_v19 = vld [vmem:[%s19049_s3 + $0xb8c] ss:$16 sps:$4 sm:$0xff]  }
 0x5a2   :  { %7783 = vmatpush1.bf16.msra.mxu1 %v12057_v21  ;;  %7741 = vmatprep.subr.bf16.mxu0 %v12058_v13  ;;  %v12096_v21 = vld [vmem:[%s19049_s3 + $0xb80] ss:$16 sps:$4 sm:$0xff]   ;;  %v12097_v13 = vld [vmem:[%s19049_s3 + $0xb88] ss:$16 sps:$4 sm:$0xff]  }
 0x5a3   :  { %7784 = vmatprep.subr.bf16.mxu1 %v12059_v43  ;;  %v12098_v43 = vld [vmem:[%s19049_s3 + $0xb64] ss:$16 sps:$4 sm:$0xff]  }
 0x5a5   :  { %7742 = vmatpush1.bf16.msra.mxu0 %v12060_v62  ;;  %v12099_v62 = vld [vmem:[%s19049_s3 + $0xb6c] ss:$16 sps:$4 sm:$0xff]  }
 0x5a6   :  { %7785 = vmatpush1.bf16.msra.mxu1 %v12061_v37  ;;  %7743 = vmatprep.subr.bf16.mxu0 %v12062_v54  ;;  %v12100_v37 = vld [vmem:[%s19049_s3 + $0xb60] ss:$16 sps:$4 sm:$0xff]   ;;  %v12101_v54 = vld [vmem:[%s19049_s3 + $0xb68] ss:$16 sps:$4 sm:$0xff]  }
 0x5a7   :  { %7786 = vmatprep.subr.bf16.mxu1 %v12063_v17  ;;  %v12102_v17 = vld [vmem:[%s19049_s3 + $0xb44] ss:$16 sps:$4 sm:$0xff]  }
 0x5a9   :  { %7744 = vmatpush1.bf16.msra.mxu0 %v12064_v0  ;;  %v12103_v0 = vld [vmem:[%s19049_s3 + $0xb4c] ss:$16 sps:$4 sm:$0xff]  }
 0x5aa   :  { %7787 = vmatpush1.bf16.msra.mxu1 %v12065_v40  ;;  %7745 = vmatprep.subr.bf16.mxu0 %v12066_v52  ;;  %v12104_v40 = vld [vmem:[%s19049_s3 + $0xb40] ss:$16 sps:$4 sm:$0xff]   ;;  %v12105_v52 = vld [vmem:[%s19049_s3 + $0xb48] ss:$16 sps:$4 sm:$0xff]  }
 0x5ab   :  { %7788 = vmatprep.subr.bf16.mxu1 %v12067_v5  ;;  %v12106_v5 = vld [vmem:[%s19049_s3 + $0xb24] ss:$16 sps:$4 sm:$0xff]  }
 0x5ad   :  { %7746 = vmatpush1.bf16.msra.mxu0 %v12068_v2  ;;  %v12107_v2 = vld [vmem:[%s19049_s3 + $0xb2c] ss:$16 sps:$4 sm:$0xff]  }
 0x5ae   :  { %7789 = vmatpush1.bf16.msra.mxu1 %v12069_v23  ;;  %7747 = vmatprep.subr.bf16.mxu0 %v12070_v35  ;;  %v12108_v23 = vld [vmem:[%s19049_s3 + $0xb20] ss:$16 sps:$4 sm:$0xff]   ;;  %v12109_v35 = vld [vmem:[%s19049_s3 + $0xb28] ss:$16 sps:$4 sm:$0xff]  }
 0x5af   :  { %7790 = vmatprep.subr.bf16.mxu1 %v12071_v50  ;;  %v12110_v50 = vld [vmem:[%s19049_s3 + $0xb04] ss:$16 sps:$4 sm:$0xff]  }
 0x5b1   :  { %7748 = vmatpush1.bf16.msra.mxu0 %v12072_v39  ;;  %v12111_v39 = vld [vmem:[%s19049_s3 + $0xb0c] ss:$16 sps:$4 sm:$0xff]  }
 0x5b2   :  { %7791 = vmatpush1.bf16.msra.mxu1 %v12073_v44  ;;  %7749 = vmatprep.subr.bf16.mxu0 %v12074_v15  ;;  %v12112_v44 = vld [vmem:[%s19049_s3 + $0xb00] ss:$16 sps:$4 sm:$0xff]   ;;  %v12113_v15 = vld [vmem:[%s19049_s3 + $0xb08] ss:$16 sps:$4 sm:$0xff]  }
 0x5b3   :  { %7792 = vmatprep.subr.bf16.mxu1 %v12075_v56  ;;  %v12114_v56 = vld [vmem:[%s19049_s3 + $0xce4] ss:$16 sps:$4 sm:$0xff]  }
 0x5b5   :  { %7750 = vmatpush1.bf16.msra.mxu0 %v12076_v12  ;;  %v12115_v12 = vld [vmem:[%s19049_s3 + $0xcec] ss:$16 sps:$4 sm:$0xff]  }
 0x5b6   :  { %7793 = vmatpush1.bf16.msra.mxu1 %v12077_v20  ;;  %7751 = vmatprep.subr.bf16.mxu0 %v12078_v10  ;;  %v12116_v20 = vld [vmem:[%s19049_s3 + $0xce0] ss:$16 sps:$4 sm:$0xff]   ;;  %v12117_v10 = vld [vmem:[%s19049_s3 + $0xce8] ss:$16 sps:$4 sm:$0xff]  }
 0x5b7   :  { %7794 = vmatprep.subr.bf16.mxu1 %v12079_v45  ;;  %v12118_v45 = vld [vmem:[%s19049_s3 + $0xcc4] ss:$16 sps:$4 sm:$0xff]  }
 0x5b9   :  { %7752 = vmatpush1.bf16.msra.mxu0 %v12080_v18  ;;  %v12120_v18 = vld [vmem:[%s19049_s3 + $0xcc0] ss:$16 sps:$4 sm:$0xff]  }
 0x5ba   :  { %7795 = vmatpush1.bf16.msra.mxu1 %v12081_v33  ;;  %7753 = vmatprep.subr.bf16.mxu0 %v12082_v9  ;;  %v12121_v33 = vld [vmem:[%s19049_s3 + $0xcc8] ss:$16 sps:$4 sm:$0xff]   ;;  %v12123_v9 = vld [vmem:[%s19049_s3 + $0xcac] ss:$16 sps:$4 sm:$0xff]  }
 0x5bb   :  { %7796 = vmatprep.subr.bf16.mxu1 %v12083_v16  ;;  %v12124_v16 = vld [vmem:[%s19049_s3 + $0xca0] ss:$16 sps:$4 sm:$0xff]  }
 0x5bd   :  { %7754 = vmatpush2.bf16.msra.mxu0 %v12084_v24  ;;  %v12125_v24 = vld [vmem:[%s19049_s3 + $0xca8] ss:$16 sps:$4 sm:$0xff]  }
 0x5be   :  { %7797 = vmatpush2.bf16.msra.mxu1 %v12085_v30  ;;  %7755 = vmatprep.subr.bf16.mxu0 %v12086_v49  ;;  %v12126_v30 = vld [vmem:[%s19049_s3 + $0xc84] ss:$16 sps:$4 sm:$0xff]   ;;  %v12127_v49 = vld [vmem:[%s19049_s3 + $0xc8c] ss:$16 sps:$4 sm:$0xff]  }
 0x5bf   :  { %7798 = vmatprep.subr.bf16.mxu1 %v12087_v46  ;;  %v12128_v46 = vld [vmem:[%s19049_s3 + $0xc80] ss:$16 sps:$4 sm:$0xff]  }
 0x5c1   :  { %7756 = vmatpush2.bf16.msra.mxu0 %v12088_v48  ;;  %v12129_v48 = vld [vmem:[%s19049_s3 + $0xc88] ss:$16 sps:$4 sm:$0xff]  }
 0x5c2   :  { %7799 = vmatpush2.bf16.msra.mxu1 %v12089_v60  ;;  %7757 = vmatprep.subr.bf16.mxu0 %v12090_v31  ;;  %v12130_v60 = vld [vmem:[%s19049_s3 + $0xc64] ss:$16 sps:$4 sm:$0xff]   ;;  %v12131_v31 = vld [vmem:[%s19049_s3 + $0xc6c] ss:$16 sps:$4 sm:$0xff]  }
 0x5c3   :  { %7800 = vmatprep.subr.bf16.mxu1 %v12091_v1  ;;  %v12132_v1 = vld [vmem:[%s19049_s3 + $0xc60] ss:$16 sps:$4 sm:$0xff]  }
 0x5c5   :  { %7758 = vmatpush2.bf16.msra.mxu0 %v12092_v51  ;;  %v12133_v51 = vld [vmem:[%s19049_s3 + $0xc68] ss:$16 sps:$4 sm:$0xff]  }
 0x5c6   :  { %7801 = vmatpush2.bf16.msra.mxu1 %v12093_v59  ;;  %7759 = vmatprep.subr.bf16.mxu0 %v12094_v57  ;;  %v12134_v59 = vld [vmem:[%s19049_s3 + $0xc44] ss:$16 sps:$4 sm:$0xff]   ;;  %v12135_v57 = vld [vmem:[%s19049_s3 + $0xc4c] ss:$16 sps:$4 sm:$0xff]  }
 0x5c7   :  { %7802 = vmatprep.subr.bf16.mxu1 %v12095_v19  ;;  %v12136_v19 = vld [vmem:[%s19049_s3 + $0xc40] ss:$16 sps:$4 sm:$0xff]  }
 0x5c9   :  { %7760 = vmatpush2.bf16.msra.mxu0 %v12096_v21  ;;  %v12137_v21 = vld [vmem:[%s19049_s3 + $0xc48] ss:$16 sps:$4 sm:$0xff]  }
 0x5ca   :  { %7803 = vmatpush2.bf16.msra.mxu1 %v12097_v13  ;;  %7761 = vmatprep.subr.bf16.mxu0 %v12098_v43  ;;  %v12138_v13 = vld [vmem:[%s19049_s3 + $0xc24] ss:$16 sps:$4 sm:$0xff]   ;;  %v12139_v43 = vld [vmem:[%s19049_s3 + $0xc2c] ss:$16 sps:$4 sm:$0xff]  }
 0x5cb   :  { %7804 = vmatprep.subr.bf16.mxu1 %v12099_v62  ;;  %v12140_v62 = vld [vmem:[%s19049_s3 + $0xc20] ss:$16 sps:$4 sm:$0xff]  }
 0x5cd   :  { %7762 = vmatpush2.bf16.msra.mxu0 %v12100_v37  ;;  %v12141_v37 = vld [vmem:[%s19049_s3 + $0xc28] ss:$16 sps:$4 sm:$0xff]  }
 0x5ce   :  { %7805 = vmatpush2.bf16.msra.mxu1 %v12101_v54  ;;  %7763 = vmatprep.subr.bf16.mxu0 %v12102_v17  ;;  %v12142_v54 = vld [vmem:[%s19049_s3 + $0xc04] ss:$16 sps:$4 sm:$0xff]   ;;  %v12143_v17 = vld [vmem:[%s19049_s3 + $0xc0c] ss:$16 sps:$4 sm:$0xff]  }
 0x5cf   :  { %7806 = vmatprep.subr.bf16.mxu1 %v12103_v0  ;;  %v12144_v0 = vld [vmem:[%s19049_s3 + $0xc00] ss:$16 sps:$4 sm:$0xff]  }
 0x5d1   :  { %7764 = vmatpush2.bf16.msra.mxu0 %v12104_v40  ;;  %v12145_v40 = vld [vmem:[%s19049_s3 + $0xc08] ss:$16 sps:$4 sm:$0xff]  }
 0x5d2   :  { %7807 = vmatpush2.bf16.msra.mxu1 %v12105_v52  ;;  %7765 = vmatprep.subr.bf16.mxu0 %v12106_v5  ;;  %v12146_v52 = vld [vmem:[%s19049_s3 + $0xde4] ss:$16 sps:$4 sm:$0xff]   ;;  %v12147_v5 = vld [vmem:[%s19049_s3 + $0xdec] ss:$16 sps:$4 sm:$0xff]  }
 0x5d3   :  { %7808 = vmatprep.subr.bf16.mxu1 %v12107_v2  ;;  %v12148_v2 = vld [vmem:[%s19049_s3 + $0xde0] ss:$16 sps:$4 sm:$0xff]  }
 0x5d5   :  { %7766 = vmatpush2.bf16.msra.mxu0 %v12108_v23  ;;  %v12149_v23 = vld [vmem:[%s19049_s3 + $0xde8] ss:$16 sps:$4 sm:$0xff]  }
 0x5d6   :  { %7809 = vmatpush2.bf16.msra.mxu1 %v12109_v35  ;;  %7767 = vmatprep.subr.bf16.mxu0 %v12110_v50  ;;  %v12150_v35 = vld [vmem:[%s19049_s3 + $0xdc4] ss:$16 sps:$4 sm:$0xff]   ;;  %v12151_v50 = vld [vmem:[%s19049_s3 + $0xdcc] ss:$16 sps:$4 sm:$0xff]  }
 0x5d7   :  { %7810 = vmatprep.subr.bf16.mxu1 %v12111_v39  ;;  %v12152_v39 = vld [vmem:[%s19049_s3 + $0xdc0] ss:$16 sps:$4 sm:$0xff]  }
 0x5d9   :  { %7768 = vmatpush2.bf16.msra.mxu0 %v12112_v44  ;;  %v12153_v44 = vld [vmem:[%s19049_s3 + $0xdc8] ss:$16 sps:$4 sm:$0xff]  }
 0x5da   :  { %7811 = vmatpush2.bf16.msra.mxu1 %v12113_v15  ;;  %7905 = vmatprep.subr.bf16.mxu0 %v12114_v56  ;;  %v12154_v15 = vld [vmem:[%s19049_s3 + $0xda4] ss:$16 sps:$4 sm:$0xff]   ;;  %v12155_v56 = vld [vmem:[%s19049_s3 + $0xdac] ss:$16 sps:$4 sm:$0xff]  }
 0x5db   :  { %7948 = vmatprep.subr.bf16.mxu1 %v12115_v12  ;;  %v12156_v12 = vld [vmem:[%s19049_s3 + $0xda0] ss:$16 sps:$4 sm:$0xff]  }
 0x5dc   :  { %7770 = vmatmul.mubr.bf16.vlgmr.msra.gmra.mxu0 %v15943_v41 }
 0x5dd   :  { %7813 = vmatmul.mubr.bf16.vlgmr.msra.gmra.mxu1 %v15943_v41  ;;  %7906 = vmatpush1.bf16.msra.mxu0 %v12116_v20  ;;  %v12119_v41 = vld [vmem:[%s19049_s3 + $0xccc] ss:$16 sps:$4 sm:$0xff]   ;;  %v12157_v20 = vld [vmem:[%s19049_s3 + $0xda8] ss:$16 sps:$4 sm:$0xff]  }
 0x5de   :  { %7937 = vmatprep.mubr.bf16.mxu0 %v15977_v63  ;;  %7949 = vmatpush1.bf16.msra.mxu1 %v12117_v10  ;;  %v12158_v10 = vld [vmem:[%s19049_s3 + $0xd84] ss:$16 sps:$4 sm:$0xff]  }
 0x5df   :  { %7980 = vmatprep.mubr.bf16.mxu1 %v15977_v63  ;;  %7907 = vmatprep.subr.bf16.mxu0 %v12118_v45  ;;  %v12122_v63 = vld [vmem:[%s19049_s3 + $0xca4] ss:$16 sps:$4 sm:$0xff]   ;;  %v12159_v45 = vld [vmem:[%s19049_s3 + $0xd8c] ss:$16 sps:$4 sm:$0xff]  }
 0x5e0   :  { %7950 = vmatprep.subr.bf16.mxu1 %v12119_v41  ;;  %v12160_v41 = vld [vmem:[%s19049_s3 + $0xd80] ss:$16 sps:$4 sm:$0xff]  }
 0x5e1   :  { %7908 = vmatpush1.bf16.msra.mxu0 %v12120_v18  ;;  %v12161_v18 = vld [vmem:[%s19049_s3 + $0xd88] ss:$16 sps:$4 sm:$0xff]  }
 0x5e2   :  { %7951 = vmatpush1.bf16.msra.mxu1 %v12121_v33  ;;  %7909 = vmatprep.subr.bf16.mxu0 %v12122_v63  ;;  %v12162_v33 = vld [vmem:[%s19049_s3 + $0xd64] ss:$16 sps:$4 sm:$0xff]   ;;  %v12163_v63 = vld [vmem:[%s19049_s3 + $0xd6c] ss:$16 sps:$4 sm:$0xff]  }
 0x5e3   :  { %7952 = vmatprep.subr.bf16.mxu1 %v12123_v9  ;;  %v12164_v9 = vld [vmem:[%s19049_s3 + $0xd60] ss:$16 sps:$4 sm:$0xff]  }
 0x5e5   :  { %7910 = vmatpush1.bf16.msra.mxu0 %v12124_v16  ;;  %v12165_v16 = vld [vmem:[%s19049_s3 + $0xd68] ss:$16 sps:$4 sm:$0xff]  }
 0x5e6   :  { %7953 = vmatpush1.bf16.msra.mxu1 %v12125_v24  ;;  %7911 = vmatprep.subr.bf16.mxu0 %v12126_v30  ;;  %v12166_v24 = vld [vmem:[%s19049_s3 + $0xd44] ss:$16 sps:$4 sm:$0xff]   ;;  %v12167_v30 = vld [vmem:[%s19049_s3 + $0xd4c] ss:$16 sps:$4 sm:$0xff]  }
 0x5e7   :  { %7954 = vmatprep.subr.bf16.mxu1 %v12127_v49  ;;  %v12168_v49 = vld [vmem:[%s19049_s3 + $0xd40] ss:$16 sps:$4 sm:$0xff]  }
 0x5e9   :  { %7912 = vmatpush1.bf16.msra.mxu0 %v12128_v46  ;;  %v12169_v46 = vld [vmem:[%s19049_s3 + $0xd48] ss:$16 sps:$4 sm:$0xff]  }
 0x5ea   :  { %7955 = vmatpush1.bf16.msra.mxu1 %v12129_v48  ;;  %7913 = vmatprep.subr.bf16.mxu0 %v12130_v60  ;;  %v12170_v48 = vld [vmem:[%s19049_s3 + $0xd24] ss:$16 sps:$4 sm:$0xff]   ;;  %v12171_v60 = vld [vmem:[%s19049_s3 + $0xd2c] ss:$16 sps:$4 sm:$0xff]  }
 0x5eb   :  { %7956 = vmatprep.subr.bf16.mxu1 %v12131_v31  ;;  %v12172_v31 = vld [vmem:[%s19049_s3 + $0xd20] ss:$16 sps:$4 sm:$0xff]  }
 0x5ed   :  { %7914 = vmatpush1.bf16.msra.mxu0 %v12132_v1  ;;  %v12173_v1 = vld [vmem:[%s19049_s3 + $0xd28] ss:$16 sps:$4 sm:$0xff]  }
 0x5ee   :  { %7957 = vmatpush1.bf16.msra.mxu1 %v12133_v51  ;;  %7915 = vmatprep.subr.bf16.mxu0 %v12134_v59  ;;  %v12174_v51 = vld [vmem:[%s19049_s3 + $0xd04] ss:$16 sps:$4 sm:$0xff]   ;;  %v12175_v59 = vld [vmem:[%s19049_s3 + $0xd0c] ss:$16 sps:$4 sm:$0xff]  }
 0x5ef   :  { %7958 = vmatprep.subr.bf16.mxu1 %v12135_v57  ;;  %v12176_v57 = vld [vmem:[%s19049_s3 + $0xd00] ss:$16 sps:$4 sm:$0xff]  }
 0x5f1   :  { %7916 = vmatpush1.bf16.msra.mxu0 %v12136_v19  ;;  %v12177_v19 = vld [vmem:[%s19049_s3 + $0xd08] ss:$16 sps:$4 sm:$0xff]  }
 0x5f2   :  { %7959 = vmatpush1.bf16.msra.mxu1 %v12137_v21  ;;  %7917 = vmatprep.subr.bf16.mxu0 %v12138_v13  ;;  %v12178_v21 = vld [vmem:[%s19051_s5 + $0x74] ss:$8 sps:$4 sm:$0xff]  }
 0x5f3   :  { %7960 = vmatprep.subr.bf16.mxu1 %v12139_v43  ;;  %v12179_v13 = vld [vmem:[%s19049_s3 + $0x2e4] ss:$16 sps:$4 sm:$0xff]   ;;  %v12180_v43 = vld [vmem:[%s19051_s5 + $0x70] ss:$8 sps:$4 sm:$0xff]  }
 0x5f5   :  { %7918 = vmatpush1.bf16.msra.mxu0 %v12140_v62  ;;  %v12181_v62 = vld [vmem:[%s19051_s5 + $0x64] ss:$8 sps:$4 sm:$0xff]  }
 0x5f6   :  { %7961 = vmatpush1.bf16.msra.mxu1 %v12141_v37  ;;  %7919 = vmatprep.subr.bf16.mxu0 %v12142_v54  ;;  %v12182_v37 = vld [vmem:[%s19049_s3 + $0x2e0] ss:$16 sps:$4 sm:$0xff]   ;;  %v12183_v54 = vld [vmem:[%s19049_s3 + $0x2c4] ss:$16 sps:$4 sm:$0xff]  }
 0x5f7   :  { %7962 = vmatprep.subr.bf16.mxu1 %v12143_v17  ;;  %v12185_v17 = vld [vmem:[%s19051_s5 + $0x54] ss:$8 sps:$4 sm:$0xff]  }
 0x5f9   :  { %7920 = vmatpush1.bf16.msra.mxu0 %v12144_v0  ;;  %v12186_v0 = vld [vmem:[%s19049_s3 + $0x2c0] ss:$16 sps:$4 sm:$0xff]  }
 0x5fa   :  { %7963 = vmatpush1.bf16.msra.mxu1 %v12145_v40  ;;  %7921 = vmatprep.subr.bf16.mxu0 %v12146_v52  ;;  %v12187_v40 = vld [vmem:[%s19049_s3 + $0x2a4] ss:$16 sps:$4 sm:$0xff]   ;;  %v12188_v52 = vld [vmem:[%s19051_s5 + $0x50] ss:$8 sps:$4 sm:$0xff]  }
 0x5fb   :  { %7964 = vmatprep.subr.bf16.mxu1 %v12147_v5  ;;  %v12189_v5 = vld [vmem:[%s19051_s5 + $0x44] ss:$8 sps:$4 sm:$0xff]  }
 0x5fd   :  { %7922 = vmatpush2.bf16.msra.mxu0 %v12148_v2  ;;  %v12190_v2 = vld [vmem:[%s19049_s3 + $0x2a0] ss:$16 sps:$4 sm:$0xff]  }
 0x5fe   :  { %7965 = vmatpush2.bf16.msra.mxu1 %v12149_v23  ;;  %7923 = vmatprep.subr.bf16.mxu0 %v12150_v35  ;;  %v12191_v23 = vld [vmem:[%s19049_s3 + $0x284] ss:$16 sps:$4 sm:$0xff]   ;;  %v12192_v35 = vld [vmem:[%s19051_s5 + $0x40] ss:$8 sps:$4 sm:$0xff]  }
 0x5ff   :  { %7966 = vmatprep.subr.bf16.mxu1 %v12151_v50  ;;  %v12193_v50 = vld [vmem:[%s19051_s5 + $0x34] ss:$8 sps:$4 sm:$0xff]  }
 0x601   :  { %7924 = vmatpush2.bf16.msra.mxu0 %v12152_v39  ;;  %v12194_v39 = vld [vmem:[%s19049_s3 + $0x280] ss:$16 sps:$4 sm:$0xff]  }
 0x602   :  { %7967 = vmatpush2.bf16.msra.mxu1 %v12153_v44  ;;  %7925 = vmatprep.subr.bf16.mxu0 %v12154_v15  ;;  %v12195_v44 = vld [vmem:[%s19049_s3 + $0x264] ss:$16 sps:$4 sm:$0xff]   ;;  %v12196_v15 = vld [vmem:[%s19051_s5 + $0x30] ss:$8 sps:$4 sm:$0xff]  }
 0x603   :  { %7968 = vmatprep.subr.bf16.mxu1 %v12155_v56  ;;  %v12197_v56 = vld [vmem:[%s19051_s5 + $0x24] ss:$8 sps:$4 sm:$0xff]  }
 0x605   :  { %7926 = vmatpush2.bf16.msra.mxu0 %v12156_v12  ;;  %v12198_v12 = vld [vmem:[%s19049_s3 + $0x260] ss:$16 sps:$4 sm:$0xff]  }
 0x606   :  { %7969 = vmatpush2.bf16.msra.mxu1 %v12157_v20  ;;  %7927 = vmatprep.subr.bf16.mxu0 %v12158_v10  ;;  %v12199_v20 = vld [vmem:[%s19049_s3 + $0x244] ss:$16 sps:$4 sm:$0xff]   ;;  %v12200_v10 = vld [vmem:[%s19051_s5 + $0x20] ss:$8 sps:$4 sm:$0xff]  }
 0x607   :  { %7970 = vmatprep.subr.bf16.mxu1 %v12159_v45  ;;  %v12201_v45 = vld [vmem:[%s19051_s5 + $0x14] ss:$8 sps:$4 sm:$0xff]  }
 0x609   :  { %7928 = vmatpush2.bf16.msra.mxu0 %v12160_v41  ;;  %v12202_v41 = vld [vmem:[%s19049_s3 + $0x240] ss:$16 sps:$4 sm:$0xff]  }
 0x60a   :  { %7971 = vmatpush2.bf16.msra.mxu1 %v12161_v18  ;;  %7929 = vmatprep.subr.bf16.mxu0 %v12162_v33  ;;  %v12203_v18 = vld [vmem:[%s19049_s3 + $0x224] ss:$16 sps:$4 sm:$0xff]   ;;  %v12204_v33 = vld [vmem:[%s19051_s5 + $0x10] ss:$8 sps:$4 sm:$0xff]  }
 0x60b   :  { %7972 = vmatprep.subr.bf16.mxu1 %v12163_v63  ;;  %v12205_v63 = vld [vmem:[%s19051_s5 + $0x4] ss:$8 sps:$4 sm:$0xff]  }
 0x60d   :  { %7930 = vmatpush2.bf16.msra.mxu0 %v12164_v9  ;;  %v12206_v9 = vld [vmem:[%s19049_s3 + $0x220] ss:$16 sps:$4 sm:$0xff]  }
 0x60e   :  { %7973 = vmatpush2.bf16.msra.mxu1 %v12165_v16  ;;  %7931 = vmatprep.subr.bf16.mxu0 %v12166_v24  ;;  %v12207_v16 = vld [vmem:[%s19049_s3 + $0x204] ss:$16 sps:$4 sm:$0xff]   ;;  %v12208_v24 = vld [vmem:[%s19051_s5] ss:$8 sps:$4 sm:$0xff]  }
 0x60f   :  { %7974 = vmatprep.subr.bf16.mxu1 %v12167_v30  ;;  %v12209_v30 = vld [vmem:[%s19051_s5 + $0xf4] ss:$8 sps:$4 sm:$0xff]  }
 0x611   :  { %7932 = vmatpush2.bf16.msra.mxu0 %v12168_v49  ;;  %v12210_v49 = vld [vmem:[%s19049_s3 + $0x200] ss:$16 sps:$4 sm:$0xff]  }
 0x612   :  { %7975 = vmatpush2.bf16.msra.mxu1 %v12169_v46  ;;  %7933 = vmatprep.subr.bf16.mxu0 %v12170_v48  ;;  %v12211_v46 = vld [vmem:[%s19049_s3 + $0x3e4] ss:$16 sps:$4 sm:$0xff]   ;;  %v12212_v48 = vld [vmem:[%s19051_s5 + $0xf0] ss:$8 sps:$4 sm:$0xff]  }
 0x613   :  { %7976 = vmatprep.subr.bf16.mxu1 %v12171_v60  ;;  %v12213_v60 = vld [vmem:[%s19051_s5 + $0xe4] ss:$8 sps:$4 sm:$0xff]  }
 0x615   :  { %7934 = vmatpush2.bf16.msra.mxu0 %v12172_v31  ;;  %v12214_v31 = vld [vmem:[%s19049_s3 + $0x3e0] ss:$16 sps:$4 sm:$0xff]  }
 0x616   :  { %7977 = vmatpush2.bf16.msra.mxu1 %v12173_v1  ;;  %7935 = vmatprep.subr.bf16.mxu0 %v12174_v51  ;;  %v12215_v1 = vld [vmem:[%s19049_s3 + $0x3c4] ss:$16 sps:$4 sm:$0xff]   ;;  %v12216_v51 = vld [vmem:[%s19051_s5 + $0xe0] ss:$8 sps:$4 sm:$0xff]  }
 0x617   :  { %7978 = vmatprep.subr.bf16.mxu1 %v12175_v59  ;;  %v12217_v59 = vld [vmem:[%s19051_s5 + $0xd4] ss:$8 sps:$4 sm:$0xff]  }
 0x619   :  { %7936 = vmatpush2.bf16.msra.mxu0 %v12176_v57  ;;  %v12218_v57 = vld [vmem:[%s19049_s3 + $0x3c0] ss:$16 sps:$4 sm:$0xff]  }
 0x61a   :  { %7979 = vmatpush2.bf16.msra.mxu1 %v12177_v19  ;;  %8041 = vmatprep.subr.bf16.mxu0 %v12178_v21  ;;  %v12219_v19 = vld [vmem:[%s19049_s3 + $0x3a4] ss:$16 sps:$4 sm:$0xff]   ;;  %v12220_v21 = vld [vmem:[%s19051_s5 + $0xd0] ss:$8 sps:$4 sm:$0xff]  }
 0x61b   :  { %8397 = vmatprep.subr.bf16.mxu1 %v12179_v13  ;;  %v12221_v13 = vld [vmem:[%s19051_s5 + $0xc4] ss:$8 sps:$4 sm:$0xff]  }
 0x61c   :  { %7938 = vmatmul.mubr.bf16.vlgmr.msra.gmra.mxu0 %v15979_v6 }
 0x61d   :  { %7981 = vmatmul.mubr.bf16.vlgmr.msra.gmra.mxu1 %v15979_v6  ;;  %8042 = vmatpush1.bf16.msra.mxu0 %v12180_v43  ;;  %v12184_v6 = vld [vmem:[%s19051_s5 + $0x60] ss:$8 sps:$4 sm:$0xff]  }
 0x61e   :  { %8043 = vmatprep.subr.bf16.mxu0 %v12181_v62  ;;  %8398 = vmatpush1.bf16.msra.mxu1 %v12182_v37  ;;  %v12222_v43 = vld [vmem:[%s19049_s3 + $0x3a0] ss:$16 sps:$4 sm:$0xff]   ;;  %v12223_v62 = vld [vmem:[%s19049_s3 + $0x384] ss:$16 sps:$4 sm:$0xff]  }
 0x61f   :  { %8399 = vmatprep.subr.bf16.mxu1 %v12183_v54  ;;  %v12224_v37 = vld [vmem:[%s19051_s5 + $0xc0] ss:$8 sps:$4 sm:$0xff]   ;;  %v12225_v54 = vld [vmem:[%s19051_s5 + $0xb4] ss:$8 sps:$4 sm:$0xff]  }
 0x621   :  { %8044 = vmatpush1.bf16.msra.mxu0 %v12184_v6  ;;  %v12226_v6 = vld [vmem:[%s19049_s3 + $0x380] ss:$16 sps:$4 sm:$0xff]  }
 0x622   :  { %8045 = vmatprep.subr.bf16.mxu0 %v12185_v17  ;;  %8400 = vmatpush1.bf16.msra.mxu1 %v12186_v0  ;;  %v12227_v17 = vld [vmem:[%s19049_s3 + $0x364] ss:$16 sps:$4 sm:$0xff]   ;;  %v12228_v0 = vld [vmem:[%s19051_s5 + $0xb0] ss:$8 sps:$4 sm:$0xff]  }
 0x623   :  { %8401 = vmatprep.subr.bf16.mxu1 %v12187_v40  ;;  %v12229_v40 = vld [vmem:[%s19051_s5 + $0xa4] ss:$8 sps:$4 sm:$0xff]  }
 0x625   :  { %8046 = vmatpush1.bf16.msra.mxu0 %v12188_v52  ;;  %v12230_v52 = vld [vmem:[%s19049_s3 + $0x360] ss:$16 sps:$4 sm:$0xff]  }
 0x626   :  { %8047 = vmatprep.subr.bf16.mxu0 %v12189_v5  ;;  %8402 = vmatpush1.bf16.msra.mxu1 %v12190_v2  ;;  %v12231_v5 = vld [vmem:[%s19049_s3 + $0x344] ss:$16 sps:$4 sm:$0xff]   ;;  %v12232_v2 = vld [vmem:[%s19051_s5 + $0xa0] ss:$8 sps:$4 sm:$0xff]  }
 0x627   :  { %8403 = vmatprep.subr.bf16.mxu1 %v12191_v23  ;;  %v12233_v23 = vld [vmem:[%s19051_s5 + $0x94] ss:$8 sps:$4 sm:$0xff]  }
 0x629   :  { %8048 = vmatpush1.bf16.msra.mxu0 %v12192_v35  ;;  %v12234_v35 = vld [vmem:[%s19049_s3 + $0x340] ss:$16 sps:$4 sm:$0xff]  }
 0x62a   :  { %8049 = vmatprep.subr.bf16.mxu0 %v12193_v50  ;;  %8404 = vmatpush1.bf16.msra.mxu1 %v12194_v39  ;;  %v12235_v50 = vld [vmem:[%s19049_s3 + $0x324] ss:$16 sps:$4 sm:$0xff]   ;;  %v12236_v39 = vld [vmem:[%s19051_s5 + $0x90] ss:$8 sps:$4 sm:$0xff]  }
 0x62b   :  { %8405 = vmatprep.subr.bf16.mxu1 %v12195_v44  ;;  %v12237_v44 = vld [vmem:[%s19051_s5 + $0x84] ss:$8 sps:$4 sm:$0xff]  }
 0x62d   :  { %8050 = vmatpush1.bf16.msra.mxu0 %v12196_v15  ;;  %v12238_v15 = vld [vmem:[%s19049_s3 + $0x320] ss:$16 sps:$4 sm:$0xff]  }
 0x62e   :  { %8051 = vmatprep.subr.bf16.mxu0 %v12197_v56  ;;  %8406 = vmatpush1.bf16.msra.mxu1 %v12198_v12  ;;  %v12239_v56 = vld [vmem:[%s19049_s3 + $0x304] ss:$16 sps:$4 sm:$0xff]   ;;  %v12240_v12 = vld [vmem:[%s19051_s5 + $0x80] ss:$8 sps:$4 sm:$0xff]  }
 0x62f   :  { %8407 = vmatprep.subr.bf16.mxu1 %v12199_v20  ;;  %v12241_v20 = vld [vmem:[%s19049_s3 + $0x2ec] ss:$16 sps:$4 sm:$0xff]  }
 0x631   :  { %8052 = vmatpush1.bf16.msra.mxu0 %v12200_v10  ;;  %v12242_v10 = vld [vmem:[%s19049_s3 + $0x300] ss:$16 sps:$4 sm:$0xff]  }
 0x632   :  { %8053 = vmatprep.subr.bf16.mxu0 %v12201_v45  ;;  %8408 = vmatpush1.bf16.msra.mxu1 %v12202_v41  ;;  %v12243_v45 = vld [vmem:[%s19049_s3 + $0xe4] ss:$16 sps:$4 sm:$0xff]   ;;  %v6952_v41 = vpop.f32.mrf.mxu1 }
 0x633   :  { %8409 = vmatprep.subr.bf16.mxu1 %v12203_v18  ;;  %v17267_v18 = vpop.f32.mrf.mxu0 }
 0x635   :  { %8054 = vmatpush1.bf16.msra.mxu0 %v12204_v33  ;;  %v6954_v33 = vpop.f32.mrf.mxu1 }
 0x636   :  { %8055 = vmatprep.subr.bf16.mxu0 %v12205_v63  ;;  %8410 = vmatpush1.bf16.msra.mxu1 %v12206_v9  ;;  %v17269_v63 = vpop.f32.mrf.mxu0 }
 0x637   :  { %8411 = vmatprep.subr.bf16.mxu1 %v12207_v16  ;;  %v6956_v9 = vpop.f32.mrf.mxu1 }
 0x638   :  { %v17271_v16 = vpop.f32.mrf.mxu0 }
 0x639   :  { %8056 = vmatpush1.bf16.msra.mxu0 %v12208_v24  ;;  %v6958_v24 = vpop.f32.mrf.mxu1 }
 0x63a   :  { %8057 = vmatprep.subr.bf16.mxu0 %v12209_v30  ;;  %8412 = vmatpush1.bf16.msra.mxu1 %v12210_v49  ;;  %v17273_v30 = vpop.f32.mrf.mxu0 }
 0x63b   :  { %8413 = vmatprep.subr.bf16.mxu1 %v12211_v46  ;;  %v7112_v49 = vpop.f32.mrf.mxu1 }
 0x63c   :  { %v17275_v46 = vpop.f32.mrf.mxu0  ;;  %v7113_v26 = vadd.f32 %v7112_v49, %v6952_v41 }
 0x63d   :  { %8058 = vmatpush2.bf16.msra.mxu0 %v12212_v48  ;;  %v7114_v48 = vpop.f32.mrf.mxu1 }
 0x63e   :  { %8059 = vmatprep.subr.bf16.mxu0 %v12213_v60  ;;  %8414 = vmatpush2.bf16.msra.mxu1 %v12214_v31  ;;  %v7071_v60 = vpop.f32.mrf.mxu0  ;;  %v7115_v32 = vadd.f32 %v7114_v48, %v6954_v33 }
 0x63f   :  { %8415 = vmatprep.subr.bf16.mxu1 %v12215_v1  ;;  %v7116_v31 = vpop.f32.mrf.mxu1 }
 0x640   :  { %v17277_v1 = vpop.f32.mrf.mxu0  ;;  %v7117_v47 = vadd.f32 %v7116_v31, %v6956_v9 }
 0x641   :  { %8060 = vmatpush2.bf16.msra.mxu0 %v12216_v51  ;;  %v7118_v51 = vpop.f32.mrf.mxu1 }
 0x642   :  { %8061 = vmatprep.subr.bf16.mxu0 %v12217_v59  ;;  %8416 = vmatpush2.bf16.msra.mxu1 %v12218_v57  ;;  %v17279_v59 = vpop.f32.mrf.mxu0  ;;  %v7119_v22 = vadd.f32 %v7118_v51, %v6958_v24 }
 0x643   :  { %8417 = vmatprep.subr.bf16.mxu1 %v12219_v19  ;;  %v7300_v57 = vpop.f32.mrf.mxu1 }
 0x644   :  { %v17281_v19 = vpop.f32.mrf.mxu0  ;;  %v7311_v53 = vadd.f32 %v7300_v57, %v7113_v26 }
 0x645   :  { %8062 = vmatpush2.bf16.msra.mxu0 %v12220_v21  ;;  %v7302_v21 = vpop.f32.mrf.mxu1 }
 0x646   :  { %8063 = vmatprep.subr.bf16.mxu0 %v12221_v13  ;;  %8418 = vmatpush2.bf16.msra.mxu1 %v12222_v43  ;;  %v17283_v13 = vpop.f32.mrf.mxu0  ;;  %v7312_v55 = vadd.f32 %v7302_v21, %v7115_v32 }
 0x647   :  { %8419 = vmatprep.subr.bf16.mxu1 %v12223_v62  ;;  %v7304_v43 = vpop.f32.mrf.mxu1 }
 0x648   :  { %v17285_v62 = vpop.f32.mrf.mxu0  ;;  %v7315_v25 = vadd.f32 %v7304_v43, %v7117_v47 }
 0x649   :  { %8064 = vmatpush2.bf16.msra.mxu0 %v12224_v37  ;;  %v7306_v37 = vpop.f32.mrf.mxu1 }
 0x64a   :  { %8065 = vmatprep.subr.bf16.mxu0 %v12225_v54  ;;  %8420 = vmatpush2.bf16.msra.mxu1 %v12226_v6  ;;  %v17287_v54 = vpop.f32.mrf.mxu0  ;;  %v7316_v14 = vadd.f32 %v7306_v37, %v7119_v22 }
 0x64b   :  { %8421 = vmatprep.subr.bf16.mxu1 %v12227_v17  ;;  %v7466_v6 = vpop.f32.mrf.mxu1 }
 0x64c   :  { %v17289_v17 = vpop.f32.mrf.mxu0  ;;  %v7477_v7 = vadd.f32 %v7466_v6, %v7311_v53 }
 0x64d   :  { %8066 = vmatpush2.bf16.msra.mxu0 %v12228_v0  ;;  %v7468_v0 = vpop.f32.mrf.mxu1 }
 0x64e   :  { %8067 = vmatprep.subr.bf16.mxu0 %v12229_v40  ;;  %8422 = vmatpush2.bf16.msra.mxu1 %v12230_v52  ;;  %v17291_v40 = vpop.f32.mrf.mxu0  ;;  %v7478_v42 = vadd.f32 %v7468_v0, %v7312_v55 }
 0x64f   :  { %8423 = vmatprep.subr.bf16.mxu1 %v12231_v5  ;;  %v7470_v52 = vpop.f32.mrf.mxu1 }
 0x650   :  { %v17293_v5 = vpop.f32.mrf.mxu0  ;;  %v7481_v36 = vadd.f32 %v7470_v52, %v7315_v25 }
 0x651   :  { %8068 = vmatpush2.bf16.msra.mxu0 %v12232_v2  ;;  %v7472_v2 = vpop.f32.mrf.mxu1 }
 0x652   :  { %8069 = vmatprep.subr.bf16.mxu0 %v12233_v23  ;;  %8424 = vmatpush2.bf16.msra.mxu1 %v12234_v35  ;;  %v17295_v23 = vpop.f32.mrf.mxu0  ;;  %v7482_v41 = vadd.f32 %v7472_v2, %v7316_v14 }
 0x653   :  { %8425 = vmatprep.subr.bf16.mxu1 %v12235_v50 }
 0x655   :  { %8070 = vmatpush2.bf16.msra.mxu0 %v12236_v39 }
 0x656   :  { %8071 = vmatprep.subr.bf16.mxu0 %v12237_v44  ;;  %8426 = vmatpush2.bf16.msra.mxu1 %v12238_v15 }
 0x657   :  { %8427 = vmatprep.subr.bf16.mxu1 %v12239_v56 }
 0x659   :  { %8072 = vmatpush2.bf16.msra.mxu0 %v12240_v12 }
 0x65a   :  { %8438 = vmatprep.subr.bf16.mxu0 %v12241_v20  ;;  %8428 = vmatpush2.bf16.msra.mxu1 %v12242_v10 }
 0x65b   :  { %8487 = vmatprep.subr.bf16.mxu1 %v12243_v45 }
 0x65c   :  { %v17297_v50 = vpop.f32.mrf.mxu0 }
 0x65d   :  { %v7648_v35 = vpop.f32.mrf.mxu1 }
 0x65e   :  { %v7607_v44 = vpop.f32.mrf.mxu0  ;;  %v7659_v34 = vadd.f32 %v7648_v35, %v7477_v7  ;;  %v7072_v7 = vadd.f32 %v7071_v60, %v17269_v63 }
 0x65f   :  { %v7650_v39 = vpop.f32.mrf.mxu1 }
 0x660   :  { %v17299_v56 = vpop.f32.mrf.mxu0  ;;  %v7660_v58 = vadd.f32 %v7650_v39, %v7478_v42  ;;  %v19248_v39 = vld [vmem:[#allocation31_spill] sm:$0xff] }
 0x661   :  { %v7652_v15 = vpop.f32.mrf.mxu1 }
 0x662   :  { %v17301_v20 = vpop.f32.mrf.mxu0  ;;  %v7663_v49 = vadd.f32 %v7652_v15, %v7481_v36  ;;  %v7074_v36 = vadd.f32 %v17277_v1, %v17271_v16  ;;  %v19250_v15 = vld [vmem:[#allocation29_spill] sm:$0xff] }
 0x663   :  { %v7654_v12 = vpop.f32.mrf.mxu1 }
 0x664   :  { %v7664_v32 = vadd.f32 %v7654_v12, %v7482_v41 }
 0x69c   :  { %v17303_v45 = vpop.f32.mrf.mxu0 }
 0x69d   :  { %v7814_v10 = vpop.f32.mrf.mxu1  ;;  %19247 = vst [vmem:[#allocation39_spill] sm:$0xff] %v17303_v45 }
 0x69e   :  { %v7773_v29 = vpop.f32.mrf.mxu0  ;;  %v7825_v61 = vadd.f32 %v7814_v10, %v7659_v34 }
 0x69f   :  { %v7816_v4 = vpop.f32.mrf.mxu1 }
 0x6a0   :  { %v7775_v11 = vpop.f32.mrf.mxu0  ;;  %v7826_v33 = vadd.f32 %v7816_v4, %v7660_v58  ;;  %v7076_v4 = vadd.f32 %v17279_v59, %v17273_v30  ;;  %v7310_v58 = vadd.f32 %v17283_v13, %v7072_v7  ;;  %v7070_v13 = vadd.f32 %v17275_v46, %v17267_v18 }
 0x6a1   :  { %v7818_v28 = vpop.f32.mrf.mxu1 }
 0x6a2   :  { %v7777_v45 = vpop.f32.mrf.mxu0  ;;  %v7829_v53 = vadd.f32 %v7818_v28, %v7663_v49  ;;  %v7314_v60 = vadd.f32 %v17287_v54, %v7076_v4  ;;  %v7476_v31 = vadd.f32 %v17291_v40, %v7310_v58  ;;  %v7309_v54 = vadd.f32 %v17281_v19, %v7070_v13  ;;  %v12245_v4 = vld [vmem:[%s19049_s3 + $0x2cc] ss:$16 sps:$4 sm:$0xff]   ;;  %v12248_v58 = vld [vmem:[%s19049_s3 + $0x2a8] ss:$16 sps:$4 sm:$0xff]  }
 0x6a3   :  { %v7820_v27 = vpop.f32.mrf.mxu1  ;;  %v12262_v13 = vld [vmem:[%s19049_s3 + $0x3c8] ss:$16 sps:$4 sm:$0xff]  }
 0x6a4   :  { %v7830_v22 = vadd.f32 %v7820_v27, %v7664_v32  ;;  %v7313_v27 = vadd.f32 %v17285_v62, %v7074_v36  ;;  %v7480_v59 = vadd.f32 %v17295_v23, %v7314_v60  ;;  %v7658_v57 = vadd.f32 %v7607_v44, %v7476_v31  ;;  %v19249_v46 = vld [vmem:[#allocation39_spill] sm:$0xff] }
 0x6a5   :  { %v12244_v36 = vld [vmem:[%s19049_s3 + $0x2e8] ss:$16 sps:$4 sm:$0xff]   ;;  %v12253_v60 = vld [vmem:[%s19049_s3 + $0x24c] ss:$16 sps:$4 sm:$0xff]  }
 0x6a6   :  { %v7479_v30 = vadd.f32 %v17293_v5, %v7313_v27  ;;  %v7662_v62 = vadd.f32 %v17301_v20, %v7480_v59  ;;  %v7824_v37 = vadd.f32 %v7773_v29, %v7658_v57  ;;  %v7475_v5 = vadd.f32 %v17289_v17, %v7309_v54  ;;  %v12252_v27 = vld [vmem:[%s19049_s3 + $0x268] ss:$16 sps:$4 sm:$0xff]   ;;  %v12259_v59 = vld [vmem:[%s19049_s3 + $0x3ec] ss:$16 sps:$4 sm:$0xff]  }
 0x6a7   :  { %v12254_v31 = vld [vmem:[%s19049_s3 + $0x248] ss:$16 sps:$4 sm:$0xff]  }
 0x6a8   :  { %v7661_v43 = vadd.f32 %v17299_v56, %v7479_v30  ;;  %v7828_v40 = vadd.f32 %v7777_v45, %v7662_v62  ;;  %v7657_v35 = vadd.f32 %v17297_v50, %v7475_v5  ;;  %v12257_v30 = vld [vmem:[%s19049_s3 + $0x20c] ss:$16 sps:$4 sm:$0xff]   ;;  %v12260_v57 = vld [vmem:[%s19049_s3 + $0x3e8] ss:$16 sps:$4 sm:$0xff]  }
 0x6a9   :  { %v12264_v62 = vld [vmem:[%s19049_s3 + $0x3a8] ss:$16 sps:$4 sm:$0xff]   ;;  %v12271_v5 = vld [vmem:[%s19049_s3 + $0x32c] ss:$16 sps:$4 sm:$0xff]  }
 0x6aa   :  { %v7827_v6 = vadd.f32 %v7775_v11, %v7661_v43  ;;  %v7823_v44 = vadd.f32 %v19249_v46, %v7657_v35  ;;  %v12263_v43 = vld [vmem:[%s19049_s3 + $0x3ac] ss:$16 sps:$4 sm:$0xff]   ;;  %v12266_v54 = vld [vmem:[%s19049_s3 + $0x388] ss:$16 sps:$4 sm:$0xff]  }
 0x6ab   :  { %v12274_v35 = vld [vmem:[%s19049_s3 + $0x308] ss:$16 sps:$4 sm:$0xff]  }
 0x6dc   :  { %v7939_v48 = vpop.f32.mrf.mxu0 }
 0x6dd   :  { %v7982_v38 = vpop.f32.mrf.mxu1  ;;  %v7991_v11 = vadd.f32 %v7939_v48, %v7823_v44 }
 0x6de   :  { %v7993_v26 = vadd.f32 %v7982_v38, %v7825_v61  ;;  %v7941_v61 = vpop.f32.mrf.mxu0 }
 0x6df   :  { %v7984_v9 = vpop.f32.mrf.mxu1  ;;  %v7992_v52 = vadd.f32 %v7941_v61, %v7824_v37  ;;  %v7999_v50 = vadd.f32 %v7991_v11, %v19250_v15  ;;  %v12246_v61 = vld [vmem:[%s19049_s3 + $0x2c8] ss:$16 sps:$4 sm:$0xff]   ;;  %v12265_v37 = vld [vmem:[%s19049_s3 + $0x38c] ss:$16 sps:$4 sm:$0xff]  }
 0x6e0   :  { %v8001_v24 = vadd.f32 %v7993_v26, %v15336_v8  ;;  %v7994_v47 = vadd.f32 %v7984_v9, %v7826_v33  ;;  %v7943_v51 = vpop.f32.mrf.mxu0 }
 0x6e1   :  { %v7986_v55 = vpop.f32.mrf.mxu1  ;;  %v7995_v2 = vadd.f32 %v7943_v51, %v7827_v6  ;;  %v8000_v18 = vadd.f32 %v7992_v52, %v19248_v39  ;;  %v12258_v51 = vld [vmem:[%s19049_s3 + $0x208] ss:$16 sps:$4 sm:$0xff]   ;;  %v12267_v6 = vld [vmem:[%s19049_s3 + $0x36c] ss:$16 sps:$4 sm:$0xff]  }
 0x6e2   :  { %v10759_v25 = vmul.f32 -1.442695, %v8001_v24  ;;  %v8002_v42 = vadd.f32 %v7994_v47, %v15349_v3  ;;  %v7997_v34 = vadd.f32 %v7986_v55, %v7829_v53  ;;  %v7945_v0 = vpop.f32.mrf.mxu0  ;;  %v12270_v52 = vld [vmem:[%s19049_s3 + $0x348] ss:$16 sps:$4 sm:$0xff]  }
 0x6e3   :  { %v7988_v38 = vpop.f32.mrf.mxu1  ;;  %v7996_v23 = vadd.f32 %v7945_v0, %v7828_v40  ;;  %v8003_v56 = vadd.f32 %v7995_v2, %v19250_v15  ;;  %v12268_v0 = vld [vmem:[%s19049_s3 + $0x368] ss:$16 sps:$4 sm:$0xff]   ;;  %v12269_v40 = vld [vmem:[%s19049_s3 + $0x34c] ss:$16 sps:$4 sm:$0xff]  }
 0x6e4   :  { %v10760_v14 = vmul.f32 -1.442695, %v8002_v42  ;;  %v8005_v28 = vadd.f32 %v7997_v34, %v15336_v8  ;;  %v7998_v63 = vadd.f32 %v7988_v38, %v7830_v22  ;;  %11692 = vpow2.f32 %v10759_v25  ;;  %v12247_v38 = vld [vmem:[%s19049_s3 + $0x2ac] ss:$16 sps:$4 sm:$0xff]   ;;  %v12272_v2 = vld [vmem:[%s19049_s3 + $0x328] ss:$16 sps:$4 sm:$0xff]  }
 0x6e5   :  { %v8004_v12 = vadd.f32 %v7996_v23, %v19248_v39  ;;  %v12273_v23 = vld [vmem:[%s19049_s3 + $0x30c] ss:$16 sps:$4 sm:$0xff]  }
 0x6e6   :  { %11694 = vpow2.f32 %v10760_v14  ;;  %v10761_v16 = vmul.f32 -1.442695, %v8005_v28  ;;  %v8006_v1 = vadd.f32 %v7998_v63, %v15349_v3  ;;  %v12249_v14 = vld [vmem:[%s19049_s3 + $0x28c] ss:$16 sps:$4 sm:$0xff]   ;;  %v12250_v28 = vld [vmem:[%s19049_s3 + $0x288] ss:$16 sps:$4 sm:$0xff]  }
 0x6e7   :  { %v12251_v63 = vld [vmem:[%s19049_s3 + $0x26c] ss:$16 sps:$4 sm:$0xff]  }
 0x6e8   :  { %11696 = vpow2.f32 %v10761_v16  ;;  %v10762_v21 = vmul.f32 -1.442695, %v8006_v1  ;;  %v12255_v16 = vld [vmem:[%s19049_s3 + $0x22c] ss:$16 sps:$4 sm:$0xff]   ;;  %v12256_v1 = vld [vmem:[%s19049_s3 + $0x228] ss:$16 sps:$4 sm:$0xff]  }
 0x6ea   :  { %11698 = vpow2.f32 %v10762_v21  ;;  %v12261_v21 = vld [vmem:[%s19049_s3 + $0x3cc] ss:$16 sps:$4 sm:$0xff]  }
 0x6eb   :  { %11700 = vtanh.f32 %v8000_v18  ;;  %v12275_v18 = vld [vmem:[%s19049_s3 + $0xec] ss:$16 sps:$4 sm:$0xff]  }
 0x6ec   :  { %11702 = vtanh.f32 %v8003_v56  ;;  %v19251_v56 = vld [vmem:[#allocation38_spill] sm:$0xff] }
 0x6ed   :  { %11704 = vtanh.f32 %v8004_v12  ;;  %v19252_v12 = vld [vmem:[#allocation48_spill] sm:$0xff] }
 0x6f1   :  { %v11693_v29 = vpop.eup %11692 }
 0x6f2   :  { %v8023_v45 = vadd.f32 1.0, %v11693_v29 }
 0x6f3   :  { %v11695_v19 = vpop.eup %11694 }
 0x6f4   :  { %v8024_v20 = vadd.f32 1.0, %v11695_v19 }
 0x6f5   :  { %v11697_v10 = vpop.eup %11696 }
 0x6f6   :  { %v8025_v17 = vadd.f32 1.0, %v11697_v10  ;;  %11706 = vrcp.f32 %v8024_v20 }
 0x6f7   :  { %v11699_v41 = vpop.eup %11698 }
 0x6f8   :  { %11708 = vrcp.f32 %v8025_v17  ;;  %v8026_v49 = vadd.f32 1.0, %v11699_v41  ;;  %v11701_v33 = vpop.eup %11700  ;;  %v19253_v17 = vld [vmem:[#allocation2_spill] sm:$0xff] }
 0x6f9   :  { %11710 = vrcp.f32 %v8023_v45  ;;  %v11703_v26 = vpop.eup %11702 }
 0x6fa   :  { %11712 = vrcp.f32 %v8026_v49  ;;  %v11705_v9 = vpop.eup %11704 }
 0x6fb   :  { %11714 = vtanh.f32 %v7999_v50 }
 0x703   :  { %v11707_v48 = vpop.eup %11706 }
 0x704   :  { %v8036_v55 = vmul.f32 %v11707_v48, %v11701_v33 }
 0x705   :  { %v11709_v32 = vpop.eup %11708 }
 0x706   :  { %v11711_v53 = vpop.eup %11710  ;;  %v8037_v47 = vmul.f32 %v11709_v32, %v11703_v26 }
 0x707   :  { %v11713_v24 = vpop.eup %11712 }
 0x708   :  { %v11715_v7 = vpop.eup %11714  ;;  %v8038_v22 = vmul.f32 %v11713_v24, %v11705_v9 }
 0x709   :  { %v8035_v25 = vmul.f32 %v11715_v7, %v11711_v53 }
 0x70a   :  { %v8040_v42 = vpack.c.bf16 %v8038_v22, %v8036_v55 }
 0x70b   :  { %v8039_v34 = vpack.c.bf16 %v8037_v47, %v8035_v25 }
 0x70c   :  { %8073 = vmatprep.mubr.bf16.mxu0 %v8040_v42 }
 0x70d   :  { %8074 = vmatmul.mubr.bf16.vlgmr.msra.gmra.mxu0 %v8039_v34 }
 0x70e   :  { %8439 = vmatpush1.bf16.msra.mxu0 %v12244_v36 }
 0x70f   :  { %8440 = vmatprep.subr.bf16.mxu0 %v12245_v4 }
 0x712   :  { %8441 = vmatpush1.bf16.msra.mxu0 %v12246_v61 }
 0x713   :  { %8442 = vmatprep.subr.bf16.mxu0 %v12247_v38 }
 0x716   :  { %8443 = vmatpush1.bf16.msra.mxu0 %v12248_v58 }
 0x717   :  { %8444 = vmatprep.subr.bf16.mxu0 %v12249_v14 }
 0x71a   :  { %8445 = vmatpush1.bf16.msra.mxu0 %v12250_v28 }
 0x71b   :  { %8446 = vmatprep.subr.bf16.mxu0 %v12251_v63  ;;  %v19254_v63 = vld [vmem:[#allocation32_spill] sm:$0xff] }
 0x71e   :  { %8447 = vmatpush1.bf16.msra.mxu0 %v12252_v27 }
 0x71f   :  { %8448 = vmatprep.subr.bf16.mxu0 %v12253_v60  ;;  %v19255_v60 = vld [vmem:[#allocation42_spill] sm:$0xff] }
 0x722   :  { %8449 = vmatpush1.bf16.msra.mxu0 %v12254_v31 }
 0x723   :  { %8450 = vmatprep.subr.bf16.mxu0 %v12255_v16 }
 0x726   :  { %8451 = vmatpush1.bf16.msra.mxu0 %v12256_v1 }
 0x727   :  { %8452 = vmatprep.subr.bf16.mxu0 %v12257_v30  ;;  %v19256_v30 = vld [vmem:[#allocation40_spill] sm:$0xff] }
 0x72a   :  { %8453 = vmatpush1.bf16.msra.mxu0 %v12258_v51 }
 0x72b   :  { %8454 = vmatprep.subr.bf16.mxu0 %v12259_v59  ;;  %v19257_v59 = vld [vmem:[#allocation33_spill] sm:$0xff] }
 0x72e   :  { %8455 = vmatpush2.bf16.msra.mxu0 %v12260_v57 }
 0x72f   :  { %8456 = vmatprep.subr.bf16.mxu0 %v12261_v21  ;;  %v19258_v21 = vld [vmem:[#allocation34_spill] sm:$0xff] }
 0x732   :  { %8457 = vmatpush2.bf16.msra.mxu0 %v12262_v13 }
 0x733   :  { %8458 = vmatprep.subr.bf16.mxu0 %v12263_v43  ;;  %v19259_v43 = vld [vmem:[#allocation44_spill] sm:$0xff] }
 0x736   :  { %8459 = vmatpush2.bf16.msra.mxu0 %v12264_v62 }
 0x737   :  { %8460 = vmatprep.subr.bf16.mxu0 %v12265_v37 }
 0x73a   :  { %8461 = vmatpush2.bf16.msra.mxu0 %v12266_v54 }
 0x73b   :  { %8462 = vmatprep.subr.bf16.mxu0 %v12267_v6  ;;  %v19260_v6 = vld [vmem:[#allocation43_spill] sm:$0xff] }
 0x73e   :  { %8463 = vmatpush2.bf16.msra.mxu0 %v12268_v0 }
 0x73f   :  { %8464 = vmatprep.subr.bf16.mxu0 %v12269_v40  ;;  %v19261_v40 = vld [vmem:[#allocation35_spill] sm:$0xff] }
 0x742   :  { %8465 = vmatpush2.bf16.msra.mxu0 %v12270_v52 }
 0x743   :  { %8466 = vmatprep.subr.bf16.mxu0 %v12271_v5 }
 0x746   :  { %8467 = vmatpush2.bf16.msra.mxu0 %v12272_v2 }
 0x747   :  { %8468 = vmatprep.subr.bf16.mxu0 %v12273_v23 }
 0x74a   :  { %8469 = vmatpush2.bf16.msra.mxu0 %v12274_v35 }
 0x74b   :  { %8528 = vmatprep.subr.bf16.mxu0 %v12275_v18 }
 0x7cd   :  { %v8075_v46 = vpop.f32.mrf.mxu0 }
 0x7ce   :  { %v8076_v29 = vadd.f32 %v8075_v46, %v19251_v56 }
 0x7cf   :  { %v8077_v44 = vpop.f32.mrf.mxu0 }
 0x7d0   :  { %v8078_v19 = vadd.f32 %v8077_v44, %v19252_v12 }
 0x7d1   :  { %v8079_v11 = vpop.f32.mrf.mxu0 }
 0x7d2   :  { %v8088_v20 = vcombine.low %v8076_v29, %v8078_v19  ;;  %v8089_v10 = vcombine.high %v8076_v29, %v8078_v19  ;;  %v8080_v33 = vadd.f32 %v8079_v11, %v19251_v56 }
 0x7d3   :  { %v8081_v45 = vpop.f32.mrf.mxu0 }
 0x7d4   :  { %v8096_v41 = vrot.slane %v8088_v20, %v19253_v17  ;;  %v8103_v50 = vrot.slane %v8089_v10, %v19253_v17  ;;  %v8082_v49 = vadd.f32 %v8081_v45, %v19252_v12 }
 0x7d6   :  { %v8104_v26 = vcombine.high %v8096_v41, %v8096_v41  ;;  %v8105_v9 = vcombine.high %v8103_v50, %v8103_v50  ;;  %v8112_v48 = vrot.slane %v8096_v41, %v19253_v17  ;;  %v8119_v32 = vrot.slane %v8103_v50, %v19253_v17 }
 0x7d7   :  { %v8138_v53 = vcombine.low %v8080_v33, %v8082_v49  ;;  %v8139_v24 = vcombine.high %v8080_v33, %v8082_v49 }
 0x7d8   :  { %v8126_v47 = vrot.slane %v8104_v26, %v19253_v17  ;;  %v8133_v7 = vrot.slane %v8105_v9, %v19253_v17  ;;  %v8134_v55 = vcombine.high %v8112_v48, %v8112_v48  ;;  %v8135_v22 = vcombine.high %v8119_v32, %v8119_v32 }
 0x7d9   :  { %v8200_v25 = vmul.f32 0.4, %v8112_v48  ;;  %v8204_v42 = vmul.f32 0.4, %v8119_v32  ;;  %v8146_v34 = vrot.slane %v8138_v53, %v19253_v17  ;;  %v8153_v36 = vrot.slane %v8139_v24, %v19253_v17  ;;  %v19262_v53 = vld [vmem:[#allocation45_spill] sm:$0xff] }
 0x7da   :  { %v8136_v4 = vcombine.high %v8126_v47, %v8126_v47  ;;  %v8137_v61 = vcombine.high %v8133_v7, %v8133_v7  ;;  %v8201_v38 = vmul.f32 0.4, %v8126_v47  ;;  %v8202_v58 = vmul.f32 0.4, %v8134_v55  ;;  %v19263_v55 = vld [vmem:[#allocation28_spill] sm:$0xff] }
 0x7db   :  { %v8205_v14 = vmul.f32 0.4, %v8133_v7  ;;  %v8206_v28 = vmul.f32 0.4, %v8135_v22  ;;  %v8214_v27 = vadd.f32 %v8200_v25, %v19254_v63  ;;  %v8218_v31 = vadd.f32 %v8204_v42, %v19255_v60  ;;  %v19264_v25 = vld [vmem:[#allocation46_spill] sm:$0xff]  ;;  %v19267_v63 = vld [vmem:[#allocation37_spill] sm:$0xff] }
 0x7dc   :  { %v8203_v16 = vmul.f32 0.4, %v8136_v4  ;;  %v8207_v1 = vmul.f32 0.4, %v8137_v61  ;;  %v8215_v51 = vadd.f32 %v8201_v38, %v19256_v30  ;;  %v8216_v57 = vadd.f32 %v8202_v58, %v19257_v59  ;;  %v19265_v4 = vld [vmem:[#allocation36_spill] sm:$0xff]  ;;  %v19266_v38 = vld [vmem:[#allocation27_spill] sm:$0xff] }
 0x7dd   :  { %v8219_v13 = vadd.f32 %v8205_v14, %v19258_v21  ;;  %v17446_v62 = vadd.f32 %v8206_v28, %v19259_v43  ;;  %v8154_v37 = vcombine.high %v8146_v34, %v8146_v34  ;;  %v8155_v54 = vcombine.high %v8153_v36, %v8153_v36 }
 0x7de   :  { %v8217_v0 = vadd.f32 %v8203_v16, %v19260_v6  ;;  %v8221_v52 = vadd.f32 %v8207_v1, %v19261_v40  ;;  %v8242_v5 = vcombine.low %v8214_v27, %v8215_v51  ;;  %v8162_v2 = vrot.slane %v8146_v34, %v19253_v17 }
 0x7df   :  { %v8244_v23 = vcombine.low %v8218_v31, %v8219_v13  ;;  %v8272_v35 = vrot.slane %v17446_v62, %v19253_v17  ;;  %v8169_v18 = vrot.slane %v8153_v36, %v19253_v17  ;;  %v8176_v46 = vrot.slane %v8154_v37, %v19253_v17 }
 0x7e0   :  { %v8243_v44 = vcombine.low %v8216_v57, %v8217_v0  ;;  %v8251_v29 = vrot.slane %v8242_v5, %v19253_v17  ;;  %v8183_v19 = vrot.slane %v8155_v54, %v19253_v17  ;;  %v8184_v11 = vcombine.high %v8162_v2, %v8162_v2 }
 0x7e1   :  { %v8265_v20 = vrot.slane %v8244_v23, %v19253_v17  ;;  %v8185_v10 = vcombine.high %v8176_v46, %v8176_v46  ;;  %v8208_v45 = vmul.f32 0.4, %v8162_v2  ;;  %v8209_v41 = vmul.f32 0.4, %v8176_v46 }
 0x7e2   :  { %v8258_v50 = vrot.slane %v8243_v44, %v19253_v17  ;;  %v8210_v49 = vmul.f32 0.4, %v8184_v11  ;;  %v8212_v33 = vmul.f32 0.4, %v8169_v18  ;;  %v8213_v26 = vmul.f32 0.4, %v8183_v19 }
 0x7e3   :  { %v8275_v9 = vcombine.low %v8265_v20, %v8272_v35  ;;  %v8276_v48 = vcombine.high %v8265_v20, %v8272_v35  ;;  %v8211_v32 = vmul.f32 0.4, %v8185_v10  ;;  %v8222_v24 = vadd.f32 %v8208_v45, %v19262_v53 }
 0x7e4   :  { %v8273_v47 = vcombine.low %v8251_v29, %v8258_v50  ;;  %v8274_v7 = vcombine.high %v8251_v29, %v8258_v50  ;;  %v8223_v22 = vadd.f32 %v8209_v41, %v19263_v55  ;;  %v8224_v42 = vadd.f32 %v8210_v49, %v19264_v25 }
 0x7e5   :  { %v8297_v34 = vrot.slane %v8275_v9, %v19253_v17  ;;  %v8304_v36 = vrot.slane %v8276_v48, %v19253_v17  ;;  %v8225_v61 = vadd.f32 %v8211_v32, %v19265_v4  ;;  %v8226_v58 = vadd.f32 %v8212_v33, %v19266_v38 }
 0x7e6   :  { %v8283_v14 = vrot.slane %v8273_v47, %v19253_v17  ;;  %v8290_v28 = vrot.slane %v8274_v7, %v19253_v17  ;;  %v17469_v27 = vadd.f32 %v8213_v26, %v19267_v63  ;;  %v8307_v60 = vcombine.low %v8221_v52, %v8222_v24 }
 0x7e7   :  { %v8308_v31 = vcombine.low %v8223_v22, %v8224_v42  ;;  %v8309_v16 = vcombine.low %v8225_v61, %v8226_v58  ;;  %v12276_v58 = vld [vmem:[%s19049_s3 + $0xe0] ss:$16 sps:$4 sm:$0xff]  }
 0x7e8   :  { %v8305_v1 = vcombine.low %v8283_v14, %v8297_v34  ;;  %v8306_v30 = vcombine.low %v8290_v28, %v8304_v36  ;;  %v8316_v51 = vrot.slane %v8307_v60, %v19253_v17  ;;  %v8337_v21 = vrot.slane %v17469_v27, %v19253_v17  ;;  %v12277_v14 = vld [vmem:[%s19049_s3 + $0xe8] ss:$16 sps:$4 sm:$0xff]  }
 0x7e9   :  { %v8323_v59 = vrot.slane %v8308_v31, %v19253_v17  ;;  %v8330_v57 = vrot.slane %v8309_v16, %v19253_v17 }
 0x7ea   :  { %v8376_v13 = vpack.c.bf16 %v8305_v1, %v8305_v1  ;;  %v8377_v43 = vpack.c.bf16 %v8306_v30, %v8306_v30 }
 0x7eb   :  { %v8338_v37 = vcombine.low %v8316_v51, %v8323_v59  ;;  %v8339_v54 = vcombine.high %v8316_v51, %v8323_v59  ;;  %v8340_v6 = vcombine.low %v8330_v57, %v8337_v21  ;;  %v8341_v0 = vcombine.high %v8330_v57, %v8337_v21  ;;  %v12278_v51 = vld [vmem:[%s19049_s3 + $0xc4] ss:$16 sps:$4 sm:$0xff]   ;;  %v12279_v59 = vld [vmem:[%s19049_s3 + $0xcc] ss:$16 sps:$4 sm:$0xff]  }
 0x7ec   :  { %v17480_v23 = vunpack.c.l.b16 %v8376_v13  ;;  %v17482_v35 = vunpack.c.l.b16 %v8377_v43 }
 0x7ed   :  { %v8348_v40 = vrot.slane %v8338_v37, %v19253_v17  ;;  %v8355_v52 = vrot.slane %v8339_v54, %v19253_v17  ;;  %v8362_v5 = vrot.slane %v8340_v6, %v19253_v17  ;;  %v8369_v2 = vrot.slane %v8341_v0, %v19253_v17  ;;  %v12280_v6 = vld [vmem:[%s19049_s3 + $0xc0] ss:$16 sps:$4 sm:$0xff]   ;;  %v12281_v0 = vld [vmem:[%s19049_s3 + $0xc8] ss:$16 sps:$4 sm:$0xff]  }
 0x7ee   :  { %v8391_v20 = vrot.slane %v17482_v35, 1  ;;  %v8388_v10 = vrot.slane %v17480_v23, 1  ;;  %v8572_v45 = vrot.slane %v17482_v35, 2  ;;  %v8569_v41 = vrot.slane %v17480_v23, 2 }
 0x7ef   :  { %v8370_v18 = vcombine.low %v8348_v40, %v8362_v5  ;;  %v8371_v46 = vcombine.low %v8355_v52, %v8369_v2  ;;  %v8668_v26 = vrot.slane %v17482_v35, 3  ;;  %v8665_v7 = vrot.slane %v17480_v23, 3  ;;  %v12282_v52 = vld [vmem:[%s19049_s3 + $0xa4] ss:$16 sps:$4 sm:$0xff]   ;;  %v12283_v5 = vld [vmem:[%s19049_s3 + $0xac] ss:$16 sps:$4 sm:$0xff]  }
 0x7f0   :  { %v8764_v42 = vrot.slane %v17482_v35, 4  ;;  %v8761_v61 = vrot.slane %v17480_v23, 4  ;;  %v8860_v63 = vrot.slane %v17482_v35, 5  ;;  %v8857_v1 = vrot.slane %v17480_v23, 5 }
 0x7f1   :  { %v8378_v44 = vpack.c.bf16 %v8370_v18, %v8370_v18  ;;  %v8379_v29 = vpack.c.bf16 %v8371_v46, %v8371_v46  ;;  %v8956_v21 = vrot.slane %v17482_v35, 6  ;;  %v8953_v37 = vrot.slane %v17480_v23, 6  ;;  %v12285_v18 = vld [vmem:[%s19049_s3 + $0xa8] ss:$16 sps:$4 sm:$0xff]   ;;  %v12286_v46 = vld [vmem:[%s19049_s3 + $0x84] ss:$16 sps:$4 sm:$0xff]  }
 0x7f3   :  { %v17484_v19 = vunpack.c.l.b16 %v8378_v44  ;;  %v8387_v11 = vunpack.c.l.b16 %v8379_v29  ;;  %v12287_v44 = vld [vmem:[%s19049_s3 + $0x8c] ss:$16 sps:$4 sm:$0xff]   ;;  %v12288_v29 = vld [vmem:[%s19049_s3 + $0x80] ss:$16 sps:$4 sm:$0xff]  }
 0x7f5   :  { %v8392_v50 = vsel %vm8389_vm1, %v8387_v11, %v8391_v20  ;;  %v8390_v49 = vsel %vm8389_vm1, %v17484_v19, %v8388_v10  ;;  %v8481_v33 = vrot.slane %v8387_v11, 7  ;;  %v8573_v32 = vrot.slane %v8387_v11, 1  ;;  %v12290_v20 = vld [vmem:[%s19049_s3 + $0x64] ss:$16 sps:$4 sm:$0xff]   ;;  %v12291_v10 = vld [vmem:[%s19049_s3 + $0x6c] ss:$16 sps:$4 sm:$0xff]  }
 0x7f6   :  { %v8394_v9 = vpack.c.b16 %v8392_v50, %v8392_v50  ;;  %v8393_v48 = vpack.c.b16 %v8390_v49, %v8390_v49  ;;  %v8570_v53 = vrot.slane %v17484_v19, 1  ;;  %v8669_v47 = vrot.slane %v8387_v11, 2  ;;  %v12294_v50 = vld [vmem:[%s19049_s3 + $0x44] ss:$16 sps:$4 sm:$0xff]   ;;  %v12295_v49 = vld [vmem:[%s19049_s3 + $0x4c] ss:$16 sps:$4 sm:$0xff]  }
 0x7f7   :  { %v8482_v24 = vsel %vm8389_vm1, %v8481_v33, %v17482_v35  ;;  %v8666_v55 = vrot.slane %v17484_v19, 2  ;;  %v17500_v25 = vsel %vm8389_vm1, %v8573_v32, %v8572_v45  ;;  %v8765_v34 = vrot.slane %v8387_v11, 3  ;;  %v12284_v35 = vld [vmem:[%s19049_s3 + $0xa0] ss:$16 sps:$4 sm:$0xff]  }
 0x7f8   :  { %8429 = vmatprep.mubr.bf16.mxu1 %v8394_v9  ;;  %8470 = vmatprep.mubr.bf16.mxu0 %v8394_v9  ;;  %v8484_v22 = vpack.c.b16 %v8482_v24, %v8482_v24  ;;  %v17504_v36 = vsel %vm8389_vm1, %v8570_v53, %v8569_v41  ;;  %v17507_v4 = vsel %vm8389_vm1, %v8669_v47, %v8668_v26  ;;  %v8762_v38 = vrot.slane %v17484_v19, 3  ;;  %v12292_v45 = vld [vmem:[%s19049_s3 + $0x60] ss:$16 sps:$4 sm:$0xff]   ;;  %v12293_v41 = vld [vmem:[%s19049_s3 + $0x68] ss:$16 sps:$4 sm:$0xff]  }
 0x7f9   :  { %8430 = vmatmul.mubr.bf16.vlgmr.msra.gmra.mxu1 %v8393_v48  ;;  %8471 = vmatmul.mubr.bf16.vlgmr.msra.gmra.mxu0 %v8393_v48  ;;  %v17518_v28 = vsel %vm8389_vm1, %v8666_v55, %v8665_v7  ;;  %v8861_v60 = vrot.slane %v8387_v11, 4  ;;  %v17522_v31 = vsel %vm8389_vm1, %v8765_v34, %v8764_v42  ;;  %v8858_v30 = vrot.slane %v17484_v19, 4  ;;  %v12296_v33 = vld [vmem:[%s19049_s3 + $0x40] ss:$16 sps:$4 sm:$0xff]   ;;  %v12297_v26 = vld [vmem:[%s19049_s3 + $0x48] ss:$16 sps:$4 sm:$0xff]  }
 0x7fa   :  { %8488 = vmatpush1.bf16.msra.mxu1 %v12276_v58  ;;  %8529 = vmatpush1.bf16.msra.mxu0 %v12277_v14  ;;  %v17525_v16 = vsel %vm8389_vm1, %v8762_v38, %v8761_v61  ;;  %v8957_v13 = vrot.slane %v8387_v11, 5  ;;  %v8954_v54 = vrot.slane %v17484_v19, 5  ;;  %v12289_v11 = vld [vmem:[%s19049_s3 + $0x88] ss:$16 sps:$4 sm:$0xff]   ;;  %v12298_v9 = vld [vmem:[%s19049_s3 + $0x24] ss:$16 sps:$4 sm:$0xff]  }
 0x7fb   :  { %8519 = vmatprep.mubr.bf16.mxu1 %v8484_v22  ;;  %8560 = vmatprep.mubr.bf16.mxu0 %v8484_v22  ;;  %v17536_v57 = vsel %vm8389_vm1, %v8861_v60, %v8860_v63  ;;  %v17540_v43 = vsel %vm8389_vm1, %v8858_v30, %v8857_v1  ;;  %v12299_v48 = vld [vmem:[%s19049_s3 + $0x2c] ss:$16 sps:$4 sm:$0xff]   ;;  %v12300_v32 = vld [vmem:[%s19049_s3 + $0x20] ss:$16 sps:$4 sm:$0xff]   ;;  %v12301_v53 = vld [vmem:[%s19049_s3 + $0x28] ss:$16 sps:$4 sm:$0xff]  }
 0x7fc   :  { %8489 = vmatprep.subr.bf16.mxu1 %v12278_v51  ;;  %8530 = vmatprep.subr.bf16.mxu0 %v12279_v59  ;;  %v17551_v40 = vsel %vm8389_vm1, %v8957_v13, %v8956_v21  ;;  %v17560_v2 = vsel %vm8389_vm1, %v8954_v54, %v8953_v37  ;;  %v12302_v24 = vld [vmem:[%s19049_s3 + $0x4] ss:$16 sps:$4 sm:$0xff]   ;;  %v12303_v47 = vld [vmem:[%s19049_s3 + $0xc] ss:$16 sps:$4 sm:$0xff]   ;;  %v12304_v7 = vld [vmem:[%s19049_s3] ss:$16 sps:$4 sm:$0xff]  }
 0x7fd   :  { %v12305_v55 = vld [vmem:[%s19049_s3 + $0x8] ss:$16 sps:$4 sm:$0xff]   ;;  %v12306_v22 = vld [vmem:[%s19049_s3 + $0x1e4] ss:$16 sps:$4 sm:$0xff]   ;;  %v12307_v42 = vld [vmem:[%s19049_s3 + $0x1ec] ss:$16 sps:$4 sm:$0xff]  }
 0x7fe   :  { %8490 = vmatpush1.bf16.msra.mxu1 %v12280_v6  ;;  %8531 = vmatpush1.bf16.msra.mxu0 %v12281_v0  ;;  %v12308_v34 = vld [vmem:[%s19049_s3 + $0x1e0] ss:$16 sps:$4 sm:$0xff]   ;;  %v12309_v61 = vld [vmem:[%s19049_s3 + $0x1e8] ss:$16 sps:$4 sm:$0xff]   ;;  %v12310_v38 = vld [vmem:[%s19049_s3 + $0x1c4] ss:$16 sps:$4 sm:$0xff]  }
 0x7ff   :  { %8491 = vmatprep.subr.bf16.mxu1 %v12282_v52  ;;  %8532 = vmatprep.subr.bf16.mxu0 %v12283_v5  ;;  %v12311_v58 = vld [vmem:[%s19049_s3 + $0x1cc] ss:$16 sps:$4 sm:$0xff]   ;;  %v12312_v14 = vld [vmem:[%s19049_s3 + $0x1c0] ss:$16 sps:$4 sm:$0xff]   ;;  %v12313_v63 = vld [vmem:[%s19049_s3 + $0x1c8] ss:$16 sps:$4 sm:$0xff]  }
 0x800   :  { %v12314_v60 = vld [vmem:[%s19049_s3 + $0x1a4] ss:$16 sps:$4 sm:$0xff]   ;;  %v12315_v1 = vld [vmem:[%s19049_s3 + $0x1ac] ss:$16 sps:$4 sm:$0xff]   ;;  %v12316_v30 = vld [vmem:[%s19049_s3 + $0x1a0] ss:$16 sps:$4 sm:$0xff]  }
 0x801   :  { %v12317_v51 = vld [vmem:[%s19049_s3 + $0x1a8] ss:$16 sps:$4 sm:$0xff]   ;;  %v12318_v59 = vld [vmem:[%s19049_s3 + $0x184] ss:$16 sps:$4 sm:$0xff]   ;;  %v12319_v21 = vld [vmem:[%s19049_s3 + $0x18c] ss:$16 sps:$4 sm:$0xff]  }
 0x802   :  { %8492 = vmatpush1.bf16.msra.mxu1 %v12284_v35  ;;  %8533 = vmatpush1.bf16.msra.mxu0 %v12285_v18  ;;  %v12320_v13 = vld [vmem:[%s19049_s3 + $0x180] ss:$16 sps:$4 sm:$0xff]   ;;  %v12321_v37 = vld [vmem:[%s19049_s3 + $0x188] ss:$16 sps:$4 sm:$0xff]   ;;  %v12322_v54 = vld [vmem:[%s19049_s3 + $0x164] ss:$16 sps:$4 sm:$0xff]  }
 0x803   :  { %8493 = vmatprep.subr.bf16.mxu1 %v12286_v46  ;;  %8534 = vmatprep.subr.bf16.mxu0 %v12287_v44  ;;  %v12323_v6 = vld [vmem:[%s19049_s3 + $0x16c] ss:$16 sps:$4 sm:$0xff]   ;;  %v12324_v0 = vld [vmem:[%s19049_s3 + $0x160] ss:$16 sps:$4 sm:$0xff]   ;;  %v12325_v52 = vld [vmem:[%s19049_s3 + $0x168] ss:$16 sps:$4 sm:$0xff]  }
 0x804   :  { %v12326_v5 = vld [vmem:[%s19049_s3 + $0x144] ss:$16 sps:$4 sm:$0xff]   ;;  %v12327_v35 = vld [vmem:[%s19049_s3 + $0x14c] ss:$16 sps:$4 sm:$0xff]   ;;  %v12328_v18 = vld [vmem:[%s19049_s3 + $0x140] ss:$16 sps:$4 sm:$0xff]  }
 0x805   :  { %v12329_v46 = vld [vmem:[%s19049_s3 + $0x148] ss:$16 sps:$4 sm:$0xff]   ;;  %v12330_v44 = vld [vmem:[%s19049_s3 + $0x124] ss:$16 sps:$4 sm:$0xff]  }
 0x806   :  { %8494 = vmatpush1.bf16.msra.mxu1 %v12288_v29  ;;  %8535 = vmatpush1.bf16.msra.mxu0 %v12289_v11  ;;  %v12331_v29 = vld [vmem:[%s19049_s3 + $0x12c] ss:$16 sps:$4 sm:$0xff]   ;;  %v8479_v11 = vrot.slane %v17484_v19, 7 }
 0x807   :  { %8495 = vmatprep.subr.bf16.mxu1 %v12290_v20  ;;  %8536 = vmatprep.subr.bf16.mxu0 %v12291_v10  ;;  %v12332_v20 = vld [vmem:[%s19049_s3 + $0x120] ss:$16 sps:$4 sm:$0xff]   ;;  %v12333_v10 = vld [vmem:[%s19049_s3 + $0x128] ss:$16 sps:$4 sm:$0xff]  }
 0x808   :  { %v8480_v19 = vsel %vm8389_vm1, %v8479_v11, %v17480_v23  ;;  %v12339_v23 = vld [vmem:[%s19049_s3 + $0x4ec] ss:$16 sps:$4 sm:$0xff]   ;;  %v12374_v11 = vld [vmem:[%s19049_s3 + $0x5c4] ss:$16 sps:$4 sm:$0xff]  }
 0x80a   :  { %8496 = vmatpush1.bf16.msra.mxu1 %v12292_v45  ;;  %8537 = vmatpush1.bf16.msra.mxu0 %v12293_v41  ;;  %v12334_v45 = vld [vmem:[%s19049_s3 + $0x104] ss:$16 sps:$4 sm:$0xff]   ;;  %v12335_v41 = vld [vmem:[%s19049_s3 + $0x10c] ss:$16 sps:$4 sm:$0xff]  }
 0x80b   :  { %8497 = vmatprep.subr.bf16.mxu1 %v12294_v50  ;;  %8538 = vmatprep.subr.bf16.mxu0 %v12295_v49  ;;  %v12336_v50 = vld [vmem:[%s19049_s3 + $0x100] ss:$16 sps:$4 sm:$0xff]   ;;  %v12337_v49 = vld [vmem:[%s19049_s3 + $0x108] ss:$16 sps:$4 sm:$0xff]  }
 0x80e   :  { %8498 = vmatpush1.bf16.msra.mxu1 %v12296_v33  ;;  %8539 = vmatpush1.bf16.msra.mxu0 %v12297_v26  ;;  %v8483_v33 = vpack.c.b16 %v8480_v19, %v8480_v19  ;;  %v12338_v26 = vld [vmem:[%s19049_s3 + $0x4e4] ss:$16 sps:$4 sm:$0xff]   ;;  %v12379_v19 = vld [vmem:[%s19049_s3 + $0x5ac] ss:$16 sps:$4 sm:$0xff]  }
 0x80f   :  { %8499 = vmatprep.subr.bf16.mxu1 %v12298_v9  ;;  %8540 = vmatprep.subr.bf16.mxu0 %v12299_v48  ;;  %v8576_v9 = vpack.c.b16 %v17500_v25, %v17500_v25  ;;  %v12340_v48 = vld [vmem:[%s19049_s3 + $0x4e0] ss:$16 sps:$4 sm:$0xff]   ;;  %v12343_v25 = vld [vmem:[%s19049_s3 + $0x4cc] ss:$16 sps:$4 sm:$0xff]  }
 0x812   :  { %8500 = vmatpush1.bf16.msra.mxu1 %v12300_v32  ;;  %8541 = vmatpush1.bf16.msra.mxu0 %v12301_v53  ;;  %v12341_v32 = vld [vmem:[%s19049_s3 + $0x4e8] ss:$16 sps:$4 sm:$0xff]   ;;  %v12342_v53 = vld [vmem:[%s19049_s3 + $0x4c4] ss:$16 sps:$4 sm:$0xff]  }
 0x813   :  { %8501 = vmatprep.subr.bf16.mxu1 %v12302_v24  ;;  %8542 = vmatprep.subr.bf16.mxu0 %v12303_v47  ;;  %v12344_v24 = vld [vmem:[%s19049_s3 + $0x4c0] ss:$16 sps:$4 sm:$0xff]   ;;  %v12345_v47 = vld [vmem:[%s19049_s3 + $0x4c8] ss:$16 sps:$4 sm:$0xff]  }
 0x816   :  { %8502 = vmatpush1.bf16.msra.mxu1 %v12304_v7  ;;  %8543 = vmatpush1.bf16.msra.mxu0 %v12305_v55  ;;  %v12346_v7 = vld [vmem:[%s19049_s3 + $0x4a4] ss:$16 sps:$4 sm:$0xff]   ;;  %v12347_v55 = vld [vmem:[%s19049_s3 + $0x4ac] ss:$16 sps:$4 sm:$0xff]  }
 0x817   :  { %8503 = vmatprep.subr.bf16.mxu1 %v12306_v22  ;;  %8544 = vmatprep.subr.bf16.mxu0 %v12307_v42  ;;  %v12348_v22 = vld [vmem:[%s19049_s3 + $0x4a0] ss:$16 sps:$4 sm:$0xff]   ;;  %v12349_v42 = vld [vmem:[%s19049_s3 + $0x4a8] ss:$16 sps:$4 sm:$0xff]  }
 0x81a   :  { %8504 = vmatpush2.bf16.msra.mxu1 %v12308_v34  ;;  %8545 = vmatpush2.bf16.msra.mxu0 %v12309_v61  ;;  %v12350_v34 = vld [vmem:[%s19049_s3 + $0x484] ss:$16 sps:$4 sm:$0xff]   ;;  %v12351_v61 = vld [vmem:[%s19049_s3 + $0x48c] ss:$16 sps:$4 sm:$0xff]  }
 0x81b   :  { %8505 = vmatprep.subr.bf16.mxu1 %v12310_v38  ;;  %8546 = vmatprep.subr.bf16.mxu0 %v12311_v58  ;;  %v12352_v38 = vld [vmem:[%s19049_s3 + $0x480] ss:$16 sps:$4 sm:$0xff]   ;;  %v12353_v58 = vld [vmem:[%s19049_s3 + $0x488] ss:$16 sps:$4 sm:$0xff]  }
 0x81e   :  { %8506 = vmatpush2.bf16.msra.mxu1 %v12312_v14  ;;  %8547 = vmatpush2.bf16.msra.mxu0 %v12313_v63  ;;  %v12354_v14 = vld [vmem:[%s19049_s3 + $0x464] ss:$16 sps:$4 sm:$0xff]   ;;  %v12355_v63 = vld [vmem:[%s19049_s3 + $0x46c] ss:$16 sps:$4 sm:$0xff]  }
 0x81f   :  { %8507 = vmatprep.subr.bf16.mxu1 %v12314_v60  ;;  %8548 = vmatprep.subr.bf16.mxu0 %v12315_v1  ;;  %v12356_v60 = vld [vmem:[%s19049_s3 + $0x460] ss:$16 sps:$4 sm:$0xff]   ;;  %v12357_v1 = vld [vmem:[%s19049_s3 + $0x468] ss:$16 sps:$4 sm:$0xff]  }
 0x822   :  { %8508 = vmatpush2.bf16.msra.mxu1 %v12316_v30  ;;  %8549 = vmatpush2.bf16.msra.mxu0 %v12317_v51  ;;  %v12358_v30 = vld [vmem:[%s19049_s3 + $0x444] ss:$16 sps:$4 sm:$0xff]   ;;  %v12359_v51 = vld [vmem:[%s19049_s3 + $0x44c] ss:$16 sps:$4 sm:$0xff]  }
 0x823   :  { %8509 = vmatprep.subr.bf16.mxu1 %v12318_v59  ;;  %8550 = vmatprep.subr.bf16.mxu0 %v12319_v21  ;;  %v12360_v59 = vld [vmem:[%s19049_s3 + $0x440] ss:$16 sps:$4 sm:$0xff]   ;;  %v12361_v21 = vld [vmem:[%s19049_s3 + $0x448] ss:$16 sps:$4 sm:$0xff]  }
 0x826   :  { %8510 = vmatpush2.bf16.msra.mxu1 %v12320_v13  ;;  %8551 = vmatpush2.bf16.msra.mxu0 %v12321_v37  ;;  %v12362_v13 = vld [vmem:[%s19049_s3 + $0x424] ss:$16 sps:$4 sm:$0xff]   ;;  %v12363_v37 = vld [vmem:[%s19049_s3 + $0x42c] ss:$16 sps:$4 sm:$0xff]  }
 0x827   :  { %8511 = vmatprep.subr.bf16.mxu1 %v12322_v54  ;;  %8552 = vmatprep.subr.bf16.mxu0 %v12323_v6  ;;  %v12364_v54 = vld [vmem:[%s19049_s3 + $0x420] ss:$16 sps:$4 sm:$0xff]   ;;  %v12365_v6 = vld [vmem:[%s19049_s3 + $0x428] ss:$16 sps:$4 sm:$0xff]  }
 0x82a   :  { %8512 = vmatpush2.bf16.msra.mxu1 %v12324_v0  ;;  %8553 = vmatpush2.bf16.msra.mxu0 %v12325_v52  ;;  %v12366_v0 = vld [vmem:[%s19049_s3 + $0x404] ss:$16 sps:$4 sm:$0xff]   ;;  %v12367_v52 = vld [vmem:[%s19049_s3 + $0x40c] ss:$16 sps:$4 sm:$0xff]  }
 0x82b   :  { %8513 = vmatprep.subr.bf16.mxu1 %v12326_v5  ;;  %8554 = vmatprep.subr.bf16.mxu0 %v12327_v35  ;;  %v12368_v5 = vld [vmem:[%s19049_s3 + $0x400] ss:$16 sps:$4 sm:$0xff]   ;;  %v12369_v35 = vld [vmem:[%s19049_s3 + $0x408] ss:$16 sps:$4 sm:$0xff]  }
 0x82e   :  { %8514 = vmatpush2.bf16.msra.mxu1 %v12328_v18  ;;  %8555 = vmatpush2.bf16.msra.mxu0 %v12329_v46  ;;  %v12370_v18 = vld [vmem:[%s19049_s3 + $0x5e4] ss:$16 sps:$4 sm:$0xff]   ;;  %v12371_v46 = vld [vmem:[%s19049_s3 + $0x5ec] ss:$16 sps:$4 sm:$0xff]  }
 0x82f   :  { %8515 = vmatprep.subr.bf16.mxu1 %v12330_v44  ;;  %8556 = vmatprep.subr.bf16.mxu0 %v12331_v29  ;;  %v12372_v44 = vld [vmem:[%s19049_s3 + $0x5e0] ss:$16 sps:$4 sm:$0xff]   ;;  %v12373_v29 = vld [vmem:[%s19049_s3 + $0x5e8] ss:$16 sps:$4 sm:$0xff]  }
 0x832   :  { %8516 = vmatpush2.bf16.msra.mxu1 %v12332_v20  ;;  %8557 = vmatpush2.bf16.msra.mxu0 %v12333_v10  ;;  %v12375_v20 = vld [vmem:[%s19049_s3 + $0x5cc] ss:$16 sps:$4 sm:$0xff]   ;;  %v12376_v10 = vld [vmem:[%s19049_s3 + $0x5c0] ss:$16 sps:$4 sm:$0xff]  }
 0x833   :  { %8517 = vmatprep.subr.bf16.mxu1 %v12334_v45  ;;  %8558 = vmatprep.subr.bf16.mxu0 %v12335_v41  ;;  %v12377_v45 = vld [vmem:[%s19049_s3 + $0x5c8] ss:$16 sps:$4 sm:$0xff]   ;;  %v12378_v41 = vld [vmem:[%s19049_s3 + $0x5a4] ss:$16 sps:$4 sm:$0xff]  }
 0x836   :  { %8518 = vmatpush2.bf16.msra.mxu1 %v12336_v50  ;;  %8559 = vmatpush2.bf16.msra.mxu0 %v12337_v49  ;;  %v12380_v50 = vld [vmem:[%s19049_s3 + $0x5a0] ss:$16 sps:$4 sm:$0xff]   ;;  %v12381_v49 = vld [vmem:[%s19049_s3 + $0x5a8] ss:$16 sps:$4 sm:$0xff]  }
 0x837   :  { %8579 = vmatprep.subr.bf16.mxu1 %v12338_v26  ;;  %8620 = vmatprep.subr.bf16.mxu0 %v12339_v23  ;;  %v12383_v26 = vld [vmem:[%s19049_s3 + $0x58c] ss:$16 sps:$4 sm:$0xff]   ;;  %v12384_v23 = vld [vmem:[%s19049_s3 + $0x580] ss:$16 sps:$4 sm:$0xff]  }
 0x839   :  { %8520 = vmatmul.mubr.bf16.vlgmr.msra.gmra.mxu1 %v8483_v33  ;;  %8561 = vmatmul.mubr.bf16.vlgmr.msra.gmra.mxu0 %v8483_v33  ;;  %v12382_v33 = vld [vmem:[%s19049_s3 + $0x584] ss:$16 sps:$4 sm:$0xff]  }
 0x83a   :  { %8580 = vmatpush1.bf16.msra.mxu1 %v12340_v48  ;;  %8611 = vmatprep.mubr.bf16.mxu1 %v8576_v9  ;;  %v12386_v48 = vld [vmem:[%s19049_s3 + $0x564] ss:$16 sps:$4 sm:$0xff]  }
 0x83b   :  { %8621 = vmatpush1.bf16.msra.mxu0 %v12341_v32  ;;  %8652 = vmatprep.mubr.bf16.mxu0 %v8576_v9  ;;  %v12385_v9 = vld [vmem:[%s19049_s3 + $0x588] ss:$16 sps:$4 sm:$0xff]   ;;  %v12387_v32 = vld [vmem:[%s19049_s3 + $0x56c] ss:$16 sps:$4 sm:$0xff]  }
 0x83c   :  { %8581 = vmatprep.subr.bf16.mxu1 %v12342_v53  ;;  %8622 = vmatprep.subr.bf16.mxu0 %v12343_v25  ;;  %v12388_v53 = vld [vmem:[%s19049_s3 + $0x560] ss:$16 sps:$4 sm:$0xff]   ;;  %v12389_v25 = vld [vmem:[%s19049_s3 + $0x568] ss:$16 sps:$4 sm:$0xff]  }
 0x83e   :  { %8582 = vmatpush1.bf16.msra.mxu1 %v12344_v24  ;;  %v12390_v24 = vld [vmem:[%s19049_s3 + $0x544] ss:$16 sps:$4 sm:$0xff]  }
 0x83f   :  { %8623 = vmatpush1.bf16.msra.mxu0 %v12345_v47  ;;  %8583 = vmatprep.subr.bf16.mxu1 %v12346_v7  ;;  %v12391_v47 = vld [vmem:[%s19049_s3 + $0x54c] ss:$16 sps:$4 sm:$0xff]   ;;  %v12392_v7 = vld [vmem:[%s19049_s3 + $0x540] ss:$16 sps:$4 sm:$0xff]  }
 0x840   :  { %8624 = vmatprep.subr.bf16.mxu0 %v12347_v55  ;;  %v12393_v55 = vld [vmem:[%s19049_s3 + $0x548] ss:$16 sps:$4 sm:$0xff]  }
 0x842   :  { %8584 = vmatpush1.bf16.msra.mxu1 %v12348_v22  ;;  %v12394_v22 = vld [vmem:[%s19049_s3 + $0x524] ss:$16 sps:$4 sm:$0xff]  }
 0x843   :  { %8625 = vmatpush1.bf16.msra.mxu0 %v12349_v42  ;;  %8585 = vmatprep.subr.bf16.mxu1 %v12350_v34  ;;  %v12395_v42 = vld [vmem:[%s19049_s3 + $0x52c] ss:$16 sps:$4 sm:$0xff]   ;;  %v12396_v34 = vld [vmem:[%s19049_s3 + $0x520] ss:$16 sps:$4 sm:$0xff]  }
 0x844   :  { %8626 = vmatprep.subr.bf16.mxu0 %v12351_v61  ;;  %v12397_v61 = vld [vmem:[%s19049_s3 + $0x528] ss:$16 sps:$4 sm:$0xff]  }
 0x846   :  { %8586 = vmatpush1.bf16.msra.mxu1 %v12352_v38  ;;  %v12398_v38 = vld [vmem:[%s19049_s3 + $0x504] ss:$16 sps:$4 sm:$0xff]  }
 0x847   :  { %8627 = vmatpush1.bf16.msra.mxu0 %v12353_v58  ;;  %8587 = vmatprep.subr.bf16.mxu1 %v12354_v14  ;;  %v12399_v58 = vld [vmem:[%s19049_s3 + $0x50c] ss:$16 sps:$4 sm:$0xff]   ;;  %v12400_v14 = vld [vmem:[%s19049_s3 + $0x500] ss:$16 sps:$4 sm:$0xff]  }
 0x848   :  { %8628 = vmatprep.subr.bf16.mxu0 %v12355_v63  ;;  %v12401_v63 = vld [vmem:[%s19049_s3 + $0x508] ss:$16 sps:$4 sm:$0xff]  }
 0x84a   :  { %8588 = vmatpush1.bf16.msra.mxu1 %v12356_v60  ;;  %v8575_v60 = vpack.c.b16 %v17504_v36, %v17504_v36  ;;  %v12405_v36 = vld [vmem:[%s19049_s3 + $0x6e8] ss:$16 sps:$4 sm:$0xff]  }
 0x84b   :  { %8629 = vmatpush1.bf16.msra.mxu0 %v12357_v1  ;;  %8589 = vmatprep.subr.bf16.mxu1 %v12358_v30  ;;  %v12402_v1 = vld [vmem:[%s19049_s3 + $0x6e4] ss:$16 sps:$4 sm:$0xff]   ;;  %v12403_v30 = vld [vmem:[%s19049_s3 + $0x6ec] ss:$16 sps:$4 sm:$0xff]  }
 0x84c   :  { %8630 = vmatprep.subr.bf16.mxu0 %v12359_v51  ;;  %v8672_v51 = vpack.c.b16 %v17507_v4, %v17507_v4  ;;  %v12407_v4 = vld [vmem:[%s19049_s3 + $0x6cc] ss:$16 sps:$4 sm:$0xff]  }
 0x84e   :  { %8590 = vmatpush1.bf16.msra.mxu1 %v12360_v59  ;;  %v12404_v59 = vld [vmem:[%s19049_s3 + $0x6e0] ss:$16 sps:$4 sm:$0xff]  }
 0x84f   :  { %8631 = vmatpush1.bf16.msra.mxu0 %v12361_v21  ;;  %8591 = vmatprep.subr.bf16.mxu1 %v12362_v13  ;;  %v12406_v21 = vld [vmem:[%s19049_s3 + $0x6c4] ss:$16 sps:$4 sm:$0xff]   ;;  %v12408_v13 = vld [vmem:[%s19049_s3 + $0x6c0] ss:$16 sps:$4 sm:$0xff]  }
 0x850   :  { %8632 = vmatprep.subr.bf16.mxu0 %v12363_v37  ;;  %v12409_v37 = vld [vmem:[%s19049_s3 + $0x6c8] ss:$16 sps:$4 sm:$0xff]  }
 0x852   :  { %8592 = vmatpush1.bf16.msra.mxu1 %v12364_v54  ;;  %v12410_v54 = vld [vmem:[%s19049_s3 + $0x6a4] ss:$16 sps:$4 sm:$0xff]  }
 0x853   :  { %8633 = vmatpush1.bf16.msra.mxu0 %v12365_v6  ;;  %8593 = vmatprep.subr.bf16.mxu1 %v12366_v0  ;;  %v12411_v6 = vld [vmem:[%s19049_s3 + $0x6ac] ss:$16 sps:$4 sm:$0xff]   ;;  %v12412_v0 = vld [vmem:[%s19049_s3 + $0x6a0] ss:$16 sps:$4 sm:$0xff]  }
 0x854   :  { %8634 = vmatprep.subr.bf16.mxu0 %v12367_v52  ;;  %v12413_v52 = vld [vmem:[%s19049_s3 + $0x6a8] ss:$16 sps:$4 sm:$0xff]  }
 0x856   :  { %8594 = vmatpush1.bf16.msra.mxu1 %v12368_v5  ;;  %v12414_v5 = vld [vmem:[%s19049_s3 + $0x684] ss:$16 sps:$4 sm:$0xff]  }
 0x857   :  { %8635 = vmatpush1.bf16.msra.mxu0 %v12369_v35  ;;  %8595 = vmatprep.subr.bf16.mxu1 %v12370_v18  ;;  %v12415_v35 = vld [vmem:[%s19049_s3 + $0x68c] ss:$16 sps:$4 sm:$0xff]   ;;  %v12416_v18 = vld [vmem:[%s19049_s3 + $0x680] ss:$16 sps:$4 sm:$0xff]  }
 0x858   :  { %8636 = vmatprep.subr.bf16.mxu0 %v12371_v46  ;;  %v12417_v46 = vld [vmem:[%s19049_s3 + $0x688] ss:$16 sps:$4 sm:$0xff]  }
 0x85a   :  { %8596 = vmatpush2.bf16.msra.mxu1 %v12372_v44  ;;  %v12418_v44 = vld [vmem:[%s19049_s3 + $0x664] ss:$16 sps:$4 sm:$0xff]  }
 0x85b   :  { %8637 = vmatpush2.bf16.msra.mxu0 %v12373_v29  ;;  %8597 = vmatprep.subr.bf16.mxu1 %v12374_v11  ;;  %v12419_v29 = vld [vmem:[%s19049_s3 + $0x66c] ss:$16 sps:$4 sm:$0xff]   ;;  %v12420_v11 = vld [vmem:[%s19049_s3 + $0x660] ss:$16 sps:$4 sm:$0xff]  }
 0x85c   :  { %8638 = vmatprep.subr.bf16.mxu0 %v12375_v20  ;;  %v12421_v20 = vld [vmem:[%s19049_s3 + $0x668] ss:$16 sps:$4 sm:$0xff]  }
 0x85e   :  { %8598 = vmatpush2.bf16.msra.mxu1 %v12376_v10  ;;  %v12422_v10 = vld [vmem:[%s19049_s3 + $0x644] ss:$16 sps:$4 sm:$0xff]  }
 0x85f   :  { %8639 = vmatpush2.bf16.msra.mxu0 %v12377_v45  ;;  %8599 = vmatprep.subr.bf16.mxu1 %v12378_v41  ;;  %v12423_v45 = vld [vmem:[%s19049_s3 + $0x64c] ss:$16 sps:$4 sm:$0xff]   ;;  %v12424_v41 = vld [vmem:[%s19049_s3 + $0x640] ss:$16 sps:$4 sm:$0xff]  }
 0x860   :  { %8640 = vmatprep.subr.bf16.mxu0 %v12379_v19  ;;  %v12425_v19 = vld [vmem:[%s19049_s3 + $0x648] ss:$16 sps:$4 sm:$0xff]  }
 0x862   :  { %8600 = vmatpush2.bf16.msra.mxu1 %v12380_v50  ;;  %v12426_v50 = vld [vmem:[%s19049_s3 + $0x624] ss:$16 sps:$4 sm:$0xff]  }
 0x863   :  { %8641 = vmatpush2.bf16.msra.mxu0 %v12381_v49  ;;  %8601 = vmatprep.subr.bf16.mxu1 %v12382_v33  ;;  %v12427_v49 = vld [vmem:[%s19049_s3 + $0x62c] ss:$16 sps:$4 sm:$0xff]   ;;  %v12428_v33 = vld [vmem:[%s19049_s3 + $0x620] ss:$16 sps:$4 sm:$0xff]  }
 0x864   :  { %8642 = vmatprep.subr.bf16.mxu0 %v12383_v26  ;;  %v12429_v26 = vld [vmem:[%s19049_s3 + $0x628] ss:$16 sps:$4 sm:$0xff]  }
 0x866   :  { %8602 = vmatpush2.bf16.msra.mxu1 %v12384_v23  ;;  %v12430_v23 = vld [vmem:[%s19049_s3 + $0x604] ss:$16 sps:$4 sm:$0xff]  }
 0x867   :  { %8643 = vmatpush2.bf16.msra.mxu0 %v12385_v9  ;;  %8603 = vmatprep.subr.bf16.mxu1 %v12386_v48  ;;  %v12431_v9 = vld [vmem:[%s19049_s3 + $0x60c] ss:$16 sps:$4 sm:$0xff]   ;;  %v12432_v48 = vld [vmem:[%s19049_s3 + $0x600] ss:$16 sps:$4 sm:$0xff]  }
 0x868   :  { %8644 = vmatprep.subr.bf16.mxu0 %v12387_v32  ;;  %v12433_v32 = vld [vmem:[%s19049_s3 + $0x608] ss:$16 sps:$4 sm:$0xff]  }
 0x86a   :  { %8604 = vmatpush2.bf16.msra.mxu1 %v12388_v53  ;;  %v12434_v53 = vld [vmem:[%s19049_s3 + $0x7e4] ss:$16 sps:$4 sm:$0xff]  }
 0x86b   :  { %8645 = vmatpush2.bf16.msra.mxu0 %v12389_v25  ;;  %8605 = vmatprep.subr.bf16.mxu1 %v12390_v24  ;;  %v12435_v25 = vld [vmem:[%s19049_s3 + $0x7ec] ss:$16 sps:$4 sm:$0xff]   ;;  %v12436_v24 = vld [vmem:[%s19049_s3 + $0x7e0] ss:$16 sps:$4 sm:$0xff]  }
 0x86c   :  { %8646 = vmatprep.subr.bf16.mxu0 %v12391_v47  ;;  %v12437_v47 = vld [vmem:[%s19049_s3 + $0x7e8] ss:$16 sps:$4 sm:$0xff]  }
 0x86e   :  { %8606 = vmatpush2.bf16.msra.mxu1 %v12392_v7  ;;  %v12438_v7 = vld [vmem:[%s19049_s3 + $0x7c4] ss:$16 sps:$4 sm:$0xff]  }
 0x86f   :  { %8647 = vmatpush2.bf16.msra.mxu0 %v12393_v55  ;;  %8607 = vmatprep.subr.bf16.mxu1 %v12394_v22  ;;  %v12439_v55 = vld [vmem:[%s19049_s3 + $0x7cc] ss:$16 sps:$4 sm:$0xff]   ;;  %v12440_v22 = vld [vmem:[%s19049_s3 + $0x7c0] ss:$16 sps:$4 sm:$0xff]  }
 0x870   :  { %8648 = vmatprep.subr.bf16.mxu0 %v12395_v42  ;;  %v12441_v42 = vld [vmem:[%s19049_s3 + $0x7c8] ss:$16 sps:$4 sm:$0xff]  }
 0x872   :  { %8608 = vmatpush2.bf16.msra.mxu1 %v12396_v34  ;;  %v12442_v34 = vld [vmem:[%s19049_s3 + $0x7a4] ss:$16 sps:$4 sm:$0xff]  }
 0x873   :  { %8649 = vmatpush2.bf16.msra.mxu0 %v12397_v61  ;;  %8609 = vmatprep.subr.bf16.mxu1 %v12398_v38  ;;  %v12443_v61 = vld [vmem:[%s19049_s3 + $0x7ac] ss:$16 sps:$4 sm:$0xff]   ;;  %v12444_v38 = vld [vmem:[%s19049_s3 + $0x7a0] ss:$16 sps:$4 sm:$0xff]  }
 0x874   :  { %8650 = vmatprep.subr.bf16.mxu0 %v12399_v58  ;;  %v12445_v58 = vld [vmem:[%s19049_s3 + $0x7a8] ss:$16 sps:$4 sm:$0xff]  }
 0x876   :  { %8610 = vmatpush2.bf16.msra.mxu1 %v12400_v14  ;;  %v12446_v14 = vld [vmem:[%s19049_s3 + $0x784] ss:$16 sps:$4 sm:$0xff]  }
 0x877   :  { %8651 = vmatpush2.bf16.msra.mxu0 %v12401_v63  ;;  %8675 = vmatprep.subr.bf16.mxu1 %v12402_v1  ;;  %v12447_v63 = vld [vmem:[%s19049_s3 + $0x78c] ss:$16 sps:$4 sm:$0xff]   ;;  %v12449_v1 = vld [vmem:[%s19049_s3 + $0x788] ss:$16 sps:$4 sm:$0xff]  }
 0x878   :  { %8716 = vmatprep.subr.bf16.mxu0 %v12403_v30  ;;  %v12450_v30 = vld [vmem:[%s19049_s3 + $0x764] ss:$16 sps:$4 sm:$0xff]  }
 0x879   :  { %8612 = vmatmul.mubr.bf16.vlgmr.msra.gmra.mxu1 %v8575_v60 }
 0x87a   :  { %8653 = vmatmul.mubr.bf16.vlgmr.msra.gmra.mxu0 %v8575_v60  ;;  %8676 = vmatpush1.bf16.msra.mxu1 %v12404_v59  ;;  %v12448_v60 = vld [vmem:[%s19049_s3 + $0x780] ss:$16 sps:$4 sm:$0xff]  }
 0x87b   :  { %8707 = vmatprep.mubr.bf16.mxu1 %v8672_v51  ;;  %8717 = vmatpush1.bf16.msra.mxu0 %v12405_v36  ;;  %v12452_v59 = vld [vmem:[%s19049_s3 + $0x760] ss:$16 sps:$4 sm:$0xff]   ;;  %v12453_v36 = vld [vmem:[%s19049_s3 + $0x768] ss:$16 sps:$4 sm:$0xff]  }
 0x87c   :  { %8748 = vmatprep.mubr.bf16.mxu0 %v8672_v51  ;;  %8677 = vmatprep.subr.bf16.mxu1 %v12406_v21  ;;  %v12451_v51 = vld [vmem:[%s19049_s3 + $0x76c] ss:$16 sps:$4 sm:$0xff]   ;;  %v12454_v21 = vld [vmem:[%s19049_s3 + $0x744] ss:$16 sps:$4 sm:$0xff]  }
 0x87d   :  { %8718 = vmatprep.subr.bf16.mxu0 %v12407_v4  ;;  %v12455_v4 = vld [vmem:[%s19049_s3 + $0x74c] ss:$16 sps:$4 sm:$0xff]  }
 0x87e   :  { %8678 = vmatpush1.bf16.msra.mxu1 %v12408_v13  ;;  %v12456_v13 = vld [vmem:[%s19049_s3 + $0x740] ss:$16 sps:$4 sm:$0xff]  }
 0x87f   :  { %8719 = vmatpush1.bf16.msra.mxu0 %v12409_v37  ;;  %8679 = vmatprep.subr.bf16.mxu1 %v12410_v54  ;;  %v12457_v37 = vld [vmem:[%s19049_s3 + $0x748] ss:$16 sps:$4 sm:$0xff]   ;;  %v12458_v54 = vld [vmem:[%s19049_s3 + $0x724] ss:$16 sps:$4 sm:$0xff]  }
 0x880   :  { %8720 = vmatprep.subr.bf16.mxu0 %v12411_v6  ;;  %v12459_v6 = vld [vmem:[%s19049_s3 + $0x72c] ss:$16 sps:$4 sm:$0xff]  }
 0x882   :  { %8680 = vmatpush1.bf16.msra.mxu1 %v12412_v0  ;;  %v12460_v0 = vld [vmem:[%s19049_s3 + $0x720] ss:$16 sps:$4 sm:$0xff]  }
 0x883   :  { %8721 = vmatpush1.bf16.msra.mxu0 %v12413_v52  ;;  %8681 = vmatprep.subr.bf16.mxu1 %v12414_v5  ;;  %v12461_v52 = vld [vmem:[%s19049_s3 + $0x728] ss:$16 sps:$4 sm:$0xff]   ;;  %v12462_v5 = vld [vmem:[%s19049_s3 + $0x704] ss:$16 sps:$4 sm:$0xff]  }
 0x884   :  { %8722 = vmatprep.subr.bf16.mxu0 %v12415_v35  ;;  %v12463_v35 = vld [vmem:[%s19049_s3 + $0x70c] ss:$16 sps:$4 sm:$0xff]  }
 0x886   :  { %8682 = vmatpush1.bf16.msra.mxu1 %v12416_v18  ;;  %v12464_v18 = vld [vmem:[%s19049_s3 + $0x700] ss:$16 sps:$4 sm:$0xff]  }
 0x887   :  { %8723 = vmatpush1.bf16.msra.mxu0 %v12417_v46  ;;  %8683 = vmatprep.subr.bf16.mxu1 %v12418_v44  ;;  %v12465_v46 = vld [vmem:[%s19049_s3 + $0x708] ss:$16 sps:$4 sm:$0xff]   ;;  %v8671_v44 = vpack.c.b16 %v17518_v28, %v17518_v28  ;;  %v12468_v28 = vld [vmem:[%s19049_s3 + $0x8e0] ss:$16 sps:$4 sm:$0xff]  }
 0x888   :  { %8724 = vmatprep.subr.bf16.mxu0 %v12419_v29  ;;  %v12466_v29 = vld [vmem:[%s19049_s3 + $0x8e4] ss:$16 sps:$4 sm:$0xff]  }
 0x88a   :  { %8684 = vmatpush1.bf16.msra.mxu1 %v12420_v11  ;;  %v12467_v11 = vld [vmem:[%s19049_s3 + $0x8ec] ss:$16 sps:$4 sm:$0xff]  }
 0x88b   :  { %8725 = vmatpush1.bf16.msra.mxu0 %v12421_v20  ;;  %8685 = vmatprep.subr.bf16.mxu1 %v12422_v10 }
 0x88c   :  { %8726 = vmatprep.subr.bf16.mxu0 %v12423_v45  ;;  %v8768_v45 = vpack.c.b16 %v17522_v31, %v17522_v31  ;;  %v12470_v31 = vld [vmem:[%s19049_s3 + $0x8c4] ss:$16 sps:$4 sm:$0xff]  }
 0x88e   :  { %8686 = vmatpush1.bf16.msra.mxu1 %v12424_v41  ;;  %v12469_v41 = vld [vmem:[%s19049_s3 + $0x8e8] ss:$16 sps:$4 sm:$0xff]  }
 0x88f   :  { %8727 = vmatpush1.bf16.msra.mxu0 %v12425_v19  ;;  %8687 = vmatprep.subr.bf16.mxu1 %v12426_v50 }
 0x890   :  { %8728 = vmatprep.subr.bf16.mxu0 %v12427_v49  ;;  %v12471_v49 = vld [vmem:[%s19049_s3 + $0x8cc] ss:$16 sps:$4 sm:$0xff]  }
 0x892   :  { %8688 = vmatpush1.bf16.msra.mxu1 %v12428_v33 }
 0x893   :  { %8729 = vmatpush1.bf16.msra.mxu0 %v12429_v26  ;;  %8689 = vmatprep.subr.bf16.mxu1 %v12430_v23  ;;  %v12472_v23 = vld [vmem:[%s19049_s3 + $0x8c0] ss:$16 sps:$4 sm:$0xff]  }
 0x894   :  { %8730 = vmatprep.subr.bf16.mxu0 %v12431_v9  ;;  %v12473_v9 = vld [vmem:[%s19049_s3 + $0x8c8] ss:$16 sps:$4 sm:$0xff]  }
 0x896   :  { %8690 = vmatpush1.bf16.msra.mxu1 %v12432_v48 }
 0x897   :  { %8731 = vmatpush1.bf16.msra.mxu0 %v12433_v32  ;;  %8691 = vmatprep.subr.bf16.mxu1 %v12434_v53  ;;  %v12474_v53 = vld [vmem:[%s19049_s3 + $0x8a4] ss:$16 sps:$4 sm:$0xff]  }
 0x898   :  { %8732 = vmatprep.subr.bf16.mxu0 %v12435_v25  ;;  %v12475_v25 = vld [vmem:[%s19049_s3 + $0x8ac] ss:$16 sps:$4 sm:$0xff]  }
 0x89a   :  { %8692 = vmatpush2.bf16.msra.mxu1 %v12436_v24  ;;  %v12476_v24 = vld [vmem:[%s19049_s3 + $0x8a0] ss:$16 sps:$4 sm:$0xff]  }
 0x89b   :  { %8733 = vmatpush2.bf16.msra.mxu0 %v12437_v47  ;;  %8693 = vmatprep.subr.bf16.mxu1 %v12438_v7  ;;  %v12477_v47 = vld [vmem:[%s19049_s3 + $0x8a8] ss:$16 sps:$4 sm:$0xff]   ;;  %v12478_v7 = vld [vmem:[%s19049_s3 + $0x884] ss:$16 sps:$4 sm:$0xff]  }
 0x89c   :  { %8734 = vmatprep.subr.bf16.mxu0 %v12439_v55  ;;  %v12479_v55 = vld [vmem:[%s19049_s3 + $0x88c] ss:$16 sps:$4 sm:$0xff]  }
 0x89e   :  { %8694 = vmatpush2.bf16.msra.mxu1 %v12440_v22  ;;  %v12480_v22 = vld [vmem:[%s19049_s3 + $0x880] ss:$16 sps:$4 sm:$0xff]  }
 0x89f   :  { %8735 = vmatpush2.bf16.msra.mxu0 %v12441_v42  ;;  %8695 = vmatprep.subr.bf16.mxu1 %v12442_v34  ;;  %v12481_v42 = vld [vmem:[%s19049_s3 + $0x888] ss:$16 sps:$4 sm:$0xff]   ;;  %v12482_v34 = vld [vmem:[%s19049_s3 + $0x864] ss:$16 sps:$4 sm:$0xff]  }
 0x8a0   :  { %8736 = vmatprep.subr.bf16.mxu0 %v12443_v61  ;;  %v12483_v61 = vld [vmem:[%s19049_s3 + $0x86c] ss:$16 sps:$4 sm:$0xff]  }
 0x8a2   :  { %8696 = vmatpush2.bf16.msra.mxu1 %v12444_v38  ;;  %v12484_v38 = vld [vmem:[%s19049_s3 + $0x860] ss:$16 sps:$4 sm:$0xff]  }
 0x8a3   :  { %8737 = vmatpush2.bf16.msra.mxu0 %v12445_v58  ;;  %8697 = vmatprep.subr.bf16.mxu1 %v12446_v14  ;;  %v12485_v58 = vld [vmem:[%s19049_s3 + $0x868] ss:$16 sps:$4 sm:$0xff]   ;;  %v12486_v14 = vld [vmem:[%s19049_s3 + $0x844] ss:$16 sps:$4 sm:$0xff]  }
 0x8a4   :  { %8738 = vmatprep.subr.bf16.mxu0 %v12447_v63  ;;  %v12487_v63 = vld [vmem:[%s19049_s3 + $0x84c] ss:$16 sps:$4 sm:$0xff]  }
 0x8a6   :  { %8698 = vmatpush2.bf16.msra.mxu1 %v12448_v60  ;;  %v12488_v60 = vld [vmem:[%s19049_s3 + $0x840] ss:$16 sps:$4 sm:$0xff]  }
 0x8a7   :  { %8739 = vmatpush2.bf16.msra.mxu0 %v12449_v1  ;;  %8699 = vmatprep.subr.bf16.mxu1 %v12450_v30  ;;  %v12489_v1 = vld [vmem:[%s19049_s3 + $0x848] ss:$16 sps:$4 sm:$0xff]   ;;  %v12490_v30 = vld [vmem:[%s19049_s3 + $0x824] ss:$16 sps:$4 sm:$0xff]  }
 0x8a8   :  { %8740 = vmatprep.subr.bf16.mxu0 %v12451_v51  ;;  %v12491_v51 = vld [vmem:[%s19049_s3 + $0x82c] ss:$16 sps:$4 sm:$0xff]  }
 0x8aa   :  { %8700 = vmatpush2.bf16.msra.mxu1 %v12452_v59  ;;  %v12492_v59 = vld [vmem:[%s19049_s3 + $0x820] ss:$16 sps:$4 sm:$0xff]  }
 0x8ab   :  { %8741 = vmatpush2.bf16.msra.mxu0 %v12453_v36  ;;  %8701 = vmatprep.subr.bf16.mxu1 %v12454_v21  ;;  %v12493_v36 = vld [vmem:[%s19049_s3 + $0x828] ss:$16 sps:$4 sm:$0xff]   ;;  %v12494_v21 = vld [vmem:[%s19049_s3 + $0x804] ss:$16 sps:$4 sm:$0xff]  }
 0x8ac   :  { %8742 = vmatprep.subr.bf16.mxu0 %v12455_v4  ;;  %v12495_v4 = vld [vmem:[%s19049_s3 + $0x80c] ss:$16 sps:$4 sm:$0xff]  }
 0x8ae   :  { %8702 = vmatpush2.bf16.msra.mxu1 %v12456_v13  ;;  %v12496_v13 = vld [vmem:[%s19049_s3 + $0x800] ss:$16 sps:$4 sm:$0xff]  }
 0x8af   :  { %8743 = vmatpush2.bf16.msra.mxu0 %v12457_v37  ;;  %8703 = vmatprep.subr.bf16.mxu1 %v12458_v54  ;;  %v12497_v37 = vld [vmem:[%s19049_s3 + $0x808] ss:$16 sps:$4 sm:$0xff]   ;;  %v12498_v54 = vld [vmem:[%s19049_s3 + $0x9e4] ss:$16 sps:$4 sm:$0xff]  }
 0x8b0   :  { %8744 = vmatprep.subr.bf16.mxu0 %v12459_v6  ;;  %v12499_v6 = vld [vmem:[%s19049_s3 + $0x9ec] ss:$16 sps:$4 sm:$0xff]  }
 0x8b2   :  { %8704 = vmatpush2.bf16.msra.mxu1 %v12460_v0  ;;  %v12500_v0 = vld [vmem:[%s19049_s3 + $0x9e0] ss:$16 sps:$4 sm:$0xff]  }
 0x8b3   :  { %8745 = vmatpush2.bf16.msra.mxu0 %v12461_v52  ;;  %8705 = vmatprep.subr.bf16.mxu1 %v12462_v5  ;;  %v12501_v52 = vld [vmem:[%s19049_s3 + $0x9e8] ss:$16 sps:$4 sm:$0xff]   ;;  %v12502_v5 = vld [vmem:[%s19049_s3 + $0x9c4] ss:$16 sps:$4 sm:$0xff]  }
 0x8b4   :  { %8746 = vmatprep.subr.bf16.mxu0 %v12463_v35  ;;  %v12503_v35 = vld [vmem:[%s19049_s3 + $0x9cc] ss:$16 sps:$4 sm:$0xff]  }
 0x8b6   :  { %8706 = vmatpush2.bf16.msra.mxu1 %v12464_v18  ;;  %v12504_v18 = vld [vmem:[%s19049_s3 + $0x9c0] ss:$16 sps:$4 sm:$0xff]  }
 0x8b7   :  { %8747 = vmatpush2.bf16.msra.mxu0 %v12465_v46  ;;  %8771 = vmatprep.subr.bf16.mxu1 %v12466_v29  ;;  %v12505_v46 = vld [vmem:[%s19049_s3 + $0x9c8] ss:$16 sps:$4 sm:$0xff]   ;;  %v12507_v29 = vld [vmem:[%s19049_s3 + $0x9ac] ss:$16 sps:$4 sm:$0xff]  }
 0x8b8   :  { %8812 = vmatprep.subr.bf16.mxu0 %v12467_v11  ;;  %v12508_v11 = vld [vmem:[%s19049_s3 + $0x9a0] ss:$16 sps:$4 sm:$0xff]  }
 0x8b9   :  { %8708 = vmatmul.mubr.bf16.vlgmr.msra.gmra.mxu1 %v8671_v44  ;;  %v18125_v20 = vpop.f32.mrf.mxu1  ;;  %v18127_v10 = vpop.f32.mrf.mxu0 }
 0x8ba   :  { %8749 = vmatmul.mubr.bf16.vlgmr.msra.gmra.mxu0 %v8671_v44  ;;  %8772 = vmatpush1.bf16.msra.mxu1 %v12468_v28  ;;  %v12506_v44 = vld [vmem:[%s19049_s3 + $0x9a4] ss:$16 sps:$4 sm:$0xff]  }
 0x8bb   :  { %8803 = vmatprep.mubr.bf16.mxu1 %v8768_v45  ;;  %8813 = vmatpush1.bf16.msra.mxu0 %v12469_v41  ;;  %v18137_v19 = vpop.f32.mrf.mxu1  ;;  %v18139_v50 = vpop.f32.mrf.mxu0  ;;  %v12510_v28 = vld [vmem:[%s19049_s3 + $0x984] ss:$16 sps:$4 sm:$0xff]   ;;  %v12511_v41 = vld [vmem:[%s19049_s3 + $0x98c] ss:$16 sps:$4 sm:$0xff]  }
 0x8bc   :  { %8844 = vmatprep.mubr.bf16.mxu0 %v8768_v45  ;;  %8773 = vmatprep.subr.bf16.mxu1 %v12470_v31  ;;  %v12509_v45 = vld [vmem:[%s19049_s3 + $0x9a8] ss:$16 sps:$4 sm:$0xff]   ;;  %v12512_v31 = vld [vmem:[%s19049_s3 + $0x980] ss:$16 sps:$4 sm:$0xff]  }
 0x8bd   :  { %8814 = vmatprep.subr.bf16.mxu0 %v12471_v49  ;;  %v8435_v33 = vpop.f32.mrf.mxu1  ;;  %v8476_v26 = vpop.f32.mrf.mxu0  ;;  %v12513_v49 = vld [vmem:[%s19049_s3 + $0x988] ss:$16 sps:$4 sm:$0xff]  }
 0x8be   :  { %8774 = vmatpush1.bf16.msra.mxu1 %v12472_v23  ;;  %v12514_v33 = vld [vmem:[%s19049_s3 + $0x964] ss:$16 sps:$4 sm:$0xff]   ;;  %v12515_v26 = vld [vmem:[%s19049_s3 + $0x96c] ss:$16 sps:$4 sm:$0xff]   ;;  %v12516_v23 = vld [vmem:[%s19049_s3 + $0x960] ss:$16 sps:$4 sm:$0xff]  }
 0x8bf   :  { %8815 = vmatpush1.bf16.msra.mxu0 %v12473_v9  ;;  %v8436_v48 = vpop.f32.mrf.mxu1  ;;  %v8477_v32 = vpop.f32.mrf.mxu0  ;;  %8775 = vmatprep.subr.bf16.mxu1 %v12474_v53  ;;  %v12517_v9 = vld [vmem:[%s19049_s3 + $0x968] ss:$16 sps:$4 sm:$0xff]   ;;  %v12520_v53 = vld [vmem:[%s19049_s3 + $0x940] ss:$16 sps:$4 sm:$0xff]  }
 0x8c0   :  { %8816 = vmatprep.subr.bf16.mxu0 %v12475_v25  ;;  %v12518_v48 = vld [vmem:[%s19049_s3 + $0x944] ss:$16 sps:$4 sm:$0xff]   ;;  %v12519_v32 = vld [vmem:[%s19049_s3 + $0x94c] ss:$16 sps:$4 sm:$0xff]   ;;  %v12521_v25 = vld [vmem:[%s19049_s3 + $0x948] ss:$16 sps:$4 sm:$0xff]  }
 0x8c2   :  { %8776 = vmatpush1.bf16.msra.mxu1 %v12476_v24  ;;  %v12522_v24 = vld [vmem:[%s19049_s3 + $0x924] ss:$16 sps:$4 sm:$0xff]  }
 0x8c3   :  { %8817 = vmatpush1.bf16.msra.mxu0 %v12477_v47  ;;  %8777 = vmatprep.subr.bf16.mxu1 %v12478_v7  ;;  %v12523_v47 = vld [vmem:[%s19049_s3 + $0x92c] ss:$16 sps:$4 sm:$0xff]   ;;  %v12524_v7 = vld [vmem:[%s19049_s3 + $0x920] ss:$16 sps:$4 sm:$0xff]  }
 0x8c4   :  { %8818 = vmatprep.subr.bf16.mxu0 %v12479_v55  ;;  %v12525_v55 = vld [vmem:[%s19049_s3 + $0x928] ss:$16 sps:$4 sm:$0xff]  }
 0x8c6   :  { %8778 = vmatpush1.bf16.msra.mxu1 %v12480_v22  ;;  %v12526_v22 = vld [vmem:[%s19049_s3 + $0x904] ss:$16 sps:$4 sm:$0xff]  }
 0x8c7   :  { %8819 = vmatpush1.bf16.msra.mxu0 %v12481_v42  ;;  %8779 = vmatprep.subr.bf16.mxu1 %v12482_v34  ;;  %v12527_v42 = vld [vmem:[%s19049_s3 + $0x90c] ss:$16 sps:$4 sm:$0xff]   ;;  %v12528_v34 = vld [vmem:[%s19049_s3 + $0x900] ss:$16 sps:$4 sm:$0xff]  }
 0x8c8   :  { %8820 = vmatprep.subr.bf16.mxu0 %v12483_v61  ;;  %v12529_v61 = vld [vmem:[%s19049_s3 + $0x908] ss:$16 sps:$4 sm:$0xff]  }
 0x8ca   :  { %8780 = vmatpush1.bf16.msra.mxu1 %v12484_v38  ;;  %v8767_v38 = vpack.c.b16 %v17525_v16, %v17525_v16 }
 0x8cb   :  { %8821 = vmatpush1.bf16.msra.mxu0 %v12485_v58  ;;  %8781 = vmatprep.subr.bf16.mxu1 %v12486_v14  ;;  %v12530_v58 = vld [vmem:[%s19049_s3 + $0xae4] ss:$16 sps:$4 sm:$0xff]   ;;  %v12531_v14 = vld [vmem:[%s19049_s3 + $0xaec] ss:$16 sps:$4 sm:$0xff]  }
 0x8cc   :  { %8822 = vmatprep.subr.bf16.mxu0 %v12487_v63 }
 0x8ce   :  { %8782 = vmatpush1.bf16.msra.mxu1 %v12488_v60 }
 0x8cf   :  { %8823 = vmatpush1.bf16.msra.mxu0 %v12489_v1  ;;  %8783 = vmatprep.subr.bf16.mxu1 %v12490_v30  ;;  %v8864_v1 = vpack.c.b16 %v17536_v57, %v17536_v57 }
 0x8d0   :  { %8824 = vmatprep.subr.bf16.mxu0 %v12491_v51  ;;  %v12532_v51 = vld [vmem:[%s19049_s3 + $0xae0] ss:$16 sps:$4 sm:$0xff]  }
 0x8d2   :  { %8784 = vmatpush1.bf16.msra.mxu1 %v12492_v59  ;;  %v12533_v59 = vld [vmem:[%s19049_s3 + $0xae8] ss:$16 sps:$4 sm:$0xff]  }
 0x8d3   :  { %8825 = vmatpush1.bf16.msra.mxu0 %v12493_v36  ;;  %8785 = vmatprep.subr.bf16.mxu1 %v12494_v21  ;;  %v12534_v21 = vld [vmem:[%s19049_s3 + $0xac4] ss:$16 sps:$4 sm:$0xff]  }
 0x8d4   :  { %8826 = vmatprep.subr.bf16.mxu0 %v12495_v4 }
 0x8d6   :  { %8786 = vmatpush1.bf16.msra.mxu1 %v12496_v13 }
 0x8d7   :  { %8827 = vmatpush1.bf16.msra.mxu0 %v12497_v37  ;;  %8787 = vmatprep.subr.bf16.mxu1 %v12498_v54  ;;  %v12535_v37 = vld [vmem:[%s19049_s3 + $0xacc] ss:$16 sps:$4 sm:$0xff]  }
 0x8d8   :  { %8828 = vmatprep.subr.bf16.mxu0 %v12499_v6 }
 0x8da   :  { %8788 = vmatpush2.bf16.msra.mxu1 %v12500_v0  ;;  %v12538_v0 = vld [vmem:[%s19049_s3 + $0xaa4] ss:$16 sps:$4 sm:$0xff]  }
 0x8db   :  { %8829 = vmatpush2.bf16.msra.mxu0 %v12501_v52  ;;  %8789 = vmatprep.subr.bf16.mxu1 %v12502_v5  ;;  %v12539_v52 = vld [vmem:[%s19049_s3 + $0xaac] ss:$16 sps:$4 sm:$0xff]   ;;  %v12540_v5 = vld [vmem:[%s19049_s3 + $0xaa0] ss:$16 sps:$4 sm:$0xff]  }
 0x8dc   :  { %8830 = vmatprep.subr.bf16.mxu0 %v12503_v35  ;;  %v12541_v35 = vld [vmem:[%s19049_s3 + $0xaa8] ss:$16 sps:$4 sm:$0xff]  }
 0x8de   :  { %8790 = vmatpush2.bf16.msra.mxu1 %v12504_v18  ;;  %v12542_v18 = vld [vmem:[%s19049_s3 + $0xa84] ss:$16 sps:$4 sm:$0xff]  }
 0x8df   :  { %8831 = vmatpush2.bf16.msra.mxu0 %v12505_v46  ;;  %8791 = vmatprep.subr.bf16.mxu1 %v12506_v44  ;;  %v12543_v46 = vld [vmem:[%s19049_s3 + $0xa8c] ss:$16 sps:$4 sm:$0xff]   ;;  %v12544_v44 = vld [vmem:[%s19049_s3 + $0xa80] ss:$16 sps:$4 sm:$0xff]  }
 0x8e0   :  { %8832 = vmatprep.subr.bf16.mxu0 %v12507_v29  ;;  %v12545_v29 = vld [vmem:[%s19049_s3 + $0xa88] ss:$16 sps:$4 sm:$0xff]  }
 0x8e2   :  { %8792 = vmatpush2.bf16.msra.mxu1 %v12508_v11  ;;  %v12546_v11 = vld [vmem:[%s19049_s3 + $0xa64] ss:$16 sps:$4 sm:$0xff]  }
 0x8e3   :  { %8833 = vmatpush2.bf16.msra.mxu0 %v12509_v45  ;;  %8793 = vmatprep.subr.bf16.mxu1 %v12510_v28  ;;  %v12547_v45 = vld [vmem:[%s19049_s3 + $0xa6c] ss:$16 sps:$4 sm:$0xff]   ;;  %v12548_v28 = vld [vmem:[%s19049_s3 + $0xa60] ss:$16 sps:$4 sm:$0xff]  }
 0x8e4   :  { %8834 = vmatprep.subr.bf16.mxu0 %v12511_v41  ;;  %v12549_v41 = vld [vmem:[%s19049_s3 + $0xa68] ss:$16 sps:$4 sm:$0xff]  }
 0x8e6   :  { %8794 = vmatpush2.bf16.msra.mxu1 %v12512_v31  ;;  %v12550_v31 = vld [vmem:[%s19049_s3 + $0xa44] ss:$16 sps:$4 sm:$0xff]  }
 0x8e7   :  { %8835 = vmatpush2.bf16.msra.mxu0 %v12513_v49  ;;  %8795 = vmatprep.subr.bf16.mxu1 %v12514_v33  ;;  %v12551_v49 = vld [vmem:[%s19049_s3 + $0xa4c] ss:$16 sps:$4 sm:$0xff]   ;;  %v12552_v33 = vld [vmem:[%s19049_s3 + $0xa40] ss:$16 sps:$4 sm:$0xff]  }
 0x8e8   :  { %8836 = vmatprep.subr.bf16.mxu0 %v12515_v26  ;;  %v12553_v26 = vld [vmem:[%s19049_s3 + $0xa48] ss:$16 sps:$4 sm:$0xff]  }
 0x8ea   :  { %8796 = vmatpush2.bf16.msra.mxu1 %v12516_v23  ;;  %v12554_v23 = vld [vmem:[%s19049_s3 + $0xa24] ss:$16 sps:$4 sm:$0xff]  }
 0x8eb   :  { %8837 = vmatpush2.bf16.msra.mxu0 %v12517_v9  ;;  %8797 = vmatprep.subr.bf16.mxu1 %v12518_v48  ;;  %v12555_v9 = vld [vmem:[%s19049_s3 + $0xa2c] ss:$16 sps:$4 sm:$0xff]   ;;  %v12556_v48 = vld [vmem:[%s19049_s3 + $0xa20] ss:$16 sps:$4 sm:$0xff]  }
 0x8ec   :  { %8838 = vmatprep.subr.bf16.mxu0 %v12519_v32  ;;  %v12557_v32 = vld [vmem:[%s19049_s3 + $0xa28] ss:$16 sps:$4 sm:$0xff]  }
 0x8ee   :  { %8798 = vmatpush2.bf16.msra.mxu1 %v12520_v53  ;;  %v12558_v53 = vld [vmem:[%s19049_s3 + $0xa04] ss:$16 sps:$4 sm:$0xff]  }
 0x8ef   :  { %8839 = vmatpush2.bf16.msra.mxu0 %v12521_v25  ;;  %8799 = vmatprep.subr.bf16.mxu1 %v12522_v24  ;;  %v12559_v25 = vld [vmem:[%s19049_s3 + $0xa0c] ss:$16 sps:$4 sm:$0xff]   ;;  %v12560_v24 = vld [vmem:[%s19049_s3 + $0xa00] ss:$16 sps:$4 sm:$0xff]  }
 0x8f0   :  { %8840 = vmatprep.subr.bf16.mxu0 %v12523_v47  ;;  %v12561_v47 = vld [vmem:[%s19049_s3 + $0xa08] ss:$16 sps:$4 sm:$0xff]  }
 0x8f2   :  { %8800 = vmatpush2.bf16.msra.mxu1 %v12524_v7  ;;  %v12562_v7 = vld [vmem:[%s19049_s3 + $0xbe4] ss:$16 sps:$4 sm:$0xff]  }
 0x8f3   :  { %8841 = vmatpush2.bf16.msra.mxu0 %v12525_v55  ;;  %8801 = vmatprep.subr.bf16.mxu1 %v12526_v22  ;;  %v12563_v55 = vld [vmem:[%s19049_s3 + $0xbec] ss:$16 sps:$4 sm:$0xff]   ;;  %v12564_v22 = vld [vmem:[%s19049_s3 + $0xbe0] ss:$16 sps:$4 sm:$0xff]  }
 0x8f4   :  { %8842 = vmatprep.subr.bf16.mxu0 %v12527_v42  ;;  %v12565_v42 = vld [vmem:[%s19049_s3 + $0xbe8] ss:$16 sps:$4 sm:$0xff]  }
 0x8f6   :  { %8802 = vmatpush2.bf16.msra.mxu1 %v12528_v34  ;;  %v12566_v34 = vld [vmem:[%s19049_s3 + $0xbc4] ss:$16 sps:$4 sm:$0xff]  }
 0x8f7   :  { %8843 = vmatpush2.bf16.msra.mxu0 %v12529_v61  ;;  %8867 = vmatprep.subr.bf16.mxu1 %v12530_v58  ;;  %v12567_v61 = vld [vmem:[%s19049_s3 + $0xbcc] ss:$16 sps:$4 sm:$0xff]   ;;  %v12569_v58 = vld [vmem:[%s19049_s3 + $0xbc8] ss:$16 sps:$4 sm:$0xff]  }
 0x8f8   :  { %8908 = vmatprep.subr.bf16.mxu0 %v12531_v14  ;;  %v12570_v14 = vld [vmem:[%s19049_s3 + $0xba4] ss:$16 sps:$4 sm:$0xff]  }
 0x8f9   :  { %v8521_v63 = vpop.f32.mrf.mxu1  ;;  %v8562_v60 = vpop.f32.mrf.mxu0  ;;  %8804 = vmatmul.mubr.bf16.vlgmr.msra.gmra.mxu1 %v8767_v38 }
 0x8fa   :  { %v18332_v30 = vadd.f32 %v8521_v63, %v18125_v20  ;;  %v18335_v16 = vadd.f32 %v8562_v60, %v18127_v10  ;;  %8845 = vmatmul.mubr.bf16.vlgmr.msra.gmra.mxu0 %v8767_v38  ;;  %8868 = vmatpush1.bf16.msra.mxu1 %v12532_v51  ;;  %v12568_v38 = vld [vmem:[%s19049_s3 + $0xbc0] ss:$16 sps:$4 sm:$0xff]   ;;  %v12571_v63 = vld [vmem:[%s19049_s3 + $0xbac] ss:$16 sps:$4 sm:$0xff]   ;;  %v12574_v51 = vld [vmem:[%s19049_s3 + $0xb84] ss:$16 sps:$4 sm:$0xff]  }
 0x8fb   :  { %8899 = vmatprep.mubr.bf16.mxu1 %v8864_v1  ;;  %8909 = vmatpush1.bf16.msra.mxu0 %v12533_v59  ;;  %v8523_v36 = vpop.f32.mrf.mxu1  ;;  %v8564_v57 = vpop.f32.mrf.mxu0  ;;  %v12572_v60 = vld [vmem:[%s19049_s3 + $0xba0] ss:$16 sps:$4 sm:$0xff]   ;;  %v12575_v59 = vld [vmem:[%s19049_s3 + $0xb8c] ss:$16 sps:$4 sm:$0xff]  }
 0x8fc   :  { %8940 = vmatprep.mubr.bf16.mxu0 %v8864_v1  ;;  %v18344_v20 = vadd.f32 %v8523_v36, %v18137_v19  ;;  %v18347_v10 = vadd.f32 %v8564_v57, %v18139_v50  ;;  %8869 = vmatprep.subr.bf16.mxu1 %v12534_v21  ;;  %v12536_v19 = vld [vmem:[%s19049_s3 + $0xac0] ss:$16 sps:$4 sm:$0xff]   ;;  %v12537_v50 = vld [vmem:[%s19049_s3 + $0xac8] ss:$16 sps:$4 sm:$0xff]   ;;  %v12578_v21 = vld [vmem:[%s19049_s3 + $0xb64] ss:$16 sps:$4 sm:$0xff]  }
 0x8fd   :  { %v8525_v4 = vpop.f32.mrf.mxu1  ;;  %v8566_v13 = vpop.f32.mrf.mxu0  ;;  %8910 = vmatprep.subr.bf16.mxu0 %v12535_v37  ;;  %v12573_v1 = vld [vmem:[%s19049_s3 + $0xba8] ss:$16 sps:$4 sm:$0xff]   ;;  %v12576_v36 = vld [vmem:[%s19049_s3 + $0xb80] ss:$16 sps:$4 sm:$0xff]  }
 0x8fe   :  { %8870 = vmatpush1.bf16.msra.mxu1 %v12536_v19  ;;  %v12577_v57 = vld [vmem:[%s19049_s3 + $0xb88] ss:$16 sps:$4 sm:$0xff]   ;;  %v12579_v4 = vld [vmem:[%s19049_s3 + $0xb6c] ss:$16 sps:$4 sm:$0xff]   ;;  %v12580_v13 = vld [vmem:[%s19049_s3 + $0xb60] ss:$16 sps:$4 sm:$0xff]  }
 0x8ff   :  { %8911 = vmatpush1.bf16.msra.mxu0 %v12537_v50  ;;  %v8526_v54 = vpop.f32.mrf.mxu1  ;;  %v8567_v6 = vpop.f32.mrf.mxu0  ;;  %8871 = vmatprep.subr.bf16.mxu1 %v12538_v0  ;;  %v12581_v37 = vld [vmem:[%s19049_s3 + $0xb68] ss:$16 sps:$4 sm:$0xff]   ;;  %v12582_v19 = vld [vmem:[%s19049_s3 + $0xb44] ss:$16 sps:$4 sm:$0xff]   ;;  %v12583_v50 = vld [vmem:[%s19049_s3 + $0xb4c] ss:$16 sps:$4 sm:$0xff]  }
 0x900   :  { %8912 = vmatprep.subr.bf16.mxu0 %v12539_v52  ;;  %v12584_v54 = vld [vmem:[%s19049_s3 + $0xb40] ss:$16 sps:$4 sm:$0xff]   ;;  %v12585_v6 = vld [vmem:[%s19049_s3 + $0xb48] ss:$16 sps:$4 sm:$0xff]   ;;  %v12586_v0 = vld [vmem:[%s19049_s3 + $0xb24] ss:$16 sps:$4 sm:$0xff]  }
 0x901   :  { %v12587_v52 = vld [vmem:[%s19049_s3 + $0xb2c] ss:$16 sps:$4 sm:$0xff]  }
 0x902   :  { %8872 = vmatpush1.bf16.msra.mxu1 %v12540_v5  ;;  %v12588_v5 = vld [vmem:[%s19049_s3 + $0xb20] ss:$16 sps:$4 sm:$0xff]  }
 0x903   :  { %8913 = vmatpush1.bf16.msra.mxu0 %v12541_v35  ;;  %8873 = vmatprep.subr.bf16.mxu1 %v12542_v18  ;;  %v12589_v35 = vld [vmem:[%s19049_s3 + $0xb28] ss:$16 sps:$4 sm:$0xff]   ;;  %v12590_v18 = vld [vmem:[%s19049_s3 + $0xb04] ss:$16 sps:$4 sm:$0xff]  }
 0x904   :  { %8914 = vmatprep.subr.bf16.mxu0 %v12543_v46  ;;  %v12591_v46 = vld [vmem:[%s19049_s3 + $0xb0c] ss:$16 sps:$4 sm:$0xff]  }
 0x906   :  { %8874 = vmatpush1.bf16.msra.mxu1 %v12544_v44  ;;  %v12592_v44 = vld [vmem:[%s19049_s3 + $0xb00] ss:$16 sps:$4 sm:$0xff]  }
 0x907   :  { %8915 = vmatpush1.bf16.msra.mxu0 %v12545_v29  ;;  %8875 = vmatprep.subr.bf16.mxu1 %v12546_v11  ;;  %v12593_v29 = vld [vmem:[%s19049_s3 + $0xb08] ss:$16 sps:$4 sm:$0xff]   ;;  %v8863_v11 = vpack.c.b16 %v17540_v43, %v17540_v43  ;;  %v12596_v43 = vld [vmem:[%s19049_s3 + $0xce0] ss:$16 sps:$4 sm:$0xff]  }
 0x908   :  { %8916 = vmatprep.subr.bf16.mxu0 %v12547_v45  ;;  %v12594_v45 = vld [vmem:[%s19049_s3 + $0xce4] ss:$16 sps:$4 sm:$0xff]  }
 0x90a   :  { %8876 = vmatpush1.bf16.msra.mxu1 %v12548_v28  ;;  %v12595_v28 = vld [vmem:[%s19049_s3 + $0xcec] ss:$16 sps:$4 sm:$0xff]  }
 0x90b   :  { %8917 = vmatpush1.bf16.msra.mxu0 %v12549_v41  ;;  %8877 = vmatprep.subr.bf16.mxu1 %v12550_v31  ;;  %v8960_v31 = vpack.c.b16 %v17551_v40, %v17551_v40 }
 0x90c   :  { %8918 = vmatprep.subr.bf16.mxu0 %v12551_v49 }
 0x90e   :  { %8878 = vmatpush1.bf16.msra.mxu1 %v12552_v33 }
 0x90f   :  { %8919 = vmatpush1.bf16.msra.mxu0 %v12553_v26  ;;  %8879 = vmatprep.subr.bf16.mxu1 %v12554_v23  ;;  %v12597_v23 = vld [vmem:[%s19049_s3 + $0xce8] ss:$16 sps:$4 sm:$0xff]  }
 0x910   :  { %8920 = vmatprep.subr.bf16.mxu0 %v12555_v9 }
 0x912   :  { %8880 = vmatpush1.bf16.msra.mxu1 %v12556_v48  ;;  %v12598_v48 = vld [vmem:[%s19049_s3 + $0xcc4] ss:$16 sps:$4 sm:$0xff]  }
 0x913   :  { %8921 = vmatpush1.bf16.msra.mxu0 %v12557_v32  ;;  %8881 = vmatprep.subr.bf16.mxu1 %v12558_v53  ;;  %v12599_v53 = vld [vmem:[%s19049_s3 + $0xccc] ss:$16 sps:$4 sm:$0xff]  }
 0x914   :  { %8922 = vmatprep.subr.bf16.mxu0 %v12559_v25 }
 0x916   :  { %8882 = vmatpush1.bf16.msra.mxu1 %v12560_v24  ;;  %v12601_v24 = vld [vmem:[%s19049_s3 + $0xcc8] ss:$16 sps:$4 sm:$0xff]  }
 0x917   :  { %8923 = vmatpush1.bf16.msra.mxu0 %v12561_v47  ;;  %8883 = vmatprep.subr.bf16.mxu1 %v12562_v7 }
 0x918   :  { %8924 = vmatprep.subr.bf16.mxu0 %v12563_v55  ;;  %v12603_v55 = vld [vmem:[%s19049_s3 + $0xcac] ss:$16 sps:$4 sm:$0xff]  }
 0x91a   :  { %8884 = vmatpush2.bf16.msra.mxu1 %v12564_v22  ;;  %v12604_v22 = vld [vmem:[%s19049_s3 + $0xca0] ss:$16 sps:$4 sm:$0xff]  }
 0x91b   :  { %8925 = vmatpush2.bf16.msra.mxu0 %v12565_v42  ;;  %8885 = vmatprep.subr.bf16.mxu1 %v12566_v34  ;;  %v12605_v42 = vld [vmem:[%s19049_s3 + $0xca8] ss:$16 sps:$4 sm:$0xff]   ;;  %v12606_v34 = vld [vmem:[%s19049_s3 + $0xc84] ss:$16 sps:$4 sm:$0xff]  }
 0x91c   :  { %8926 = vmatprep.subr.bf16.mxu0 %v12567_v61  ;;  %v12607_v61 = vld [vmem:[%s19049_s3 + $0xc8c] ss:$16 sps:$4 sm:$0xff]  }
 0x91e   :  { %8886 = vmatpush2.bf16.msra.mxu1 %v12568_v38  ;;  %v12608_v38 = vld [vmem:[%s19049_s3 + $0xc80] ss:$16 sps:$4 sm:$0xff]  }
 0x91f   :  { %8927 = vmatpush2.bf16.msra.mxu0 %v12569_v58  ;;  %8887 = vmatprep.subr.bf16.mxu1 %v12570_v14  ;;  %v12609_v58 = vld [vmem:[%s19049_s3 + $0xc88] ss:$16 sps:$4 sm:$0xff]   ;;  %v12610_v14 = vld [vmem:[%s19049_s3 + $0xc64] ss:$16 sps:$4 sm:$0xff]  }
 0x920   :  { %8928 = vmatprep.subr.bf16.mxu0 %v12571_v63  ;;  %v12611_v63 = vld [vmem:[%s19049_s3 + $0xc6c] ss:$16 sps:$4 sm:$0xff]  }
 0x922   :  { %8888 = vmatpush2.bf16.msra.mxu1 %v12572_v60  ;;  %v12612_v60 = vld [vmem:[%s19049_s3 + $0xc60] ss:$16 sps:$4 sm:$0xff]  }
 0x923   :  { %8929 = vmatpush2.bf16.msra.mxu0 %v12573_v1  ;;  %8889 = vmatprep.subr.bf16.mxu1 %v12574_v51  ;;  %v12613_v1 = vld [vmem:[%s19049_s3 + $0xc68] ss:$16 sps:$4 sm:$0xff]   ;;  %v12614_v51 = vld [vmem:[%s19049_s3 + $0xc44] ss:$16 sps:$4 sm:$0xff]  }
 0x924   :  { %8930 = vmatprep.subr.bf16.mxu0 %v12575_v59  ;;  %v12615_v59 = vld [vmem:[%s19049_s3 + $0xc4c] ss:$16 sps:$4 sm:$0xff]  }
 0x926   :  { %8890 = vmatpush2.bf16.msra.mxu1 %v12576_v36  ;;  %v12616_v36 = vld [vmem:[%s19049_s3 + $0xc40] ss:$16 sps:$4 sm:$0xff]  }
 0x927   :  { %8931 = vmatpush2.bf16.msra.mxu0 %v12577_v57  ;;  %8891 = vmatprep.subr.bf16.mxu1 %v12578_v21  ;;  %v12617_v57 = vld [vmem:[%s19049_s3 + $0xc48] ss:$16 sps:$4 sm:$0xff]   ;;  %v12618_v21 = vld [vmem:[%s19049_s3 + $0xc24] ss:$16 sps:$4 sm:$0xff]  }
 0x928   :  { %8932 = vmatprep.subr.bf16.mxu0 %v12579_v4  ;;  %v12619_v4 = vld [vmem:[%s19049_s3 + $0xc2c] ss:$16 sps:$4 sm:$0xff]  }
 0x92a   :  { %8892 = vmatpush2.bf16.msra.mxu1 %v12580_v13  ;;  %v12620_v13 = vld [vmem:[%s19049_s3 + $0xc20] ss:$16 sps:$4 sm:$0xff]  }
 0x92b   :  { %8933 = vmatpush2.bf16.msra.mxu0 %v12581_v37  ;;  %8893 = vmatprep.subr.bf16.mxu1 %v12582_v19  ;;  %v12621_v37 = vld [vmem:[%s19049_s3 + $0xc28] ss:$16 sps:$4 sm:$0xff]   ;;  %v12622_v19 = vld [vmem:[%s19049_s3 + $0xc04] ss:$16 sps:$4 sm:$0xff]  }
 0x92c   :  { %8934 = vmatprep.subr.bf16.mxu0 %v12583_v50  ;;  %v12623_v50 = vld [vmem:[%s19049_s3 + $0xc0c] ss:$16 sps:$4 sm:$0xff]  }
 0x92e   :  { %8894 = vmatpush2.bf16.msra.mxu1 %v12584_v54  ;;  %v12624_v54 = vld [vmem:[%s19049_s3 + $0xc00] ss:$16 sps:$4 sm:$0xff]  }
 0x92f   :  { %8935 = vmatpush2.bf16.msra.mxu0 %v12585_v6  ;;  %8895 = vmatprep.subr.bf16.mxu1 %v12586_v0  ;;  %v12625_v6 = vld [vmem:[%s19049_s3 + $0xc08] ss:$16 sps:$4 sm:$0xff]   ;;  %v12626_v0 = vld [vmem:[%s19049_s3 + $0xde4] ss:$16 sps:$4 sm:$0xff]  }
 0x930   :  { %8936 = vmatprep.subr.bf16.mxu0 %v12587_v52  ;;  %v12627_v52 = vld [vmem:[%s19049_s3 + $0xdec] ss:$16 sps:$4 sm:$0xff]  }
 0x932   :  { %8896 = vmatpush2.bf16.msra.mxu1 %v12588_v5  ;;  %v12628_v5 = vld [vmem:[%s19049_s3 + $0xde0] ss:$16 sps:$4 sm:$0xff]  }
 0x933   :  { %8937 = vmatpush2.bf16.msra.mxu0 %v12589_v35  ;;  %8897 = vmatprep.subr.bf16.mxu1 %v12590_v18  ;;  %v12629_v35 = vld [vmem:[%s19049_s3 + $0xde8] ss:$16 sps:$4 sm:$0xff]   ;;  %v12630_v18 = vld [vmem:[%s19049_s3 + $0xdc4] ss:$16 sps:$4 sm:$0xff]  }
 0x934   :  { %8938 = vmatprep.subr.bf16.mxu0 %v12591_v46  ;;  %v12631_v46 = vld [vmem:[%s19049_s3 + $0xdcc] ss:$16 sps:$4 sm:$0xff]  }
 0x936   :  { %8898 = vmatpush2.bf16.msra.mxu1 %v12592_v44  ;;  %v12632_v44 = vld [vmem:[%s19049_s3 + $0xdc0] ss:$16 sps:$4 sm:$0xff]  }
 0x937   :  { %8939 = vmatpush2.bf16.msra.mxu0 %v12593_v29  ;;  %8963 = vmatprep.subr.bf16.mxu1 %v12594_v45  ;;  %v12633_v29 = vld [vmem:[%s19049_s3 + $0xdc8] ss:$16 sps:$4 sm:$0xff]   ;;  %v12635_v45 = vld [vmem:[%s19049_s3 + $0xdac] ss:$16 sps:$4 sm:$0xff]  }
 0x938   :  { %9004 = vmatprep.subr.bf16.mxu0 %v12595_v28  ;;  %v12636_v28 = vld [vmem:[%s19049_s3 + $0xda0] ss:$16 sps:$4 sm:$0xff]  }
 0x939   :  { %v8613_v41 = vpop.f32.mrf.mxu1  ;;  %8900 = vmatmul.mubr.bf16.vlgmr.msra.gmra.mxu1 %v8863_v11 }
 0x93a   :  { %v18540_v49 = vadd.f32 %v8613_v41, %v18332_v30  ;;  %v8654_v33 = vpop.f32.mrf.mxu0  ;;  %8941 = vmatmul.mubr.bf16.vlgmr.msra.gmra.mxu0 %v8863_v11  ;;  %8964 = vmatpush1.bf16.msra.mxu1 %v12596_v43  ;;  %v12634_v11 = vld [vmem:[%s19049_s3 + $0xda4] ss:$16 sps:$4 sm:$0xff]   ;;  %v12637_v41 = vld [vmem:[%s19049_s3 + $0xda8] ss:$16 sps:$4 sm:$0xff]   ;;  %v12640_v43 = vld [vmem:[%s19049_s3 + $0xd80] ss:$16 sps:$4 sm:$0xff]  }
 0x93b   :  { %v18546_v26 = vadd.f32 %v8654_v33, %v18335_v16  ;;  %8995 = vmatprep.mubr.bf16.mxu1 %v8960_v31  ;;  %9005 = vmatpush1.bf16.msra.mxu0 %v12597_v23  ;;  %v8615_v40 = vpop.f32.mrf.mxu1  ;;  %v12639_v33 = vld [vmem:[%s19049_s3 + $0xd8c] ss:$16 sps:$4 sm:$0xff]   ;;  %v12641_v23 = vld [vmem:[%s19049_s3 + $0xd88] ss:$16 sps:$4 sm:$0xff]  }
 0x93c   :  { %9036 = vmatprep.mubr.bf16.mxu0 %v8960_v31  ;;  %v18552_v30 = vadd.f32 %v8615_v40, %v18344_v20  ;;  %v8656_v9 = vpop.f32.mrf.mxu0  ;;  %8965 = vmatprep.subr.bf16.mxu1 %v12598_v48  ;;  %v12600_v20 = vld [vmem:[%s19049_s3 + $0xcc0] ss:$16 sps:$4 sm:$0xff]   ;;  %v12638_v31 = vld [vmem:[%s19049_s3 + $0xd84] ss:$16 sps:$4 sm:$0xff]  }
 0x93d   :  { %v18558_v16 = vadd.f32 %v8656_v9, %v18347_v10  ;;  %v8617_v32 = vpop.f32.mrf.mxu1  ;;  %9006 = vmatprep.subr.bf16.mxu0 %v12599_v53  ;;  %v12602_v10 = vld [vmem:[%s19049_s3 + $0xca4] ss:$16 sps:$4 sm:$0xff]   ;;  %v12643_v9 = vld [vmem:[%s19049_s3 + $0xd6c] ss:$16 sps:$4 sm:$0xff]   ;;  %v12644_v48 = vld [vmem:[%s19049_s3 + $0xd60] ss:$16 sps:$4 sm:$0xff]  }
 0x93e   :  { %v8658_v25 = vpop.f32.mrf.mxu0  ;;  %8966 = vmatpush1.bf16.msra.mxu1 %v12600_v20  ;;  %v12642_v40 = vld [vmem:[%s19049_s3 + $0xd64] ss:$16 sps:$4 sm:$0xff]   ;;  %v12645_v32 = vld [vmem:[%s19049_s3 + $0xd68] ss:$16 sps:$4 sm:$0xff]   ;;  %v12648_v20 = vld [vmem:[%s19049_s3 + $0xd40] ss:$16 sps:$4 sm:$0xff]  }
 0x93f   :  { %9007 = vmatpush1.bf16.msra.mxu0 %v12601_v24  ;;  %v8618_v47 = vpop.f32.mrf.mxu1  ;;  %8967 = vmatprep.subr.bf16.mxu1 %v12602_v10  ;;  %v12646_v53 = vld [vmem:[%s19049_s3 + $0xd44] ss:$16 sps:$4 sm:$0xff]   ;;  %v12647_v25 = vld [vmem:[%s19049_s3 + $0xd4c] ss:$16 sps:$4 sm:$0xff]   ;;  %v12649_v24 = vld [vmem:[%s19049_s3 + $0xd48] ss:$16 sps:$4 sm:$0xff]  }
 0x940   :  { %v8659_v7 = vpop.f32.mrf.mxu0  ;;  %9008 = vmatprep.subr.bf16.mxu0 %v12603_v55  ;;  %v12650_v47 = vld [vmem:[%s19049_s3 + $0xd24] ss:$16 sps:$4 sm:$0xff]   ;;  %v12651_v10 = vld [vmem:[%s19049_s3 + $0xd2c] ss:$16 sps:$4 sm:$0xff]   ;;  %v12653_v55 = vld [vmem:[%s19049_s3 + $0xd28] ss:$16 sps:$4 sm:$0xff]  }
 0x941   :  { %v12652_v7 = vld [vmem:[%s19049_s3 + $0xd20] ss:$16 sps:$4 sm:$0xff]  }
 0x942   :  { %8968 = vmatpush1.bf16.msra.mxu1 %v12604_v22  ;;  %v12654_v22 = vld [vmem:[%s19049_s3 + $0xd04] ss:$16 sps:$4 sm:$0xff]  }
 0x943   :  { %9009 = vmatpush1.bf16.msra.mxu0 %v12605_v42  ;;  %8969 = vmatprep.subr.bf16.mxu1 %v12606_v34  ;;  %v12655_v42 = vld [vmem:[%s19049_s3 + $0xd0c] ss:$16 sps:$4 sm:$0xff]   ;;  %v12656_v34 = vld [vmem:[%s19049_s3 + $0xd00] ss:$16 sps:$4 sm:$0xff]  }
 0x944   :  { %9010 = vmatprep.subr.bf16.mxu0 %v12607_v61  ;;  %v12657_v61 = vld [vmem:[%s19049_s3 + $0xd08] ss:$16 sps:$4 sm:$0xff]  }
 0x946   :  { %8970 = vmatpush1.bf16.msra.mxu1 %v12608_v38  ;;  %v8959_v38 = vpack.c.b16 %v17560_v2, %v17560_v2 }
 0x947   :  { %9011 = vmatpush1.bf16.msra.mxu0 %v12609_v58  ;;  %8971 = vmatprep.subr.bf16.mxu1 %v12610_v14  ;;  %v12658_v58 = vld [vmem:[%s19051_s5 + $0x74] ss:$8 sps:$4 sm:$0xff]  }
 0x948   :  { %9012 = vmatprep.subr.bf16.mxu0 %v12611_v63 }
 0x94a   :  { %8972 = vmatpush1.bf16.msra.mxu1 %v12612_v60 }
 0x94b   :  { %9013 = vmatpush1.bf16.msra.mxu0 %v12613_v1  ;;  %8973 = vmatprep.subr.bf16.mxu1 %v12614_v51  ;;  %v12659_v1 = vld [vmem:[%s19051_s5 + $0x70] ss:$8 sps:$4 sm:$0xff]  }
 0x94c   :  { %9014 = vmatprep.subr.bf16.mxu0 %v12615_v59  ;;  %v12660_v59 = vld [vmem:[%s19051_s5 + $0x64] ss:$8 sps:$4 sm:$0xff]  }
 0x94e   :  { %8974 = vmatpush1.bf16.msra.mxu1 %v12616_v36 }
 0x94f   :  { %9015 = vmatpush1.bf16.msra.mxu0 %v12617_v57  ;;  %8975 = vmatprep.subr.bf16.mxu1 %v12618_v21 }
 0x950   :  { %9016 = vmatprep.subr.bf16.mxu0 %v12619_v4 }
 0x952   :  { %8976 = vmatpush1.bf16.msra.mxu1 %v12620_v13 }
 0x953   :  { %9017 = vmatpush1.bf16.msra.mxu0 %v12621_v37  ;;  %8977 = vmatprep.subr.bf16.mxu1 %v12622_v19  ;;  %v12662_v37 = vld [vmem:[%s19051_s5 + $0x54] ss:$8 sps:$4 sm:$0xff]  }
 0x954   :  { %9018 = vmatprep.subr.bf16.mxu0 %v12623_v50  ;;  %v12665_v50 = vld [vmem:[%s19051_s5 + $0x40] ss:$8 sps:$4 sm:$0xff]  }
 0x956   :  { %8978 = vmatpush1.bf16.msra.mxu1 %v12624_v54  ;;  %v12666_v54 = vld [vmem:[%s19051_s5 + $0x34] ss:$8 sps:$4 sm:$0xff]  }
 0x957   :  { %9019 = vmatpush1.bf16.msra.mxu0 %v12625_v6  ;;  %8979 = vmatprep.subr.bf16.mxu1 %v12626_v0  ;;  %v12667_v6 = vld [vmem:[%s19051_s5 + $0x30] ss:$8 sps:$4 sm:$0xff]   ;;  %v12668_v0 = vld [vmem:[%s19051_s5 + $0x24] ss:$8 sps:$4 sm:$0xff]  }
 0x958   :  { %9020 = vmatprep.subr.bf16.mxu0 %v12627_v52  ;;  %v12669_v52 = vld [vmem:[%s19051_s5 + $0x20] ss:$8 sps:$4 sm:$0xff]  }
 0x95a   :  { %8980 = vmatpush2.bf16.msra.mxu1 %v12628_v5  ;;  %v12670_v5 = vld [vmem:[%s19051_s5 + $0x14] ss:$8 sps:$4 sm:$0xff]  }
 0x95b   :  { %9021 = vmatpush2.bf16.msra.mxu0 %v12629_v35  ;;  %8981 = vmatprep.subr.bf16.mxu1 %v12630_v18  ;;  %v12671_v35 = vld [vmem:[%s19051_s5 + $0x10] ss:$8 sps:$4 sm:$0xff]   ;;  %v12672_v18 = vld [vmem:[%s19051_s5 + $0x4] ss:$8 sps:$4 sm:$0xff]  }
 0x95c   :  { %9022 = vmatprep.subr.bf16.mxu0 %v12631_v46  ;;  %v12673_v46 = vld [vmem:[%s19051_s5] ss:$8 sps:$4 sm:$0xff]  }
 0x95e   :  { %8982 = vmatpush2.bf16.msra.mxu1 %v12632_v44  ;;  %v12674_v44 = vld [vmem:[%s19051_s5 + $0xf4] ss:$8 sps:$4 sm:$0xff]  }
 0x95f   :  { %9023 = vmatpush2.bf16.msra.mxu0 %v12633_v29  ;;  %8983 = vmatprep.subr.bf16.mxu1 %v12634_v11  ;;  %v12675_v29 = vld [vmem:[%s19051_s5 + $0xf0] ss:$8 sps:$4 sm:$0xff]   ;;  %v12676_v11 = vld [vmem:[%s19051_s5 + $0xe4] ss:$8 sps:$4 sm:$0xff]  }
 0x960   :  { %9024 = vmatprep.subr.bf16.mxu0 %v12635_v45  ;;  %v12677_v45 = vld [vmem:[%s19051_s5 + $0xe0] ss:$8 sps:$4 sm:$0xff]  }
 0x962   :  { %8984 = vmatpush2.bf16.msra.mxu1 %v12636_v28  ;;  %v12678_v28 = vld [vmem:[%s19051_s5 + $0xd4] ss:$8 sps:$4 sm:$0xff]  }
 0x963   :  { %9025 = vmatpush2.bf16.msra.mxu0 %v12637_v41  ;;  %8985 = vmatprep.subr.bf16.mxu1 %v12638_v31  ;;  %v12679_v41 = vld [vmem:[%s19051_s5 + $0xd0] ss:$8 sps:$4 sm:$0xff]   ;;  %v12680_v31 = vld [vmem:[%s19051_s5 + $0xc4] ss:$8 sps:$4 sm:$0xff]  }
 0x964   :  { %9026 = vmatprep.subr.bf16.mxu0 %v12639_v33  ;;  %v12681_v33 = vld [vmem:[%s19051_s5 + $0xc0] ss:$8 sps:$4 sm:$0xff]  }
 0x966   :  { %8986 = vmatpush2.bf16.msra.mxu1 %v12640_v43  ;;  %v12682_v43 = vld [vmem:[%s19051_s5 + $0xb4] ss:$8 sps:$4 sm:$0xff]  }
 0x967   :  { %9027 = vmatpush2.bf16.msra.mxu0 %v12641_v23  ;;  %8987 = vmatprep.subr.bf16.mxu1 %v12642_v40  ;;  %v12683_v23 = vld [vmem:[%s19051_s5 + $0xb0] ss:$8 sps:$4 sm:$0xff]   ;;  %v12684_v40 = vld [vmem:[%s19051_s5 + $0xa4] ss:$8 sps:$4 sm:$0xff]  }
 0x968   :  { %9028 = vmatprep.subr.bf16.mxu0 %v12643_v9  ;;  %v12685_v9 = vld [vmem:[%s19051_s5 + $0xa0] ss:$8 sps:$4 sm:$0xff]  }
 0x96a   :  { %8988 = vmatpush2.bf16.msra.mxu1 %v12644_v48  ;;  %v12686_v48 = vld [vmem:[%s19051_s5 + $0x94] ss:$8 sps:$4 sm:$0xff]  }
 0x96b   :  { %9029 = vmatpush2.bf16.msra.mxu0 %v12645_v32  ;;  %8989 = vmatprep.subr.bf16.mxu1 %v12646_v53  ;;  %v12687_v32 = vld [vmem:[%s19051_s5 + $0x90] ss:$8 sps:$4 sm:$0xff]   ;;  %v12688_v53 = vld [vmem:[%s19051_s5 + $0x84] ss:$8 sps:$4 sm:$0xff]  }
 0x96c   :  { %9030 = vmatprep.subr.bf16.mxu0 %v12647_v25  ;;  %v12689_v25 = vld [vmem:[%s19051_s5 + $0x80] ss:$8 sps:$4 sm:$0xff]  }
 0x96e   :  { %8990 = vmatpush2.bf16.msra.mxu1 %v12648_v20 }
 0x96f   :  { %9031 = vmatpush2.bf16.msra.mxu0 %v12649_v24  ;;  %8991 = vmatprep.subr.bf16.mxu1 %v12650_v47 }
 0x970   :  { %9032 = vmatprep.subr.bf16.mxu0 %v12651_v10 }
 0x972   :  { %8992 = vmatpush2.bf16.msra.mxu1 %v12652_v7 }
 0x973   :  { %9033 = vmatpush2.bf16.msra.mxu0 %v12653_v55  ;;  %8993 = vmatprep.subr.bf16.mxu1 %v12654_v22 }
 0x974   :  { %9034 = vmatprep.subr.bf16.mxu0 %v12655_v42 }
 0x976   :  { %8994 = vmatpush2.bf16.msra.mxu1 %v12656_v34 }
 0x977   :  { %9035 = vmatpush2.bf16.msra.mxu0 %v12657_v61  ;;  %9071 = vmatprep.subr.bf16.mxu1 %v12658_v58 }
 0x979   :  { %v8709_v14 = vpop.f32.mrf.mxu1  ;;  %8996 = vmatmul.mubr.bf16.vlgmr.msra.gmra.mxu1 %v8959_v38 }
 0x97a   :  { %v18743_v63 = vadd.f32 %v8709_v14, %v18540_v49  ;;  %v8750_v60 = vpop.f32.mrf.mxu0  ;;  %9037 = vmatmul.mubr.bf16.vlgmr.msra.gmra.mxu0 %v8959_v38  ;;  %9072 = vmatpush1.bf16.msra.mxu1 %v12659_v1 }
 0x97b   :  { %v18749_v51 = vadd.f32 %v8750_v60, %v18546_v26  ;;  %v8711_v2 = vpop.f32.mrf.mxu1  ;;  %9073 = vmatprep.subr.bf16.mxu1 %v12660_v59  ;;  %v12661_v26 = vld [vmem:[%s19051_s5 + $0x60] ss:$8 sps:$4 sm:$0xff]  }
 0x97c   :  { %v18755_v36 = vadd.f32 %v8711_v2, %v18552_v30  ;;  %v8752_v49 = vpop.f32.mrf.mxu0  ;;  %v12663_v30 = vld [vmem:[%s19051_s5 + $0x50] ss:$8 sps:$4 sm:$0xff]  }
 0x97d   :  { %v18758_v57 = vadd.f32 %v8752_v49, %v18558_v16  ;;  %v8713_v21 = vpop.f32.mrf.mxu1  ;;  %v12664_v16 = vld [vmem:[%s19051_s5 + $0x44] ss:$8 sps:$4 sm:$0xff]  }
 0x97e   :  { %v8754_v4 = vpop.f32.mrf.mxu0  ;;  %9074 = vmatpush1.bf16.msra.mxu1 %v12661_v26 }
 0x97f   :  { %v8714_v13 = vpop.f32.mrf.mxu1  ;;  %9075 = vmatprep.subr.bf16.mxu1 %v12662_v37 }
 0x980   :  { %v8755_v19 = vpop.f32.mrf.mxu0 }
 0x982   :  { %9076 = vmatpush1.bf16.msra.mxu1 %v12663_v30 }
 0x983   :  { %9077 = vmatprep.subr.bf16.mxu1 %v12664_v16 }
 0x986   :  { %9078 = vmatpush1.bf16.msra.mxu1 %v12665_v50 }
 0x987   :  { %9079 = vmatprep.subr.bf16.mxu1 %v12666_v54 }
 0x98a   :  { %9080 = vmatpush1.bf16.msra.mxu1 %v12667_v6 }
 0x98b   :  { %9081 = vmatprep.subr.bf16.mxu1 %v12668_v0 }
 0x98e   :  { %9082 = vmatpush1.bf16.msra.mxu1 %v12669_v52 }
 0x98f   :  { %9083 = vmatprep.subr.bf16.mxu1 %v12670_v5 }
 0x992   :  { %9084 = vmatpush1.bf16.msra.mxu1 %v12671_v35 }
 0x993   :  { %9085 = vmatprep.subr.bf16.mxu1 %v12672_v18 }
 0x996   :  { %9086 = vmatpush1.bf16.msra.mxu1 %v12673_v46 }
 0x997   :  { %9087 = vmatprep.subr.bf16.mxu1 %v12674_v44 }
 0x99a   :  { %9088 = vmatpush2.bf16.msra.mxu1 %v12675_v29 }
 0x99b   :  { %9089 = vmatprep.subr.bf16.mxu1 %v12676_v11 }
 0x99e   :  { %9090 = vmatpush2.bf16.msra.mxu1 %v12677_v45 }
 0x99f   :  { %9091 = vmatprep.subr.bf16.mxu1 %v12678_v28 }
 0x9a2   :  { %9092 = vmatpush2.bf16.msra.mxu1 %v12679_v41 }
 0x9a3   :  { %9093 = vmatprep.subr.bf16.mxu1 %v12680_v31 }
 0x9a6   :  { %9094 = vmatpush2.bf16.msra.mxu1 %v12681_v33 }
 0x9a7   :  { %9095 = vmatprep.subr.bf16.mxu1 %v12682_v43 }
 0x9aa   :  { %9096 = vmatpush2.bf16.msra.mxu1 %v12683_v23 }
 0x9ab   :  { %9097 = vmatprep.subr.bf16.mxu1 %v12684_v40 }
 0x9ae   :  { %9098 = vmatpush2.bf16.msra.mxu1 %v12685_v9 }
 0x9af   :  { %9099 = vmatprep.subr.bf16.mxu1 %v12686_v48 }
 0x9b2   :  { %9100 = vmatpush2.bf16.msra.mxu1 %v12687_v32 }
 0x9b3   :  { %9101 = vmatprep.subr.bf16.mxu1 %v12688_v53 }
 0x9b6   :  { %9102 = vmatpush2.bf16.msra.mxu1 %v12689_v25 }
 0x9b9   :  { %v8805_v20 = vpop.f32.mrf.mxu1 }
 0x9ba   :  { %v8853_v24 = vadd.f32 %v8805_v20, %v18743_v63  ;;  %v8846_v47 = vpop.f32.mrf.mxu0 }
 0x9bb   :  { %v8855_v10 = vadd.f32 %v8846_v47, %v18749_v51  ;;  %v8807_v7 = vpop.f32.mrf.mxu1 }
 0x9bc   :  { %v8854_v55 = vadd.f32 %v8807_v7, %v18755_v36  ;;  %v8848_v22 = vpop.f32.mrf.mxu0 }
 0x9bd   :  { %v8856_v42 = vadd.f32 %v8848_v22, %v18758_v57  ;;  %v8809_v34 = vpop.f32.mrf.mxu1 }
 0x9be   :  { %v8850_v61 = vpop.f32.mrf.mxu0 }
 0x9bf   :  { %v8810_v38 = vpop.f32.mrf.mxu1 }
 0x9c0   :  { %v8851_v58 = vpop.f32.mrf.mxu0 }
 0x9f9   :  { %v8901_v14 = vpop.f32.mrf.mxu1 }
 0x9fa   :  { %v8949_v60 = vadd.f32 %v8901_v14, %v8853_v24  ;;  %v8942_v1 = vpop.f32.mrf.mxu0 }
 0x9fb   :  { %v8951_v2 = vadd.f32 %v8942_v1, %v8855_v10  ;;  %v8903_v59 = vpop.f32.mrf.mxu1 }
 0x9fc   :  { %v8950_v49 = vadd.f32 %v8903_v59, %v8854_v55  ;;  %v8944_v63 = vpop.f32.mrf.mxu0 }
 0x9fd   :  { %v8905_v21 = vpop.f32.mrf.mxu1  ;;  %v8952_v37 = vadd.f32 %v8944_v63, %v8856_v42 }
 0x9fe   :  { %v8946_v4 = vpop.f32.mrf.mxu0 }
 0x9ff   :  { %v8906_v51 = vpop.f32.mrf.mxu1 }
 0xa00   :  { %v8947_v26 = vpop.f32.mrf.mxu0 }
 0xa39   :  { %v8997_v13 = vpop.f32.mrf.mxu1 }
 0xa3a   :  { %v9038_v36 = vpop.f32.mrf.mxu0  ;;  %v9045_v46 = vadd.f32 %v8997_v13, %v8949_v60 }
 0xa3b   :  { %v9047_v19 = vadd.f32 %v9038_v36, %v8951_v2  ;;  %v8999_v57 = vpop.f32.mrf.mxu1 }
 0xa3c   :  { %v9040_v30 = vpop.f32.mrf.mxu0  ;;  %v9046_v44 = vadd.f32 %v8999_v57, %v8950_v49  ;;  %v9049_v29 = vadd.f32 %v9045_v46, %v19250_v15  ;;  %v11594_v46 = vld [vmem:[%s19054_s7 + $0x60] sm:$0xff]  }
 0xa3d   :  { %v9051_v16 = vadd.f32 %v9047_v19, %v15336_v8  ;;  %v9048_v50 = vadd.f32 %v9040_v30, %v8952_v37  ;;  %v9001_v54 = vpop.f32.mrf.mxu1 }
 0xa3e   :  { %v9042_v6 = vpop.f32.mrf.mxu0  ;;  %v9050_v45 = vadd.f32 %v9046_v44, %v19248_v39  ;;  %v11595_v44 = vld [vmem:[%s19054_s7 + $0x20] sm:$0xff]  }
 0xa3f   :  { %v10763_v0 = vmul.f32 -1.442695, %v9051_v16  ;;  %v9052_v52 = vadd.f32 %v9048_v50, %v15349_v3  ;;  %v9002_v5 = vpop.f32.mrf.mxu1  ;;  %v11588_v6 = vld [vmem:[%s19054_s7 + $0x78] sm:$0xff]  }
 0xa40   :  { %v9043_v35 = vpop.f32.mrf.mxu0  ;;  %10815 = vmatprep.subr.bf16.mxu0 %v11588_v6  ;;  %v11591_v5 = vld [vmem:[%s19054_s7 + $0x30] sm:$0xff]  }
 0xa41   :  { %11716 = vpow2.f32 %v10763_v0  ;;  %v10764_v18 = vmul.f32 -1.442695, %v9052_v52  ;;  %v11589_v0 = vld [vmem:[%s19054_s7 + $0x38] sm:$0xff]   ;;  %v11590_v52 = vld [vmem:[%s19054_s7 + $0x70] sm:$0xff]   ;;  %v11592_v35 = vld [vmem:[%s19054_s7 + $0x68] sm:$0xff]  }
 0xa42   :  { %10816 = vmatpush3.bf16.msra.mxu0 %v11589_v0  ;;  %v11630_v6 = vld [vmem:[%s19056_s11 + $0x70] sm:$0xff]  }
 0xa43   :  { %11718 = vpow2.f32 %v10764_v18  ;;  %10817 = vmatprep.subr.bf16.mxu0 %v11590_v52  ;;  %v11593_v18 = vld [vmem:[%s19054_s7 + $0x28] sm:$0xff]   ;;  %v11631_v0 = vld [vmem:[%s19056_s11 + $0x30] sm:$0xff]  }
 0xa44   :  { %11720 = vtanh.f32 %v9049_v29  ;;  %v11596_v29 = vld [vmem:[%s19054_s7 + $0x58] sm:$0xff]   ;;  %v11632_v52 = vld [vmem:[%s19056_s11 + $0x68] sm:$0xff]  }
 0xa46   :  { %10818 = vmatpush3.bf16.msra.mxu0 %v11591_v5  ;;  %v11633_v5 = vld [vmem:[%s19056_s11 + $0x28] sm:$0xff]  }
 0xa47   :  { %10819 = vmatprep.subr.bf16.mxu0 %v11592_v35  ;;  %v11634_v35 = vld [vmem:[%s19056_s11 + $0x60] sm:$0xff]  }
 0xa4a   :  { %10820 = vmatpush3.bf16.msra.mxu0 %v11593_v18  ;;  %v11635_v18 = vld [vmem:[%s19056_s11 + $0x20] sm:$0xff]  }
 0xa4b   :  { %10821 = vmatprep.subr.bf16.mxu0 %v11594_v46  ;;  %v11636_v46 = vld [vmem:[%s19056_s11 + $0x58] sm:$0xff]  }
 0xa4e   :  { %v11717_v11 = vpop.eup %11716  ;;  %10822 = vmatpush3.bf16.msra.mxu0 %v11595_v44  ;;  %v11637_v44 = vld [vmem:[%s19056_s11 + $0x18] sm:$0xff]  }
 0xa4f   :  { %v9061_v28 = vadd.f32 1.0, %v11717_v11  ;;  %v11597_v11 = vld [vmem:[%s19054_s7 + $0x18] sm:$0xff]   ;;  %10823 = vmatprep.subr.bf16.mxu0 %v11596_v29  ;;  %v11638_v29 = vld [vmem:[%s19056_s11 + $0x50] sm:$0xff]  }
 0xa50   :  { %v11719_v8 = vpop.eup %11718 }
 0xa51   :  { %11722 = vrcp.f32 %v9061_v28  ;;  %v9062_v41 = vadd.f32 1.0, %v11719_v8  ;;  %v11721_v3 = vpop.eup %11720  ;;  %v11599_v28 = vld [vmem:[%s19054_s7 + $0x10] sm:$0xff]   ;;  %v11600_v8 = vld [vmem:[%s19054_s7 + $0x48] sm:$0xff]  }
 0xa52   :  { %11724 = vtanh.f32 %v9050_v45  ;;  %v11598_v45 = vld [vmem:[%s19054_s7 + $0x50] sm:$0xff]   ;;  %10824 = vmatpush3.bf16.msra.mxu0 %v11597_v11 }
 0xa53   :  { %11726 = vrcp.f32 %v9062_v41  ;;  %10825 = vmatprep.subr.bf16.mxu0 %v11598_v45  ;;  %v11601_v41 = vld [vmem:[%s19054_s7 + $0x8] sm:$0xff]   ;;  %v11639_v11 = vld [vmem:[%s19056_s11 + $0x10] sm:$0xff]  }
 0xa56   :  { %10826 = vmatpush3.bf16.msra.mxu0 %v11599_v28  ;;  %v10765_v28 = vld [vmem:[%s19057_s8] ss:$0 sm:$0xff] }
 0xa57   :  { %10827 = vmatprep.subr.bf16.mxu0 %v11600_v8 }
 0xa5a   :  { %10828 = vmatpush3.bf16.msra.mxu0 %v11601_v41 }
 0xa5e   :  { %v11723_v31 = vpop.eup %11722 }
 0xa5f   :  { %v11725_v33 = vpop.eup %11724  ;;  %v9067_v43 = vmul.f32 %v11723_v31, %v11721_v3  ;;  %v11602_v3 = vld [vmem:[%s19054_s7 + $0x40] sm:$0xff]  }
 0xa60   :  { %v11727_v23 = vpop.eup %11726  ;;  %v11603_v31 = vld [vmem:[%s19054_s7] sm:$0xff]   ;;  %10829 = vmatprep.subr.bf16.mxu0 %v11602_v3 }
 0xa61   :  { %v9068_v40 = vmul.f32 %v11727_v23, %v11725_v33  ;;  %v9069_v48 = vpack.c.bf16 %v9067_v43, %v9067_v43  ;;  %10830 = vmatpush3.bf16.msra.mxu0 %v11603_v31  ;;  %v11606_v33 = vld [vmem:[%s19055_s9 + $0x74] ss:$8 sps:$4 sm:$0xff]  }
 0xa62   :  { %9568 = vmatprep.subr.bf16.mxu0 %v11606_v33 }
 0xa63   :  { %v9070_v9 = vpack.c.bf16 %v9068_v40, %v9068_v40 }
 0xa65   :  { %9103 = vmatprep.mubr.bf16.mxu1 %v9070_v9 }
 0xa66   :  { %9104 = vmatmul.mubr.bf16.vlgmr.msra.gmra.mxu1 %v9069_v48 }
 0xb26   :  { %v9105_v15 = vpop.f32.mrf.mxu1 }
 0xb27   :  { %v9106_v39 = vadd.f32 %v9105_v15, %v19251_v56 }
 0xb28   :  { %v9107_v32 = vpop.f32.mrf.mxu1 }
 0xb29   :  { %v9108_v53 = vadd.f32 %v9107_v32, %v19252_v12 }
 0xb2a   :  { %v9109_v25 = vpop.f32.mrf.mxu1 }
 0xb2b   :  { %v9114_v20 = vcombine.low %v9106_v39, %v9108_v53 }
 0xb2c   :  { %v9110_v24 = vpop.f32.mrf.mxu1 }
 0xb2d   :  { %v9121_v47 = vrot.slane %v9114_v20, %v19253_v17 }
 0xb2f   :  { %v9122_v10 = vcombine.high %v9121_v47, %v9121_v47  ;;  %v9129_v7 = vrot.slane %v9121_v47, %v19253_v17 }
 0xb31   :  { %v9136_v55 = vrot.slane %v9122_v10, %v19253_v17  ;;  %v9139_v22 = vmul.f32 0.4, %v9129_v7 }
 0xb33   :  { %v9140_v42 = vmul.f32 0.4, %v9136_v55  ;;  %v9141_v34 = vadd.f32 %v9139_v22, %v17446_v62  ;;  %v19268_v62 = vld [vmem:[#allocation3_spill] sm:$0xff] }
 0xb35   :  { %v9142_v61 = vadd.f32 %v9140_v42, %v17469_v27  ;;  %v19269_v27 = vld [vmem:[#allocation4_spill] sm:$0xff] }
 0xb37   :  { %v9145_v38 = vcombine.low %v9141_v34, %v9142_v61 }
 0xb39   :  { %v9152_v56 = vrot.slane %v9145_v38, %v19253_v17 }
 0xb3b   :  { %v9153_v12 = vcombine.high %v9152_v56, %v9152_v56  ;;  %v9160_v58 = vrot.slane %v9152_v56, %v19253_v17 }
 0xb3d   :  { %v9167_v14 = vrot.slane %v9153_v12, %v19253_v17  ;;  %v9171_v60 = vsel %vm9170_vm2, %v9160_v58, 0.0 }
 0xb3f   :  { %v9172_v1 = vsel %vm9170_vm2, %v9167_v14, 0.0 }
 0xb40   :  { %v9173_v2 = vadd.f32 %v9172_v1, %v9171_v60  ;;  %v11604_v1 = vld [vmem:[%s19055_s9 + $0x70] ss:$8 sps:$4 sm:$0xff]  }
 0xb42   :  { %9174 = vadd.xlane.f32.xlu0 %v9173_v2  ;;  %v11609_v2 = vld [vmem:[%s19055_s9 + $0x64] ss:$8 sps:$4 sm:$0xff]  }
 0xbcb   :  { %v9175_v59 = vpop.xlane.xlu0 %9174 }
 0xbcc   :  { %v9177_v49 = vmul.f32 0.00390625, %v9175_v59  ;;  %v11607_v59 = vld [vmem:[%s19055_s9 + $0x60] ss:$8 sps:$4 sm:$0xff]  }
 0xbce   :  { %v9182_v63 = vrot.slane %v9177_v49, %v19268_v62  ;;  %v9186_v21 = vrot.slane %v9177_v49, %v19269_v27  ;;  %v19270_v49 = vmov 0  }
 0xbd0   :  { %v9189_v4 = vsub.f32 %v9141_v34, %v9182_v63  ;;  %v9190_v51 = vsub.f32 %v9142_v61, %v9186_v21  ;;  %v11612_v63 = vld [vmem:[%s19055_s9 + $0x54] ss:$8 sps:$4 sm:$0xff]   ;;  %v11610_v21 = vld [vmem:[%s19055_s9 + $0x50] ss:$8 sps:$4 sm:$0xff]  }
 0xbd2   :  { %v9191_v26 = vmul.f32 %v9189_v4, %v9189_v4  ;;  %v9192_v13 = vmul.f32 %v9190_v51, %v9190_v51 }
 0xbd4   :  { %v9195_v36 = vcombine.low %v9191_v26, %v9192_v13  ;;  %v11618_v26 = vld [vmem:[%s19055_s9 + $0x34] ss:$8 sps:$4 sm:$0xff]   ;;  %v11616_v13 = vld [vmem:[%s19055_s9 + $0x30] ss:$8 sps:$4 sm:$0xff]  }
 0xbd6   :  { %v9202_v37 = vrot.slane %v9195_v36, %v19253_v17  ;;  %v11621_v36 = vld [vmem:[%s19055_s9 + $0x24] ss:$8 sps:$4 sm:$0xff]  }
 0xbd8   :  { %v9203_v19 = vcombine.high %v9202_v37, %v9202_v37  ;;  %v9210_v57 = vrot.slane %v9202_v37, %v19253_v17  ;;  %v11619_v37 = vld [vmem:[%s19055_s9 + $0x20] ss:$8 sps:$4 sm:$0xff]  }
 0xbda   :  { %v9217_v30 = vrot.slane %v9203_v19, %v19253_v17  ;;  %v9220_v16 = vsel %vm9170_vm2, %v9210_v57, 0.0  ;;  %v11622_v19 = vld [vmem:[%s19055_s9 + $0x10] ss:$8 sps:$4 sm:$0xff]   ;;  %v11624_v57 = vld [vmem:[%s19055_s9 + $0x14] ss:$8 sps:$4 sm:$0xff]  }
 0xbdc   :  { %v9221_v50 = vsel %vm9170_vm2, %v9217_v30, 0.0  ;;  %v11627_v30 = vld [vmem:[%s19055_s9 + $0x4] ss:$8 sps:$4 sm:$0xff]  }
 0xbdd   :  { %v9222_v54 = vadd.f32 %v9221_v50, %v9220_v16  ;;  %v11625_v16 = vld [vmem:[%s19055_s9] ss:$8 sps:$4 sm:$0xff]   ;;  %v11628_v50 = vld [vmem:[%s19056_s11 + $0x78] sm:$0xff]  }
 0xbde   :  { %10837 = vmatprep.subr.bf16.mxu1 %v11628_v50 }
 0xbdf   :  { %9223 = vadd.xlane.f32.xlu0 %v9222_v54  ;;  %v11629_v54 = vld [vmem:[%s19056_s11 + $0x38] sm:$0xff]  }
 0xbe0   :  { %10838 = vmatpush3.bf16.msra.mxu1 %v11629_v54 }
 0xbe1   :  { %10839 = vmatprep.subr.bf16.mxu1 %v11630_v6 }
 0xbe4   :  { %10840 = vmatpush3.bf16.msra.mxu1 %v11631_v0 }
 0xbe5   :  { %10841 = vmatprep.subr.bf16.mxu1 %v11632_v52 }
 0xbe8   :  { %10842 = vmatpush3.bf16.msra.mxu1 %v11633_v5 }
 0xbe9   :  { %10843 = vmatprep.subr.bf16.mxu1 %v11634_v35 }
 0xbec   :  { %10844 = vmatpush3.bf16.msra.mxu1 %v11635_v18 }
 0xbed   :  { %10845 = vmatprep.subr.bf16.mxu1 %v11636_v46 }
 0xbf0   :  { %10846 = vmatpush3.bf16.msra.mxu1 %v11637_v44 }
 0xbf1   :  { %10847 = vmatprep.subr.bf16.mxu1 %v11638_v29 }
 0xbf4   :  { %10848 = vmatpush3.bf16.msra.mxu1 %v11639_v11 }
 0xc68   :  { %v9224_v43 = vpop.xlane.xlu0 %9223 }
 0xc69   :  { %v9225_v23 = vmul.f32 0.00390625, %v9224_v43 }
 0xc6b   :  { %v9226_v40 = vadd.f32 1e-05, %v9225_v23 }
 0xc6d   :  { %11728 = vrsqrt.f32 %v9226_v40  ;;  %v11640_v40 = vld [vmem:[%s19056_s11 + $0x48] sm:$0xff]  }
 0xc6e   :  { %10849 = vmatprep.subr.bf16.mxu1 %v11640_v40 }
 0xc7a   :  { %v11729_v9 = vpop.eup %11728 }
 0xc7b   :  { %v9232_v48 = vrot.slane %v11729_v9, %v19268_v62  ;;  %v9236_v15 = vrot.slane %v11729_v9, %v19269_v27  ;;  %v11641_v9 = vld [vmem:[%s19056_s11 + $0x8] sm:$0xff]  }
 0xc7c   :  { %10850 = vmatpush3.bf16.msra.mxu1 %v11641_v9 }
 0xc7d   :  { %v9239_v32 = vmul.f32 %v9232_v48, %v9189_v4  ;;  %v9240_v39 = vmul.f32 %v9236_v15, %v9190_v51  ;;  %v11615_v4 = vld [vmem:[%s19055_s9 + $0x44] ss:$8 sps:$4 sm:$0xff]   ;;  %v11613_v51 = vld [vmem:[%s19055_s9 + $0x40] ss:$8 sps:$4 sm:$0xff]  }
 0xc7e   :  { %v11642_v48 = vld [vmem:[%s19056_s11 + $0x40] sm:$0xff]  }
 0xc7f   :  { %v9246_v53 = vrot.slane %v9239_v32, %v19268_v62  ;;  %v9250_v25 = vrot.slane %v9239_v32, %v19269_v27  ;;  %v9254_v20 = vrot.slane %v9240_v39, %v19268_v62  ;;  %v9258_v24 = vrot.slane %v9240_v39, %v19269_v27  ;;  %v11643_v15 = vld [vmem:[%s19056_s11] sm:$0xff]   ;;  %10851 = vmatprep.subr.bf16.mxu1 %v11642_v48 }
 0xc80   :  { %10852 = vmatpush3.bf16.msra.mxu1 %v11643_v15  ;;  %v9476_v32 = vld [vmem:[%s19058_s10] sm:$0x3] }
 0xc81   :  { %v9263_v47 = vpack.c.bf16 %v9246_v53, %v9246_v53  ;;  %v9264_v10 = vpack.c.bf16 %v9250_v25, %v9250_v25  ;;  %v9265_v7 = vpack.c.bf16 %v9254_v20, %v9254_v20  ;;  %v9266_v55 = vpack.c.bf16 %v9258_v24, %v9258_v24 }
 0xc82   :  { %v9481_v39 = vrot.slane %v9476_v32, %v19268_v62  ;;  %v9485_v53 = vrot.slane %v9476_v32, %v19269_v27 }
 0xc83   :  { %v9312_v22 = vunpack.c.l.b16 %v9265_v7  ;;  %v9313_v42 = vunpack.c.l.b16 %v9266_v55  ;;  %v9310_v34 = vunpack.c.l.b16 %v9263_v47  ;;  %v9311_v61 = vunpack.c.l.b16 %v9264_v10 }
 0xc85   :  { %v9314_v38 = vrot.slane %v9312_v22, 7  ;;  %v9316_v56 = vrot.slane %v9313_v42, 7 }
 0xc87   :  { %v9317_v12 = vsel %vm8389_vm1, %v9316_v56, %v9311_v61  ;;  %v9315_v58 = vsel %vm8389_vm1, %v9314_v38, %v9310_v34  ;;  %v10798_v38 = vld [vmem:[%s19059_s12] ss:$0 sm:$0xff] }
 0xc88   :  { %v9319_v14 = vpack.c.b16 %v9317_v12, %v9317_v12  ;;  %v9318_v60 = vpack.c.b16 %v9315_v58, %v9315_v58 }
 0xc8a   :  { %9450 = vmatprep.mubr.bf16.mxu0 %v9319_v14 }
 0xc8b   :  { %9451 = vmatmul.mubr.bf16.vlgmr.msra.gmra.mxu0 %v9318_v60 }
 0xc8c   :  { %9569 = vmatpush1.bf16.msra.mxu0 %v11604_v1  ;;  %9600 = vmatprep.mubr.bf16.mxu0 %v19270_v49 }
 0xc8d   :  { %9570 = vmatprep.subr.bf16.mxu0 %v11609_v2 }
 0xc90   :  { %9571 = vmatpush1.bf16.msra.mxu0 %v11607_v59 }
 0xc91   :  { %9572 = vmatprep.subr.bf16.mxu0 %v11612_v63 }
 0xc94   :  { %9573 = vmatpush1.bf16.msra.mxu0 %v11610_v21 }
 0xc95   :  { %9574 = vmatprep.subr.bf16.mxu0 %v11615_v4 }
 0xc98   :  { %9575 = vmatpush1.bf16.msra.mxu0 %v11613_v51 }
 0xc99   :  { %9576 = vmatprep.subr.bf16.mxu0 %v11618_v26 }
 0xc9c   :  { %9577 = vmatpush1.bf16.msra.mxu0 %v11616_v13 }
 0xc9d   :  { %9578 = vmatprep.subr.bf16.mxu0 %v11621_v36 }
 0xca0   :  { %9579 = vmatpush1.bf16.msra.mxu0 %v11619_v37 }
 0xca1   :  { %9580 = vmatprep.subr.bf16.mxu0 %v11624_v57 }
 0xca4   :  { %9581 = vmatpush1.bf16.msra.mxu0 %v11622_v19 }
 0xca5   :  { %9582 = vmatprep.subr.bf16.mxu0 %v11627_v30 }
 0xca8   :  { %9583 = vmatpush1.bf16.msra.mxu0 %v11625_v16 }
 0xd4b   :  { %v10831_v45 = vpop.f32.mrf.mxu0 }
 0xd4d   :  { %v10832_v8 = vpop.f32.mrf.mxu0 }
 0xd4e   :  { %v10833_v41 = vadd.f32 %v10832_v8, %v10831_v45 }
 0xd4f   :  { %v10834_v3 = vpop.f32.mrf.mxu0 }
 0xd50   :  { %v9453_v31 = vadd.f32 %v10833_v41, %v10765_v28 }
 0xd51   :  { %v10835_v33 = vpop.f32.mrf.mxu0 }
 0xd52   :  { %v9458_v43 = vmax.f32 %v9453_v31, 0.0 }
 0xd54   :  { %v9459_v23 = vpack.c.bf16 %v9458_v43, %v9458_v43 }
 0xd56   :  { %9601 = vmatmul.mubr.bf16.vlgmr.msra.gmra.mxu0 %v9459_v23 }
 0xe16   :  { %v9602_v25 = vpop.f32.mrf.mxu0 }
 0xe17   :  { %v9603_v20 = vadd.f32 %v9602_v25, %v9481_v39 }
 0xe18   :  { %v9604_v24 = vpop.f32.mrf.mxu0 }
 0xe19   :  { %v9605_v47 = vadd.f32 %v9604_v24, %v9485_v53  ;;  %v9609_v10 = vmax.f32 %v9603_v20, 0.0 }
 0xe1a   :  { %v9606_v7 = vpop.f32.mrf.mxu0 }
 0xe1b   :  { %v9610_v55 = vmax.f32 %v9605_v47, 0.0  ;;  %v9611_v34 = vpack.c.bf16 %v9609_v10, %v9609_v10 }
 0xe1c   :  { %v9607_v22 = vpop.f32.mrf.mxu0 }
 0xe1d   :  { %v9612_v42 = vpack.c.bf16 %v9610_v55, %v9610_v55 }
 0xe1f   :  { %9780 = vmatprep.mubr.bf16.mxu1 %v9612_v42 }
 0xe20   :  { %9781 = vmatmul.mubr.bf16.vlgmr.msra.gmra.mxu1 %v9611_v34 }
 0xee0   :  { %v10853_v61 = vpop.f32.mrf.mxu1 }
 0xee2   :  { %v10854_v62 = vpop.f32.mrf.mxu1 }
 0xee3   :  { %v10855_v56 = vadd.f32 %v10854_v62, %v10853_v61 }
 0xee4   :  { %v10856_v27 = vpop.f32.mrf.mxu1 }
 0xee5   :  { %v9783_v12 = vadd.f32 %v10855_v56, %v10798_v38 }
 0xee6   :  { %v10857_v58 = vpop.f32.mrf.mxu1 }
 0xee7   :  { %v9795_v14 = vrot.slane %v9783_v12, %v19253_v17 }
 0xee9   :  { %v9796_v60 = vcombine.high %v9795_v14, %v9795_v14  ;;  %v9803_v1 = vrot.slane %v9795_v14, %v19253_v17 }
 0xeeb   :  { %v9810_v2 = vrot.slane %v9796_v60, %v19253_v17  ;;  %9814 = vst.msk [vmem:[%s19060_s13] sm:$0x1] %vm9813_vm3, %v9803_v1 }
 0xeed   :  { %9815 = vst.msk [vmem:[%s19060_s13 + $0x1] sm:$0x1] %vm9813_vm3, %v9810_v2 }

</bundles_post_ra>
